<compile_context>
chip_gen: v6e
topology: v6e:2x2x1
jax: 0.10.0
libtpu: 0.0.40
codegen_flags: <defaults>
</compile_context>

<pallas_src>
import functools

import jax
import jax.numpy as jnp
from jax import lax
from jax.experimental import pallas as pl
from jax.experimental.pallas import tpu as pltpu

_EPS = 1e-5
_VMEM_LIMIT = 48 * 1024 * 1024  # <= v7x 64 MiB physical VMEM, plenty for v5e/v6e


def _round_up(x, m):
    return (x + m - 1) // m * m


def _cp(*sem):
    return pltpu.CompilerParams(
        dimension_semantics=sem, vmem_limit_bytes=_VMEM_LIMIT
    )


def _pick_tile_m(mp):
    # Prefer large MXU tiles, but keep >= 2 grid steps when possible so the
    # "parallel" M axis can shard across v7x's two TensorCores.
    for t in (256, 128, 64, 32, 16):
        if mp % t == 0 and mp // t >= 2:
            return t
    return mp


def _pick_tile_k(kp):
    # kp is always a multiple of 128 (weights pre-padded at init).
    if kp <= 1024:
        return kp
    best = 128
    t = 256
    while t <= 1024:
        if kp % t == 0:
            best = t
        t += 128
    return best


def _pick_tile_rows(mp):
    for t in (1024, 512, 256, 128, 64, 32, 16):
        if mp % t == 0:
            return t
    return mp


# --------------------------------------------------------------------------
# Pallas kernels
# --------------------------------------------------------------------------
def _mm_stats_kernel(a_ref, b_ref, y_ref, s1_ref, s2_ref, acc_ref):
    """bf16 MXU matmul with f32 accumulation; also emits per-M-tile column
    sum / sum-of-squares so BatchNorm batch statistics come for free."""
    k = pl.program_id(1)

    @pl.when(k == 0)
    def _():
        acc_ref[...] = jnp.zeros_like(acc_ref)

    acc_ref[...] += jnp.dot(
        a_ref[...], b_ref[...], preferred_element_type=jnp.float32
    )

    @pl.when(k == pl.num_programs(1) - 1)
    def _():
        acc = acc_ref[...]
        y_ref[...] = acc.astype(y_ref.dtype)
        s1_ref[...] = jnp.sum(acc, axis=0, keepdims=True)[None]
        s2_ref[...] = jnp.sum(acc * acc, axis=0, keepdims=True)[None]


def _mm_bias_kernel(a_ref, b_ref, bias_ref, o_ref, acc_ref):
    k = pl.program_id(1)

    @pl.when(k == 0)
    def _():
        acc_ref[...] = jnp.zeros_like(acc_ref)

    acc_ref[...] += jnp.dot(
        a_ref[...], b_ref[...], preferred_element_type=jnp.float32
    )

    @pl.when(k == pl.num_programs(1) - 1)
    def _():
        o_ref[...] = (acc_ref[...] + bias_ref[...]).astype(o_ref.dtype)


def _affine_kernel(y_ref, s_ref, t_ref, o_ref, *, relu):
    # y * scale + shift (per-channel), elementwise math in f32 (v5e-friendly).
    v = y_ref[...].astype(jnp.float32) * s_ref[...] + t_ref[...]
    if relu:
        v = jnp.maximum(v, 0.0)
    o_ref[...] = v.astype(o_ref.dtype)


def _affine_add_relu_kernel(y_ref, r_ref, s_ref, t_ref, o_ref):
    # BasicBlock tail: relu(bn2(conv2(x)) + identity)
    v = (
        y_ref[...].astype(jnp.float32) * s_ref[...]
        + t_ref[...]
        + r_ref[...].astype(jnp.float32)
    )
    o_ref[...] = jnp.maximum(v, 0.0).astype(o_ref.dtype)


def _max_reduce_kernel(x_ref, o_ref):
    # x: (9, rows, C) -> max over the 9 pooling windows
    o_ref[...] = jnp.max(x_ref[...], axis=0)


def _mean_kernel(x_ref, o_ref):
    # x: (1, HW, C) -> mean over spatial positions (adaptive avg-pool to 1x1)
    o_ref[...] = jnp.mean(x_ref[...].astype(jnp.float32), axis=1, keepdims=True)


# --------------------------------------------------------------------------
# Pallas wrappers
# --------------------------------------------------------------------------
def matmul_stats(a, w):
    """a:(M,K) any float, w:(Kp,Np) bf16 pre-padded.  Returns padded bf16
    product (Mp,Np) plus per-tile column sum/sumsq (f32) and the true M."""
    M, K = a.shape
    Kp, Np = w.shape
    Mp = _round_up(M, 16)          # bf16 sublane packing
    tm = _pick_tile_m(Mp)
    tk = _pick_tile_k(Kp)
    nm, nk = Mp // tm, Kp // tk
    a = jnp.pad(a.astype(jnp.bfloat16), ((0, Mp - M), (0, Kp - K)))
    y, s1, s2 = pl.pallas_call(
        _mm_stats_kernel,
        out_shape=(
            jax.ShapeDtypeStruct((Mp, Np), jnp.bfloat16),
            jax.ShapeDtypeStruct((nm, 1, Np), jnp.float32),
            jax.ShapeDtypeStruct((nm, 1, Np), jnp.float32),
        ),
        grid=(nm, nk),
        in_specs=[
            pl.BlockSpec((tm, tk), lambda i, k: (i, k)),
            pl.BlockSpec((tk, Np), lambda i, k: (k, 0)),
        ],
        out_specs=(
            pl.BlockSpec((tm, Np), lambda i, k: (i, 0)),
            pl.BlockSpec((1, 1, Np), lambda i, k: (i, 0, 0)),
            pl.BlockSpec((1, 1, Np), lambda i, k: (i, 0, 0)),
        ),
        scratch_shapes=[pltpu.VMEM((tm, Np), jnp.float32)],
        compiler_params=_cp("parallel", "arbitrary"),
    )(a, w)
    return y, s1, s2, M


def matmul_bias(a, w, bias):
    """a:(M,K), w:(Kp,Np) bf16 pre-padded, bias:(1,Np) f32 -> (M,Np) f32."""
    M, K = a.shape
    Kp, Np = w.shape
    Mp = _round_up(M, 16)
    tm = _pick_tile_m(Mp)
    tk = _pick_tile_k(Kp)
    nm, nk = Mp // tm, Kp // tk
    a = jnp.pad(a.astype(jnp.bfloat16), ((0, Mp - M), (0, Kp - K)))
    out = pl.pallas_call(
        _mm_bias_kernel,
        out_shape=jax.ShapeDtypeStruct((Mp, Np), jnp.float32),
        grid=(nm, nk),
        in_specs=[
            pl.BlockSpec((tm, tk), lambda i, k: (i, k)),
            pl.BlockSpec((tk, Np), lambda i, k: (k, 0)),
            pl.BlockSpec((1, Np), lambda i, k: (0, 0)),
        ],
        out_specs=pl.BlockSpec((tm, Np), lambda i, k: (i, 0)),
        scratch_shapes=[pltpu.VMEM((tm, Np), jnp.float32)],
        compiler_params=_cp("parallel", "arbitrary"),
    )(a, w, bias)
    return out[:M]


def bn_act(y_pad, s1, s2, rows, gamma_p, beta_p, *, relu, residual=None):
    """Fused BatchNorm (batch stats) + affine + optional ReLU / residual add.
    Per-channel scale/shift are parameter-sized and derived in plain JAX from
    the matmul's fused partial sums; the activation-sized work is one tiled
    Pallas pass over the (padded) bf16 matmul output."""
    mean = jnp.sum(s1, axis=(0, 1)) / rows
    var = jnp.maximum(jnp.sum(s2, axis=(0, 1)) / rows - mean * mean, 0.0)
    inv = lax.rsqrt(var + _EPS)
    scale = (gamma_p * inv).reshape(1, -1).astype(jnp.float32)
    shift = (beta_p - mean * gamma_p * inv).reshape(1, -1).astype(jnp.float32)

    Mp, Np = y_pad.shape
    tr = _pick_tile_rows(Mp)
    grid = (Mp // tr,)
    row_spec = pl.BlockSpec((tr, Np), lambda i: (i, 0))
    vec_spec = pl.BlockSpec((1, Np), lambda i: (0, 0))

    if residual is None:
        return pl.pallas_call(
            functools.partial(_affine_kernel, relu=relu),
            out_shape=jax.ShapeDtypeStruct((Mp, Np), jnp.bfloat16),
            grid=grid,
            in_specs=[row_spec, vec_spec, vec_spec],
            out_specs=row_spec,
            compiler_params=_cp("parallel"),
        )(y_pad, scale, shift)

    assert residual.shape == y_pad.shape and relu
    return pl.pallas_call(
        _affine_add_relu_kernel,
        out_shape=jax.ShapeDtypeStruct((Mp, Np), jnp.bfloat16),
        grid=grid,
        in_specs=[row_spec, row_spec, vec_spec, vec_spec],
        out_specs=row_spec,
        compiler_params=_cp("parallel"),
    )(y_pad, residual, scale, shift)


# --------------------------------------------------------------------------
# Convolution / pooling
# --------------------------------------------------------------------------
def _im2col(x, kh, kw, stride, pad):
    # TODO(synk): patch extraction is still XLA glue (bf16 to halve the bytes);
    # a halo-DMA direct-conv Pallas kernel would remove the kh*kw-fold expansion.
    N, H, W, C = x.shape
    Ho = (H + 2 * pad - kh) // stride + 1
    Wo = (W + 2 * pad - kw) // stride + 1
    if pad:
        x = jnp.pad(x, ((0, 0), (pad, pad), (pad, pad), (0, 0)))
    patches = [
        x[:, i : i + stride * Ho : stride, j : j + stride * Wo : stride, :]
        for i in range(kh)
        for j in range(kw)
    ]
    cols = jnp.stack(patches, axis=3)  # (N, Ho, Wo, kh*kw, C)
    return cols.reshape(N * Ho * Wo, kh * kw * C), Ho, Wo


def maxpool2d_3x3_s2(x):
    # TODO(synk): window extraction is XLA glue; the Pallas kernel does the
    # tiled 9-way max reduction (gridded so it never exceeds VMEM).
    N, H, W, C = x.shape
    Ho = (H + 2 - 3) // 2 + 1
    Wo = (W + 2 - 3) // 2 + 1
    xp = jnp.pad(x, ((0, 0), (1, 1), (1, 1), (0, 0)), constant_values=-jnp.inf)
    wins = [
        xp[:, i : i + 2 * Ho : 2, j : j + 2 * Wo : 2, :]
        for i in range(3)
        for j in range(3)
    ]
    stack = jnp.stack(wins, axis=0).reshape(9, N * Ho * Wo, C)
    M = N * Ho * Wo
    Mp = _round_up(M, 16)
    stack = jnp.pad(stack, ((0, 0), (0, Mp - M), (0, 0)))
    tr = _pick_tile_rows(Mp)
    out = pl.pallas_call(
        _max_reduce_kernel,
        out_shape=jax.ShapeDtypeStruct((Mp, C), jnp.bfloat16),
        grid=(Mp // tr,),
        in_specs=[pl.BlockSpec((9, tr, C), lambda i: (0, i, 0))],
        out_specs=pl.BlockSpec((tr, C), lambda i: (i, 0)),
        compiler_params=_cp("parallel"),
    )(stack)
    return out[:M].reshape(N, Ho, Wo, C)


def global_avgpool(x):
    # (N, H, W, C) bf16 -> (N, C) f32, no transpose: reduce axis 1 in-kernel.
    N, H, W, C = x.shape
    xr = x.reshape(N, H * W, C)
    out = pl.pallas_call(
        _mean_kernel,
        out_shape=jax.ShapeDtypeStruct((N, 1, C), jnp.float32),
        grid=(N,),
        in_specs=[pl.BlockSpec((1, H * W, C), lambda i: (i, 0, 0))],
        out_specs=pl.BlockSpec((1, 1, C), lambda i: (i, 0, 0)),
        compiler_params=_cp("parallel"),
    )(xr)
    return out.reshape(N, C)


# --------------------------------------------------------------------------
# ResNet18 + projection head
# --------------------------------------------------------------------------
# (cin, cout, stride) for the 8 BasicBlocks of resnet18
BLOCK_CFG = [
    (64, 64, 1), (64, 64, 1),
    (64, 128, 2), (128, 128, 1),
    (128, 256, 2), (256, 256, 1),
    (256, 512, 2), (512, 512, 1),
]


def init_params(key):
    """PyTorch-layout parameters (what a resnet18 state_dict would hold)."""
    kit = iter(jax.random.split(key, 64))

    def w(shape, scale=0.05):
        return scale * jax.random.normal(next(kit), shape, jnp.float32)

    def bn(c):
        return {"g": jnp.ones((c,), jnp.float32), "b": jnp.zeros((c,), jnp.float32)}

    params = {"conv1_w": w((64, 3, 7, 7)), "bn1": bn(64), "layers": []}
    for cin, cout, stride in BLOCK_CFG:
        blk = {
            "conv1_w": w((cout, cin, 3, 3)), "bn1": bn(cout),
            "conv2_w": w((cout, cout, 3, 3)), "bn2": bn(cout),
        }
        if stride != 1 or cin != cout:
            blk["convd_w"] = w((cout, cin, 1, 1))
            blk["bnd"] = bn(cout)
        params["layers"].append(blk)
    params["proj"] = {
        "fc1_w": w((512, 512)), "fc1_b": w((512,)),
        "bn": bn(512),
        "fc2_w": w((128, 512)), "fc2_b": w((128,)),
    }
    return params


def _prep_conv_w(w):
    cout, cin, kh, kw = w.shape
    k = kh * kw * cin
    wm = jnp.transpose(w, (2, 3, 1, 0)).reshape(k, cout)
    return jnp.pad(
        wm, ((0, _round_up(k, 128) - k), (0, _round_up(cout, 128) - cout))
    ).astype(jnp.bfloat16)


def _prep_fc_w(w):
    out_f, in_f = w.shape
    return jnp.pad(
        w.T, ((0, _round_up(in_f, 128) - in_f), (0, _round_up(out_f, 128) - out_f))
    ).astype(jnp.bfloat16)


def _prep_bn(bn, cout):
    npad = _round_up(cout, 128) - cout
    return jnp.pad(bn["g"], (0, npad)), jnp.pad(bn["b"], (0, npad))


def prepare_params(p):
    """One-time weight re-layout: conv weights -> (kh*kw*cin, cout) bf16
    matrices pre-padded to MXU-friendly multiples of 128; FC pre-transposed."""
    out = {"w1": _prep_conv_w(p["conv1_w"])}
    out["g1"], out["b1"] = _prep_bn(p["bn1"], 64)
    out["blocks"] = []
    for blk, (cin, cout, stride) in zip(p["layers"], BLOCK_CFG):
        d = {"w1": _prep_conv_w(blk["conv1_w"]), "w2": _prep_conv_w(blk["conv2_w"])}
        d["g1"], d["b1"] = _prep_bn(blk["bn1"], cout)
        d["g2"], d["b2"] = _prep_bn(blk["bn2"], cout)
        if "convd_w" in blk:
            d["wd"] = _prep_conv_w(blk["convd_w"])
            d["gd"], d["bd"] = _prep_bn(blk["bnd"], cout)
        out["blocks"].append(d)
    pr = p["proj"]
    out["fc1_w"] = _prep_fc_w(pr["fc1_w"])
    # fc1 bias is immediately followed by BatchNorm1d, so it cancels exactly
    # in the normalized output and is dropped.
    out["pg"], out["pb"] = _prep_bn(pr["bn"], 512)
    out["fc2_w"] = _prep_fc_w(pr["fc2_w"])
    b2 = pr["fc2_b"]
    out["fc2_b"] = (
        jnp.pad(b2, (0, _round_up(b2.shape[0], 128) - b2.shape[0]))
        .reshape(1, -1)
        .astype(jnp.float32)
    )
    return out


def basic_block(x, blk, stride, cout):
    N, H, W, C = x.shape
    # conv3x3 (stride) -> BN -> ReLU   (BN stats fused into the matmul)
    cols, Ho, Wo = _im2col(x, 3, 3, stride, 1)
    y, s1, s2, M = matmul_stats(cols, blk["w1"])
    y = bn_act(y, s1, s2, M, blk["g1"], blk["b1"], relu=True)
    y = y[:M, :cout].reshape(N, Ho, Wo, cout)

    # conv3x3 (stride 1)
    cols2, _, _ = _im2col(y, 3, 3, 1, 1)
    z, t1, t2, M2 = matmul_stats(cols2, blk["w2"])

    # residual branch
    if "wd" in blk:
        xd = x[:, ::stride, ::stride, :].reshape(-1, C)  # 1x1 conv, stride s
        r, d1, d2, Md = matmul_stats(xd, blk["wd"])
        r = bn_act(r, d1, d2, Md, blk["gd"], blk["bd"], relu=False)
    else:
        r = x.reshape(N * H * W, C).astype(jnp.bfloat16)
        r = jnp.pad(r, ((0, z.shape[0] - r.shape[0]), (0, z.shape[1] - C)))

    # BN2 + residual add + ReLU fused into one tiled pass
    out = bn_act(z, t1, t2, M2, blk["g2"], blk["b2"], relu=True, residual=r)
    return out[:M2, :cout].reshape(N, Ho, Wo, cout)


def resnet18_forward(params, x_nchw):
    # NCHW (PyTorch) -> NHWC (channels on the lane dim), bf16 activations.
    x = jnp.transpose(x_nchw, (0, 2, 3, 1)).astype(jnp.bfloat16)
    N = x.shape[0]

    # stem: conv7x7/2 -> BN -> ReLU -> maxpool 3x3/2
    cols, Ho, Wo = _im2col(x, 7, 7, 2, 3)
    y, s1, s2, M = matmul_stats(cols, params["w1"])
    y = bn_act(y, s1, s2, M, params["g1"], params["b1"], relu=True)
    x = y[:M, :64].reshape(N, Ho, Wo, 64)
    x = maxpool2d_3x3_s2(x)

    # residual stages
    for blk, (cin, cout, stride) in zip(params["blocks"], BLOCK_CFG):
        x = basic_block(x, blk, stride, cout)

    # adaptive avg-pool (1,1) + flatten  ==  h.view(N, 512)
    h = global_avgpool(x)  # (N, 512) f32

    # projection MLP: Linear(512,512) -> BatchNorm1d -> ReLU -> Linear(512,128)
    z, s1, s2, M = matmul_stats(h, params["fc1_w"])
    z = bn_act(z, s1, s2, M, params["pg"], params["pb"], relu=True)
    out = matmul_bias(z[:M], params["fc2_w"], params["fc2_b"])
    return out[:, :128]


if __name__ == "__main__":
    key = jax.random.PRNGKey(0)
    pkey, xkey = jax.random.split(key)
    params = prepare_params(init_params(pkey))  # one-time weight re-layout
    # Small but shape-consistent input: 32x32 RGB keeps every stage >= 1x1.
    x = jax.random.normal(xkey, (2, 3, 32, 32), jnp.float32)  # NCHW like PyTorch

    fwd = jax.jit(resnet18_forward)
    out = jax.block_until_ready(fwd(params, x))

    assert out.shape == (2, 128), out.shape
    assert bool(jnp.all(jnp.isfinite(out)))
    print("KERNEL_OK")
</pallas_src>

<mosaic_0001>
module attributes {stable_mosaic.version = 11 : i64} {
  func.func @_mm_stats_kernel(%arg0: i32, %arg1: i32, %arg2: memref<256x256xbf16, #tpu.memory_space<vmem>>, %arg3: memref<256x128xbf16, #tpu.memory_space<vmem>>, %arg4: memref<256x128xbf16, #tpu.memory_space<vmem>>, %arg5: memref<1x1x128xf32, #tpu.memory_space<vmem>>, %arg6: memref<1x1x128xf32, #tpu.memory_space<vmem>>, %arg7: memref<256x128xf32, #tpu.memory_space<vmem>>) attributes {dimension_semantics = [#tpu.dimension_semantics<parallel>, #tpu.dimension_semantics<arbitrary>], iteration_bounds = array<i64: 2, 1>, scalar_prefetch = 0 : i64, scratch_operands = 1 : i64, tpu.core_type = #tpu.core_type<tc>, window_params = [{transform_indices = @transform_0, window_bounds = array<i64: 256, 256>}, {transform_indices = @transform_1, window_bounds = array<i64: 256, 128>}, {transform_indices = @transform_2, window_bounds = array<i64: 256, 128>}, {transform_indices = @transform_3, window_bounds = array<i64: 1, 1, 128>}, {transform_indices = @transform_4, window_bounds = array<i64: 1, 1, 128>}]} {
    %c0_i32 = arith.constant 0 : i32
    %0 = arith.cmpi eq, %arg1, %c0_i32 : i32
    %1 = arith.extui %0 : i1 to i32
    %c0_i32_0 = arith.constant 0 : i32
    %2 = arith.cmpi ne, %1, %c0_i32_0 : i32
    scf.if %2 {
      %cst_10 = arith.constant 0.000000e+00 : f32
      %12 = vector.broadcast %cst_10 : f32 to vector<256x128xf32>
      %c0_11 = arith.constant 0 : index
      %c0_12 = arith.constant 0 : index
      %13 = vector.load %arg7[%c0_11, %c0_12] : memref<256x128xf32, #tpu.memory_space<vmem>>, vector<256x128xf32>
      tpu.vector_store %arg7[%c0_11, %c0_12], %12 {strides = array<i32>} : memref<256x128xf32, #tpu.memory_space<vmem>>, vector<256x128xf32>,
    } else {
    }
    %c0 = arith.constant 0 : index
    %c0_1 = arith.constant 0 : index
    %3 = vector.load %arg7[%c0, %c0_1] : memref<256x128xf32, #tpu.memory_space<vmem>>, vector<256x128xf32>
    %c0_2 = arith.constant 0 : index
    %c0_3 = arith.constant 0 : index
    %4 = vector.load %arg2[%c0_2, %c0_3] : memref<256x256xbf16, #tpu.memory_space<vmem>>, vector<256x256xbf16>
    %c0_4 = arith.constant 0 : index
    %c0_5 = arith.constant 0 : index
    %5 = vector.load %arg3[%c0_4, %c0_5] : memref<256x128xbf16, #tpu.memory_space<vmem>>, vector<256x128xbf16>
    %cst = arith.constant dense<0.000000e+00> : vector<256x128xf32>
    %6 = tpu.matmul %4, %5, %cst {dimension_numbers = #tpu.dot_dimension_numbers<[1], [0], [0], [1], [0, 0, 1, 1], [], []>} : vector<256x256xbf16>, vector<256x128xbf16>, vector<256x128xf32> -> vector<256x128xf32>
    %7 = arith.addf %3, %6 : vector<256x128xf32>
    %c0_6 = arith.constant 0 : index
    %c0_7 = arith.constant 0 : index
    %8 = vector.load %arg7[%c0_6, %c0_7] : memref<256x128xf32, #tpu.memory_space<vmem>>, vector<256x128xf32>
    tpu.vector_store %arg7[%c0_6, %c0_7], %7 {strides = array<i32>} : memref<256x128xf32, #tpu.memory_space<vmem>>, vector<256x128xf32>,
    %c0_i32_8 = arith.constant 0 : i32
    %9 = arith.cmpi eq, %arg1, %c0_i32_8 : i32
    %10 = arith.extui %9 : i1 to i32
    %c0_i32_9 = arith.constant 0 : i32
    %11 = arith.cmpi ne, %10, %c0_i32_9 : i32
    scf.if %11 {
      %c0_10 = arith.constant 0 : index
      %c0_11 = arith.constant 0 : index
      %12 = vector.load %arg7[%c0_10, %c0_11] : memref<256x128xf32, #tpu.memory_space<vmem>>, vector<256x128xf32>
      %13 = arith.truncf %12 : vector<256x128xf32> to vector<256x128xbf16>
      %c0_12 = arith.constant 0 : index
      %c0_13 = arith.constant 0 : index
      %14 = vector.load %arg4[%c0_12, %c0_13] : memref<256x128xbf16, #tpu.memory_space<vmem>>, vector<256x128xbf16>
      tpu.vector_store %arg4[%c0_12, %c0_13], %13 {strides = array<i32>} : memref<256x128xbf16, #tpu.memory_space<vmem>>, vector<256x128xbf16>,
      %cst_14 = arith.constant dense<0.000000e+00> : vector<128xf32>
      %15 = vector.multi_reduction <add>, %12, %cst_14 [0] : vector<256x128xf32> to vector<128xf32>
      %16 = vector.shape_cast %15 : vector<128xf32> to vector<1x128xf32>
      %17 = vector.shape_cast %16 : vector<1x128xf32> to vector<1x1x128xf32>
      %c0_15 = arith.constant 0 : index
      %c0_16 = arith.constant 0 : index
      %c0_17 = arith.constant 0 : index
      %18 = vector.load %arg5[%c0_15, %c0_16, %c0_17] : memref<1x1x128xf32, #tpu.memory_space<vmem>>, vector<1x1x128xf32>
      tpu.vector_store %arg5[%c0_15, %c0_16, %c0_17], %17 {strides = array<i32>} : memref<1x1x128xf32, #tpu.memory_space<vmem>>, vector<1x1x128xf32>,
      %19 = arith.mulf %12, %12 : vector<256x128xf32>
      %cst_18 = arith.constant dense<0.000000e+00> : vector<128xf32>
      %20 = vector.multi_reduction <add>, %19, %cst_18 [0] : vector<256x128xf32> to vector<128xf32>
      %21 = vector.shape_cast %20 : vector<128xf32> to vector<1x128xf32>
      %22 = vector.shape_cast %21 : vector<1x128xf32> to vector<1x1x128xf32>
      %c0_19 = arith.constant 0 : index
      %c0_20 = arith.constant 0 : index
      %c0_21 = arith.constant 0 : index
      %23 = vector.load %arg6[%c0_19, %c0_20, %c0_21] : memref<1x1x128xf32, #tpu.memory_space<vmem>>, vector<1x1x128xf32>
      tpu.vector_store %arg6[%c0_19, %c0_20, %c0_21], %22 {strides = array<i32>} : memref<1x1x128xf32, #tpu.memory_space<vmem>>, vector<1x1x128xf32>,
    } else {
    }
    return
  }
  func.func @transform_0(%arg0: i32, %arg1: i32) -> (i32, i32) {
    %c0_i32 = arith.constant 0 : i32
    return %arg0, %arg1 : i32, i32
  }
  func.func @transform_1(%arg0: i32, %arg1: i32) -> (i32, i32) {
    %c0_i32 = arith.constant 0 : i32
    %c0_i32_0 = arith.constant 0 : i32
    return %arg1, %c0_i32 : i32, i32
  }
  func.func @transform_2(%arg0: i32, %arg1: i32) -> (i32, i32) {
    %c0_i32 = arith.constant 0 : i32
    %c0_i32_0 = arith.constant 0 : i32
    return %arg0, %c0_i32 : i32, i32
  }
  func.func @transform_3(%arg0: i32, %arg1: i32) -> (i32, i32, i32) {
    %c0_i32 = arith.constant 0 : i32
    %c0_i32_0 = arith.constant 0 : i32
    %c0_i32_1 = arith.constant 0 : i32
    return %arg0, %c0_i32, %c0_i32_0 : i32, i32, i32
  }
  func.func @transform_4(%arg0: i32, %arg1: i32) -> (i32, i32, i32) {
    %c0_i32 = arith.constant 0 : i32
    %c0_i32_0 = arith.constant 0 : i32
    %c0_i32_1 = arith.constant 0 : i32
    return %arg0, %c0_i32, %c0_i32_0 : i32, i32, i32
  }
}

module attributes {stable_mosaic.version = 11 : i64} {
  func.func @_affine_kernel(%arg0: i32, %arg1: memref<512x128xbf16, #tpu.memory_space<vmem>>, %arg2: memref<1x128xf32, #tpu.memory_space<vmem>>, %arg3: memref<1x128xf32, #tpu.memory_space<vmem>>, %arg4: memref<512x128xbf16, #tpu.memory_space<vmem>>) attributes {dimension_semantics = [#tpu.dimension_semantics<parallel>], iteration_bounds = array<i64: 1>, scalar_prefetch = 0 : i64, scratch_operands = 0 : i64, tpu.core_type = #tpu.core_type<tc>, window_params = [{transform_indices = @transform_0, window_bounds = array<i64: 512, 128>}, {pipeline_mode = #tpu.pipeline_mode<synchronous>, transform_indices = @transform_1, window_bounds = array<i64: 1, 128>}, {pipeline_mode = #tpu.pipeline_mode<synchronous>, transform_indices = @transform_2, window_bounds = array<i64: 1, 128>}, {transform_indices = @transform_3, window_bounds = array<i64: 512, 128>}]} {
    %c0 = arith.constant 0 : index
    %c0_0 = arith.constant 0 : index
    %0 = vector.load %arg1[%c0, %c0_0] : memref<512x128xbf16, #tpu.memory_space<vmem>>, vector<512x128xbf16>
    %1 = arith.extf %0 : vector<512x128xbf16> to vector<512x128xf32>
    %c0_1 = arith.constant 0 : index
    %c0_2 = arith.constant 0 : index
    %2 = vector.load %arg2[%c0_1, %c0_2] : memref<1x128xf32, #tpu.memory_space<vmem>>, vector<1x128xf32>
    %3 = vector.broadcast %2 : vector<1x128xf32> to vector<512x128xf32>
    %4 = arith.mulf %1, %3 : vector<512x128xf32>
    %c0_3 = arith.constant 0 : index
    %c0_4 = arith.constant 0 : index
    %5 = vector.load %arg3[%c0_3, %c0_4] : memref<1x128xf32, #tpu.memory_space<vmem>>, vector<1x128xf32>
    %6 = vector.broadcast %5 : vector<1x128xf32> to vector<512x128xf32>
    %7 = arith.addf %4, %6 : vector<512x128xf32>
    %cst = arith.constant 0.000000e+00 : f32
    %8 = vector.broadcast %cst : f32 to vector<512x128xf32>
    %9 = arith.maximumf %7, %8 : vector<512x128xf32>
    %10 = arith.truncf %9 : vector<512x128xf32> to vector<512x128xbf16>
    %c0_5 = arith.constant 0 : index
    %c0_6 = arith.constant 0 : index
    %11 = vector.load %arg4[%c0_5, %c0_6] : memref<512x128xbf16, #tpu.memory_space<vmem>>, vector<512x128xbf16>
    tpu.vector_store %arg4[%c0_5, %c0_6], %10 {strides = array<i32>} : memref<512x128xbf16, #tpu.memory_space<vmem>>, vector<512x128xbf16>,
    return
  }
  func.func @transform_0(%arg0: i32) -> (i32, i32) {
    %c0_i32 = arith.constant 0 : i32
    %c0_i32_0 = arith.constant 0 : i32
    return %arg0, %c0_i32 : i32, i32
  }
  func.func @transform_1(%arg0: i32) -> (i32, i32) {
    %c0_i32 = arith.constant 0 : i32
    %c0_i32_0 = arith.constant 0 : i32
    %c0_i32_1 = arith.constant 0 : i32
    return %c0_i32, %c0_i32_0 : i32, i32
  }
  func.func @transform_2(%arg0: i32) -> (i32, i32) {
    %c0_i32 = arith.constant 0 : i32
    %c0_i32_0 = arith.constant 0 : i32
    %c0_i32_1 = arith.constant 0 : i32
    return %c0_i32, %c0_i32_0 : i32, i32
  }
  func.func @transform_3(%arg0: i32) -> (i32, i32) {
    %c0_i32 = arith.constant 0 : i32
    %c0_i32_0 = arith.constant 0 : i32
    return %arg0, %c0_i32 : i32, i32
  }
}

module attributes {stable_mosaic.version = 11 : i64} {
  func.func @_max_reduce_kernel(%arg0: i32, %arg1: memref<9x128x64xbf16, #tpu.memory_space<vmem>>, %arg2: memref<128x64xbf16, #tpu.memory_space<vmem>>) attributes {dimension_semantics = [#tpu.dimension_semantics<parallel>], iteration_bounds = array<i64: 1>, scalar_prefetch = 0 : i64, scratch_operands = 0 : i64, tpu.core_type = #tpu.core_type<tc>, window_params = [{transform_indices = @transform_0, window_bounds = array<i64: 9, 128, 64>}, {transform_indices = @transform_1, window_bounds = array<i64: 128, 64>}]} {
    %c0 = arith.constant 0 : index
    %c0_0 = arith.constant 0 : index
    %c0_1 = arith.constant 0 : index
    %0 = vector.load %arg1[%c0, %c0_0, %c0_1] : memref<9x128x64xbf16, #tpu.memory_space<vmem>>, vector<9x128x64xbf16>
    %cst = arith.constant dense<0xFF80> : vector<128x64xbf16>
    %1 = vector.multi_reduction <maximumf>, %0, %cst [0] : vector<9x128x64xbf16> to vector<128x64xbf16>
    %c0_2 = arith.constant 0 : index
    %c0_3 = arith.constant 0 : index
    %2 = vector.load %arg2[%c0_2, %c0_3] : memref<128x64xbf16, #tpu.memory_space<vmem>>, vector<128x64xbf16>
    tpu.vector_store %arg2[%c0_2, %c0_3], %1 {strides = array<i32>} : memref<128x64xbf16, #tpu.memory_space<vmem>>, vector<128x64xbf16>,
    return
  }
  func.func @transform_0(%arg0: i32) -> (i32, i32, i32) {
    %c0_i32 = arith.constant 0 : i32
    %c0_i32_0 = arith.constant 0 : i32
    %c0_i32_1 = arith.constant 0 : i32
    return %c0_i32, %arg0, %c0_i32_0 : i32, i32, i32
  }
  func.func @transform_1(%arg0: i32) -> (i32, i32) {
    %c0_i32 = arith.constant 0 : i32
    %c0_i32_0 = arith.constant 0 : i32
    return %arg0, %c0_i32 : i32, i32
  }
}

module attributes {stable_mosaic.version = 11 : i64} {
  func.func @_mm_stats_kernel(%arg0: i32, %arg1: i32, %arg2: memref<64x640xbf16, #tpu.memory_space<vmem>>, %arg3: memref<640x128xbf16, #tpu.memory_space<vmem>>, %arg4: memref<64x128xbf16, #tpu.memory_space<vmem>>, %arg5: memref<1x1x128xf32, #tpu.memory_space<vmem>>, %arg6: memref<1x1x128xf32, #tpu.memory_space<vmem>>, %arg7: memref<64x128xf32, #tpu.memory_space<vmem>>) attributes {dimension_semantics = [#tpu.dimension_semantics<parallel>, #tpu.dimension_semantics<arbitrary>], iteration_bounds = array<i64: 2, 1>, scalar_prefetch = 0 : i64, scratch_operands = 1 : i64, tpu.core_type = #tpu.core_type<tc>, window_params = [{transform_indices = @transform_0, window_bounds = array<i64: 64, 640>}, {transform_indices = @transform_1, window_bounds = array<i64: 640, 128>}, {transform_indices = @transform_2, window_bounds = array<i64: 64, 128>}, {transform_indices = @transform_3, window_bounds = array<i64: 1, 1, 128>}, {transform_indices = @transform_4, window_bounds = array<i64: 1, 1, 128>}]} {
    %c0_i32 = arith.constant 0 : i32
    %0 = arith.cmpi eq, %arg1, %c0_i32 : i32
    %1 = arith.extui %0 : i1 to i32
    %c0_i32_0 = arith.constant 0 : i32
    %2 = arith.cmpi ne, %1, %c0_i32_0 : i32
    scf.if %2 {
      %cst_10 = arith.constant 0.000000e+00 : f32
      %12 = vector.broadcast %cst_10 : f32 to vector<64x128xf32>
      %c0_11 = arith.constant 0 : index
      %c0_12 = arith.constant 0 : index
      %13 = vector.load %arg7[%c0_11, %c0_12] : memref<64x128xf32, #tpu.memory_space<vmem>>, vector<64x128xf32>
      tpu.vector_store %arg7[%c0_11, %c0_12], %12 {strides = array<i32>} : memref<64x128xf32, #tpu.memory_space<vmem>>, vector<64x128xf32>,
    } else {
    }
    %c0 = arith.constant 0 : index
    %c0_1 = arith.constant 0 : index
    %3 = vector.load %arg7[%c0, %c0_1] : memref<64x128xf32, #tpu.memory_space<vmem>>, vector<64x128xf32>
    %c0_2 = arith.constant 0 : index
    %c0_3 = arith.constant 0 : index
    %4 = vector.load %arg2[%c0_2, %c0_3] : memref<64x640xbf16, #tpu.memory_space<vmem>>, vector<64x640xbf16>
    %c0_4 = arith.constant 0 : index
    %c0_5 = arith.constant 0 : index
    %5 = vector.load %arg3[%c0_4, %c0_5] : memref<640x128xbf16, #tpu.memory_space<vmem>>, vector<640x128xbf16>
    %cst = arith.constant dense<0.000000e+00> : vector<64x128xf32>
    %6 = tpu.matmul %4, %5, %cst {dimension_numbers = #tpu.dot_dimension_numbers<[1], [0], [0], [1], [0, 0, 1, 1], [], []>} : vector<64x640xbf16>, vector<640x128xbf16>, vector<64x128xf32> -> vector<64x128xf32>
    %7 = arith.addf %3, %6 : vector<64x128xf32>
    %c0_6 = arith.constant 0 : index
    %c0_7 = arith.constant 0 : index
    %8 = vector.load %arg7[%c0_6, %c0_7] : memref<64x128xf32, #tpu.memory_space<vmem>>, vector<64x128xf32>
    tpu.vector_store %arg7[%c0_6, %c0_7], %7 {strides = array<i32>} : memref<64x128xf32, #tpu.memory_space<vmem>>, vector<64x128xf32>,
    %c0_i32_8 = arith.constant 0 : i32
    %9 = arith.cmpi eq, %arg1, %c0_i32_8 : i32
    %10 = arith.extui %9 : i1 to i32
    %c0_i32_9 = arith.constant 0 : i32
    %11 = arith.cmpi ne, %10, %c0_i32_9 : i32
    scf.if %11 {
      %c0_10 = arith.constant 0 : index
      %c0_11 = arith.constant 0 : index
      %12 = vector.load %arg7[%c0_10, %c0_11] : memref<64x128xf32, #tpu.memory_space<vmem>>, vector<64x128xf32>
      %13 = arith.truncf %12 : vector<64x128xf32> to vector<64x128xbf16>
      %c0_12 = arith.constant 0 : index
      %c0_13 = arith.constant 0 : index
      %14 = vector.load %arg4[%c0_12, %c0_13] : memref<64x128xbf16, #tpu.memory_space<vmem>>, vector<64x128xbf16>
      tpu.vector_store %arg4[%c0_12, %c0_13], %13 {strides = array<i32>} : memref<64x128xbf16, #tpu.memory_space<vmem>>, vector<64x128xbf16>,
      %cst_14 = arith.constant dense<0.000000e+00> : vector<128xf32>
      %15 = vector.multi_reduction <add>, %12, %cst_14 [0] : vector<64x128xf32> to vector<128xf32>
      %16 = vector.shape_cast %15 : vector<128xf32> to vector<1x128xf32>
      %17 = vector.shape_cast %16 : vector<1x128xf32> to vector<1x1x128xf32>
      %c0_15 = arith.constant 0 : index
      %c0_16 = arith.constant 0 : index
      %c0_17 = arith.constant 0 : index
      %18 = vector.load %arg5[%c0_15, %c0_16, %c0_17] : memref<1x1x128xf32, #tpu.memory_space<vmem>>, vector<1x1x128xf32>
      tpu.vector_store %arg5[%c0_15, %c0_16, %c0_17], %17 {strides = array<i32>} : memref<1x1x128xf32, #tpu.memory_space<vmem>>, vector<1x1x128xf32>,
      %19 = arith.mulf %12, %12 : vector<64x128xf32>
      %cst_18 = arith.constant dense<0.000000e+00> : vector<128xf32>
      %20 = vector.multi_reduction <add>, %19, %cst_18 [0] : vector<64x128xf32> to vector<128xf32>
      %21 = vector.shape_cast %20 : vector<128xf32> to vector<1x128xf32>
      %22 = vector.shape_cast %21 : vector<1x128xf32> to vector<1x1x128xf32>
      %c0_19 = arith.constant 0 : index
      %c0_20 = arith.constant 0 : index
      %c0_21 = arith.constant 0 : index
      %23 = vector.load %arg6[%c0_19, %c0_20, %c0_21] : memref<1x1x128xf32, #tpu.memory_space<vmem>>, vector<1x1x128xf32>
      tpu.vector_store %arg6[%c0_19, %c0_20, %c0_21], %22 {strides = array<i32>} : memref<1x1x128xf32, #tpu.memory_space<vmem>>, vector<1x1x128xf32>,
    } else {
    }
    return
  }
  func.func @transform_0(%arg0: i32, %arg1: i32) -> (i32, i32) {
    %c0_i32 = arith.constant 0 : i32
    return %arg0, %arg1 : i32, i32
  }
  func.func @transform_1(%arg0: i32, %arg1: i32) -> (i32, i32) {
    %c0_i32 = arith.constant 0 : i32
    %c0_i32_0 = arith.constant 0 : i32
    return %arg1, %c0_i32 : i32, i32
  }
  func.func @transform_2(%arg0: i32, %arg1: i32) -> (i32, i32) {
    %c0_i32 = arith.constant 0 : i32
    %c0_i32_0 = arith.constant 0 : i32
    return %arg0, %c0_i32 : i32, i32
  }
  func.func @transform_3(%arg0: i32, %arg1: i32) -> (i32, i32, i32) {
    %c0_i32 = arith.constant 0 : i32
    %c0_i32_0 = arith.constant 0 : i32
    %c0_i32_1 = arith.constant 0 : i32
    return %arg0, %c0_i32, %c0_i32_0 : i32, i32, i32
  }
  func.func @transform_4(%arg0: i32, %arg1: i32) -> (i32, i32, i32) {
    %c0_i32 = arith.constant 0 : i32
    %c0_i32_0 = arith.constant 0 : i32
    %c0_i32_1 = arith.constant 0 : i32
    return %arg0, %c0_i32, %c0_i32_0 : i32, i32, i32
  }
}

module attributes {stable_mosaic.version = 11 : i64} {
  func.func @_affine_kernel(%arg0: i32, %arg1: memref<128x128xbf16, #tpu.memory_space<vmem>>, %arg2: memref<1x128xf32, #tpu.memory_space<vmem>>, %arg3: memref<1x128xf32, #tpu.memory_space<vmem>>, %arg4: memref<128x128xbf16, #tpu.memory_space<vmem>>) attributes {dimension_semantics = [#tpu.dimension_semantics<parallel>], iteration_bounds = array<i64: 1>, scalar_prefetch = 0 : i64, scratch_operands = 0 : i64, tpu.core_type = #tpu.core_type<tc>, window_params = [{transform_indices = @transform_0, window_bounds = array<i64: 128, 128>}, {pipeline_mode = #tpu.pipeline_mode<synchronous>, transform_indices = @transform_1, window_bounds = array<i64: 1, 128>}, {pipeline_mode = #tpu.pipeline_mode<synchronous>, transform_indices = @transform_2, window_bounds = array<i64: 1, 128>}, {transform_indices = @transform_3, window_bounds = array<i64: 128, 128>}]} {
    %c0 = arith.constant 0 : index
    %c0_0 = arith.constant 0 : index
    %0 = vector.load %arg1[%c0, %c0_0] : memref<128x128xbf16, #tpu.memory_space<vmem>>, vector<128x128xbf16>
    %1 = arith.extf %0 : vector<128x128xbf16> to vector<128x128xf32>
    %c0_1 = arith.constant 0 : index
    %c0_2 = arith.constant 0 : index
    %2 = vector.load %arg2[%c0_1, %c0_2] : memref<1x128xf32, #tpu.memory_space<vmem>>, vector<1x128xf32>
    %3 = vector.broadcast %2 : vector<1x128xf32> to vector<128x128xf32>
    %4 = arith.mulf %1, %3 : vector<128x128xf32>
    %c0_3 = arith.constant 0 : index
    %c0_4 = arith.constant 0 : index
    %5 = vector.load %arg3[%c0_3, %c0_4] : memref<1x128xf32, #tpu.memory_space<vmem>>, vector<1x128xf32>
    %6 = vector.broadcast %5 : vector<1x128xf32> to vector<128x128xf32>
    %7 = arith.addf %4, %6 : vector<128x128xf32>
    %cst = arith.constant 0.000000e+00 : f32
    %8 = vector.broadcast %cst : f32 to vector<128x128xf32>
    %9 = arith.maximumf %7, %8 : vector<128x128xf32>
    %10 = arith.truncf %9 : vector<128x128xf32> to vector<128x128xbf16>
    %c0_5 = arith.constant 0 : index
    %c0_6 = arith.constant 0 : index
    %11 = vector.load %arg4[%c0_5, %c0_6] : memref<128x128xbf16, #tpu.memory_space<vmem>>, vector<128x128xbf16>
    tpu.vector_store %arg4[%c0_5, %c0_6], %10 {strides = array<i32>} : memref<128x128xbf16, #tpu.memory_space<vmem>>, vector<128x128xbf16>,
    return
  }
  func.func @transform_0(%arg0: i32) -> (i32, i32) {
    %c0_i32 = arith.constant 0 : i32
    %c0_i32_0 = arith.constant 0 : i32
    return %arg0, %c0_i32 : i32, i32
  }
  func.func @transform_1(%arg0: i32) -> (i32, i32) {
    %c0_i32 = arith.constant 0 : i32
    %c0_i32_0 = arith.constant 0 : i32
    %c0_i32_1 = arith.constant 0 : i32
    return %c0_i32, %c0_i32_0 : i32, i32
  }
  func.func @transform_2(%arg0: i32) -> (i32, i32) {
    %c0_i32 = arith.constant 0 : i32
    %c0_i32_0 = arith.constant 0 : i32
    %c0_i32_1 = arith.constant 0 : i32
    return %c0_i32, %c0_i32_0 : i32, i32
  }
  func.func @transform_3(%arg0: i32) -> (i32, i32) {
    %c0_i32 = arith.constant 0 : i32
    %c0_i32_0 = arith.constant 0 : i32
    return %arg0, %c0_i32 : i32, i32
  }
}

module attributes {stable_mosaic.version = 11 : i64} {
  func.func @_affine_add_relu_kernel(%arg0: i32, %arg1: memref<128x128xbf16, #tpu.memory_space<vmem>>, %arg2: memref<128x128xbf16, #tpu.memory_space<vmem>>, %arg3: memref<1x128xf32, #tpu.memory_space<vmem>>, %arg4: memref<1x128xf32, #tpu.memory_space<vmem>>, %arg5: memref<128x128xbf16, #tpu.memory_space<vmem>>) attributes {dimension_semantics = [#tpu.dimension_semantics<parallel>], iteration_bounds = array<i64: 1>, scalar_prefetch = 0 : i64, scratch_operands = 0 : i64, tpu.core_type = #tpu.core_type<tc>, window_params = [{transform_indices = @transform_0, window_bounds = array<i64: 128, 128>}, {transform_indices = @transform_1, window_bounds = array<i64: 128, 128>}, {pipeline_mode = #tpu.pipeline_mode<synchronous>, transform_indices = @transform_2, window_bounds = array<i64: 1, 128>}, {pipeline_mode = #tpu.pipeline_mode<synchronous>, transform_indices = @transform_3, window_bounds = array<i64: 1, 128>}, {transform_indices = @transform_4, window_bounds = array<i64: 128, 128>}]} {
    %c0 = arith.constant 0 : index
    %c0_0 = arith.constant 0 : index
    %0 = vector.load %arg1[%c0, %c0_0] : memref<128x128xbf16, #tpu.memory_space<vmem>>, vector<128x128xbf16>
    %1 = arith.extf %0 : vector<128x128xbf16> to vector<128x128xf32>
    %c0_1 = arith.constant 0 : index
    %c0_2 = arith.constant 0 : index
    %2 = vector.load %arg3[%c0_1, %c0_2] : memref<1x128xf32, #tpu.memory_space<vmem>>, vector<1x128xf32>
    %3 = vector.broadcast %2 : vector<1x128xf32> to vector<128x128xf32>
    %4 = arith.mulf %1, %3 : vector<128x128xf32>
    %c0_3 = arith.constant 0 : index
    %c0_4 = arith.constant 0 : index
    %5 = vector.load %arg4[%c0_3, %c0_4] : memref<1x128xf32, #tpu.memory_space<vmem>>, vector<1x128xf32>
    %6 = vector.broadcast %5 : vector<1x128xf32> to vector<128x128xf32>
    %7 = arith.addf %4, %6 : vector<128x128xf32>
    %c0_5 = arith.constant 0 : index
    %c0_6 = arith.constant 0 : index
    %8 = vector.load %arg2[%c0_5, %c0_6] : memref<128x128xbf16, #tpu.memory_space<vmem>>, vector<128x128xbf16>
    %9 = arith.extf %8 : vector<128x128xbf16> to vector<128x128xf32>
    %10 = arith.addf %7, %9 : vector<128x128xf32>
    %cst = arith.constant 0.000000e+00 : f32
    %11 = vector.broadcast %cst : f32 to vector<128x128xf32>
    %12 = arith.maximumf %10, %11 : vector<128x128xf32>
    %13 = arith.truncf %12 : vector<128x128xf32> to vector<128x128xbf16>
    %c0_7 = arith.constant 0 : index
    %c0_8 = arith.constant 0 : index
    %14 = vector.load %arg5[%c0_7, %c0_8] : memref<128x128xbf16, #tpu.memory_space<vmem>>, vector<128x128xbf16>
    tpu.vector_store %arg5[%c0_7, %c0_8], %13 {strides = array<i32>} : memref<128x128xbf16, #tpu.memory_space<vmem>>, vector<128x128xbf16>,
    return
  }
  func.func @transform_0(%arg0: i32) -> (i32, i32) {
    %c0_i32 = arith.constant 0 : i32
    %c0_i32_0 = arith.constant 0 : i32
    return %arg0, %c0_i32 : i32, i32
  }
  func.func @transform_1(%arg0: i32) -> (i32, i32) {
    %c0_i32 = arith.constant 0 : i32
    %c0_i32_0 = arith.constant 0 : i32
    return %arg0, %c0_i32 : i32, i32
  }
  func.func @transform_2(%arg0: i32) -> (i32, i32) {
    %c0_i32 = arith.constant 0 : i32
    %c0_i32_0 = arith.constant 0 : i32
    %c0_i32_1 = arith.constant 0 : i32
    return %c0_i32, %c0_i32_0 : i32, i32
  }
  func.func @transform_3(%arg0: i32) -> (i32, i32) {
    %c0_i32 = arith.constant 0 : i32
    %c0_i32_0 = arith.constant 0 : i32
    %c0_i32_1 = arith.constant 0 : i32
    return %c0_i32, %c0_i32_0 : i32, i32
  }
  func.func @transform_4(%arg0: i32) -> (i32, i32) {
    %c0_i32 = arith.constant 0 : i32
    %c0_i32_0 = arith.constant 0 : i32
    return %arg0, %c0_i32 : i32, i32
  }
}

module attributes {stable_mosaic.version = 11 : i64} {
  func.func @_mm_stats_kernel(%arg0: i32, %arg1: i32, %arg2: memref<16x640xbf16, #tpu.memory_space<vmem>>, %arg3: memref<640x128xbf16, #tpu.memory_space<vmem>>, %arg4: memref<16x128xbf16, #tpu.memory_space<vmem>>, %arg5: memref<1x1x128xf32, #tpu.memory_space<vmem>>, %arg6: memref<1x1x128xf32, #tpu.memory_space<vmem>>, %arg7: memref<16x128xf32, #tpu.memory_space<vmem>>) attributes {dimension_semantics = [#tpu.dimension_semantics<parallel>, #tpu.dimension_semantics<arbitrary>], iteration_bounds = array<i64: 2, 1>, scalar_prefetch = 0 : i64, scratch_operands = 1 : i64, tpu.core_type = #tpu.core_type<tc>, window_params = [{transform_indices = @transform_0, window_bounds = array<i64: 16, 640>}, {transform_indices = @transform_1, window_bounds = array<i64: 640, 128>}, {transform_indices = @transform_2, window_bounds = array<i64: 16, 128>}, {transform_indices = @transform_3, window_bounds = array<i64: 1, 1, 128>}, {transform_indices = @transform_4, window_bounds = array<i64: 1, 1, 128>}]} {
    %c0_i32 = arith.constant 0 : i32
    %0 = arith.cmpi eq, %arg1, %c0_i32 : i32
    %1 = arith.extui %0 : i1 to i32
    %c0_i32_0 = arith.constant 0 : i32
    %2 = arith.cmpi ne, %1, %c0_i32_0 : i32
    scf.if %2 {
      %cst_10 = arith.constant 0.000000e+00 : f32
      %12 = vector.broadcast %cst_10 : f32 to vector<16x128xf32>
      %c0_11 = arith.constant 0 : index
      %c0_12 = arith.constant 0 : index
      %13 = vector.load %arg7[%c0_11, %c0_12] : memref<16x128xf32, #tpu.memory_space<vmem>>, vector<16x128xf32>
      tpu.vector_store %arg7[%c0_11, %c0_12], %12 {strides = array<i32>} : memref<16x128xf32, #tpu.memory_space<vmem>>, vector<16x128xf32>,
    } else {
    }
    %c0 = arith.constant 0 : index
    %c0_1 = arith.constant 0 : index
    %3 = vector.load %arg7[%c0, %c0_1] : memref<16x128xf32, #tpu.memory_space<vmem>>, vector<16x128xf32>
    %c0_2 = arith.constant 0 : index
    %c0_3 = arith.constant 0 : index
    %4 = vector.load %arg2[%c0_2, %c0_3] : memref<16x640xbf16, #tpu.memory_space<vmem>>, vector<16x640xbf16>
    %c0_4 = arith.constant 0 : index
    %c0_5 = arith.constant 0 : index
    %5 = vector.load %arg3[%c0_4, %c0_5] : memref<640x128xbf16, #tpu.memory_space<vmem>>, vector<640x128xbf16>
    %cst = arith.constant dense<0.000000e+00> : vector<16x128xf32>
    %6 = tpu.matmul %4, %5, %cst {dimension_numbers = #tpu.dot_dimension_numbers<[1], [0], [0], [1], [0, 0, 1, 1], [], []>} : vector<16x640xbf16>, vector<640x128xbf16>, vector<16x128xf32> -> vector<16x128xf32>
    %7 = arith.addf %3, %6 : vector<16x128xf32>
    %c0_6 = arith.constant 0 : index
    %c0_7 = arith.constant 0 : index
    %8 = vector.load %arg7[%c0_6, %c0_7] : memref<16x128xf32, #tpu.memory_space<vmem>>, vector<16x128xf32>
    tpu.vector_store %arg7[%c0_6, %c0_7], %7 {strides = array<i32>} : memref<16x128xf32, #tpu.memory_space<vmem>>, vector<16x128xf32>,
    %c0_i32_8 = arith.constant 0 : i32
    %9 = arith.cmpi eq, %arg1, %c0_i32_8 : i32
    %10 = arith.extui %9 : i1 to i32
    %c0_i32_9 = arith.constant 0 : i32
    %11 = arith.cmpi ne, %10, %c0_i32_9 : i32
    scf.if %11 {
      %c0_10 = arith.constant 0 : index
      %c0_11 = arith.constant 0 : index
      %12 = vector.load %arg7[%c0_10, %c0_11] : memref<16x128xf32, #tpu.memory_space<vmem>>, vector<16x128xf32>
      %13 = arith.truncf %12 : vector<16x128xf32> to vector<16x128xbf16>
      %c0_12 = arith.constant 0 : index
      %c0_13 = arith.constant 0 : index
      %14 = vector.load %arg4[%c0_12, %c0_13] : memref<16x128xbf16, #tpu.memory_space<vmem>>, vector<16x128xbf16>
      tpu.vector_store %arg4[%c0_12, %c0_13], %13 {strides = array<i32>} : memref<16x128xbf16, #tpu.memory_space<vmem>>, vector<16x128xbf16>,
      %cst_14 = arith.constant dense<0.000000e+00> : vector<128xf32>
      %15 = vector.multi_reduction <add>, %12, %cst_14 [0] : vector<16x128xf32> to vector<128xf32>
      %16 = vector.shape_cast %15 : vector<128xf32> to vector<1x128xf32>
      %17 = vector.shape_cast %16 : vector<1x128xf32> to vector<1x1x128xf32>
      %c0_15 = arith.constant 0 : index
      %c0_16 = arith.constant 0 : index
      %c0_17 = arith.constant 0 : index
      %18 = vector.load %arg5[%c0_15, %c0_16, %c0_17] : memref<1x1x128xf32, #tpu.memory_space<vmem>>, vector<1x1x128xf32>
      tpu.vector_store %arg5[%c0_15, %c0_16, %c0_17], %17 {strides = array<i32>} : memref<1x1x128xf32, #tpu.memory_space<vmem>>, vector<1x1x128xf32>,
      %19 = arith.mulf %12, %12 : vector<16x128xf32>
      %cst_18 = arith.constant dense<0.000000e+00> : vector<128xf32>
      %20 = vector.multi_reduction <add>, %19, %cst_18 [0] : vector<16x128xf32> to vector<128xf32>
      %21 = vector.shape_cast %20 : vector<128xf32> to vector<1x128xf32>
      %22 = vector.shape_cast %21 : vector<1x128xf32> to vector<1x1x128xf32>
      %c0_19 = arith.constant 0 : index
      %c0_20 = arith.constant 0 : index
      %c0_21 = arith.constant 0 : index
      %23 = vector.load %arg6[%c0_19, %c0_20, %c0_21] : memref<1x1x128xf32, #tpu.memory_space<vmem>>, vector<1x1x128xf32>
      tpu.vector_store %arg6[%c0_19, %c0_20, %c0_21], %22 {strides = array<i32>} : memref<1x1x128xf32, #tpu.memory_space<vmem>>, vector<1x1x128xf32>,
    } else {
    }
    return
  }
  func.func @transform_0(%arg0: i32, %arg1: i32) -> (i32, i32) {
    %c0_i32 = arith.constant 0 : i32
    return %arg0, %arg1 : i32, i32
  }
  func.func @transform_1(%arg0: i32, %arg1: i32) -> (i32, i32) {
    %c0_i32 = arith.constant 0 : i32
    %c0_i32_0 = arith.constant 0 : i32
    return %arg1, %c0_i32 : i32, i32
  }
  func.func @transform_2(%arg0: i32, %arg1: i32) -> (i32, i32) {
    %c0_i32 = arith.constant 0 : i32
    %c0_i32_0 = arith.constant 0 : i32
    return %arg0, %c0_i32 : i32, i32
  }
  func.func @transform_3(%arg0: i32, %arg1: i32) -> (i32, i32, i32) {
    %c0_i32 = arith.constant 0 : i32
    %c0_i32_0 = arith.constant 0 : i32
    %c0_i32_1 = arith.constant 0 : i32
    return %arg0, %c0_i32, %c0_i32_0 : i32, i32, i32
  }
  func.func @transform_4(%arg0: i32, %arg1: i32) -> (i32, i32, i32) {
    %c0_i32 = arith.constant 0 : i32
    %c0_i32_0 = arith.constant 0 : i32
    %c0_i32_1 = arith.constant 0 : i32
    return %arg0, %c0_i32, %c0_i32_0 : i32, i32, i32
  }
}

module attributes {stable_mosaic.version = 11 : i64} {
  func.func @_affine_kernel(%arg0: i32, %arg1: memref<32x128xbf16, #tpu.memory_space<vmem>>, %arg2: memref<1x128xf32, #tpu.memory_space<vmem>>, %arg3: memref<1x128xf32, #tpu.memory_space<vmem>>, %arg4: memref<32x128xbf16, #tpu.memory_space<vmem>>) attributes {dimension_semantics = [#tpu.dimension_semantics<parallel>], iteration_bounds = array<i64: 1>, scalar_prefetch = 0 : i64, scratch_operands = 0 : i64, tpu.core_type = #tpu.core_type<tc>, window_params = [{transform_indices = @transform_0, window_bounds = array<i64: 32, 128>}, {pipeline_mode = #tpu.pipeline_mode<synchronous>, transform_indices = @transform_1, window_bounds = array<i64: 1, 128>}, {pipeline_mode = #tpu.pipeline_mode<synchronous>, transform_indices = @transform_2, window_bounds = array<i64: 1, 128>}, {transform_indices = @transform_3, window_bounds = array<i64: 32, 128>}]} {
    %c0 = arith.constant 0 : index
    %c0_0 = arith.constant 0 : index
    %0 = vector.load %arg1[%c0, %c0_0] : memref<32x128xbf16, #tpu.memory_space<vmem>>, vector<32x128xbf16>
    %1 = arith.extf %0 : vector<32x128xbf16> to vector<32x128xf32>
    %c0_1 = arith.constant 0 : index
    %c0_2 = arith.constant 0 : index
    %2 = vector.load %arg2[%c0_1, %c0_2] : memref<1x128xf32, #tpu.memory_space<vmem>>, vector<1x128xf32>
    %3 = vector.broadcast %2 : vector<1x128xf32> to vector<32x128xf32>
    %4 = arith.mulf %1, %3 : vector<32x128xf32>
    %c0_3 = arith.constant 0 : index
    %c0_4 = arith.constant 0 : index
    %5 = vector.load %arg3[%c0_3, %c0_4] : memref<1x128xf32, #tpu.memory_space<vmem>>, vector<1x128xf32>
    %6 = vector.broadcast %5 : vector<1x128xf32> to vector<32x128xf32>
    %7 = arith.addf %4, %6 : vector<32x128xf32>
    %cst = arith.constant 0.000000e+00 : f32
    %8 = vector.broadcast %cst : f32 to vector<32x128xf32>
    %9 = arith.maximumf %7, %8 : vector<32x128xf32>
    %10 = arith.truncf %9 : vector<32x128xf32> to vector<32x128xbf16>
    %c0_5 = arith.constant 0 : index
    %c0_6 = arith.constant 0 : index
    %11 = vector.load %arg4[%c0_5, %c0_6] : memref<32x128xbf16, #tpu.memory_space<vmem>>, vector<32x128xbf16>
    tpu.vector_store %arg4[%c0_5, %c0_6], %10 {strides = array<i32>} : memref<32x128xbf16, #tpu.memory_space<vmem>>, vector<32x128xbf16>,
    return
  }
  func.func @transform_0(%arg0: i32) -> (i32, i32) {
    %c0_i32 = arith.constant 0 : i32
    %c0_i32_0 = arith.constant 0 : i32
    return %arg0, %c0_i32 : i32, i32
  }
  func.func @transform_1(%arg0: i32) -> (i32, i32) {
    %c0_i32 = arith.constant 0 : i32
    %c0_i32_0 = arith.constant 0 : i32
    %c0_i32_1 = arith.constant 0 : i32
    return %c0_i32, %c0_i32_0 : i32, i32
  }
  func.func @transform_2(%arg0: i32) -> (i32, i32) {
    %c0_i32 = arith.constant 0 : i32
    %c0_i32_0 = arith.constant 0 : i32
    %c0_i32_1 = arith.constant 0 : i32
    return %c0_i32, %c0_i32_0 : i32, i32
  }
  func.func @transform_3(%arg0: i32) -> (i32, i32) {
    %c0_i32 = arith.constant 0 : i32
    %c0_i32_0 = arith.constant 0 : i32
    return %arg0, %c0_i32 : i32, i32
  }
}

module attributes {stable_mosaic.version = 11 : i64} {
  func.func @_mm_stats_kernel(%arg0: i32, %arg1: i32, %arg2: memref<16x384xbf16, #tpu.memory_space<vmem>>, %arg3: memref<384x128xbf16, #tpu.memory_space<vmem>>, %arg4: memref<16x128xbf16, #tpu.memory_space<vmem>>, %arg5: memref<1x1x128xf32, #tpu.memory_space<vmem>>, %arg6: memref<1x1x128xf32, #tpu.memory_space<vmem>>, %arg7: memref<16x128xf32, #tpu.memory_space<vmem>>) attributes {dimension_semantics = [#tpu.dimension_semantics<parallel>, #tpu.dimension_semantics<arbitrary>], iteration_bounds = array<i64: 2, 3>, scalar_prefetch = 0 : i64, scratch_operands = 1 : i64, tpu.core_type = #tpu.core_type<tc>, window_params = [{transform_indices = @transform_0, window_bounds = array<i64: 16, 384>}, {transform_indices = @transform_1, window_bounds = array<i64: 384, 128>}, {transform_indices = @transform_2, window_bounds = array<i64: 16, 128>}, {transform_indices = @transform_3, window_bounds = array<i64: 1, 1, 128>}, {transform_indices = @transform_4, window_bounds = array<i64: 1, 1, 128>}]} {
    %c0_i32 = arith.constant 0 : i32
    %0 = arith.cmpi eq, %arg1, %c0_i32 : i32
    %1 = arith.extui %0 : i1 to i32
    %c0_i32_0 = arith.constant 0 : i32
    %2 = arith.cmpi ne, %1, %c0_i32_0 : i32
    scf.if %2 {
      %cst_9 = arith.constant 0.000000e+00 : f32
      %12 = vector.broadcast %cst_9 : f32 to vector<16x128xf32>
      %c0_10 = arith.constant 0 : index
      %c0_11 = arith.constant 0 : index
      %13 = vector.load %arg7[%c0_10, %c0_11] : memref<16x128xf32, #tpu.memory_space<vmem>>, vector<16x128xf32>
      tpu.vector_store %arg7[%c0_10, %c0_11], %12 {strides = array<i32>} : memref<16x128xf32, #tpu.memory_space<vmem>>, vector<16x128xf32>,
    } else {
    }
    %c0 = arith.constant 0 : index
    %c0_1 = arith.constant 0 : index
    %3 = vector.load %arg7[%c0, %c0_1] : memref<16x128xf32, #tpu.memory_space<vmem>>, vector<16x128xf32>
    %c0_2 = arith.constant 0 : index
    %c0_3 = arith.constant 0 : index
    %4 = vector.load %arg2[%c0_2, %c0_3] : memref<16x384xbf16, #tpu.memory_space<vmem>>, vector<16x384xbf16>
    %c0_4 = arith.constant 0 : index
    %c0_5 = arith.constant 0 : index
    %5 = vector.load %arg3[%c0_4, %c0_5] : memref<384x128xbf16, #tpu.memory_space<vmem>>, vector<384x128xbf16>
    %cst = arith.constant dense<0.000000e+00> : vector<16x128xf32>
    %6 = tpu.matmul %4, %5, %cst {dimension_numbers = #tpu.dot_dimension_numbers<[1], [0], [0], [1], [0, 0, 1, 1], [], []>} : vector<16x384xbf16>, vector<384x128xbf16>, vector<16x128xf32> -> vector<16x128xf32>
    %7 = arith.addf %3, %6 : vector<16x128xf32>
    %c0_6 = arith.constant 0 : index
    %c0_7 = arith.constant 0 : index
    %8 = vector.load %arg7[%c0_6, %c0_7] : memref<16x128xf32, #tpu.memory_space<vmem>>, vector<16x128xf32>
    tpu.vector_store %arg7[%c0_6, %c0_7], %7 {strides = array<i32>} : memref<16x128xf32, #tpu.memory_space<vmem>>, vector<16x128xf32>,
    %c2_i32 = arith.constant 2 : i32
    %9 = arith.cmpi eq, %arg1, %c2_i32 : i32
    %10 = arith.extui %9 : i1 to i32
    %c0_i32_8 = arith.constant 0 : i32
    %11 = arith.cmpi ne, %10, %c0_i32_8 : i32
    scf.if %11 {
      %c0_9 = arith.constant 0 : index
      %c0_10 = arith.constant 0 : index
      %12 = vector.load %arg7[%c0_9, %c0_10] : memref<16x128xf32, #tpu.memory_space<vmem>>, vector<16x128xf32>
      %13 = arith.truncf %12 : vector<16x128xf32> to vector<16x128xbf16>
      %c0_11 = arith.constant 0 : index
      %c0_12 = arith.constant 0 : index
      %14 = vector.load %arg4[%c0_11, %c0_12] : memref<16x128xbf16, #tpu.memory_space<vmem>>, vector<16x128xbf16>
      tpu.vector_store %arg4[%c0_11, %c0_12], %13 {strides = array<i32>} : memref<16x128xbf16, #tpu.memory_space<vmem>>, vector<16x128xbf16>,
      %cst_13 = arith.constant dense<0.000000e+00> : vector<128xf32>
      %15 = vector.multi_reduction <add>, %12, %cst_13 [0] : vector<16x128xf32> to vector<128xf32>
      %16 = vector.shape_cast %15 : vector<128xf32> to vector<1x128xf32>
      %17 = vector.shape_cast %16 : vector<1x128xf32> to vector<1x1x128xf32>
      %c0_14 = arith.constant 0 : index
      %c0_15 = arith.constant 0 : index
      %c0_16 = arith.constant 0 : index
      %18 = vector.load %arg5[%c0_14, %c0_15, %c0_16] : memref<1x1x128xf32, #tpu.memory_space<vmem>>, vector<1x1x128xf32>
      tpu.vector_store %arg5[%c0_14, %c0_15, %c0_16], %17 {strides = array<i32>} : memref<1x1x128xf32, #tpu.memory_space<vmem>>, vector<1x1x128xf32>,
      %19 = arith.mulf %12, %12 : vector<16x128xf32>
      %cst_17 = arith.constant dense<0.000000e+00> : vector<128xf32>
      %20 = vector.multi_reduction <add>, %19, %cst_17 [0] : vector<16x128xf32> to vector<128xf32>
      %21 = vector.shape_cast %20 : vector<128xf32> to vector<1x128xf32>
      %22 = vector.shape_cast %21 : vector<1x128xf32> to vector<1x1x128xf32>
      %c0_18 = arith.constant 0 : index
      %c0_19 = arith.constant 0 : index
      %c0_20 = arith.constant 0 : index
      %23 = vector.load %arg6[%c0_18, %c0_19, %c0_20] : memref<1x1x128xf32, #tpu.memory_space<vmem>>, vector<1x1x128xf32>
      tpu.vector_store %arg6[%c0_18, %c0_19, %c0_20], %22 {strides = array<i32>} : memref<1x1x128xf32, #tpu.memory_space<vmem>>, vector<1x1x128xf32>,
    } else {
    }
    return
  }
  func.func @transform_0(%arg0: i32, %arg1: i32) -> (i32, i32) {
    %c0_i32 = arith.constant 0 : i32
    return %arg0, %arg1 : i32, i32
  }
  func.func @transform_1(%arg0: i32, %arg1: i32) -> (i32, i32) {
    %c0_i32 = arith.constant 0 : i32
    %c0_i32_0 = arith.constant 0 : i32
    return %arg1, %c0_i32 : i32, i32
  }
  func.func @transform_2(%arg0: i32, %arg1: i32) -> (i32, i32) {
    %c0_i32 = arith.constant 0 : i32
    %c0_i32_0 = arith.constant 0 : i32
    return %arg0, %c0_i32 : i32, i32
  }
  func.func @transform_3(%arg0: i32, %arg1: i32) -> (i32, i32, i32) {
    %c0_i32 = arith.constant 0 : i32
    %c0_i32_0 = arith.constant 0 : i32
    %c0_i32_1 = arith.constant 0 : i32
    return %arg0, %c0_i32, %c0_i32_0 : i32, i32, i32
  }
  func.func @transform_4(%arg0: i32, %arg1: i32) -> (i32, i32, i32) {
    %c0_i32 = arith.constant 0 : i32
    %c0_i32_0 = arith.constant 0 : i32
    %c0_i32_1 = arith.constant 0 : i32
    return %arg0, %c0_i32, %c0_i32_0 : i32, i32, i32
  }
}

module attributes {stable_mosaic.version = 11 : i64} {
  func.func @_affine_kernel(%arg0: i32, %arg1: memref<32x128xbf16, #tpu.memory_space<vmem>>, %arg2: memref<1x128xf32, #tpu.memory_space<vmem>>, %arg3: memref<1x128xf32, #tpu.memory_space<vmem>>, %arg4: memref<32x128xbf16, #tpu.memory_space<vmem>>) attributes {dimension_semantics = [#tpu.dimension_semantics<parallel>], iteration_bounds = array<i64: 1>, scalar_prefetch = 0 : i64, scratch_operands = 0 : i64, tpu.core_type = #tpu.core_type<tc>, window_params = [{transform_indices = @transform_0, window_bounds = array<i64: 32, 128>}, {pipeline_mode = #tpu.pipeline_mode<synchronous>, transform_indices = @transform_1, window_bounds = array<i64: 1, 128>}, {pipeline_mode = #tpu.pipeline_mode<synchronous>, transform_indices = @transform_2, window_bounds = array<i64: 1, 128>}, {transform_indices = @transform_3, window_bounds = array<i64: 32, 128>}]} {
    %c0 = arith.constant 0 : index
    %c0_0 = arith.constant 0 : index
    %0 = vector.load %arg1[%c0, %c0_0] : memref<32x128xbf16, #tpu.memory_space<vmem>>, vector<32x128xbf16>
    %1 = arith.extf %0 : vector<32x128xbf16> to vector<32x128xf32>
    %c0_1 = arith.constant 0 : index
    %c0_2 = arith.constant 0 : index
    %2 = vector.load %arg2[%c0_1, %c0_2] : memref<1x128xf32, #tpu.memory_space<vmem>>, vector<1x128xf32>
    %3 = vector.broadcast %2 : vector<1x128xf32> to vector<32x128xf32>
    %4 = arith.mulf %1, %3 : vector<32x128xf32>
    %c0_3 = arith.constant 0 : index
    %c0_4 = arith.constant 0 : index
    %5 = vector.load %arg3[%c0_3, %c0_4] : memref<1x128xf32, #tpu.memory_space<vmem>>, vector<1x128xf32>
    %6 = vector.broadcast %5 : vector<1x128xf32> to vector<32x128xf32>
    %7 = arith.addf %4, %6 : vector<32x128xf32>
    %8 = arith.truncf %7 : vector<32x128xf32> to vector<32x128xbf16>
    %c0_5 = arith.constant 0 : index
    %c0_6 = arith.constant 0 : index
    %9 = vector.load %arg4[%c0_5, %c0_6] : memref<32x128xbf16, #tpu.memory_space<vmem>>, vector<32x128xbf16>
    tpu.vector_store %arg4[%c0_5, %c0_6], %8 {strides = array<i32>} : memref<32x128xbf16, #tpu.memory_space<vmem>>, vector<32x128xbf16>,
    return
  }
  func.func @transform_0(%arg0: i32) -> (i32, i32) {
    %c0_i32 = arith.constant 0 : i32
    %c0_i32_0 = arith.constant 0 : i32
    return %arg0, %c0_i32 : i32, i32
  }
  func.func @transform_1(%arg0: i32) -> (i32, i32) {
    %c0_i32 = arith.constant 0 : i32
    %c0_i32_0 = arith.constant 0 : i32
    %c0_i32_1 = arith.constant 0 : i32
    return %c0_i32, %c0_i32_0 : i32, i32
  }
  func.func @transform_2(%arg0: i32) -> (i32, i32) {
    %c0_i32 = arith.constant 0 : i32
    %c0_i32_0 = arith.constant 0 : i32
    %c0_i32_1 = arith.constant 0 : i32
    return %c0_i32, %c0_i32_0 : i32, i32
  }
  func.func @transform_3(%arg0: i32) -> (i32, i32) {
    %c0_i32 = arith.constant 0 : i32
    %c0_i32_0 = arith.constant 0 : i32
    return %arg0, %c0_i32 : i32, i32
  }
}

module attributes {stable_mosaic.version = 11 : i64} {
  func.func @_mm_stats_kernel(%arg0: i32, %arg1: i32, %arg2: memref<16x128xbf16, #tpu.memory_space<vmem>>, %arg3: memref<128x128xbf16, #tpu.memory_space<vmem>>, %arg4: memref<16x128xbf16, #tpu.memory_space<vmem>>, %arg5: memref<1x1x128xf32, #tpu.memory_space<vmem>>, %arg6: memref<1x1x128xf32, #tpu.memory_space<vmem>>, %arg7: memref<16x128xf32, #tpu.memory_space<vmem>>) attributes {dimension_semantics = [#tpu.dimension_semantics<parallel>, #tpu.dimension_semantics<arbitrary>], iteration_bounds = array<i64: 2, 1>, scalar_prefetch = 0 : i64, scratch_operands = 1 : i64, tpu.core_type = #tpu.core_type<tc>, window_params = [{transform_indices = @transform_0, window_bounds = array<i64: 16, 128>}, {transform_indices = @transform_1, window_bounds = array<i64: 128, 128>}, {transform_indices = @transform_2, window_bounds = array<i64: 16, 128>}, {transform_indices = @transform_3, window_bounds = array<i64: 1, 1, 128>}, {transform_indices = @transform_4, window_bounds = array<i64: 1, 1, 128>}]} {
    %c0_i32 = arith.constant 0 : i32
    %0 = arith.cmpi eq, %arg1, %c0_i32 : i32
    %1 = arith.extui %0 : i1 to i32
    %c0_i32_0 = arith.constant 0 : i32
    %2 = arith.cmpi ne, %1, %c0_i32_0 : i32
    scf.if %2 {
      %cst_10 = arith.constant 0.000000e+00 : f32
      %12 = vector.broadcast %cst_10 : f32 to vector<16x128xf32>
      %c0_11 = arith.constant 0 : index
      %c0_12 = arith.constant 0 : index
      %13 = vector.load %arg7[%c0_11, %c0_12] : memref<16x128xf32, #tpu.memory_space<vmem>>, vector<16x128xf32>
      tpu.vector_store %arg7[%c0_11, %c0_12], %12 {strides = array<i32>} : memref<16x128xf32, #tpu.memory_space<vmem>>, vector<16x128xf32>,
    } else {
    }
    %c0 = arith.constant 0 : index
    %c0_1 = arith.constant 0 : index
    %3 = vector.load %arg7[%c0, %c0_1] : memref<16x128xf32, #tpu.memory_space<vmem>>, vector<16x128xf32>
    %c0_2 = arith.constant 0 : index
    %c0_3 = arith.constant 0 : index
    %4 = vector.load %arg2[%c0_2, %c0_3] : memref<16x128xbf16, #tpu.memory_space<vmem>>, vector<16x128xbf16>
    %c0_4 = arith.constant 0 : index
    %c0_5 = arith.constant 0 : index
    %5 = vector.load %arg3[%c0_4, %c0_5] : memref<128x128xbf16, #tpu.memory_space<vmem>>, vector<128x128xbf16>
    %cst = arith.constant dense<0.000000e+00> : vector<16x128xf32>
    %6 = tpu.matmul %4, %5, %cst {dimension_numbers = #tpu.dot_dimension_numbers<[1], [0], [0], [1], [0, 0, 1, 1], [], []>} : vector<16x128xbf16>, vector<128x128xbf16>, vector<16x128xf32> -> vector<16x128xf32>
    %7 = arith.addf %3, %6 : vector<16x128xf32>
    %c0_6 = arith.constant 0 : index
    %c0_7 = arith.constant 0 : index
    %8 = vector.load %arg7[%c0_6, %c0_7] : memref<16x128xf32, #tpu.memory_space<vmem>>, vector<16x128xf32>
    tpu.vector_store %arg7[%c0_6, %c0_7], %7 {strides = array<i32>} : memref<16x128xf32, #tpu.memory_space<vmem>>, vector<16x128xf32>,
    %c0_i32_8 = arith.constant 0 : i32
    %9 = arith.cmpi eq, %arg1, %c0_i32_8 : i32
    %10 = arith.extui %9 : i1 to i32
    %c0_i32_9 = arith.constant 0 : i32
    %11 = arith.cmpi ne, %10, %c0_i32_9 : i32
    scf.if %11 {
      %c0_10 = arith.constant 0 : index
      %c0_11 = arith.constant 0 : index
      %12 = vector.load %arg7[%c0_10, %c0_11] : memref<16x128xf32, #tpu.memory_space<vmem>>, vector<16x128xf32>
      %13 = arith.truncf %12 : vector<16x128xf32> to vector<16x128xbf16>
      %c0_12 = arith.constant 0 : index
      %c0_13 = arith.constant 0 : index
      %14 = vector.load %arg4[%c0_12, %c0_13] : memref<16x128xbf16, #tpu.memory_space<vmem>>, vector<16x128xbf16>
      tpu.vector_store %arg4[%c0_12, %c0_13], %13 {strides = array<i32>} : memref<16x128xbf16, #tpu.memory_space<vmem>>, vector<16x128xbf16>,
      %cst_14 = arith.constant dense<0.000000e+00> : vector<128xf32>
      %15 = vector.multi_reduction <add>, %12, %cst_14 [0] : vector<16x128xf32> to vector<128xf32>
      %16 = vector.shape_cast %15 : vector<128xf32> to vector<1x128xf32>
      %17 = vector.shape_cast %16 : vector<1x128xf32> to vector<1x1x128xf32>
      %c0_15 = arith.constant 0 : index
      %c0_16 = arith.constant 0 : index
      %c0_17 = arith.constant 0 : index
      %18 = vector.load %arg5[%c0_15, %c0_16, %c0_17] : memref<1x1x128xf32, #tpu.memory_space<vmem>>, vector<1x1x128xf32>
      tpu.vector_store %arg5[%c0_15, %c0_16, %c0_17], %17 {strides = array<i32>} : memref<1x1x128xf32, #tpu.memory_space<vmem>>, vector<1x1x128xf32>,
      %19 = arith.mulf %12, %12 : vector<16x128xf32>
      %cst_18 = arith.constant dense<0.000000e+00> : vector<128xf32>
      %20 = vector.multi_reduction <add>, %19, %cst_18 [0] : vector<16x128xf32> to vector<128xf32>
      %21 = vector.shape_cast %20 : vector<128xf32> to vector<1x128xf32>
      %22 = vector.shape_cast %21 : vector<1x128xf32> to vector<1x1x128xf32>
      %c0_19 = arith.constant 0 : index
      %c0_20 = arith.constant 0 : index
      %c0_21 = arith.constant 0 : index
      %23 = vector.load %arg6[%c0_19, %c0_20, %c0_21] : memref<1x1x128xf32, #tpu.memory_space<vmem>>, vector<1x1x128xf32>
      tpu.vector_store %arg6[%c0_19, %c0_20, %c0_21], %22 {strides = array<i32>} : memref<1x1x128xf32, #tpu.memory_space<vmem>>, vector<1x1x128xf32>,
    } else {
    }
    return
  }
  func.func @transform_0(%arg0: i32, %arg1: i32) -> (i32, i32) {
    %c0_i32 = arith.constant 0 : i32
    return %arg0, %arg1 : i32, i32
  }
  func.func @transform_1(%arg0: i32, %arg1: i32) -> (i32, i32) {
    %c0_i32 = arith.constant 0 : i32
    %c0_i32_0 = arith.constant 0 : i32
    return %arg1, %c0_i32 : i32, i32
  }
  func.func @transform_2(%arg0: i32, %arg1: i32) -> (i32, i32) {
    %c0_i32 = arith.constant 0 : i32
    %c0_i32_0 = arith.constant 0 : i32
    return %arg0, %c0_i32 : i32, i32
  }
  func.func @transform_3(%arg0: i32, %arg1: i32) -> (i32, i32, i32) {
    %c0_i32 = arith.constant 0 : i32
    %c0_i32_0 = arith.constant 0 : i32
    %c0_i32_1 = arith.constant 0 : i32
    return %arg0, %c0_i32, %c0_i32_0 : i32, i32, i32
  }
  func.func @transform_4(%arg0: i32, %arg1: i32) -> (i32, i32, i32) {
    %c0_i32 = arith.constant 0 : i32
    %c0_i32_0 = arith.constant 0 : i32
    %c0_i32_1 = arith.constant 0 : i32
    return %arg0, %c0_i32, %c0_i32_0 : i32, i32, i32
  }
}

module attributes {stable_mosaic.version = 11 : i64} {
  func.func @_affine_add_relu_kernel(%arg0: i32, %arg1: memref<32x128xbf16, #tpu.memory_space<vmem>>, %arg2: memref<32x128xbf16, #tpu.memory_space<vmem>>, %arg3: memref<1x128xf32, #tpu.memory_space<vmem>>, %arg4: memref<1x128xf32, #tpu.memory_space<vmem>>, %arg5: memref<32x128xbf16, #tpu.memory_space<vmem>>) attributes {dimension_semantics = [#tpu.dimension_semantics<parallel>], iteration_bounds = array<i64: 1>, scalar_prefetch = 0 : i64, scratch_operands = 0 : i64, tpu.core_type = #tpu.core_type<tc>, window_params = [{transform_indices = @transform_0, window_bounds = array<i64: 32, 128>}, {transform_indices = @transform_1, window_bounds = array<i64: 32, 128>}, {pipeline_mode = #tpu.pipeline_mode<synchronous>, transform_indices = @transform_2, window_bounds = array<i64: 1, 128>}, {pipeline_mode = #tpu.pipeline_mode<synchronous>, transform_indices = @transform_3, window_bounds = array<i64: 1, 128>}, {transform_indices = @transform_4, window_bounds = array<i64: 32, 128>}]} {
    %c0 = arith.constant 0 : index
    %c0_0 = arith.constant 0 : index
    %0 = vector.load %arg1[%c0, %c0_0] : memref<32x128xbf16, #tpu.memory_space<vmem>>, vector<32x128xbf16>
    %1 = arith.extf %0 : vector<32x128xbf16> to vector<32x128xf32>
    %c0_1 = arith.constant 0 : index
    %c0_2 = arith.constant 0 : index
    %2 = vector.load %arg3[%c0_1, %c0_2] : memref<1x128xf32, #tpu.memory_space<vmem>>, vector<1x128xf32>
    %3 = vector.broadcast %2 : vector<1x128xf32> to vector<32x128xf32>
    %4 = arith.mulf %1, %3 : vector<32x128xf32>
    %c0_3 = arith.constant 0 : index
    %c0_4 = arith.constant 0 : index
    %5 = vector.load %arg4[%c0_3, %c0_4] : memref<1x128xf32, #tpu.memory_space<vmem>>, vector<1x128xf32>
    %6 = vector.broadcast %5 : vector<1x128xf32> to vector<32x128xf32>
    %7 = arith.addf %4, %6 : vector<32x128xf32>
    %c0_5 = arith.constant 0 : index
    %c0_6 = arith.constant 0 : index
    %8 = vector.load %arg2[%c0_5, %c0_6] : memref<32x128xbf16, #tpu.memory_space<vmem>>, vector<32x128xbf16>
    %9 = arith.extf %8 : vector<32x128xbf16> to vector<32x128xf32>
    %10 = arith.addf %7, %9 : vector<32x128xf32>
    %cst = arith.constant 0.000000e+00 : f32
    %11 = vector.broadcast %cst : f32 to vector<32x128xf32>
    %12 = arith.maximumf %10, %11 : vector<32x128xf32>
    %13 = arith.truncf %12 : vector<32x128xf32> to vector<32x128xbf16>
    %c0_7 = arith.constant 0 : index
    %c0_8 = arith.constant 0 : index
    %14 = vector.load %arg5[%c0_7, %c0_8] : memref<32x128xbf16, #tpu.memory_space<vmem>>, vector<32x128xbf16>
    tpu.vector_store %arg5[%c0_7, %c0_8], %13 {strides = array<i32>} : memref<32x128xbf16, #tpu.memory_space<vmem>>, vector<32x128xbf16>,
    return
  }
  func.func @transform_0(%arg0: i32) -> (i32, i32) {
    %c0_i32 = arith.constant 0 : i32
    %c0_i32_0 = arith.constant 0 : i32
    return %arg0, %c0_i32 : i32, i32
  }
  func.func @transform_1(%arg0: i32) -> (i32, i32) {
    %c0_i32 = arith.constant 0 : i32
    %c0_i32_0 = arith.constant 0 : i32
    return %arg0, %c0_i32 : i32, i32
  }
  func.func @transform_2(%arg0: i32) -> (i32, i32) {
    %c0_i32 = arith.constant 0 : i32
    %c0_i32_0 = arith.constant 0 : i32
    %c0_i32_1 = arith.constant 0 : i32
    return %c0_i32, %c0_i32_0 : i32, i32
  }
  func.func @transform_3(%arg0: i32) -> (i32, i32) {
    %c0_i32 = arith.constant 0 : i32
    %c0_i32_0 = arith.constant 0 : i32
    %c0_i32_1 = arith.constant 0 : i32
    return %c0_i32, %c0_i32_0 : i32, i32
  }
  func.func @transform_4(%arg0: i32) -> (i32, i32) {
    %c0_i32 = arith.constant 0 : i32
    %c0_i32_0 = arith.constant 0 : i32
    return %arg0, %c0_i32 : i32, i32
  }
}

module attributes {stable_mosaic.version = 11 : i64} {
  func.func @_affine_kernel(%arg0: i32, %arg1: memref<16x256xbf16, #tpu.memory_space<vmem>>, %arg2: memref<1x256xf32, #tpu.memory_space<vmem>>, %arg3: memref<1x256xf32, #tpu.memory_space<vmem>>, %arg4: memref<16x256xbf16, #tpu.memory_space<vmem>>) attributes {dimension_semantics = [#tpu.dimension_semantics<parallel>], iteration_bounds = array<i64: 1>, scalar_prefetch = 0 : i64, scratch_operands = 0 : i64, tpu.core_type = #tpu.core_type<tc>, window_params = [{transform_indices = @transform_0, window_bounds = array<i64: 16, 256>}, {pipeline_mode = #tpu.pipeline_mode<synchronous>, transform_indices = @transform_1, window_bounds = array<i64: 1, 256>}, {pipeline_mode = #tpu.pipeline_mode<synchronous>, transform_indices = @transform_2, window_bounds = array<i64: 1, 256>}, {transform_indices = @transform_3, window_bounds = array<i64: 16, 256>}]} {
    %c0 = arith.constant 0 : index
    %c0_0 = arith.constant 0 : index
    %0 = vector.load %arg1[%c0, %c0_0] : memref<16x256xbf16, #tpu.memory_space<vmem>>, vector<16x256xbf16>
    %1 = arith.extf %0 : vector<16x256xbf16> to vector<16x256xf32>
    %c0_1 = arith.constant 0 : index
    %c0_2 = arith.constant 0 : index
    %2 = vector.load %arg2[%c0_1, %c0_2] : memref<1x256xf32, #tpu.memory_space<vmem>>, vector<1x256xf32>
    %3 = vector.broadcast %2 : vector<1x256xf32> to vector<16x256xf32>
    %4 = arith.mulf %1, %3 : vector<16x256xf32>
    %c0_3 = arith.constant 0 : index
    %c0_4 = arith.constant 0 : index
    %5 = vector.load %arg3[%c0_3, %c0_4] : memref<1x256xf32, #tpu.memory_space<vmem>>, vector<1x256xf32>
    %6 = vector.broadcast %5 : vector<1x256xf32> to vector<16x256xf32>
    %7 = arith.addf %4, %6 : vector<16x256xf32>
    %cst = arith.constant 0.000000e+00 : f32
    %8 = vector.broadcast %cst : f32 to vector<16x256xf32>
    %9 = arith.maximumf %7, %8 : vector<16x256xf32>
    %10 = arith.truncf %9 : vector<16x256xf32> to vector<16x256xbf16>
    %c0_5 = arith.constant 0 : index
    %c0_6 = arith.constant 0 : index
    %11 = vector.load %arg4[%c0_5, %c0_6] : memref<16x256xbf16, #tpu.memory_space<vmem>>, vector<16x256xbf16>
    tpu.vector_store %arg4[%c0_5, %c0_6], %10 {strides = array<i32>} : memref<16x256xbf16, #tpu.memory_space<vmem>>, vector<16x256xbf16>,
    return
  }
  func.func @transform_0(%arg0: i32) -> (i32, i32) {
    %c0_i32 = arith.constant 0 : i32
    %c0_i32_0 = arith.constant 0 : i32
    return %arg0, %c0_i32 : i32, i32
  }
  func.func @transform_1(%arg0: i32) -> (i32, i32) {
    %c0_i32 = arith.constant 0 : i32
    %c0_i32_0 = arith.constant 0 : i32
    %c0_i32_1 = arith.constant 0 : i32
    return %c0_i32, %c0_i32_0 : i32, i32
  }
  func.func @transform_2(%arg0: i32) -> (i32, i32) {
    %c0_i32 = arith.constant 0 : i32
    %c0_i32_0 = arith.constant 0 : i32
    %c0_i32_1 = arith.constant 0 : i32
    return %c0_i32, %c0_i32_0 : i32, i32
  }
  func.func @transform_3(%arg0: i32) -> (i32, i32) {
    %c0_i32 = arith.constant 0 : i32
    %c0_i32_0 = arith.constant 0 : i32
    return %arg0, %c0_i32 : i32, i32
  }
}

module attributes {stable_mosaic.version = 11 : i64} {
  func.func @_mm_stats_kernel(%arg0: i32, %arg1: i32, %arg2: memref<16x384xbf16, #tpu.memory_space<vmem>>, %arg3: memref<384x256xbf16, #tpu.memory_space<vmem>>, %arg4: memref<16x256xbf16, #tpu.memory_space<vmem>>, %arg5: memref<1x1x256xf32, #tpu.memory_space<vmem>>, %arg6: memref<1x1x256xf32, #tpu.memory_space<vmem>>, %arg7: memref<16x256xf32, #tpu.memory_space<vmem>>) attributes {dimension_semantics = [#tpu.dimension_semantics<parallel>, #tpu.dimension_semantics<arbitrary>], iteration_bounds = array<i64: 1, 3>, scalar_prefetch = 0 : i64, scratch_operands = 1 : i64, tpu.core_type = #tpu.core_type<tc>, window_params = [{transform_indices = @transform_0, window_bounds = array<i64: 16, 384>}, {transform_indices = @transform_1, window_bounds = array<i64: 384, 256>}, {transform_indices = @transform_2, window_bounds = array<i64: 16, 256>}, {transform_indices = @transform_3, window_bounds = array<i64: 1, 1, 256>}, {transform_indices = @transform_4, window_bounds = array<i64: 1, 1, 256>}]} {
    %c0_i32 = arith.constant 0 : i32
    %0 = arith.cmpi eq, %arg1, %c0_i32 : i32
    %1 = arith.extui %0 : i1 to i32
    %c0_i32_0 = arith.constant 0 : i32
    %2 = arith.cmpi ne, %1, %c0_i32_0 : i32
    scf.if %2 {
      %cst_9 = arith.constant 0.000000e+00 : f32
      %12 = vector.broadcast %cst_9 : f32 to vector<16x256xf32>
      %c0_10 = arith.constant 0 : index
      %c0_11 = arith.constant 0 : index
      %13 = vector.load %arg7[%c0_10, %c0_11] : memref<16x256xf32, #tpu.memory_space<vmem>>, vector<16x256xf32>
      tpu.vector_store %arg7[%c0_10, %c0_11], %12 {strides = array<i32>} : memref<16x256xf32, #tpu.memory_space<vmem>>, vector<16x256xf32>,
    } else {
    }
    %c0 = arith.constant 0 : index
    %c0_1 = arith.constant 0 : index
    %3 = vector.load %arg7[%c0, %c0_1] : memref<16x256xf32, #tpu.memory_space<vmem>>, vector<16x256xf32>
    %c0_2 = arith.constant 0 : index
    %c0_3 = arith.constant 0 : index
    %4 = vector.load %arg2[%c0_2, %c0_3] : memref<16x384xbf16, #tpu.memory_space<vmem>>, vector<16x384xbf16>
    %c0_4 = arith.constant 0 : index
    %c0_5 = arith.constant 0 : index
    %5 = vector.load %arg3[%c0_4, %c0_5] : memref<384x256xbf16, #tpu.memory_space<vmem>>, vector<384x256xbf16>
    %cst = arith.constant dense<0.000000e+00> : vector<16x256xf32>
    %6 = tpu.matmul %4, %5, %cst {dimension_numbers = #tpu.dot_dimension_numbers<[1], [0], [0], [1], [0, 0, 1, 1], [], []>} : vector<16x384xbf16>, vector<384x256xbf16>, vector<16x256xf32> -> vector<16x256xf32>
    %7 = arith.addf %3, %6 : vector<16x256xf32>
    %c0_6 = arith.constant 0 : index
    %c0_7 = arith.constant 0 : index
    %8 = vector.load %arg7[%c0_6, %c0_7] : memref<16x256xf32, #tpu.memory_space<vmem>>, vector<16x256xf32>
    tpu.vector_store %arg7[%c0_6, %c0_7], %7 {strides = array<i32>} : memref<16x256xf32, #tpu.memory_space<vmem>>, vector<16x256xf32>,
    %c2_i32 = arith.constant 2 : i32
    %9 = arith.cmpi eq, %arg1, %c2_i32 : i32
    %10 = arith.extui %9 : i1 to i32
    %c0_i32_8 = arith.constant 0 : i32
    %11 = arith.cmpi ne, %10, %c0_i32_8 : i32
    scf.if %11 {
      %c0_9 = arith.constant 0 : index
      %c0_10 = arith.constant 0 : index
      %12 = vector.load %arg7[%c0_9, %c0_10] : memref<16x256xf32, #tpu.memory_space<vmem>>, vector<16x256xf32>
      %13 = arith.truncf %12 : vector<16x256xf32> to vector<16x256xbf16>
      %c0_11 = arith.constant 0 : index
      %c0_12 = arith.constant 0 : index
      %14 = vector.load %arg4[%c0_11, %c0_12] : memref<16x256xbf16, #tpu.memory_space<vmem>>, vector<16x256xbf16>
      tpu.vector_store %arg4[%c0_11, %c0_12], %13 {strides = array<i32>} : memref<16x256xbf16, #tpu.memory_space<vmem>>, vector<16x256xbf16>,
      %cst_13 = arith.constant dense<0.000000e+00> : vector<256xf32>
      %15 = vector.multi_reduction <add>, %12, %cst_13 [0] : vector<16x256xf32> to vector<256xf32>
      %16 = vector.shape_cast %15 : vector<256xf32> to vector<1x256xf32>
      %17 = vector.shape_cast %16 : vector<1x256xf32> to vector<1x1x256xf32>
      %c0_14 = arith.constant 0 : index
      %c0_15 = arith.constant 0 : index
      %c0_16 = arith.constant 0 : index
      %18 = vector.load %arg5[%c0_14, %c0_15, %c0_16] : memref<1x1x256xf32, #tpu.memory_space<vmem>>, vector<1x1x256xf32>
      tpu.vector_store %arg5[%c0_14, %c0_15, %c0_16], %17 {strides = array<i32>} : memref<1x1x256xf32, #tpu.memory_space<vmem>>, vector<1x1x256xf32>,
      %19 = arith.mulf %12, %12 : vector<16x256xf32>
      %cst_17 = arith.constant dense<0.000000e+00> : vector<256xf32>
      %20 = vector.multi_reduction <add>, %19, %cst_17 [0] : vector<16x256xf32> to vector<256xf32>
      %21 = vector.shape_cast %20 : vector<256xf32> to vector<1x256xf32>
      %22 = vector.shape_cast %21 : vector<1x256xf32> to vector<1x1x256xf32>
      %c0_18 = arith.constant 0 : index
      %c0_19 = arith.constant 0 : index
      %c0_20 = arith.constant 0 : index
      %23 = vector.load %arg6[%c0_18, %c0_19, %c0_20] : memref<1x1x256xf32, #tpu.memory_space<vmem>>, vector<1x1x256xf32>
      tpu.vector_store %arg6[%c0_18, %c0_19, %c0_20], %22 {strides = array<i32>} : memref<1x1x256xf32, #tpu.memory_space<vmem>>, vector<1x1x256xf32>,
    } else {
    }
    return
  }
  func.func @transform_0(%arg0: i32, %arg1: i32) -> (i32, i32) {
    %c0_i32 = arith.constant 0 : i32
    return %arg0, %arg1 : i32, i32
  }
  func.func @transform_1(%arg0: i32, %arg1: i32) -> (i32, i32) {
    %c0_i32 = arith.constant 0 : i32
    %c0_i32_0 = arith.constant 0 : i32
    return %arg1, %c0_i32 : i32, i32
  }
  func.func @transform_2(%arg0: i32, %arg1: i32) -> (i32, i32) {
    %c0_i32 = arith.constant 0 : i32
    %c0_i32_0 = arith.constant 0 : i32
    return %arg0, %c0_i32 : i32, i32
  }
  func.func @transform_3(%arg0: i32, %arg1: i32) -> (i32, i32, i32) {
    %c0_i32 = arith.constant 0 : i32
    %c0_i32_0 = arith.constant 0 : i32
    %c0_i32_1 = arith.constant 0 : i32
    return %arg0, %c0_i32, %c0_i32_0 : i32, i32, i32
  }
  func.func @transform_4(%arg0: i32, %arg1: i32) -> (i32, i32, i32) {
    %c0_i32 = arith.constant 0 : i32
    %c0_i32_0 = arith.constant 0 : i32
    %c0_i32_1 = arith.constant 0 : i32
    return %arg0, %c0_i32, %c0_i32_0 : i32, i32, i32
  }
}

module attributes {stable_mosaic.version = 11 : i64} {
  func.func @_mm_stats_kernel(%arg0: i32, %arg1: i32, %arg2: memref<16x768xbf16, #tpu.memory_space<vmem>>, %arg3: memref<768x256xbf16, #tpu.memory_space<vmem>>, %arg4: memref<16x256xbf16, #tpu.memory_space<vmem>>, %arg5: memref<1x1x256xf32, #tpu.memory_space<vmem>>, %arg6: memref<1x1x256xf32, #tpu.memory_space<vmem>>, %arg7: memref<16x256xf32, #tpu.memory_space<vmem>>) attributes {dimension_semantics = [#tpu.dimension_semantics<parallel>, #tpu.dimension_semantics<arbitrary>], iteration_bounds = array<i64: 1, 3>, scalar_prefetch = 0 : i64, scratch_operands = 1 : i64, tpu.core_type = #tpu.core_type<tc>, window_params = [{transform_indices = @transform_0, window_bounds = array<i64: 16, 768>}, {transform_indices = @transform_1, window_bounds = array<i64: 768, 256>}, {transform_indices = @transform_2, window_bounds = array<i64: 16, 256>}, {transform_indices = @transform_3, window_bounds = array<i64: 1, 1, 256>}, {transform_indices = @transform_4, window_bounds = array<i64: 1, 1, 256>}]} {
    %c0_i32 = arith.constant 0 : i32
    %0 = arith.cmpi eq, %arg1, %c0_i32 : i32
    %1 = arith.extui %0 : i1 to i32
    %c0_i32_0 = arith.constant 0 : i32
    %2 = arith.cmpi ne, %1, %c0_i32_0 : i32
    scf.if %2 {
      %cst_9 = arith.constant 0.000000e+00 : f32
      %12 = vector.broadcast %cst_9 : f32 to vector<16x256xf32>
      %c0_10 = arith.constant 0 : index
      %c0_11 = arith.constant 0 : index
      %13 = vector.load %arg7[%c0_10, %c0_11] : memref<16x256xf32, #tpu.memory_space<vmem>>, vector<16x256xf32>
      tpu.vector_store %arg7[%c0_10, %c0_11], %12 {strides = array<i32>} : memref<16x256xf32, #tpu.memory_space<vmem>>, vector<16x256xf32>,
    } else {
    }
    %c0 = arith.constant 0 : index
    %c0_1 = arith.constant 0 : index
    %3 = vector.load %arg7[%c0, %c0_1] : memref<16x256xf32, #tpu.memory_space<vmem>>, vector<16x256xf32>
    %c0_2 = arith.constant 0 : index
    %c0_3 = arith.constant 0 : index
    %4 = vector.load %arg2[%c0_2, %c0_3] : memref<16x768xbf16, #tpu.memory_space<vmem>>, vector<16x768xbf16>
    %c0_4 = arith.constant 0 : index
    %c0_5 = arith.constant 0 : index
    %5 = vector.load %arg3[%c0_4, %c0_5] : memref<768x256xbf16, #tpu.memory_space<vmem>>, vector<768x256xbf16>
    %cst = arith.constant dense<0.000000e+00> : vector<16x256xf32>
    %6 = tpu.matmul %4, %5, %cst {dimension_numbers = #tpu.dot_dimension_numbers<[1], [0], [0], [1], [0, 0, 1, 1], [], []>} : vector<16x768xbf16>, vector<768x256xbf16>, vector<16x256xf32> -> vector<16x256xf32>
    %7 = arith.addf %3, %6 : vector<16x256xf32>
    %c0_6 = arith.constant 0 : index
    %c0_7 = arith.constant 0 : index
    %8 = vector.load %arg7[%c0_6, %c0_7] : memref<16x256xf32, #tpu.memory_space<vmem>>, vector<16x256xf32>
    tpu.vector_store %arg7[%c0_6, %c0_7], %7 {strides = array<i32>} : memref<16x256xf32, #tpu.memory_space<vmem>>, vector<16x256xf32>,
    %c2_i32 = arith.constant 2 : i32
    %9 = arith.cmpi eq, %arg1, %c2_i32 : i32
    %10 = arith.extui %9 : i1 to i32
    %c0_i32_8 = arith.constant 0 : i32
    %11 = arith.cmpi ne, %10, %c0_i32_8 : i32
    scf.if %11 {
      %c0_9 = arith.constant 0 : index
      %c0_10 = arith.constant 0 : index
      %12 = vector.load %arg7[%c0_9, %c0_10] : memref<16x256xf32, #tpu.memory_space<vmem>>, vector<16x256xf32>
      %13 = arith.truncf %12 : vector<16x256xf32> to vector<16x256xbf16>
      %c0_11 = arith.constant 0 : index
      %c0_12 = arith.constant 0 : index
      %14 = vector.load %arg4[%c0_11, %c0_12] : memref<16x256xbf16, #tpu.memory_space<vmem>>, vector<16x256xbf16>
      tpu.vector_store %arg4[%c0_11, %c0_12], %13 {strides = array<i32>} : memref<16x256xbf16, #tpu.memory_space<vmem>>, vector<16x256xbf16>,
      %cst_13 = arith.constant dense<0.000000e+00> : vector<256xf32>
      %15 = vector.multi_reduction <add>, %12, %cst_13 [0] : vector<16x256xf32> to vector<256xf32>
      %16 = vector.shape_cast %15 : vector<256xf32> to vector<1x256xf32>
      %17 = vector.shape_cast %16 : vector<1x256xf32> to vector<1x1x256xf32>
      %c0_14 = arith.constant 0 : index
      %c0_15 = arith.constant 0 : index
      %c0_16 = arith.constant 0 : index
      %18 = vector.load %arg5[%c0_14, %c0_15, %c0_16] : memref<1x1x256xf32, #tpu.memory_space<vmem>>, vector<1x1x256xf32>
      tpu.vector_store %arg5[%c0_14, %c0_15, %c0_16], %17 {strides = array<i32>} : memref<1x1x256xf32, #tpu.memory_space<vmem>>, vector<1x1x256xf32>,
      %19 = arith.mulf %12, %12 : vector<16x256xf32>
      %cst_17 = arith.constant dense<0.000000e+00> : vector<256xf32>
      %20 = vector.multi_reduction <add>, %19, %cst_17 [0] : vector<16x256xf32> to vector<256xf32>
      %21 = vector.shape_cast %20 : vector<256xf32> to vector<1x256xf32>
      %22 = vector.shape_cast %21 : vector<1x256xf32> to vector<1x1x256xf32>
      %c0_18 = arith.constant 0 : index
      %c0_19 = arith.constant 0 : index
      %c0_20 = arith.constant 0 : index
      %23 = vector.load %arg6[%c0_18, %c0_19, %c0_20] : memref<1x1x256xf32, #tpu.memory_space<vmem>>, vector<1x1x256xf32>
      tpu.vector_store %arg6[%c0_18, %c0_19, %c0_20], %22 {strides = array<i32>} : memref<1x1x256xf32, #tpu.memory_space<vmem>>, vector<1x1x256xf32>,
    } else {
    }
    return
  }
  func.func @transform_0(%arg0: i32, %arg1: i32) -> (i32, i32) {
    %c0_i32 = arith.constant 0 : i32
    return %arg0, %arg1 : i32, i32
  }
  func.func @transform_1(%arg0: i32, %arg1: i32) -> (i32, i32) {
    %c0_i32 = arith.constant 0 : i32
    %c0_i32_0 = arith.constant 0 : i32
    return %arg1, %c0_i32 : i32, i32
  }
  func.func @transform_2(%arg0: i32, %arg1: i32) -> (i32, i32) {
    %c0_i32 = arith.constant 0 : i32
    %c0_i32_0 = arith.constant 0 : i32
    return %arg0, %c0_i32 : i32, i32
  }
  func.func @transform_3(%arg0: i32, %arg1: i32) -> (i32, i32, i32) {
    %c0_i32 = arith.constant 0 : i32
    %c0_i32_0 = arith.constant 0 : i32
    %c0_i32_1 = arith.constant 0 : i32
    return %arg0, %c0_i32, %c0_i32_0 : i32, i32, i32
  }
  func.func @transform_4(%arg0: i32, %arg1: i32) -> (i32, i32, i32) {
    %c0_i32 = arith.constant 0 : i32
    %c0_i32_0 = arith.constant 0 : i32
    %c0_i32_1 = arith.constant 0 : i32
    return %arg0, %c0_i32, %c0_i32_0 : i32, i32, i32
  }
}

module attributes {stable_mosaic.version = 11 : i64} {
  func.func @_mm_stats_kernel(%arg0: i32, %arg1: i32, %arg2: memref<16x128xbf16, #tpu.memory_space<vmem>>, %arg3: memref<128x256xbf16, #tpu.memory_space<vmem>>, %arg4: memref<16x256xbf16, #tpu.memory_space<vmem>>, %arg5: memref<1x1x256xf32, #tpu.memory_space<vmem>>, %arg6: memref<1x1x256xf32, #tpu.memory_space<vmem>>, %arg7: memref<16x256xf32, #tpu.memory_space<vmem>>) attributes {dimension_semantics = [#tpu.dimension_semantics<parallel>, #tpu.dimension_semantics<arbitrary>], iteration_bounds = array<i64: 1, 1>, scalar_prefetch = 0 : i64, scratch_operands = 1 : i64, tpu.core_type = #tpu.core_type<tc>, window_params = [{transform_indices = @transform_0, window_bounds = array<i64: 16, 128>}, {transform_indices = @transform_1, window_bounds = array<i64: 128, 256>}, {transform_indices = @transform_2, window_bounds = array<i64: 16, 256>}, {transform_indices = @transform_3, window_bounds = array<i64: 1, 1, 256>}, {transform_indices = @transform_4, window_bounds = array<i64: 1, 1, 256>}]} {
    %c0_i32 = arith.constant 0 : i32
    %0 = arith.cmpi eq, %arg1, %c0_i32 : i32
    %1 = arith.extui %0 : i1 to i32
    %c0_i32_0 = arith.constant 0 : i32
    %2 = arith.cmpi ne, %1, %c0_i32_0 : i32
    scf.if %2 {
      %cst_10 = arith.constant 0.000000e+00 : f32
      %12 = vector.broadcast %cst_10 : f32 to vector<16x256xf32>
      %c0_11 = arith.constant 0 : index
      %c0_12 = arith.constant 0 : index
      %13 = vector.load %arg7[%c0_11, %c0_12] : memref<16x256xf32, #tpu.memory_space<vmem>>, vector<16x256xf32>
      tpu.vector_store %arg7[%c0_11, %c0_12], %12 {strides = array<i32>} : memref<16x256xf32, #tpu.memory_space<vmem>>, vector<16x256xf32>,
    } else {
    }
    %c0 = arith.constant 0 : index
    %c0_1 = arith.constant 0 : index
    %3 = vector.load %arg7[%c0, %c0_1] : memref<16x256xf32, #tpu.memory_space<vmem>>, vector<16x256xf32>
    %c0_2 = arith.constant 0 : index
    %c0_3 = arith.constant 0 : index
    %4 = vector.load %arg2[%c0_2, %c0_3] : memref<16x128xbf16, #tpu.memory_space<vmem>>, vector<16x128xbf16>
    %c0_4 = arith.constant 0 : index
    %c0_5 = arith.constant 0 : index
    %5 = vector.load %arg3[%c0_4, %c0_5] : memref<128x256xbf16, #tpu.memory_space<vmem>>, vector<128x256xbf16>
    %cst = arith.constant dense<0.000000e+00> : vector<16x256xf32>
    %6 = tpu.matmul %4, %5, %cst {dimension_numbers = #tpu.dot_dimension_numbers<[1], [0], [0], [1], [0, 0, 1, 1], [], []>} : vector<16x128xbf16>, vector<128x256xbf16>, vector<16x256xf32> -> vector<16x256xf32>
    %7 = arith.addf %3, %6 : vector<16x256xf32>
    %c0_6 = arith.constant 0 : index
    %c0_7 = arith.constant 0 : index
    %8 = vector.load %arg7[%c0_6, %c0_7] : memref<16x256xf32, #tpu.memory_space<vmem>>, vector<16x256xf32>
    tpu.vector_store %arg7[%c0_6, %c0_7], %7 {strides = array<i32>} : memref<16x256xf32, #tpu.memory_space<vmem>>, vector<16x256xf32>,
    %c0_i32_8 = arith.constant 0 : i32
    %9 = arith.cmpi eq, %arg1, %c0_i32_8 : i32
    %10 = arith.extui %9 : i1 to i32
    %c0_i32_9 = arith.constant 0 : i32
    %11 = arith.cmpi ne, %10, %c0_i32_9 : i32
    scf.if %11 {
      %c0_10 = arith.constant 0 : index
      %c0_11 = arith.constant 0 : index
      %12 = vector.load %arg7[%c0_10, %c0_11] : memref<16x256xf32, #tpu.memory_space<vmem>>, vector<16x256xf32>
      %13 = arith.truncf %12 : vector<16x256xf32> to vector<16x256xbf16>
      %c0_12 = arith.constant 0 : index
      %c0_13 = arith.constant 0 : index
      %14 = vector.load %arg4[%c0_12, %c0_13] : memref<16x256xbf16, #tpu.memory_space<vmem>>, vector<16x256xbf16>
      tpu.vector_store %arg4[%c0_12, %c0_13], %13 {strides = array<i32>} : memref<16x256xbf16, #tpu.memory_space<vmem>>, vector<16x256xbf16>,
      %cst_14 = arith.constant dense<0.000000e+00> : vector<256xf32>
      %15 = vector.multi_reduction <add>, %12, %cst_14 [0] : vector<16x256xf32> to vector<256xf32>
      %16 = vector.shape_cast %15 : vector<256xf32> to vector<1x256xf32>
      %17 = vector.shape_cast %16 : vector<1x256xf32> to vector<1x1x256xf32>
      %c0_15 = arith.constant 0 : index
      %c0_16 = arith.constant 0 : index
      %c0_17 = arith.constant 0 : index
      %18 = vector.load %arg5[%c0_15, %c0_16, %c0_17] : memref<1x1x256xf32, #tpu.memory_space<vmem>>, vector<1x1x256xf32>
      tpu.vector_store %arg5[%c0_15, %c0_16, %c0_17], %17 {strides = array<i32>} : memref<1x1x256xf32, #tpu.memory_space<vmem>>, vector<1x1x256xf32>,
      %19 = arith.mulf %12, %12 : vector<16x256xf32>
      %cst_18 = arith.constant dense<0.000000e+00> : vector<256xf32>
      %20 = vector.multi_reduction <add>, %19, %cst_18 [0] : vector<16x256xf32> to vector<256xf32>
      %21 = vector.shape_cast %20 : vector<256xf32> to vector<1x256xf32>
      %22 = vector.shape_cast %21 : vector<1x256xf32> to vector<1x1x256xf32>
      %c0_19 = arith.constant 0 : index
      %c0_20 = arith.constant 0 : index
      %c0_21 = arith.constant 0 : index
      %23 = vector.load %arg6[%c0_19, %c0_20, %c0_21] : memref<1x1x256xf32, #tpu.memory_space<vmem>>, vector<1x1x256xf32>
      tpu.vector_store %arg6[%c0_19, %c0_20, %c0_21], %22 {strides = array<i32>} : memref<1x1x256xf32, #tpu.memory_space<vmem>>, vector<1x1x256xf32>,
    } else {
    }
    return
  }
  func.func @transform_0(%arg0: i32, %arg1: i32) -> (i32, i32) {
    %c0_i32 = arith.constant 0 : i32
    return %arg0, %arg1 : i32, i32
  }
  func.func @transform_1(%arg0: i32, %arg1: i32) -> (i32, i32) {
    %c0_i32 = arith.constant 0 : i32
    %c0_i32_0 = arith.constant 0 : i32
    return %arg1, %c0_i32 : i32, i32
  }
  func.func @transform_2(%arg0: i32, %arg1: i32) -> (i32, i32) {
    %c0_i32 = arith.constant 0 : i32
    %c0_i32_0 = arith.constant 0 : i32
    return %arg0, %c0_i32 : i32, i32
  }
  func.func @transform_3(%arg0: i32, %arg1: i32) -> (i32, i32, i32) {
    %c0_i32 = arith.constant 0 : i32
    %c0_i32_0 = arith.constant 0 : i32
    %c0_i32_1 = arith.constant 0 : i32
    return %arg0, %c0_i32, %c0_i32_0 : i32, i32, i32
  }
  func.func @transform_4(%arg0: i32, %arg1: i32) -> (i32, i32, i32) {
    %c0_i32 = arith.constant 0 : i32
    %c0_i32_0 = arith.constant 0 : i32
    %c0_i32_1 = arith.constant 0 : i32
    return %arg0, %c0_i32, %c0_i32_0 : i32, i32, i32
  }
}

module attributes {stable_mosaic.version = 11 : i64} {
  func.func @_affine_kernel(%arg0: i32, %arg1: memref<16x256xbf16, #tpu.memory_space<vmem>>, %arg2: memref<1x256xf32, #tpu.memory_space<vmem>>, %arg3: memref<1x256xf32, #tpu.memory_space<vmem>>, %arg4: memref<16x256xbf16, #tpu.memory_space<vmem>>) attributes {dimension_semantics = [#tpu.dimension_semantics<parallel>], iteration_bounds = array<i64: 1>, scalar_prefetch = 0 : i64, scratch_operands = 0 : i64, tpu.core_type = #tpu.core_type<tc>, window_params = [{transform_indices = @transform_0, window_bounds = array<i64: 16, 256>}, {pipeline_mode = #tpu.pipeline_mode<synchronous>, transform_indices = @transform_1, window_bounds = array<i64: 1, 256>}, {pipeline_mode = #tpu.pipeline_mode<synchronous>, transform_indices = @transform_2, window_bounds = array<i64: 1, 256>}, {transform_indices = @transform_3, window_bounds = array<i64: 16, 256>}]} {
    %c0 = arith.constant 0 : index
    %c0_0 = arith.constant 0 : index
    %0 = vector.load %arg1[%c0, %c0_0] : memref<16x256xbf16, #tpu.memory_space<vmem>>, vector<16x256xbf16>
    %1 = arith.extf %0 : vector<16x256xbf16> to vector<16x256xf32>
    %c0_1 = arith.constant 0 : index
    %c0_2 = arith.constant 0 : index
    %2 = vector.load %arg2[%c0_1, %c0_2] : memref<1x256xf32, #tpu.memory_space<vmem>>, vector<1x256xf32>
    %3 = vector.broadcast %2 : vector<1x256xf32> to vector<16x256xf32>
    %4 = arith.mulf %1, %3 : vector<16x256xf32>
    %c0_3 = arith.constant 0 : index
    %c0_4 = arith.constant 0 : index
    %5 = vector.load %arg3[%c0_3, %c0_4] : memref<1x256xf32, #tpu.memory_space<vmem>>, vector<1x256xf32>
    %6 = vector.broadcast %5 : vector<1x256xf32> to vector<16x256xf32>
    %7 = arith.addf %4, %6 : vector<16x256xf32>
    %8 = arith.truncf %7 : vector<16x256xf32> to vector<16x256xbf16>
    %c0_5 = arith.constant 0 : index
    %c0_6 = arith.constant 0 : index
    %9 = vector.load %arg4[%c0_5, %c0_6] : memref<16x256xbf16, #tpu.memory_space<vmem>>, vector<16x256xbf16>
    tpu.vector_store %arg4[%c0_5, %c0_6], %8 {strides = array<i32>} : memref<16x256xbf16, #tpu.memory_space<vmem>>, vector<16x256xbf16>,
    return
  }
  func.func @transform_0(%arg0: i32) -> (i32, i32) {
    %c0_i32 = arith.constant 0 : i32
    %c0_i32_0 = arith.constant 0 : i32
    return %arg0, %c0_i32 : i32, i32
  }
  func.func @transform_1(%arg0: i32) -> (i32, i32) {
    %c0_i32 = arith.constant 0 : i32
    %c0_i32_0 = arith.constant 0 : i32
    %c0_i32_1 = arith.constant 0 : i32
    return %c0_i32, %c0_i32_0 : i32, i32
  }
  func.func @transform_2(%arg0: i32) -> (i32, i32) {
    %c0_i32 = arith.constant 0 : i32
    %c0_i32_0 = arith.constant 0 : i32
    %c0_i32_1 = arith.constant 0 : i32
    return %c0_i32, %c0_i32_0 : i32, i32
  }
  func.func @transform_3(%arg0: i32) -> (i32, i32) {
    %c0_i32 = arith.constant 0 : i32
    %c0_i32_0 = arith.constant 0 : i32
    return %arg0, %c0_i32 : i32, i32
  }
}

module attributes {stable_mosaic.version = 11 : i64} {
  func.func @_affine_add_relu_kernel(%arg0: i32, %arg1: memref<16x256xbf16, #tpu.memory_space<vmem>>, %arg2: memref<16x256xbf16, #tpu.memory_space<vmem>>, %arg3: memref<1x256xf32, #tpu.memory_space<vmem>>, %arg4: memref<1x256xf32, #tpu.memory_space<vmem>>, %arg5: memref<16x256xbf16, #tpu.memory_space<vmem>>) attributes {dimension_semantics = [#tpu.dimension_semantics<parallel>], iteration_bounds = array<i64: 1>, scalar_prefetch = 0 : i64, scratch_operands = 0 : i64, tpu.core_type = #tpu.core_type<tc>, window_params = [{transform_indices = @transform_0, window_bounds = array<i64: 16, 256>}, {transform_indices = @transform_1, window_bounds = array<i64: 16, 256>}, {pipeline_mode = #tpu.pipeline_mode<synchronous>, transform_indices = @transform_2, window_bounds = array<i64: 1, 256>}, {pipeline_mode = #tpu.pipeline_mode<synchronous>, transform_indices = @transform_3, window_bounds = array<i64: 1, 256>}, {transform_indices = @transform_4, window_bounds = array<i64: 16, 256>}]} {
    %c0 = arith.constant 0 : index
    %c0_0 = arith.constant 0 : index
    %0 = vector.load %arg1[%c0, %c0_0] : memref<16x256xbf16, #tpu.memory_space<vmem>>, vector<16x256xbf16>
    %1 = arith.extf %0 : vector<16x256xbf16> to vector<16x256xf32>
    %c0_1 = arith.constant 0 : index
    %c0_2 = arith.constant 0 : index
    %2 = vector.load %arg3[%c0_1, %c0_2] : memref<1x256xf32, #tpu.memory_space<vmem>>, vector<1x256xf32>
    %3 = vector.broadcast %2 : vector<1x256xf32> to vector<16x256xf32>
    %4 = arith.mulf %1, %3 : vector<16x256xf32>
    %c0_3 = arith.constant 0 : index
    %c0_4 = arith.constant 0 : index
    %5 = vector.load %arg4[%c0_3, %c0_4] : memref<1x256xf32, #tpu.memory_space<vmem>>, vector<1x256xf32>
    %6 = vector.broadcast %5 : vector<1x256xf32> to vector<16x256xf32>
    %7 = arith.addf %4, %6 : vector<16x256xf32>
    %c0_5 = arith.constant 0 : index
    %c0_6 = arith.constant 0 : index
    %8 = vector.load %arg2[%c0_5, %c0_6] : memref<16x256xbf16, #tpu.memory_space<vmem>>, vector<16x256xbf16>
    %9 = arith.extf %8 : vector<16x256xbf16> to vector<16x256xf32>
    %10 = arith.addf %7, %9 : vector<16x256xf32>
    %cst = arith.constant 0.000000e+00 : f32
    %11 = vector.broadcast %cst : f32 to vector<16x256xf32>
    %12 = arith.maximumf %10, %11 : vector<16x256xf32>
    %13 = arith.truncf %12 : vector<16x256xf32> to vector<16x256xbf16>
    %c0_7 = arith.constant 0 : index
    %c0_8 = arith.constant 0 : index
    %14 = vector.load %arg5[%c0_7, %c0_8] : memref<16x256xbf16, #tpu.memory_space<vmem>>, vector<16x256xbf16>
    tpu.vector_store %arg5[%c0_7, %c0_8], %13 {strides = array<i32>} : memref<16x256xbf16, #tpu.memory_space<vmem>>, vector<16x256xbf16>,
    return
  }
  func.func @transform_0(%arg0: i32) -> (i32, i32) {
    %c0_i32 = arith.constant 0 : i32
    %c0_i32_0 = arith.constant 0 : i32
    return %arg0, %c0_i32 : i32, i32
  }
  func.func @transform_1(%arg0: i32) -> (i32, i32) {
    %c0_i32 = arith.constant 0 : i32
    %c0_i32_0 = arith.constant 0 : i32
    return %arg0, %c0_i32 : i32, i32
  }
  func.func @transform_2(%arg0: i32) -> (i32, i32) {
    %c0_i32 = arith.constant 0 : i32
    %c0_i32_0 = arith.constant 0 : i32
    %c0_i32_1 = arith.constant 0 : i32
    return %c0_i32, %c0_i32_0 : i32, i32
  }
  func.func @transform_3(%arg0: i32) -> (i32, i32) {
    %c0_i32 = arith.constant 0 : i32
    %c0_i32_0 = arith.constant 0 : i32
    %c0_i32_1 = arith.constant 0 : i32
    return %c0_i32, %c0_i32_0 : i32, i32
  }
  func.func @transform_4(%arg0: i32) -> (i32, i32) {
    %c0_i32 = arith.constant 0 : i32
    %c0_i32_0 = arith.constant 0 : i32
    return %arg0, %c0_i32 : i32, i32
  }
}

module attributes {stable_mosaic.version = 11 : i64} {
  func.func @_affine_kernel(%arg0: i32, %arg1: memref<16x512xbf16, #tpu.memory_space<vmem>>, %arg2: memref<1x512xf32, #tpu.memory_space<vmem>>, %arg3: memref<1x512xf32, #tpu.memory_space<vmem>>, %arg4: memref<16x512xbf16, #tpu.memory_space<vmem>>) attributes {dimension_semantics = [#tpu.dimension_semantics<parallel>], iteration_bounds = array<i64: 1>, scalar_prefetch = 0 : i64, scratch_operands = 0 : i64, tpu.core_type = #tpu.core_type<tc>, window_params = [{transform_indices = @transform_0, window_bounds = array<i64: 16, 512>}, {pipeline_mode = #tpu.pipeline_mode<synchronous>, transform_indices = @transform_1, window_bounds = array<i64: 1, 512>}, {pipeline_mode = #tpu.pipeline_mode<synchronous>, transform_indices = @transform_2, window_bounds = array<i64: 1, 512>}, {transform_indices = @transform_3, window_bounds = array<i64: 16, 512>}]} {
    %c0 = arith.constant 0 : index
    %c0_0 = arith.constant 0 : index
    %0 = vector.load %arg1[%c0, %c0_0] : memref<16x512xbf16, #tpu.memory_space<vmem>>, vector<16x512xbf16>
    %1 = arith.extf %0 : vector<16x512xbf16> to vector<16x512xf32>
    %c0_1 = arith.constant 0 : index
    %c0_2 = arith.constant 0 : index
    %2 = vector.load %arg2[%c0_1, %c0_2] : memref<1x512xf32, #tpu.memory_space<vmem>>, vector<1x512xf32>
    %3 = vector.broadcast %2 : vector<1x512xf32> to vector<16x512xf32>
    %4 = arith.mulf %1, %3 : vector<16x512xf32>
    %c0_3 = arith.constant 0 : index
    %c0_4 = arith.constant 0 : index
    %5 = vector.load %arg3[%c0_3, %c0_4] : memref<1x512xf32, #tpu.memory_space<vmem>>, vector<1x512xf32>
    %6 = vector.broadcast %5 : vector<1x512xf32> to vector<16x512xf32>
    %7 = arith.addf %4, %6 : vector<16x512xf32>
    %cst = arith.constant 0.000000e+00 : f32
    %8 = vector.broadcast %cst : f32 to vector<16x512xf32>
    %9 = arith.maximumf %7, %8 : vector<16x512xf32>
    %10 = arith.truncf %9 : vector<16x512xf32> to vector<16x512xbf16>
    %c0_5 = arith.constant 0 : index
    %c0_6 = arith.constant 0 : index
    %11 = vector.load %arg4[%c0_5, %c0_6] : memref<16x512xbf16, #tpu.memory_space<vmem>>, vector<16x512xbf16>
    tpu.vector_store %arg4[%c0_5, %c0_6], %10 {strides = array<i32>} : memref<16x512xbf16, #tpu.memory_space<vmem>>, vector<16x512xbf16>,
    return
  }
  func.func @transform_0(%arg0: i32) -> (i32, i32) {
    %c0_i32 = arith.constant 0 : i32
    %c0_i32_0 = arith.constant 0 : i32
    return %arg0, %c0_i32 : i32, i32
  }
  func.func @transform_1(%arg0: i32) -> (i32, i32) {
    %c0_i32 = arith.constant 0 : i32
    %c0_i32_0 = arith.constant 0 : i32
    %c0_i32_1 = arith.constant 0 : i32
    return %c0_i32, %c0_i32_0 : i32, i32
  }
  func.func @transform_2(%arg0: i32) -> (i32, i32) {
    %c0_i32 = arith.constant 0 : i32
    %c0_i32_0 = arith.constant 0 : i32
    %c0_i32_1 = arith.constant 0 : i32
    return %c0_i32, %c0_i32_0 : i32, i32
  }
  func.func @transform_3(%arg0: i32) -> (i32, i32) {
    %c0_i32 = arith.constant 0 : i32
    %c0_i32_0 = arith.constant 0 : i32
    return %arg0, %c0_i32 : i32, i32
  }
}

module attributes {stable_mosaic.version = 11 : i64} {
  func.func @_mm_stats_kernel(%arg0: i32, %arg1: i32, %arg2: memref<16x768xbf16, #tpu.memory_space<vmem>>, %arg3: memref<768x512xbf16, #tpu.memory_space<vmem>>, %arg4: memref<16x512xbf16, #tpu.memory_space<vmem>>, %arg5: memref<1x1x512xf32, #tpu.memory_space<vmem>>, %arg6: memref<1x1x512xf32, #tpu.memory_space<vmem>>, %arg7: memref<16x512xf32, #tpu.memory_space<vmem>>) attributes {dimension_semantics = [#tpu.dimension_semantics<parallel>, #tpu.dimension_semantics<arbitrary>], iteration_bounds = array<i64: 1, 3>, scalar_prefetch = 0 : i64, scratch_operands = 1 : i64, tpu.core_type = #tpu.core_type<tc>, window_params = [{transform_indices = @transform_0, window_bounds = array<i64: 16, 768>}, {transform_indices = @transform_1, window_bounds = array<i64: 768, 512>}, {transform_indices = @transform_2, window_bounds = array<i64: 16, 512>}, {transform_indices = @transform_3, window_bounds = array<i64: 1, 1, 512>}, {transform_indices = @transform_4, window_bounds = array<i64: 1, 1, 512>}]} {
    %c0_i32 = arith.constant 0 : i32
    %0 = arith.cmpi eq, %arg1, %c0_i32 : i32
    %1 = arith.extui %0 : i1 to i32
    %c0_i32_0 = arith.constant 0 : i32
    %2 = arith.cmpi ne, %1, %c0_i32_0 : i32
    scf.if %2 {
      %cst_9 = arith.constant 0.000000e+00 : f32
      %12 = vector.broadcast %cst_9 : f32 to vector<16x512xf32>
      %c0_10 = arith.constant 0 : index
      %c0_11 = arith.constant 0 : index
      %13 = vector.load %arg7[%c0_10, %c0_11] : memref<16x512xf32, #tpu.memory_space<vmem>>, vector<16x512xf32>
      tpu.vector_store %arg7[%c0_10, %c0_11], %12 {strides = array<i32>} : memref<16x512xf32, #tpu.memory_space<vmem>>, vector<16x512xf32>,
    } else {
    }
    %c0 = arith.constant 0 : index
    %c0_1 = arith.constant 0 : index
    %3 = vector.load %arg7[%c0, %c0_1] : memref<16x512xf32, #tpu.memory_space<vmem>>, vector<16x512xf32>
    %c0_2 = arith.constant 0 : index
    %c0_3 = arith.constant 0 : index
    %4 = vector.load %arg2[%c0_2, %c0_3] : memref<16x768xbf16, #tpu.memory_space<vmem>>, vector<16x768xbf16>
    %c0_4 = arith.constant 0 : index
    %c0_5 = arith.constant 0 : index
    %5 = vector.load %arg3[%c0_4, %c0_5] : memref<768x512xbf16, #tpu.memory_space<vmem>>, vector<768x512xbf16>
    %cst = arith.constant dense<0.000000e+00> : vector<16x512xf32>
    %6 = tpu.matmul %4, %5, %cst {dimension_numbers = #tpu.dot_dimension_numbers<[1], [0], [0], [1], [0, 0, 1, 1], [], []>} : vector<16x768xbf16>, vector<768x512xbf16>, vector<16x512xf32> -> vector<16x512xf32>
    %7 = arith.addf %3, %6 : vector<16x512xf32>
    %c0_6 = arith.constant 0 : index
    %c0_7 = arith.constant 0 : index
    %8 = vector.load %arg7[%c0_6, %c0_7] : memref<16x512xf32, #tpu.memory_space<vmem>>, vector<16x512xf32>
    tpu.vector_store %arg7[%c0_6, %c0_7], %7 {strides = array<i32>} : memref<16x512xf32, #tpu.memory_space<vmem>>, vector<16x512xf32>,
    %c2_i32 = arith.constant 2 : i32
    %9 = arith.cmpi eq, %arg1, %c2_i32 : i32
    %10 = arith.extui %9 : i1 to i32
    %c0_i32_8 = arith.constant 0 : i32
    %11 = arith.cmpi ne, %10, %c0_i32_8 : i32
    scf.if %11 {
      %c0_9 = arith.constant 0 : index
      %c0_10 = arith.constant 0 : index
      %12 = vector.load %arg7[%c0_9, %c0_10] : memref<16x512xf32, #tpu.memory_space<vmem>>, vector<16x512xf32>
      %13 = arith.truncf %12 : vector<16x512xf32> to vector<16x512xbf16>
      %c0_11 = arith.constant 0 : index
      %c0_12 = arith.constant 0 : index
      %14 = vector.load %arg4[%c0_11, %c0_12] : memref<16x512xbf16, #tpu.memory_space<vmem>>, vector<16x512xbf16>
      tpu.vector_store %arg4[%c0_11, %c0_12], %13 {strides = array<i32>} : memref<16x512xbf16, #tpu.memory_space<vmem>>, vector<16x512xbf16>,
      %cst_13 = arith.constant dense<0.000000e+00> : vector<512xf32>
      %15 = vector.multi_reduction <add>, %12, %cst_13 [0] : vector<16x512xf32> to vector<512xf32>
      %16 = vector.shape_cast %15 : vector<512xf32> to vector<1x512xf32>
      %17 = vector.shape_cast %16 : vector<1x512xf32> to vector<1x1x512xf32>
      %c0_14 = arith.constant 0 : index
      %c0_15 = arith.constant 0 : index
      %c0_16 = arith.constant 0 : index
      %18 = vector.load %arg5[%c0_14, %c0_15, %c0_16] : memref<1x1x512xf32, #tpu.memory_space<vmem>>, vector<1x1x512xf32>
      tpu.vector_store %arg5[%c0_14, %c0_15, %c0_16], %17 {strides = array<i32>} : memref<1x1x512xf32, #tpu.memory_space<vmem>>, vector<1x1x512xf32>,
      %19 = arith.mulf %12, %12 : vector<16x512xf32>
      %cst_17 = arith.constant dense<0.000000e+00> : vector<512xf32>
      %20 = vector.multi_reduction <add>, %19, %cst_17 [0] : vector<16x512xf32> to vector<512xf32>
      %21 = vector.shape_cast %20 : vector<512xf32> to vector<1x512xf32>
      %22 = vector.shape_cast %21 : vector<1x512xf32> to vector<1x1x512xf32>
      %c0_18 = arith.constant 0 : index
      %c0_19 = arith.constant 0 : index
      %c0_20 = arith.constant 0 : index
      %23 = vector.load %arg6[%c0_18, %c0_19, %c0_20] : memref<1x1x512xf32, #tpu.memory_space<vmem>>, vector<1x1x512xf32>
      tpu.vector_store %arg6[%c0_18, %c0_19, %c0_20], %22 {strides = array<i32>} : memref<1x1x512xf32, #tpu.memory_space<vmem>>, vector<1x1x512xf32>,
    } else {
    }
    return
  }
  func.func @transform_0(%arg0: i32, %arg1: i32) -> (i32, i32) {
    %c0_i32 = arith.constant 0 : i32
    return %arg0, %arg1 : i32, i32
  }
  func.func @transform_1(%arg0: i32, %arg1: i32) -> (i32, i32) {
    %c0_i32 = arith.constant 0 : i32
    %c0_i32_0 = arith.constant 0 : i32
    return %arg1, %c0_i32 : i32, i32
  }
  func.func @transform_2(%arg0: i32, %arg1: i32) -> (i32, i32) {
    %c0_i32 = arith.constant 0 : i32
    %c0_i32_0 = arith.constant 0 : i32
    return %arg0, %c0_i32 : i32, i32
  }
  func.func @transform_3(%arg0: i32, %arg1: i32) -> (i32, i32, i32) {
    %c0_i32 = arith.constant 0 : i32
    %c0_i32_0 = arith.constant 0 : i32
    %c0_i32_1 = arith.constant 0 : i32
    return %arg0, %c0_i32, %c0_i32_0 : i32, i32, i32
  }
  func.func @transform_4(%arg0: i32, %arg1: i32) -> (i32, i32, i32) {
    %c0_i32 = arith.constant 0 : i32
    %c0_i32_0 = arith.constant 0 : i32
    %c0_i32_1 = arith.constant 0 : i32
    return %arg0, %c0_i32, %c0_i32_0 : i32, i32, i32
  }
}

module attributes {stable_mosaic.version = 11 : i64} {
  func.func @_mm_stats_kernel(%arg0: i32, %arg1: i32, %arg2: memref<16x768xbf16, #tpu.memory_space<vmem>>, %arg3: memref<768x512xbf16, #tpu.memory_space<vmem>>, %arg4: memref<16x512xbf16, #tpu.memory_space<vmem>>, %arg5: memref<1x1x512xf32, #tpu.memory_space<vmem>>, %arg6: memref<1x1x512xf32, #tpu.memory_space<vmem>>, %arg7: memref<16x512xf32, #tpu.memory_space<vmem>>) attributes {dimension_semantics = [#tpu.dimension_semantics<parallel>, #tpu.dimension_semantics<arbitrary>], iteration_bounds = array<i64: 1, 6>, scalar_prefetch = 0 : i64, scratch_operands = 1 : i64, tpu.core_type = #tpu.core_type<tc>, window_params = [{transform_indices = @transform_0, window_bounds = array<i64: 16, 768>}, {transform_indices = @transform_1, window_bounds = array<i64: 768, 512>}, {transform_indices = @transform_2, window_bounds = array<i64: 16, 512>}, {transform_indices = @transform_3, window_bounds = array<i64: 1, 1, 512>}, {transform_indices = @transform_4, window_bounds = array<i64: 1, 1, 512>}]} {
    %c0_i32 = arith.constant 0 : i32
    %0 = arith.cmpi eq, %arg1, %c0_i32 : i32
    %1 = arith.extui %0 : i1 to i32
    %c0_i32_0 = arith.constant 0 : i32
    %2 = arith.cmpi ne, %1, %c0_i32_0 : i32
    scf.if %2 {
      %cst_9 = arith.constant 0.000000e+00 : f32
      %12 = vector.broadcast %cst_9 : f32 to vector<16x512xf32>
      %c0_10 = arith.constant 0 : index
      %c0_11 = arith.constant 0 : index
      %13 = vector.load %arg7[%c0_10, %c0_11] : memref<16x512xf32, #tpu.memory_space<vmem>>, vector<16x512xf32>
      tpu.vector_store %arg7[%c0_10, %c0_11], %12 {strides = array<i32>} : memref<16x512xf32, #tpu.memory_space<vmem>>, vector<16x512xf32>,
    } else {
    }
    %c0 = arith.constant 0 : index
    %c0_1 = arith.constant 0 : index
    %3 = vector.load %arg7[%c0, %c0_1] : memref<16x512xf32, #tpu.memory_space<vmem>>, vector<16x512xf32>
    %c0_2 = arith.constant 0 : index
    %c0_3 = arith.constant 0 : index
    %4 = vector.load %arg2[%c0_2, %c0_3] : memref<16x768xbf16, #tpu.memory_space<vmem>>, vector<16x768xbf16>
    %c0_4 = arith.constant 0 : index
    %c0_5 = arith.constant 0 : index
    %5 = vector.load %arg3[%c0_4, %c0_5] : memref<768x512xbf16, #tpu.memory_space<vmem>>, vector<768x512xbf16>
    %cst = arith.constant dense<0.000000e+00> : vector<16x512xf32>
    %6 = tpu.matmul %4, %5, %cst {dimension_numbers = #tpu.dot_dimension_numbers<[1], [0], [0], [1], [0, 0, 1, 1], [], []>} : vector<16x768xbf16>, vector<768x512xbf16>, vector<16x512xf32> -> vector<16x512xf32>
    %7 = arith.addf %3, %6 : vector<16x512xf32>
    %c0_6 = arith.constant 0 : index
    %c0_7 = arith.constant 0 : index
    %8 = vector.load %arg7[%c0_6, %c0_7] : memref<16x512xf32, #tpu.memory_space<vmem>>, vector<16x512xf32>
    tpu.vector_store %arg7[%c0_6, %c0_7], %7 {strides = array<i32>} : memref<16x512xf32, #tpu.memory_space<vmem>>, vector<16x512xf32>,
    %c5_i32 = arith.constant 5 : i32
    %9 = arith.cmpi eq, %arg1, %c5_i32 : i32
    %10 = arith.extui %9 : i1 to i32
    %c0_i32_8 = arith.constant 0 : i32
    %11 = arith.cmpi ne, %10, %c0_i32_8 : i32
    scf.if %11 {
      %c0_9 = arith.constant 0 : index
      %c0_10 = arith.constant 0 : index
      %12 = vector.load %arg7[%c0_9, %c0_10] : memref<16x512xf32, #tpu.memory_space<vmem>>, vector<16x512xf32>
      %13 = arith.truncf %12 : vector<16x512xf32> to vector<16x512xbf16>
      %c0_11 = arith.constant 0 : index
      %c0_12 = arith.constant 0 : index
      %14 = vector.load %arg4[%c0_11, %c0_12] : memref<16x512xbf16, #tpu.memory_space<vmem>>, vector<16x512xbf16>
      tpu.vector_store %arg4[%c0_11, %c0_12], %13 {strides = array<i32>} : memref<16x512xbf16, #tpu.memory_space<vmem>>, vector<16x512xbf16>,
      %cst_13 = arith.constant dense<0.000000e+00> : vector<512xf32>
      %15 = vector.multi_reduction <add>, %12, %cst_13 [0] : vector<16x512xf32> to vector<512xf32>
      %16 = vector.shape_cast %15 : vector<512xf32> to vector<1x512xf32>
      %17 = vector.shape_cast %16 : vector<1x512xf32> to vector<1x1x512xf32>
      %c0_14 = arith.constant 0 : index
      %c0_15 = arith.constant 0 : index
      %c0_16 = arith.constant 0 : index
      %18 = vector.load %arg5[%c0_14, %c0_15, %c0_16] : memref<1x1x512xf32, #tpu.memory_space<vmem>>, vector<1x1x512xf32>
      tpu.vector_store %arg5[%c0_14, %c0_15, %c0_16], %17 {strides = array<i32>} : memref<1x1x512xf32, #tpu.memory_space<vmem>>, vector<1x1x512xf32>,
      %19 = arith.mulf %12, %12 : vector<16x512xf32>
      %cst_17 = arith.constant dense<0.000000e+00> : vector<512xf32>
      %20 = vector.multi_reduction <add>, %19, %cst_17 [0] : vector<16x512xf32> to vector<512xf32>
      %21 = vector.shape_cast %20 : vector<512xf32> to vector<1x512xf32>
      %22 = vector.shape_cast %21 : vector<1x512xf32> to vector<1x1x512xf32>
      %c0_18 = arith.constant 0 : index
      %c0_19 = arith.constant 0 : index
      %c0_20 = arith.constant 0 : index
      %23 = vector.load %arg6[%c0_18, %c0_19, %c0_20] : memref<1x1x512xf32, #tpu.memory_space<vmem>>, vector<1x1x512xf32>
      tpu.vector_store %arg6[%c0_18, %c0_19, %c0_20], %22 {strides = array<i32>} : memref<1x1x512xf32, #tpu.memory_space<vmem>>, vector<1x1x512xf32>,
    } else {
    }
    return
  }
  func.func @transform_0(%arg0: i32, %arg1: i32) -> (i32, i32) {
    %c0_i32 = arith.constant 0 : i32
    return %arg0, %arg1 : i32, i32
  }
  func.func @transform_1(%arg0: i32, %arg1: i32) -> (i32, i32) {
    %c0_i32 = arith.constant 0 : i32
    %c0_i32_0 = arith.constant 0 : i32
    return %arg1, %c0_i32 : i32, i32
  }
  func.func @transform_2(%arg0: i32, %arg1: i32) -> (i32, i32) {
    %c0_i32 = arith.constant 0 : i32
    %c0_i32_0 = arith.constant 0 : i32
    return %arg0, %c0_i32 : i32, i32
  }
  func.func @transform_3(%arg0: i32, %arg1: i32) -> (i32, i32, i32) {
    %c0_i32 = arith.constant 0 : i32
    %c0_i32_0 = arith.constant 0 : i32
    %c0_i32_1 = arith.constant 0 : i32
    return %arg0, %c0_i32, %c0_i32_0 : i32, i32, i32
  }
  func.func @transform_4(%arg0: i32, %arg1: i32) -> (i32, i32, i32) {
    %c0_i32 = arith.constant 0 : i32
    %c0_i32_0 = arith.constant 0 : i32
    %c0_i32_1 = arith.constant 0 : i32
    return %arg0, %c0_i32, %c0_i32_0 : i32, i32, i32
  }
}

module attributes {stable_mosaic.version = 11 : i64} {
  func.func @_mm_stats_kernel(%arg0: i32, %arg1: i32, %arg2: memref<16x256xbf16, #tpu.memory_space<vmem>>, %arg3: memref<256x512xbf16, #tpu.memory_space<vmem>>, %arg4: memref<16x512xbf16, #tpu.memory_space<vmem>>, %arg5: memref<1x1x512xf32, #tpu.memory_space<vmem>>, %arg6: memref<1x1x512xf32, #tpu.memory_space<vmem>>, %arg7: memref<16x512xf32, #tpu.memory_space<vmem>>) attributes {dimension_semantics = [#tpu.dimension_semantics<parallel>, #tpu.dimension_semantics<arbitrary>], iteration_bounds = array<i64: 1, 1>, scalar_prefetch = 0 : i64, scratch_operands = 1 : i64, tpu.core_type = #tpu.core_type<tc>, window_params = [{transform_indices = @transform_0, window_bounds = array<i64: 16, 256>}, {transform_indices = @transform_1, window_bounds = array<i64: 256, 512>}, {transform_indices = @transform_2, window_bounds = array<i64: 16, 512>}, {transform_indices = @transform_3, window_bounds = array<i64: 1, 1, 512>}, {transform_indices = @transform_4, window_bounds = array<i64: 1, 1, 512>}]} {
    %c0_i32 = arith.constant 0 : i32
    %0 = arith.cmpi eq, %arg1, %c0_i32 : i32
    %1 = arith.extui %0 : i1 to i32
    %c0_i32_0 = arith.constant 0 : i32
    %2 = arith.cmpi ne, %1, %c0_i32_0 : i32
    scf.if %2 {
      %cst_10 = arith.constant 0.000000e+00 : f32
      %12 = vector.broadcast %cst_10 : f32 to vector<16x512xf32>
      %c0_11 = arith.constant 0 : index
      %c0_12 = arith.constant 0 : index
      %13 = vector.load %arg7[%c0_11, %c0_12] : memref<16x512xf32, #tpu.memory_space<vmem>>, vector<16x512xf32>
      tpu.vector_store %arg7[%c0_11, %c0_12], %12 {strides = array<i32>} : memref<16x512xf32, #tpu.memory_space<vmem>>, vector<16x512xf32>,
    } else {
    }
    %c0 = arith.constant 0 : index
    %c0_1 = arith.constant 0 : index
    %3 = vector.load %arg7[%c0, %c0_1] : memref<16x512xf32, #tpu.memory_space<vmem>>, vector<16x512xf32>
    %c0_2 = arith.constant 0 : index
    %c0_3 = arith.constant 0 : index
    %4 = vector.load %arg2[%c0_2, %c0_3] : memref<16x256xbf16, #tpu.memory_space<vmem>>, vector<16x256xbf16>
    %c0_4 = arith.constant 0 : index
    %c0_5 = arith.constant 0 : index
    %5 = vector.load %arg3[%c0_4, %c0_5] : memref<256x512xbf16, #tpu.memory_space<vmem>>, vector<256x512xbf16>
    %cst = arith.constant dense<0.000000e+00> : vector<16x512xf32>
    %6 = tpu.matmul %4, %5, %cst {dimension_numbers = #tpu.dot_dimension_numbers<[1], [0], [0], [1], [0, 0, 1, 1], [], []>} : vector<16x256xbf16>, vector<256x512xbf16>, vector<16x512xf32> -> vector<16x512xf32>
    %7 = arith.addf %3, %6 : vector<16x512xf32>
    %c0_6 = arith.constant 0 : index
    %c0_7 = arith.constant 0 : index
    %8 = vector.load %arg7[%c0_6, %c0_7] : memref<16x512xf32, #tpu.memory_space<vmem>>, vector<16x512xf32>
    tpu.vector_store %arg7[%c0_6, %c0_7], %7 {strides = array<i32>} : memref<16x512xf32, #tpu.memory_space<vmem>>, vector<16x512xf32>,
    %c0_i32_8 = arith.constant 0 : i32
    %9 = arith.cmpi eq, %arg1, %c0_i32_8 : i32
    %10 = arith.extui %9 : i1 to i32
    %c0_i32_9 = arith.constant 0 : i32
    %11 = arith.cmpi ne, %10, %c0_i32_9 : i32
    scf.if %11 {
      %c0_10 = arith.constant 0 : index
      %c0_11 = arith.constant 0 : index
      %12 = vector.load %arg7[%c0_10, %c0_11] : memref<16x512xf32, #tpu.memory_space<vmem>>, vector<16x512xf32>
      %13 = arith.truncf %12 : vector<16x512xf32> to vector<16x512xbf16>
      %c0_12 = arith.constant 0 : index
      %c0_13 = arith.constant 0 : index
      %14 = vector.load %arg4[%c0_12, %c0_13] : memref<16x512xbf16, #tpu.memory_space<vmem>>, vector<16x512xbf16>
      tpu.vector_store %arg4[%c0_12, %c0_13], %13 {strides = array<i32>} : memref<16x512xbf16, #tpu.memory_space<vmem>>, vector<16x512xbf16>,
      %cst_14 = arith.constant dense<0.000000e+00> : vector<512xf32>
      %15 = vector.multi_reduction <add>, %12, %cst_14 [0] : vector<16x512xf32> to vector<512xf32>
      %16 = vector.shape_cast %15 : vector<512xf32> to vector<1x512xf32>
      %17 = vector.shape_cast %16 : vector<1x512xf32> to vector<1x1x512xf32>
      %c0_15 = arith.constant 0 : index
      %c0_16 = arith.constant 0 : index
      %c0_17 = arith.constant 0 : index
      %18 = vector.load %arg5[%c0_15, %c0_16, %c0_17] : memref<1x1x512xf32, #tpu.memory_space<vmem>>, vector<1x1x512xf32>
      tpu.vector_store %arg5[%c0_15, %c0_16, %c0_17], %17 {strides = array<i32>} : memref<1x1x512xf32, #tpu.memory_space<vmem>>, vector<1x1x512xf32>,
      %19 = arith.mulf %12, %12 : vector<16x512xf32>
      %cst_18 = arith.constant dense<0.000000e+00> : vector<512xf32>
      %20 = vector.multi_reduction <add>, %19, %cst_18 [0] : vector<16x512xf32> to vector<512xf32>
      %21 = vector.shape_cast %20 : vector<512xf32> to vector<1x512xf32>
      %22 = vector.shape_cast %21 : vector<1x512xf32> to vector<1x1x512xf32>
      %c0_19 = arith.constant 0 : index
      %c0_20 = arith.constant 0 : index
      %c0_21 = arith.constant 0 : index
      %23 = vector.load %arg6[%c0_19, %c0_20, %c0_21] : memref<1x1x512xf32, #tpu.memory_space<vmem>>, vector<1x1x512xf32>
      tpu.vector_store %arg6[%c0_19, %c0_20, %c0_21], %22 {strides = array<i32>} : memref<1x1x512xf32, #tpu.memory_space<vmem>>, vector<1x1x512xf32>,
    } else {
    }
    return
  }
  func.func @transform_0(%arg0: i32, %arg1: i32) -> (i32, i32) {
    %c0_i32 = arith.constant 0 : i32
    return %arg0, %arg1 : i32, i32
  }
  func.func @transform_1(%arg0: i32, %arg1: i32) -> (i32, i32) {
    %c0_i32 = arith.constant 0 : i32
    %c0_i32_0 = arith.constant 0 : i32
    return %arg1, %c0_i32 : i32, i32
  }
  func.func @transform_2(%arg0: i32, %arg1: i32) -> (i32, i32) {
    %c0_i32 = arith.constant 0 : i32
    %c0_i32_0 = arith.constant 0 : i32
    return %arg0, %c0_i32 : i32, i32
  }
  func.func @transform_3(%arg0: i32, %arg1: i32) -> (i32, i32, i32) {
    %c0_i32 = arith.constant 0 : i32
    %c0_i32_0 = arith.constant 0 : i32
    %c0_i32_1 = arith.constant 0 : i32
    return %arg0, %c0_i32, %c0_i32_0 : i32, i32, i32
  }
  func.func @transform_4(%arg0: i32, %arg1: i32) -> (i32, i32, i32) {
    %c0_i32 = arith.constant 0 : i32
    %c0_i32_0 = arith.constant 0 : i32
    %c0_i32_1 = arith.constant 0 : i32
    return %arg0, %c0_i32, %c0_i32_0 : i32, i32, i32
  }
}

module attributes {stable_mosaic.version = 11 : i64} {
  func.func @_affine_kernel(%arg0: i32, %arg1: memref<16x512xbf16, #tpu.memory_space<vmem>>, %arg2: memref<1x512xf32, #tpu.memory_space<vmem>>, %arg3: memref<1x512xf32, #tpu.memory_space<vmem>>, %arg4: memref<16x512xbf16, #tpu.memory_space<vmem>>) attributes {dimension_semantics = [#tpu.dimension_semantics<parallel>], iteration_bounds = array<i64: 1>, scalar_prefetch = 0 : i64, scratch_operands = 0 : i64, tpu.core_type = #tpu.core_type<tc>, window_params = [{transform_indices = @transform_0, window_bounds = array<i64: 16, 512>}, {pipeline_mode = #tpu.pipeline_mode<synchronous>, transform_indices = @transform_1, window_bounds = array<i64: 1, 512>}, {pipeline_mode = #tpu.pipeline_mode<synchronous>, transform_indices = @transform_2, window_bounds = array<i64: 1, 512>}, {transform_indices = @transform_3, window_bounds = array<i64: 16, 512>}]} {
    %c0 = arith.constant 0 : index
    %c0_0 = arith.constant 0 : index
    %0 = vector.load %arg1[%c0, %c0_0] : memref<16x512xbf16, #tpu.memory_space<vmem>>, vector<16x512xbf16>
    %1 = arith.extf %0 : vector<16x512xbf16> to vector<16x512xf32>
    %c0_1 = arith.constant 0 : index
    %c0_2 = arith.constant 0 : index
    %2 = vector.load %arg2[%c0_1, %c0_2] : memref<1x512xf32, #tpu.memory_space<vmem>>, vector<1x512xf32>
    %3 = vector.broadcast %2 : vector<1x512xf32> to vector<16x512xf32>
    %4 = arith.mulf %1, %3 : vector<16x512xf32>
    %c0_3 = arith.constant 0 : index
    %c0_4 = arith.constant 0 : index
    %5 = vector.load %arg3[%c0_3, %c0_4] : memref<1x512xf32, #tpu.memory_space<vmem>>, vector<1x512xf32>
    %6 = vector.broadcast %5 : vector<1x512xf32> to vector<16x512xf32>
    %7 = arith.addf %4, %6 : vector<16x512xf32>
    %8 = arith.truncf %7 : vector<16x512xf32> to vector<16x512xbf16>
    %c0_5 = arith.constant 0 : index
    %c0_6 = arith.constant 0 : index
    %9 = vector.load %arg4[%c0_5, %c0_6] : memref<16x512xbf16, #tpu.memory_space<vmem>>, vector<16x512xbf16>
    tpu.vector_store %arg4[%c0_5, %c0_6], %8 {strides = array<i32>} : memref<16x512xbf16, #tpu.memory_space<vmem>>, vector<16x512xbf16>,
    return
  }
  func.func @transform_0(%arg0: i32) -> (i32, i32) {
    %c0_i32 = arith.constant 0 : i32
    %c0_i32_0 = arith.constant 0 : i32
    return %arg0, %c0_i32 : i32, i32
  }
  func.func @transform_1(%arg0: i32) -> (i32, i32) {
    %c0_i32 = arith.constant 0 : i32
    %c0_i32_0 = arith.constant 0 : i32
    %c0_i32_1 = arith.constant 0 : i32
    return %c0_i32, %c0_i32_0 : i32, i32
  }
  func.func @transform_2(%arg0: i32) -> (i32, i32) {
    %c0_i32 = arith.constant 0 : i32
    %c0_i32_0 = arith.constant 0 : i32
    %c0_i32_1 = arith.constant 0 : i32
    return %c0_i32, %c0_i32_0 : i32, i32
  }
  func.func @transform_3(%arg0: i32) -> (i32, i32) {
    %c0_i32 = arith.constant 0 : i32
    %c0_i32_0 = arith.constant 0 : i32
    return %arg0, %c0_i32 : i32, i32
  }
}

module attributes {stable_mosaic.version = 11 : i64} {
  func.func @_affine_add_relu_kernel(%arg0: i32, %arg1: memref<16x512xbf16, #tpu.memory_space<vmem>>, %arg2: memref<16x512xbf16, #tpu.memory_space<vmem>>, %arg3: memref<1x512xf32, #tpu.memory_space<vmem>>, %arg4: memref<1x512xf32, #tpu.memory_space<vmem>>, %arg5: memref<16x512xbf16, #tpu.memory_space<vmem>>) attributes {dimension_semantics = [#tpu.dimension_semantics<parallel>], iteration_bounds = array<i64: 1>, scalar_prefetch = 0 : i64, scratch_operands = 0 : i64, tpu.core_type = #tpu.core_type<tc>, window_params = [{transform_indices = @transform_0, window_bounds = array<i64: 16, 512>}, {transform_indices = @transform_1, window_bounds = array<i64: 16, 512>}, {pipeline_mode = #tpu.pipeline_mode<synchronous>, transform_indices = @transform_2, window_bounds = array<i64: 1, 512>}, {pipeline_mode = #tpu.pipeline_mode<synchronous>, transform_indices = @transform_3, window_bounds = array<i64: 1, 512>}, {transform_indices = @transform_4, window_bounds = array<i64: 16, 512>}]} {
    %c0 = arith.constant 0 : index
    %c0_0 = arith.constant 0 : index
    %0 = vector.load %arg1[%c0, %c0_0] : memref<16x512xbf16, #tpu.memory_space<vmem>>, vector<16x512xbf16>
    %1 = arith.extf %0 : vector<16x512xbf16> to vector<16x512xf32>
    %c0_1 = arith.constant 0 : index
    %c0_2 = arith.constant 0 : index
    %2 = vector.load %arg3[%c0_1, %c0_2] : memref<1x512xf32, #tpu.memory_space<vmem>>, vector<1x512xf32>
    %3 = vector.broadcast %2 : vector<1x512xf32> to vector<16x512xf32>
    %4 = arith.mulf %1, %3 : vector<16x512xf32>
    %c0_3 = arith.constant 0 : index
    %c0_4 = arith.constant 0 : index
    %5 = vector.load %arg4[%c0_3, %c0_4] : memref<1x512xf32, #tpu.memory_space<vmem>>, vector<1x512xf32>
    %6 = vector.broadcast %5 : vector<1x512xf32> to vector<16x512xf32>
    %7 = arith.addf %4, %6 : vector<16x512xf32>
    %c0_5 = arith.constant 0 : index
    %c0_6 = arith.constant 0 : index
    %8 = vector.load %arg2[%c0_5, %c0_6] : memref<16x512xbf16, #tpu.memory_space<vmem>>, vector<16x512xbf16>
    %9 = arith.extf %8 : vector<16x512xbf16> to vector<16x512xf32>
    %10 = arith.addf %7, %9 : vector<16x512xf32>
    %cst = arith.constant 0.000000e+00 : f32
    %11 = vector.broadcast %cst : f32 to vector<16x512xf32>
    %12 = arith.maximumf %10, %11 : vector<16x512xf32>
    %13 = arith.truncf %12 : vector<16x512xf32> to vector<16x512xbf16>
    %c0_7 = arith.constant 0 : index
    %c0_8 = arith.constant 0 : index
    %14 = vector.load %arg5[%c0_7, %c0_8] : memref<16x512xbf16, #tpu.memory_space<vmem>>, vector<16x512xbf16>
    tpu.vector_store %arg5[%c0_7, %c0_8], %13 {strides = array<i32>} : memref<16x512xbf16, #tpu.memory_space<vmem>>, vector<16x512xbf16>,
    return
  }
  func.func @transform_0(%arg0: i32) -> (i32, i32) {
    %c0_i32 = arith.constant 0 : i32
    %c0_i32_0 = arith.constant 0 : i32
    return %arg0, %c0_i32 : i32, i32
  }
  func.func @transform_1(%arg0: i32) -> (i32, i32) {
    %c0_i32 = arith.constant 0 : i32
    %c0_i32_0 = arith.constant 0 : i32
    return %arg0, %c0_i32 : i32, i32
  }
  func.func @transform_2(%arg0: i32) -> (i32, i32) {
    %c0_i32 = arith.constant 0 : i32
    %c0_i32_0 = arith.constant 0 : i32
    %c0_i32_1 = arith.constant 0 : i32
    return %c0_i32, %c0_i32_0 : i32, i32
  }
  func.func @transform_3(%arg0: i32) -> (i32, i32) {
    %c0_i32 = arith.constant 0 : i32
    %c0_i32_0 = arith.constant 0 : i32
    %c0_i32_1 = arith.constant 0 : i32
    return %c0_i32, %c0_i32_0 : i32, i32
  }
  func.func @transform_4(%arg0: i32) -> (i32, i32) {
    %c0_i32 = arith.constant 0 : i32
    %c0_i32_0 = arith.constant 0 : i32
    return %arg0, %c0_i32 : i32, i32
  }
}

module attributes {stable_mosaic.version = 11 : i64} {
  func.func @_mean_kernel(%arg0: i32, %arg1: memref<1x1x512xbf16, #tpu.memory_space<vmem>>, %arg2: memref<1x1x512xf32, #tpu.memory_space<vmem>>) attributes {dimension_semantics = [#tpu.dimension_semantics<parallel>], iteration_bounds = array<i64: 2>, scalar_prefetch = 0 : i64, scratch_operands = 0 : i64, tpu.core_type = #tpu.core_type<tc>, window_params = [{transform_indices = @transform_0, window_bounds = array<i64: 1, 1, 512>}, {transform_indices = @transform_1, window_bounds = array<i64: 1, 1, 512>}]} {
    %c0 = arith.constant 0 : index
    %c0_0 = arith.constant 0 : index
    %c0_1 = arith.constant 0 : index
    %0 = vector.load %arg1[%c0, %c0_0, %c0_1] : memref<1x1x512xbf16, #tpu.memory_space<vmem>>, vector<1x1x512xbf16>
    %1 = arith.extf %0 : vector<1x1x512xbf16> to vector<1x1x512xf32>
    %cst = arith.constant dense<0.000000e+00> : vector<1x512xf32>
    %2 = vector.multi_reduction <add>, %1, %cst [1] : vector<1x1x512xf32> to vector<1x512xf32>
    %3 = vector.shape_cast %2 : vector<1x512xf32> to vector<1x1x512xf32>
    %cst_2 = arith.constant 1.000000e+00 : f32
    %4 = vector.broadcast %cst_2 : f32 to vector<1x1x512xf32>
    %5 = arith.divf %3, %4 : vector<1x1x512xf32>
    %c0_3 = arith.constant 0 : index
    %c0_4 = arith.constant 0 : index
    %c0_5 = arith.constant 0 : index
    %6 = vector.load %arg2[%c0_3, %c0_4, %c0_5] : memref<1x1x512xf32, #tpu.memory_space<vmem>>, vector<1x1x512xf32>
    tpu.vector_store %arg2[%c0_3, %c0_4, %c0_5], %5 {strides = array<i32>} : memref<1x1x512xf32, #tpu.memory_space<vmem>>, vector<1x1x512xf32>,
    return
  }
  func.func @transform_0(%arg0: i32) -> (i32, i32, i32) {
    %c0_i32 = arith.constant 0 : i32
    %c0_i32_0 = arith.constant 0 : i32
    %c0_i32_1 = arith.constant 0 : i32
    return %arg0, %c0_i32, %c0_i32_0 : i32, i32, i32
  }
  func.func @transform_1(%arg0: i32) -> (i32, i32, i32) {
    %c0_i32 = arith.constant 0 : i32
    %c0_i32_0 = arith.constant 0 : i32
    %c0_i32_1 = arith.constant 0 : i32
    return %arg0, %c0_i32, %c0_i32_0 : i32, i32, i32
  }
}

module attributes {stable_mosaic.version = 11 : i64} {
  func.func @_mm_stats_kernel(%arg0: i32, %arg1: i32, %arg2: memref<16x512xbf16, #tpu.memory_space<vmem>>, %arg3: memref<512x512xbf16, #tpu.memory_space<vmem>>, %arg4: memref<16x512xbf16, #tpu.memory_space<vmem>>, %arg5: memref<1x1x512xf32, #tpu.memory_space<vmem>>, %arg6: memref<1x1x512xf32, #tpu.memory_space<vmem>>, %arg7: memref<16x512xf32, #tpu.memory_space<vmem>>) attributes {dimension_semantics = [#tpu.dimension_semantics<parallel>, #tpu.dimension_semantics<arbitrary>], iteration_bounds = array<i64: 1, 1>, scalar_prefetch = 0 : i64, scratch_operands = 1 : i64, tpu.core_type = #tpu.core_type<tc>, window_params = [{transform_indices = @transform_0, window_bounds = array<i64: 16, 512>}, {transform_indices = @transform_1, window_bounds = array<i64: 512, 512>}, {transform_indices = @transform_2, window_bounds = array<i64: 16, 512>}, {transform_indices = @transform_3, window_bounds = array<i64: 1, 1, 512>}, {transform_indices = @transform_4, window_bounds = array<i64: 1, 1, 512>}]} {
    %c0_i32 = arith.constant 0 : i32
    %0 = arith.cmpi eq, %arg1, %c0_i32 : i32
    %1 = arith.extui %0 : i1 to i32
    %c0_i32_0 = arith.constant 0 : i32
    %2 = arith.cmpi ne, %1, %c0_i32_0 : i32
    scf.if %2 {
      %cst_10 = arith.constant 0.000000e+00 : f32
      %12 = vector.broadcast %cst_10 : f32 to vector<16x512xf32>
      %c0_11 = arith.constant 0 : index
      %c0_12 = arith.constant 0 : index
      %13 = vector.load %arg7[%c0_11, %c0_12] : memref<16x512xf32, #tpu.memory_space<vmem>>, vector<16x512xf32>
      tpu.vector_store %arg7[%c0_11, %c0_12], %12 {strides = array<i32>} : memref<16x512xf32, #tpu.memory_space<vmem>>, vector<16x512xf32>,
    } else {
    }
    %c0 = arith.constant 0 : index
    %c0_1 = arith.constant 0 : index
    %3 = vector.load %arg7[%c0, %c0_1] : memref<16x512xf32, #tpu.memory_space<vmem>>, vector<16x512xf32>
    %c0_2 = arith.constant 0 : index
    %c0_3 = arith.constant 0 : index
    %4 = vector.load %arg2[%c0_2, %c0_3] : memref<16x512xbf16, #tpu.memory_space<vmem>>, vector<16x512xbf16>
    %c0_4 = arith.constant 0 : index
    %c0_5 = arith.constant 0 : index
    %5 = vector.load %arg3[%c0_4, %c0_5] : memref<512x512xbf16, #tpu.memory_space<vmem>>, vector<512x512xbf16>
    %cst = arith.constant dense<0.000000e+00> : vector<16x512xf32>
    %6 = tpu.matmul %4, %5, %cst {dimension_numbers = #tpu.dot_dimension_numbers<[1], [0], [0], [1], [0, 0, 1, 1], [], []>} : vector<16x512xbf16>, vector<512x512xbf16>, vector<16x512xf32> -> vector<16x512xf32>
    %7 = arith.addf %3, %6 : vector<16x512xf32>
    %c0_6 = arith.constant 0 : index
    %c0_7 = arith.constant 0 : index
    %8 = vector.load %arg7[%c0_6, %c0_7] : memref<16x512xf32, #tpu.memory_space<vmem>>, vector<16x512xf32>
    tpu.vector_store %arg7[%c0_6, %c0_7], %7 {strides = array<i32>} : memref<16x512xf32, #tpu.memory_space<vmem>>, vector<16x512xf32>,
    %c0_i32_8 = arith.constant 0 : i32
    %9 = arith.cmpi eq, %arg1, %c0_i32_8 : i32
    %10 = arith.extui %9 : i1 to i32
    %c0_i32_9 = arith.constant 0 : i32
    %11 = arith.cmpi ne, %10, %c0_i32_9 : i32
    scf.if %11 {
      %c0_10 = arith.constant 0 : index
      %c0_11 = arith.constant 0 : index
      %12 = vector.load %arg7[%c0_10, %c0_11] : memref<16x512xf32, #tpu.memory_space<vmem>>, vector<16x512xf32>
      %13 = arith.truncf %12 : vector<16x512xf32> to vector<16x512xbf16>
      %c0_12 = arith.constant 0 : index
      %c0_13 = arith.constant 0 : index
      %14 = vector.load %arg4[%c0_12, %c0_13] : memref<16x512xbf16, #tpu.memory_space<vmem>>, vector<16x512xbf16>
      tpu.vector_store %arg4[%c0_12, %c0_13], %13 {strides = array<i32>} : memref<16x512xbf16, #tpu.memory_space<vmem>>, vector<16x512xbf16>,
      %cst_14 = arith.constant dense<0.000000e+00> : vector<512xf32>
      %15 = vector.multi_reduction <add>, %12, %cst_14 [0] : vector<16x512xf32> to vector<512xf32>
      %16 = vector.shape_cast %15 : vector<512xf32> to vector<1x512xf32>
      %17 = vector.shape_cast %16 : vector<1x512xf32> to vector<1x1x512xf32>
      %c0_15 = arith.constant 0 : index
      %c0_16 = arith.constant 0 : index
      %c0_17 = arith.constant 0 : index
      %18 = vector.load %arg5[%c0_15, %c0_16, %c0_17] : memref<1x1x512xf32, #tpu.memory_space<vmem>>, vector<1x1x512xf32>
      tpu.vector_store %arg5[%c0_15, %c0_16, %c0_17], %17 {strides = array<i32>} : memref<1x1x512xf32, #tpu.memory_space<vmem>>, vector<1x1x512xf32>,
      %19 = arith.mulf %12, %12 : vector<16x512xf32>
      %cst_18 = arith.constant dense<0.000000e+00> : vector<512xf32>
      %20 = vector.multi_reduction <add>, %19, %cst_18 [0] : vector<16x512xf32> to vector<512xf32>
      %21 = vector.shape_cast %20 : vector<512xf32> to vector<1x512xf32>
      %22 = vector.shape_cast %21 : vector<1x512xf32> to vector<1x1x512xf32>
      %c0_19 = arith.constant 0 : index
      %c0_20 = arith.constant 0 : index
      %c0_21 = arith.constant 0 : index
      %23 = vector.load %arg6[%c0_19, %c0_20, %c0_21] : memref<1x1x512xf32, #tpu.memory_space<vmem>>, vector<1x1x512xf32>
      tpu.vector_store %arg6[%c0_19, %c0_20, %c0_21], %22 {strides = array<i32>} : memref<1x1x512xf32, #tpu.memory_space<vmem>>, vector<1x1x512xf32>,
    } else {
    }
    return
  }
  func.func @transform_0(%arg0: i32, %arg1: i32) -> (i32, i32) {
    %c0_i32 = arith.constant 0 : i32
    return %arg0, %arg1 : i32, i32
  }
  func.func @transform_1(%arg0: i32, %arg1: i32) -> (i32, i32) {
    %c0_i32 = arith.constant 0 : i32
    %c0_i32_0 = arith.constant 0 : i32
    return %arg1, %c0_i32 : i32, i32
  }
  func.func @transform_2(%arg0: i32, %arg1: i32) -> (i32, i32) {
    %c0_i32 = arith.constant 0 : i32
    %c0_i32_0 = arith.constant 0 : i32
    return %arg0, %c0_i32 : i32, i32
  }
  func.func @transform_3(%arg0: i32, %arg1: i32) -> (i32, i32, i32) {
    %c0_i32 = arith.constant 0 : i32
    %c0_i32_0 = arith.constant 0 : i32
    %c0_i32_1 = arith.constant 0 : i32
    return %arg0, %c0_i32, %c0_i32_0 : i32, i32, i32
  }
  func.func @transform_4(%arg0: i32, %arg1: i32) -> (i32, i32, i32) {
    %c0_i32 = arith.constant 0 : i32
    %c0_i32_0 = arith.constant 0 : i32
    %c0_i32_1 = arith.constant 0 : i32
    return %arg0, %c0_i32, %c0_i32_0 : i32, i32, i32
  }
}

module attributes {stable_mosaic.version = 11 : i64} {
  func.func @_mm_bias_kernel(%arg0: i32, %arg1: i32, %arg2: memref<16x512xbf16, #tpu.memory_space<vmem>>, %arg3: memref<512x128xbf16, #tpu.memory_space<vmem>>, %arg4: memref<1x128xf32, #tpu.memory_space<vmem>>, %arg5: memref<16x128xf32, #tpu.memory_space<vmem>>, %arg6: memref<16x128xf32, #tpu.memory_space<vmem>>) attributes {dimension_semantics = [#tpu.dimension_semantics<parallel>, #tpu.dimension_semantics<arbitrary>], iteration_bounds = array<i64: 1, 1>, scalar_prefetch = 0 : i64, scratch_operands = 1 : i64, tpu.core_type = #tpu.core_type<tc>, window_params = [{transform_indices = @transform_0, window_bounds = array<i64: 16, 512>}, {transform_indices = @transform_1, window_bounds = array<i64: 512, 128>}, {pipeline_mode = #tpu.pipeline_mode<synchronous>, transform_indices = @transform_2, window_bounds = array<i64: 1, 128>}, {transform_indices = @transform_3, window_bounds = array<i64: 16, 128>}]} {
    %c0_i32 = arith.constant 0 : i32
    %0 = arith.cmpi eq, %arg1, %c0_i32 : i32
    %1 = arith.extui %0 : i1 to i32
    %c0_i32_0 = arith.constant 0 : i32
    %2 = arith.cmpi ne, %1, %c0_i32_0 : i32
    scf.if %2 {
      %cst_10 = arith.constant 0.000000e+00 : f32
      %12 = vector.broadcast %cst_10 : f32 to vector<16x128xf32>
      %c0_11 = arith.constant 0 : index
      %c0_12 = arith.constant 0 : index
      %13 = vector.load %arg6[%c0_11, %c0_12] : memref<16x128xf32, #tpu.memory_space<vmem>>, vector<16x128xf32>
      tpu.vector_store %arg6[%c0_11, %c0_12], %12 {strides = array<i32>} : memref<16x128xf32, #tpu.memory_space<vmem>>, vector<16x128xf32>,
    } else {
    }
    %c0 = arith.constant 0 : index
    %c0_1 = arith.constant 0 : index
    %3 = vector.load %arg6[%c0, %c0_1] : memref<16x128xf32, #tpu.memory_space<vmem>>, vector<16x128xf32>
    %c0_2 = arith.constant 0 : index
    %c0_3 = arith.constant 0 : index
    %4 = vector.load %arg2[%c0_2, %c0_3] : memref<16x512xbf16, #tpu.memory_space<vmem>>, vector<16x512xbf16>
    %c0_4 = arith.constant 0 : index
    %c0_5 = arith.constant 0 : index
    %5 = vector.load %arg3[%c0_4, %c0_5] : memref<512x128xbf16, #tpu.memory_space<vmem>>, vector<512x128xbf16>
    %cst = arith.constant dense<0.000000e+00> : vector<16x128xf32>
    %6 = tpu.matmul %4, %5, %cst {dimension_numbers = #tpu.dot_dimension_numbers<[1], [0], [0], [1], [0, 0, 1, 1], [], []>} : vector<16x512xbf16>, vector<512x128xbf16>, vector<16x128xf32> -> vector<16x128xf32>
    %7 = arith.addf %3, %6 : vector<16x128xf32>
    %c0_6 = arith.constant 0 : index
    %c0_7 = arith.constant 0 : index
    %8 = vector.load %arg6[%c0_6, %c0_7] : memref<16x128xf32, #tpu.memory_space<vmem>>, vector<16x128xf32>
    tpu.vector_store %arg6[%c0_6, %c0_7], %7 {strides = array<i32>} : memref<16x128xf32, #tpu.memory_space<vmem>>, vector<16x128xf32>,
    %c0_i32_8 = arith.constant 0 : i32
    %9 = arith.cmpi eq, %arg1, %c0_i32_8 : i32
    %10 = arith.extui %9 : i1 to i32
    %c0_i32_9 = arith.constant 0 : i32
    %11 = arith.cmpi ne, %10, %c0_i32_9 : i32
    scf.if %11 {
      %c0_10 = arith.constant 0 : index
      %c0_11 = arith.constant 0 : index
      %12 = vector.load %arg6[%c0_10, %c0_11] : memref<16x128xf32, #tpu.memory_space<vmem>>, vector<16x128xf32>
      %c0_12 = arith.constant 0 : index
      %c0_13 = arith.constant 0 : index
      %13 = vector.load %arg4[%c0_12, %c0_13] : memref<1x128xf32, #tpu.memory_space<vmem>>, vector<1x128xf32>
      %14 = vector.broadcast %13 : vector<1x128xf32> to vector<16x128xf32>
      %15 = arith.addf %12, %14 : vector<16x128xf32>
      %c0_14 = arith.constant 0 : index
      %c0_15 = arith.constant 0 : index
      %16 = vector.load %arg5[%c0_14, %c0_15] : memref<16x128xf32, #tpu.memory_space<vmem>>, vector<16x128xf32>
      tpu.vector_store %arg5[%c0_14, %c0_15], %15 {strides = array<i32>} : memref<16x128xf32, #tpu.memory_space<vmem>>, vector<16x128xf32>,
    } else {
    }
    return
  }
  func.func @transform_0(%arg0: i32, %arg1: i32) -> (i32, i32) {
    %c0_i32 = arith.constant 0 : i32
    return %arg0, %arg1 : i32, i32
  }
  func.func @transform_1(%arg0: i32, %arg1: i32) -> (i32, i32) {
    %c0_i32 = arith.constant 0 : i32
    %c0_i32_0 = arith.constant 0 : i32
    return %arg1, %c0_i32 : i32, i32
  }
  func.func @transform_2(%arg0: i32, %arg1: i32) -> (i32, i32) {
    %c0_i32 = arith.constant 0 : i32
    %c0_i32_0 = arith.constant 0 : i32
    %c0_i32_1 = arith.constant 0 : i32
    return %c0_i32, %c0_i32_0 : i32, i32
  }
  func.func @transform_3(%arg0: i32, %arg1: i32) -> (i32, i32) {
    %c0_i32 = arith.constant 0 : i32
    %c0_i32_0 = arith.constant 0 : i32
    return %arg0, %c0_i32 : i32, i32
  }
}

</mosaic_0001>

<bundles_post_ra>
// kernel: resnet18_forward.46
= control target key start
LH: loop header
LB: loop body
LE: loop exit
PB: predicated region body
PF: predicated region fallthrough
CT: control target
= control target key end

     0   :  { %s1502_s0 = inlined_call_operand.vmem [shape: bf16[512,128], index: 0, kind: input, shape index: {}]   ;;  %s1503_s1 = inlined_call_operand.vmem [shape: f32[1,128], index: 1, kind: input, shape index: {}]   ;;  %s1504_s2 = inlined_call_operand.vmem [shape: f32[1,128], index: 2, kind: input, shape index: {}]   ;;  %s1505_s3 = inlined_call_operand.vmem [shape: bf16[512,128], index: 3, kind: output, shape index: {}]  }
   0x1   :  { %v803_v0 = vld [vmem:[%s1502_s0] sm:$0xff]   ;;  %v1090_v4 = vld [vmem:[%s1502_s0 + $0x8] sm:$0xff]   ;;  %v1091_v5 = vld [vmem:[%s1502_s0 + $0x10] sm:$0xff]  }
   0x2   :  { %v1178_v1 = vld [vmem:[%s1503_s1] ss:$0 sm:$0xff]  ;;  %v804_v2 = vunpack.c.l.bf16 %v803_v0  ;;  %v805_v3 = vunpack.c.h.bf16 %v803_v0  ;;  %v1092_v6 = vld [vmem:[%s1502_s0 + $0x18] sm:$0xff]   ;;  %v808_v8 = vunpack.c.l.bf16 %v1090_v4  ;;  %v809_v9 = vunpack.c.h.bf16 %v1090_v4  ;;  %v1094_v33 = vld [vmem:[%s1502_s0 + $0x28] sm:$0xff]  }
   0x3   :  { %v1192_v7 = vld [vmem:[%s1504_s2] ss:$0 sm:$0xff]  ;;  %v812_v10 = vunpack.c.l.bf16 %v1091_v5  ;;  %v813_v11 = vunpack.c.h.bf16 %v1091_v5  ;;  %v816_v14 = vunpack.c.l.bf16 %v1092_v6  ;;  %v817_v15 = vunpack.c.h.bf16 %v1092_v6  ;;  %v1095_v38 = vld [vmem:[%s1502_s0 + $0x30] sm:$0xff]   ;;  %v1096_v43 = vld [vmem:[%s1502_s0 + $0x38] sm:$0xff]  }
   0x4   :  { %v149_v12 = vmul.f32 %v804_v2, %v1178_v1  ;;  %v150_v13 = vmul.f32 %v805_v3, %v1178_v1  ;;  %v151_v16 = vmul.f32 %v808_v8, %v1178_v1  ;;  %v152_v17 = vmul.f32 %v809_v9, %v1178_v1  ;;  %v1093_v28 = vld [vmem:[%s1502_s0 + $0x20] sm:$0xff]  }
   0x5   :  { %v153_v18 = vmul.f32 %v812_v10, %v1178_v1  ;;  %v154_v19 = vmul.f32 %v813_v11, %v1178_v1  ;;  %v155_v22 = vmul.f32 %v816_v14, %v1178_v1  ;;  %v156_v23 = vmul.f32 %v817_v15, %v1178_v1  ;;  %v1097_v0 = vld [vmem:[%s1502_s0 + $0x40] sm:$0xff]   ;;  %v1098_v11 = vld [vmem:[%s1502_s0 + $0x48] sm:$0xff]  }
   0x6   :  { %v220_v20 = vadd.f32 %v1192_v7, %v149_v12  ;;  %v221_v21 = vadd.f32 %v1192_v7, %v150_v13  ;;  %v222_v24 = vadd.f32 %v1192_v7, %v151_v16  ;;  %v223_v25 = vadd.f32 %v1192_v7, %v152_v17  ;;  %v1099_v16 = vld [vmem:[%s1502_s0 + $0x50] sm:$0xff]  }
   0x7   :  { %v224_v26 = vadd.f32 %v1192_v7, %v153_v18  ;;  %v225_v27 = vadd.f32 %v1192_v7, %v154_v19  ;;  %v226_v31 = vadd.f32 %v1192_v7, %v155_v22  ;;  %v227_v32 = vadd.f32 %v1192_v7, %v156_v23 }
   0x8   :  { %v284_v29 = vmax.f32 %v220_v20, 0.0  ;;  %v285_v30 = vmax.f32 %v221_v21, 0.0  ;;  %v286_v34 = vmax.f32 %v222_v24, 0.0  ;;  %v287_v35 = vmax.f32 %v223_v25, 0.0  ;;  %v1100_v25 = vld [vmem:[%s1502_s0 + $0x58] sm:$0xff]  }
   0x9   :  { %v288_v36 = vmax.f32 %v224_v26, 0.0  ;;  %v289_v37 = vmax.f32 %v225_v27, 0.0  ;;  %v290_v40 = vmax.f32 %v226_v31, 0.0  ;;  %v291_v41 = vmax.f32 %v227_v32, 0.0 }
   0xa   :  { %v933_v39 = vpack.c.bf16 %v285_v30, %v284_v29  ;;  %v820_v42 = vunpack.c.l.bf16 %v1093_v28  ;;  %v938_v44 = vpack.c.bf16 %v287_v35, %v286_v34  ;;  %v821_v46 = vunpack.c.h.bf16 %v1093_v28 }
   0xb   :  { %v943_v45 = vpack.c.bf16 %v289_v37, %v288_v36  ;;  %v824_v47 = vunpack.c.l.bf16 %v1094_v33  ;;  %v948_v48 = vpack.c.bf16 %v291_v41, %v290_v40  ;;  %v825_v50 = vunpack.c.h.bf16 %v1094_v33 }
   0xc   :  { %934 = vst [vmem:[%s1505_s3] sm:$0xff] %v933_v39   ;;  %v157_v49 = vmul.f32 %v820_v42, %v1178_v1  ;;  %v828_v51 = vunpack.c.l.bf16 %v1095_v38  ;;  %1121 = vst [vmem:[%s1505_s3 + $0x8] sm:$0xff] %v938_v44   ;;  %v158_v52 = vmul.f32 %v821_v46, %v1178_v1  ;;  %v829_v54 = vunpack.c.h.bf16 %v1095_v38  ;;  %v1101_v38 = vld [vmem:[%s1502_s0 + $0x60] sm:$0xff]  }
   0xd   :  { %1122 = vst [vmem:[%s1505_s3 + $0x10] sm:$0xff] %v943_v45   ;;  %v159_v53 = vmul.f32 %v824_v47, %v1178_v1  ;;  %v832_v55 = vunpack.c.l.bf16 %v1096_v43  ;;  %1123 = vst [vmem:[%s1505_s3 + $0x18] sm:$0xff] %v948_v48   ;;  %v160_v57 = vmul.f32 %v825_v50, %v1178_v1  ;;  %v833_v59 = vunpack.c.h.bf16 %v1096_v43 }
   0xe   :  { %v228_v56 = vadd.f32 %v1192_v7, %v157_v49  ;;  %v161_v58 = vmul.f32 %v828_v51, %v1178_v1  ;;  %v229_v60 = vadd.f32 %v1192_v7, %v158_v52  ;;  %v162_v62 = vmul.f32 %v829_v54, %v1178_v1  ;;  %v1102_v51 = vld [vmem:[%s1502_s0 + $0x68] sm:$0xff]  }
   0xf   :  { %v230_v61 = vadd.f32 %v1192_v7, %v159_v53  ;;  %v163_v63 = vmul.f32 %v832_v55, %v1178_v1  ;;  %v231_v3 = vadd.f32 %v1192_v7, %v160_v57  ;;  %v164_v5 = vmul.f32 %v833_v59, %v1178_v1 }
  0x10   :  { %v292_v2 = vmax.f32 %v228_v56, 0.0  ;;  %v232_v4 = vadd.f32 %v1192_v7, %v161_v58  ;;  %v293_v6 = vmax.f32 %v229_v60, 0.0  ;;  %v233_v9 = vadd.f32 %v1192_v7, %v162_v62  ;;  %v1103_v60 = vld [vmem:[%s1502_s0 + $0x70] sm:$0xff]  }
  0x11   :  { %v294_v8 = vmax.f32 %v230_v61, 0.0  ;;  %v234_v10 = vadd.f32 %v1192_v7, %v163_v63  ;;  %v295_v12 = vmax.f32 %v231_v3, 0.0  ;;  %v235_v14 = vadd.f32 %v1192_v7, %v164_v5 }
  0x12   :  { %v296_v13 = vmax.f32 %v232_v4, 0.0  ;;  %v836_v15 = vunpack.c.l.bf16 %v1097_v0  ;;  %v953_v17 = vpack.c.bf16 %v293_v6, %v292_v2  ;;  %v297_v18 = vmax.f32 %v233_v9, 0.0  ;;  %v1104_v2 = vld [vmem:[%s1502_s0 + $0x78] sm:$0xff]  }
  0x13   :  { %v298_v19 = vmax.f32 %v234_v10, 0.0  ;;  %v837_v20 = vunpack.c.h.bf16 %v1097_v0  ;;  %v958_v21 = vpack.c.bf16 %v295_v12, %v294_v8  ;;  %v299_v22 = vmax.f32 %v235_v14, 0.0  ;;  %v1105_v12 = vld [vmem:[%s1502_s0 + $0x80] sm:$0xff]  }
  0x14   :  { %v165_v23 = vmul.f32 %v836_v15, %v1178_v1  ;;  %v840_v24 = vunpack.c.l.bf16 %v1098_v11  ;;  %1124 = vst [vmem:[%s1505_s3 + $0x20] sm:$0xff] %v953_v17   ;;  %v963_v26 = vpack.c.bf16 %v297_v18, %v296_v13  ;;  %v841_v28 = vunpack.c.h.bf16 %v1098_v11 }
  0x15   :  { %v166_v27 = vmul.f32 %v837_v20, %v1178_v1  ;;  %v844_v29 = vunpack.c.l.bf16 %v1099_v16  ;;  %1125 = vst [vmem:[%s1505_s3 + $0x28] sm:$0xff] %v958_v21   ;;  %v968_v30 = vpack.c.bf16 %v299_v22, %v298_v19  ;;  %v845_v33 = vunpack.c.h.bf16 %v1099_v16 }
  0x16   :  { %v236_v31 = vadd.f32 %v1192_v7, %v165_v23  ;;  %v167_v32 = vmul.f32 %v840_v24, %v1178_v1  ;;  %1126 = vst [vmem:[%s1505_s3 + $0x30] sm:$0xff] %v963_v26   ;;  %v168_v35 = vmul.f32 %v841_v28, %v1178_v1  ;;  %v848_v37 = vunpack.c.l.bf16 %v1100_v25 }
  0x17   :  { %v237_v34 = vadd.f32 %v1192_v7, %v166_v27  ;;  %v169_v36 = vmul.f32 %v844_v29, %v1178_v1  ;;  %1127 = vst [vmem:[%s1505_s3 + $0x38] sm:$0xff] %v968_v30   ;;  %v170_v41 = vmul.f32 %v845_v33, %v1178_v1  ;;  %v849_v42 = vunpack.c.h.bf16 %v1100_v25  ;;  %v1106_v29 = vld [vmem:[%s1502_s0 + $0x88] sm:$0xff]  }
  0x18   :  { %v300_v39 = vmax.f32 %v236_v31, 0.0  ;;  %v238_v40 = vadd.f32 %v1192_v7, %v167_v32  ;;  %v239_v44 = vadd.f32 %v1192_v7, %v168_v35  ;;  %v171_v46 = vmul.f32 %v848_v37, %v1178_v1 }
  0x19   :  { %v301_v43 = vmax.f32 %v237_v34, 0.0  ;;  %v240_v45 = vadd.f32 %v1192_v7, %v169_v36  ;;  %v241_v48 = vadd.f32 %v1192_v7, %v170_v41  ;;  %v172_v49 = vmul.f32 %v849_v42, %v1178_v1  ;;  %v1107_v34 = vld [vmem:[%s1502_s0 + $0x90] sm:$0xff]  }
  0x1a   :  { %v302_v47 = vmax.f32 %v238_v40, 0.0  ;;  %v852_v50 = vunpack.c.l.bf16 %v1101_v38  ;;  %v303_v53 = vmax.f32 %v239_v44, 0.0  ;;  %v242_v55 = vadd.f32 %v1192_v7, %v171_v46 }
  0x1b   :  { %v973_v52 = vpack.c.bf16 %v301_v43, %v300_v39  ;;  %v304_v54 = vmax.f32 %v240_v45, 0.0  ;;  %v305_v56 = vmax.f32 %v241_v48, 0.0  ;;  %v243_v57 = vadd.f32 %v1192_v7, %v172_v49  ;;  %v1108_v43 = vld [vmem:[%s1502_s0 + $0x98] sm:$0xff]  }
  0x1c   :  { %v853_v58 = vunpack.c.h.bf16 %v1101_v38  ;;  %v173_v59 = vmul.f32 %v852_v50, %v1178_v1  ;;  %v978_v61 = vpack.c.bf16 %v303_v53, %v302_v47  ;;  %v306_v62 = vmax.f32 %v242_v55, 0.0 }
  0x1d   :  { %1128 = vst [vmem:[%s1505_s3 + $0x40] sm:$0xff] %v973_v52   ;;  %v856_v63 = vunpack.c.l.bf16 %v1102_v51  ;;  %v857_v0 = vunpack.c.h.bf16 %v1102_v51  ;;  %v983_v3 = vpack.c.bf16 %v305_v56, %v304_v54  ;;  %v307_v4 = vmax.f32 %v243_v57, 0.0  ;;  %v1109_v56 = vld [vmem:[%s1502_s0 + $0xa0] sm:$0xff]  }
  0x1e   :  { %v174_v5 = vmul.f32 %v853_v58, %v1178_v1  ;;  %v244_v6 = vadd.f32 %v1192_v7, %v173_v59  ;;  %1129 = vst [vmem:[%s1505_s3 + $0x48] sm:$0xff] %v978_v61   ;;  %v860_v10 = vunpack.c.l.bf16 %v1103_v60  ;;  %v861_v11 = vunpack.c.h.bf16 %v1103_v60 }
  0x1f   :  { %v175_v8 = vmul.f32 %v856_v63, %v1178_v1  ;;  %v176_v9 = vmul.f32 %v857_v0, %v1178_v1  ;;  %1130 = vst [vmem:[%s1505_s3 + $0x50] sm:$0xff] %v983_v3   ;;  %v988_v13 = vpack.c.bf16 %v307_v4, %v306_v62  ;;  %v864_v16 = vunpack.c.l.bf16 %v1104_v2 }
  0x20   :  { %v245_v14 = vadd.f32 %v1192_v7, %v174_v5  ;;  %v308_v15 = vmax.f32 %v244_v6, 0.0  ;;  %v177_v19 = vmul.f32 %v860_v10, %v1178_v1  ;;  %v178_v20 = vmul.f32 %v861_v11, %v1178_v1 }
  0x21   :  { %v246_v17 = vadd.f32 %v1192_v7, %v175_v8  ;;  %v247_v18 = vadd.f32 %v1192_v7, %v176_v9  ;;  %1131 = vst [vmem:[%s1505_s3 + $0x58] sm:$0xff] %v988_v13   ;;  %v865_v22 = vunpack.c.h.bf16 %v1104_v2  ;;  %v179_v23 = vmul.f32 %v864_v16, %v1178_v1  ;;  %v1110_v2 = vld [vmem:[%s1502_s0 + $0xa8] sm:$0xff]   ;;  %v1111_v16 = vld [vmem:[%s1502_s0 + $0xb0] sm:$0xff]  }
  0x22   :  { %v309_v21 = vmax.f32 %v245_v14, 0.0  ;;  %v868_v24 = vunpack.c.l.bf16 %v1105_v12  ;;  %v248_v27 = vadd.f32 %v1192_v7, %v177_v19  ;;  %v249_v28 = vadd.f32 %v1192_v7, %v178_v20 }
  0x23   :  { %v310_v25 = vmax.f32 %v246_v17, 0.0  ;;  %v311_v26 = vmax.f32 %v247_v18, 0.0  ;;  %v180_v31 = vmul.f32 %v865_v22, %v1178_v1  ;;  %v250_v32 = vadd.f32 %v1192_v7, %v179_v23 }
  0x24   :  { %v993_v30 = vpack.c.bf16 %v309_v21, %v308_v15  ;;  %v869_v33 = vunpack.c.h.bf16 %v1105_v12  ;;  %v312_v36 = vmax.f32 %v248_v27, 0.0  ;;  %v313_v37 = vmax.f32 %v249_v28, 0.0  ;;  %v1112_v21 = vld [vmem:[%s1502_s0 + $0xb8] sm:$0xff]  }
  0x25   :  { %v998_v35 = vpack.c.bf16 %v311_v26, %v310_v25  ;;  %v181_v38 = vmul.f32 %v868_v24, %v1178_v1  ;;  %v251_v39 = vadd.f32 %v1192_v7, %v180_v31  ;;  %v314_v40 = vmax.f32 %v250_v32, 0.0 }
  0x26   :  { %1132 = vst [vmem:[%s1505_s3 + $0x60] sm:$0xff] %v993_v30   ;;  %v182_v41 = vmul.f32 %v869_v33, %v1178_v1  ;;  %v872_v42 = vunpack.c.l.bf16 %v1106_v29  ;;  %v1003_v44 = vpack.c.bf16 %v313_v37, %v312_v36  ;;  %v873_v46 = vunpack.c.h.bf16 %v1106_v29 }
  0x27   :  { %1133 = vst [vmem:[%s1505_s3 + $0x68] sm:$0xff] %v998_v35   ;;  %v252_v45 = vadd.f32 %v1192_v7, %v181_v38  ;;  %v876_v47 = vunpack.c.l.bf16 %v1107_v34  ;;  %v315_v48 = vmax.f32 %v251_v39, 0.0  ;;  %v877_v51 = vunpack.c.h.bf16 %v1107_v34  ;;  %v1113_v34 = vld [vmem:[%s1502_s0 + $0xc0] sm:$0xff]  }
  0x28   :  { %v253_v49 = vadd.f32 %v1192_v7, %v182_v41  ;;  %v183_v50 = vmul.f32 %v872_v42, %v1178_v1  ;;  %1134 = vst [vmem:[%s1505_s3 + $0x70] sm:$0xff] %v1003_v44   ;;  %v184_v53 = vmul.f32 %v873_v46, %v1178_v1  ;;  %v880_v55 = vunpack.c.l.bf16 %v1108_v43 }
  0x29   :  { %v316_v52 = vmax.f32 %v252_v45, 0.0  ;;  %v185_v54 = vmul.f32 %v876_v47, %v1178_v1  ;;  %v1008_v57 = vpack.c.bf16 %v315_v48, %v314_v40  ;;  %v186_v60 = vmul.f32 %v877_v51, %v1178_v1  ;;  %v1114_v47 = vld [vmem:[%s1502_s0 + $0xc8] sm:$0xff]  }
  0x2a   :  { %v317_v58 = vmax.f32 %v253_v49, 0.0  ;;  %v254_v59 = vadd.f32 %v1192_v7, %v183_v50  ;;  %v255_v61 = vadd.f32 %v1192_v7, %v184_v53  ;;  %v881_v63 = vunpack.c.h.bf16 %v1108_v43 }
  0x2b   :  { %v256_v62 = vadd.f32 %v1192_v7, %v185_v54  ;;  %v187_v0 = vmul.f32 %v880_v55, %v1178_v1  ;;  %1135 = vst [vmem:[%s1505_s3 + $0x78] sm:$0xff] %v1008_v57   ;;  %v257_v5 = vadd.f32 %v1192_v7, %v186_v60  ;;  %v884_v6 = vunpack.c.l.bf16 %v1109_v56 }
  0x2c   :  { %v1013_v3 = vpack.c.bf16 %v317_v58, %v316_v52  ;;  %v318_v4 = vmax.f32 %v254_v59, 0.0  ;;  %v319_v8 = vmax.f32 %v255_v61, 0.0  ;;  %v188_v10 = vmul.f32 %v881_v63, %v1178_v1  ;;  %v1115_v52 = vld [vmem:[%s1502_s0 + $0xd0] sm:$0xff]   ;;  %v1116_v61 = vld [vmem:[%s1502_s0 + $0xd8] sm:$0xff]  }
  0x2d   :  { %v320_v9 = vmax.f32 %v256_v62, 0.0  ;;  %v258_v11 = vadd.f32 %v1192_v7, %v187_v0  ;;  %v321_v12 = vmax.f32 %v257_v5, 0.0  ;;  %v885_v13 = vunpack.c.h.bf16 %v1109_v56 }
  0x2e   :  { %1136 = vst [vmem:[%s1505_s3 + $0x80] sm:$0xff] %v1013_v3   ;;  %v189_v14 = vmul.f32 %v884_v6, %v1178_v1  ;;  %v888_v15 = vunpack.c.l.bf16 %v1110_v2  ;;  %v1018_v17 = vpack.c.bf16 %v319_v8, %v318_v4  ;;  %v259_v18 = vadd.f32 %v1192_v7, %v188_v10 }
  0x2f   :  { %v322_v19 = vmax.f32 %v258_v11, 0.0  ;;  %v889_v20 = vunpack.c.h.bf16 %v1110_v2  ;;  %v1023_v22 = vpack.c.bf16 %v321_v12, %v320_v9  ;;  %v190_v23 = vmul.f32 %v885_v13, %v1178_v1  ;;  %v1117_v12 = vld [vmem:[%s1502_s0 + $0xe0] sm:$0xff]  }
  0x30   :  { %v260_v24 = vadd.f32 %v1192_v7, %v189_v14  ;;  %v191_v25 = vmul.f32 %v888_v15, %v1178_v1  ;;  %1137 = vst [vmem:[%s1505_s3 + $0x88] sm:$0xff] %v1018_v17   ;;  %v323_v26 = vmax.f32 %v259_v18, 0.0  ;;  %v892_v28 = vunpack.c.l.bf16 %v1111_v16 }
  0x31   :  { %v192_v27 = vmul.f32 %v889_v20, %v1178_v1  ;;  %v893_v29 = vunpack.c.h.bf16 %v1111_v16  ;;  %1138 = vst [vmem:[%s1505_s3 + $0x90] sm:$0xff] %v1023_v22   ;;  %v261_v30 = vadd.f32 %v1192_v7, %v190_v23  ;;  %v896_v33 = vunpack.c.l.bf16 %v1112_v21 }
  0x32   :  { %v324_v31 = vmax.f32 %v260_v24, 0.0  ;;  %v262_v32 = vadd.f32 %v1192_v7, %v191_v25  ;;  %v1028_v35 = vpack.c.bf16 %v323_v26, %v322_v19  ;;  %v193_v37 = vmul.f32 %v892_v28, %v1178_v1 }
  0x33   :  { %v263_v36 = vadd.f32 %v1192_v7, %v192_v27  ;;  %v194_v38 = vmul.f32 %v893_v29, %v1178_v1  ;;  %v325_v39 = vmax.f32 %v261_v30, 0.0  ;;  %v897_v41 = vunpack.c.h.bf16 %v1112_v21  ;;  %v1118_v21 = vld [vmem:[%s1502_s0 + $0xe8] sm:$0xff]  }
  0x34   :  { %v326_v40 = vmax.f32 %v262_v32, 0.0  ;;  %v195_v42 = vmul.f32 %v896_v33, %v1178_v1  ;;  %1139 = vst [vmem:[%s1505_s3 + $0x98] sm:$0xff] %v1028_v35   ;;  %v264_v44 = vadd.f32 %v1192_v7, %v193_v37  ;;  %v900_v46 = vunpack.c.l.bf16 %v1113_v34 }
  0x35   :  { %v327_v43 = vmax.f32 %v263_v36, 0.0  ;;  %v265_v45 = vadd.f32 %v1192_v7, %v194_v38  ;;  %v1033_v48 = vpack.c.bf16 %v325_v39, %v324_v31  ;;  %v196_v49 = vmul.f32 %v897_v41, %v1178_v1  ;;  %v1120_v39 = vld [vmem:[%s1502_s0 + $0xf8] sm:$0xff]  }
  0x36   :  { %v266_v50 = vadd.f32 %v1192_v7, %v195_v42  ;;  %v901_v51 = vunpack.c.h.bf16 %v1113_v34  ;;  %v328_v54 = vmax.f32 %v264_v44, 0.0  ;;  %v197_v56 = vmul.f32 %v900_v46, %v1178_v1  ;;  %v1119_v34 = vld [vmem:[%s1502_s0 + $0xf0] sm:$0xff]  }
  0x37   :  { %v1038_v53 = vpack.c.bf16 %v327_v43, %v326_v40  ;;  %v329_v55 = vmax.f32 %v265_v45, 0.0  ;;  %1140 = vst [vmem:[%s1505_s3 + $0xa0] sm:$0xff] %v1033_v48   ;;  %v267_v57 = vadd.f32 %v1192_v7, %v196_v49  ;;  %v904_v60 = vunpack.c.l.bf16 %v1114_v47 }
  0x38   :  { %v330_v58 = vmax.f32 %v266_v50, 0.0  ;;  %v198_v59 = vmul.f32 %v901_v51, %v1178_v1  ;;  %v268_v63 = vadd.f32 %v1192_v7, %v197_v56  ;;  %v905_v0 = vunpack.c.h.bf16 %v1114_v47 }
  0x39   :  { %1141 = vst [vmem:[%s1505_s3 + $0xa8] sm:$0xff] %v1038_v53   ;;  %v1043_v62 = vpack.c.bf16 %v329_v55, %v328_v54  ;;  %v908_v2 = vunpack.c.l.bf16 %v1115_v52  ;;  %v331_v3 = vmax.f32 %v267_v57, 0.0  ;;  %v199_v5 = vmul.f32 %v904_v60, %v1178_v1 }
  0x3a   :  { %v269_v4 = vadd.f32 %v1192_v7, %v198_v59  ;;  %v909_v6 = vunpack.c.h.bf16 %v1115_v52  ;;  %v332_v8 = vmax.f32 %v268_v63, 0.0  ;;  %v200_v9 = vmul.f32 %v905_v0, %v1178_v1 }
  0x3b   :  { %1142 = vst [vmem:[%s1505_s3 + $0xb0] sm:$0xff] %v1043_v62   ;;  %v201_v10 = vmul.f32 %v908_v2, %v1178_v1  ;;  %v912_v11 = vunpack.c.l.bf16 %v1116_v61  ;;  %v1048_v13 = vpack.c.bf16 %v331_v3, %v330_v58  ;;  %v270_v15 = vadd.f32 %v1192_v7, %v199_v5 }
  0x3c   :  { %v333_v14 = vmax.f32 %v269_v4, 0.0  ;;  %v202_v16 = vmul.f32 %v909_v6, %v1178_v1  ;;  %v271_v17 = vadd.f32 %v1192_v7, %v200_v9  ;;  %v913_v19 = vunpack.c.h.bf16 %v1116_v61 }
  0x3d   :  { %v272_v18 = vadd.f32 %v1192_v7, %v201_v10  ;;  %v203_v20 = vmul.f32 %v912_v11, %v1178_v1  ;;  %1143 = vst [vmem:[%s1505_s3 + $0xb8] sm:$0xff] %v1048_v13   ;;  %v334_v23 = vmax.f32 %v270_v15, 0.0  ;;  %v916_v25 = vunpack.c.l.bf16 %v1117_v12 }
  0x3e   :  { %v1053_v22 = vpack.c.bf16 %v333_v14, %v332_v8  ;;  %v273_v24 = vadd.f32 %v1192_v7, %v202_v16  ;;  %v335_v26 = vmax.f32 %v271_v17, 0.0  ;;  %v204_v28 = vmul.f32 %v913_v19, %v1178_v1 }
  0x3f   :  { %v336_v27 = vmax.f32 %v272_v18, 0.0  ;;  %v274_v29 = vadd.f32 %v1192_v7, %v203_v20  ;;  %v917_v31 = vunpack.c.h.bf16 %v1117_v12  ;;  %v205_v32 = vmul.f32 %v916_v25, %v1178_v1 }
  0x40   :  { %1144 = vst [vmem:[%s1505_s3 + $0xc0] sm:$0xff] %v1053_v22   ;;  %v337_v30 = vmax.f32 %v273_v24, 0.0  ;;  %v920_v33 = vunpack.c.l.bf16 %v1118_v21  ;;  %v1058_v35 = vpack.c.bf16 %v335_v26, %v334_v23  ;;  %v275_v36 = vadd.f32 %v1192_v7, %v204_v28 }
  0x41   :  { %v338_v37 = vmax.f32 %v274_v29, 0.0  ;;  %v921_v38 = vunpack.c.h.bf16 %v1118_v21  ;;  %v206_v41 = vmul.f32 %v917_v31, %v1178_v1  ;;  %v276_v42 = vadd.f32 %v1192_v7, %v205_v32 }
  0x42   :  { %v1063_v40 = vpack.c.bf16 %v337_v30, %v336_v27  ;;  %v207_v43 = vmul.f32 %v920_v33, %v1178_v1  ;;  %1145 = vst [vmem:[%s1505_s3 + $0xc8] sm:$0xff] %v1058_v35   ;;  %v339_v44 = vmax.f32 %v275_v36, 0.0  ;;  %v924_v46 = vunpack.c.l.bf16 %v1119_v34 }
  0x43   :  { %v208_v45 = vmul.f32 %v921_v38, %v1178_v1  ;;  %v925_v47 = vunpack.c.h.bf16 %v1119_v34  ;;  %v277_v48 = vadd.f32 %v1192_v7, %v206_v41  ;;  %v340_v49 = vmax.f32 %v276_v42, 0.0 }
  0x44   :  { %1146 = vst [vmem:[%s1505_s3 + $0xd0] sm:$0xff] %v1063_v40   ;;  %v278_v50 = vadd.f32 %v1192_v7, %v207_v43  ;;  %v928_v51 = vunpack.c.l.bf16 %v1120_v39  ;;  %v1068_v52 = vpack.c.bf16 %v339_v44, %v338_v37  ;;  %v209_v54 = vmul.f32 %v924_v46, %v1178_v1 }
  0x45   :  { %v279_v53 = vadd.f32 %v1192_v7, %v208_v45  ;;  %v210_v55 = vmul.f32 %v925_v47, %v1178_v1  ;;  %v341_v56 = vmax.f32 %v277_v48, 0.0  ;;  %v929_v58 = vunpack.c.h.bf16 %v1120_v39 }
  0x46   :  { %v342_v57 = vmax.f32 %v278_v50, 0.0  ;;  %v211_v59 = vmul.f32 %v928_v51, %v1178_v1  ;;  %1147 = vst [vmem:[%s1505_s3 + $0xd8] sm:$0xff] %v1068_v52   ;;  %v280_v61 = vadd.f32 %v1192_v7, %v209_v54 }
  0x47   :  { %v343_v60 = vmax.f32 %v279_v53, 0.0  ;;  %v281_v62 = vadd.f32 %v1192_v7, %v210_v55  ;;  %v1073_v63 = vpack.c.bf16 %v341_v56, %v340_v49  ;;  %v212_v0 = vmul.f32 %v929_v58, %v1178_v1 }
  0x48   :  { %v282_v2 = vadd.f32 %v1192_v7, %v211_v59  ;;  %v344_v4 = vmax.f32 %v280_v61, 0.0 }
  0x49   :  { %v1078_v3 = vpack.c.bf16 %v343_v60, %v342_v57  ;;  %v345_v5 = vmax.f32 %v281_v62, 0.0  ;;  %1148 = vst [vmem:[%s1505_s3 + $0xe0] sm:$0xff] %v1073_v63   ;;  %v283_v6 = vadd.f32 %v1192_v7, %v212_v0 }
  0x4a   :  { %v346_v8 = vmax.f32 %v282_v2, 0.0 }
  0x4b   :  { %1149 = vst [vmem:[%s1505_s3 + $0xe8] sm:$0xff] %v1078_v3   ;;  %v1083_v9 = vpack.c.bf16 %v345_v5, %v344_v4  ;;  %v347_v10 = vmax.f32 %v283_v6, 0.0 }
  0x4d   :  { %1150 = vst [vmem:[%s1505_s3 + $0xf0] sm:$0xff] %v1083_v9   ;;  %v1088_v1 = vpack.c.bf16 %v347_v10, %v346_v8 }
  0x4f   :  { %1151 = vst [vmem:[%s1505_s3 + $0xf8] sm:$0xff] %v1088_v1  }

// kernel: resnet18_forward.45
= control target key start
LH: loop header
LB: loop body
LE: loop exit
PB: predicated region body
PF: predicated region fallthrough
CT: control target
= control target key end

     0   :  { %s1810_s15 = smov 0   ;;  %s1812_s16 = smov 0   ;;  %s2054_s0 = inlined_call_operand.vmem [shape: bf16[512,256], index: 0, kind: input, shape index: {}]   ;;  %s2055_s1 = inlined_call_operand.vmem [shape: bf16[256,128], index: 1, kind: input, shape index: {}]   ;;  %s2056_s2 = inlined_call_operand.vmem [shape: bf16[512,128], index: 2, kind: output, shape index: {0}]   ;;  %s2057_s3 = inlined_call_operand.vmem [shape: f32[2,1,128], index: 3, kind: output, shape index: {1}]   ;;  %s2058_s4 = inlined_call_operand.vmem [shape: f32[2,1,128], index: 4, kind: output, shape index: {2}]  }
   0x1   :  { %s1814_s17 = smov 0  }
   0x2 LB: > { %s27_s18 = sadd.s32 1, %s1779_s16  ;;  %p1329_p0 = scmp.ge.s32.totalorder %s1783_s17, 1  ;;  %s1783_s17 = sphi %s1814_s17, %s15_s17   ;;  %s1779_s16 = sphi %s1812_s16, %s2060_s16   ;;  %s1775_s15 = sphi %s1810_s15, %s2059_s15  }
   0x3   : > { %p29_p1 = scmp.ge.s32.totalorder %s27_s18, 2  ;;  %p199_p2 = scmp.lt.s32.totalorder %s1783_s17, 3 }
   0x5   : > { %s2062_s18 = smov (%p29_p1, %s27_s18), 0  ;;  %p200_p3 = pnand %p1329_p0, %p199_p2 }
   0x6   : > { %s1330_s21 = sshll.u32 (!%p200_p3), %s1775_s15, 5  ;;  %p265_p5 = scmp.lt.s32.totalorder (!%p200_p3), %s1775_s15, 1 }
   0x7   : > { %203 = sbr.rel (%p200_p3) target bundleno = 351 (0x15f), region = 28  ;;  %p243_p4 = scmp.lt.s32.totalorder (!%p200_p3), %s1330_s21, 63 }
   0xc   : > { %v1697_v0 = vld [vmem:[%s2055_s1 + $0x78] sm:$0xff]   ;;  %v1699_v2 = vld [vmem:[%s2055_s1 + $0x70] sm:$0xff]   ;;  %v1701_v4 = vld [vmem:[%s2055_s1 + $0x68] sm:$0xff]   ;;  %s2064_s21 = smov (!%p243_p4, %s1330_s21), 63  ;;  %s2066_s15 = smov (!%p265_p5, %s1775_s15), 1 }
   0xd   : > { %v1698_v1 = vld [vmem:[%s2055_s1 + $0x38] sm:$0xff]   ;;  %1545 = vmatprep.subr.bf16.mxu0 %v1697_v0  ;;  %1657 = vmatprep.subr.bf16.mxu1 %v1697_v0  ;;  %v1700_v3 = vld [vmem:[%s2055_s1 + $0x30] sm:$0xff]   ;;  %v1702_v5 = vld [vmem:[%s2055_s1 + $0x28] sm:$0xff]   ;;  %s1417_s10 = sshll.u32 %s2064_s21, 3  ;;  %s1334_s9 = sshll.u32 %s2064_s21, 2 }
   0xe   : > { %1546 = vmatpush3.bf16.msra.mxu0 %v1698_v1  ;;  %1665 = vmatpush3.bf16.msra.mxu1 %v1698_v1  ;;  %v1703_v6 = vld [vmem:[%s2055_s1 + $0x60] sm:$0xff]   ;;  %v1705_v8 = vld [vmem:[%s2055_s1 + $0x58] sm:$0xff]   ;;  %s1864_s19 = scalar_lea.vmem %s2054_s0, %s1417_s10  ;;  %v1707_v10 = vld [vmem:[%s2055_s1 + $0x50] sm:$0xff]   ;;  %s1929_s12 = scalar_lea.vmem %s2056_s2, %s1334_s9 }
   0xf   : > { %1547 = vmatprep.subr.bf16.mxu0 %v1699_v2  ;;  %1658 = vmatprep.subr.bf16.mxu1 %v1699_v2  ;;  %v1704_v7 = vld [vmem:[%s2055_s1 + $0x20] sm:$0xff]   ;;  %v1706_v9 = vld [vmem:[%s2055_s1 + $0x18] sm:$0xff]   ;;  %v1708_v12 = vld [vmem:[%s2055_s1 + $0x10] sm:$0xff]   ;;  %s267_s14 = scalar_lea.vmem %s2057_s3, %s2066_s15  ;;  %s270_s22 = scalar_lea.vmem %s2058_s4, %s2066_s15 }
  0x10   : > { %v1715_v11 = vld [vmem:[%s1864_s19 + $0x4] ss:$8 sps:$4 sm:$0xff]   ;;  %v1713_v18 = vld [vmem:[%s1864_s19] ss:$8 sps:$4 sm:$0xff]   ;;  %v1716_v19 = vld [vmem:[%s1864_s19 + $0x14] ss:$8 sps:$4 sm:$0xff]  }
  0x11   : > { %692 = vmatprep.mubr.bf16.mxu0 %v1715_v11  ;;  %v1709_v13 = vld [vmem:[%s2055_s1 + $0x48] sm:$0xff]   ;;  %v1711_v16 = vld [vmem:[%s2055_s1 + $0x40] sm:$0xff]   ;;  %v1731_v21 = vld [vmem:[%s1864_s19 + $0x94] ss:$8 sps:$4 sm:$0xff]  }
  0x12   : > { %1548 = vmatpush3.bf16.msra.mxu0 %v1700_v3  ;;  %1666 = vmatpush3.bf16.msra.mxu1 %v1700_v3  ;;  %v1727_v14 = vld [vmem:[%s1864_s19 + $0x84] ss:$8 sps:$4 sm:$0xff]   ;;  %v1725_v20 = vld [vmem:[%s1864_s19 + $0x80] ss:$8 sps:$4 sm:$0xff]   ;;  %v1718_v22 = vld [vmem:[%s1864_s19 + $0x10] ss:$8 sps:$4 sm:$0xff]  }
  0x13   : > { %1549 = vmatprep.subr.bf16.mxu0 %v1701_v4  ;;  %1659 = vmatprep.subr.bf16.mxu1 %v1701_v4  ;;  %v1710_v15 = vld [vmem:[%s2055_s1 + $0x8] sm:$0xff]   ;;  %v1712_v17 = vld [vmem:[%s2055_s1] sm:$0xff]   ;;  %v1733_v24 = vld [vmem:[%s1864_s19 + $0x90] ss:$8 sps:$4 sm:$0xff]  }
  0x14   : > { %756 = vmatprep.mubr.bf16.mxu1 %v1727_v14  ;;  %v1719_v23 = vld [vmem:[%s1864_s19 + $0x24] ss:$8 sps:$4 sm:$0xff]   ;;  %v1721_v26 = vld [vmem:[%s1864_s19 + $0x20] ss:$8 sps:$4 sm:$0xff]   ;;  %v1722_v27 = vld [vmem:[%s1864_s19 + $0x34] ss:$8 sps:$4 sm:$0xff]  }
  0x15   : > { %v1737_v25 = vld [vmem:[%s1864_s19 + $0xa4] ss:$8 sps:$4 sm:$0xff]   ;;  %v1739_v28 = vld [vmem:[%s1864_s19 + $0xa0] ss:$8 sps:$4 sm:$0xff]   ;;  %v1743_v29 = vld [vmem:[%s1864_s19 + $0xb4] ss:$8 sps:$4 sm:$0xff]  }
  0x16   : > { %1550 = vmatpush3.bf16.msra.mxu0 %v1702_v5  ;;  %1667 = vmatpush3.bf16.msra.mxu1 %v1702_v5  ;;  %v1724_v30 = vld [vmem:[%s1864_s19 + $0x30] ss:$8 sps:$4 sm:$0xff]   ;;  %v1728_v31 = vld [vmem:[%s1864_s19 + $0x44] ss:$8 sps:$4 sm:$0xff]   ;;  %v1730_v34 = vld [vmem:[%s1864_s19 + $0x40] ss:$8 sps:$4 sm:$0xff]  }
  0x17   : > { %1551 = vmatprep.subr.bf16.mxu0 %v1703_v6  ;;  %1660 = vmatprep.subr.bf16.mxu1 %v1703_v6  ;;  %v1745_v32 = vld [vmem:[%s1864_s19 + $0xb0] ss:$8 sps:$4 sm:$0xff]   ;;  %v1749_v33 = vld [vmem:[%s1864_s19 + $0xc4] ss:$8 sps:$4 sm:$0xff]   ;;  %v1734_v35 = vld [vmem:[%s1864_s19 + $0x54] ss:$8 sps:$4 sm:$0xff]  }
  0x18   : > { %v1751_v36 = vld [vmem:[%s1864_s19 + $0xc0] ss:$8 sps:$4 sm:$0xff]   ;;  %v1752_v37 = vld [vmem:[%s1864_s19 + $0xd4] ss:$8 sps:$4 sm:$0xff]   ;;  %v1736_v38 = vld [vmem:[%s1864_s19 + $0x50] ss:$8 sps:$4 sm:$0xff]  }
  0x19   : > { %v1740_v39 = vld [vmem:[%s1864_s19 + $0x64] ss:$8 sps:$4 sm:$0xff]   ;;  %v1754_v40 = vld [vmem:[%s1864_s19 + $0xd0] ss:$8 sps:$4 sm:$0xff]   ;;  %v1742_v42 = vld [vmem:[%s1864_s19 + $0x60] ss:$8 sps:$4 sm:$0xff]  }
  0x1a   : > { %1552 = vmatpush3.bf16.msra.mxu0 %v1704_v7  ;;  %1668 = vmatpush3.bf16.msra.mxu1 %v1704_v7  ;;  %v1755_v41 = vld [vmem:[%s1864_s19 + $0xe4] ss:$8 sps:$4 sm:$0xff]   ;;  %v1746_v43 = vld [vmem:[%s1864_s19 + $0x74] ss:$8 sps:$4 sm:$0xff]   ;;  %v1757_v44 = vld [vmem:[%s1864_s19 + $0xe0] ss:$8 sps:$4 sm:$0xff]  }
  0x1b   : > { %1553 = vmatprep.subr.bf16.mxu0 %v1705_v8  ;;  %1661 = vmatprep.subr.bf16.mxu1 %v1705_v8  ;;  %v1758_v45 = vld [vmem:[%s1864_s19 + $0xf4] ss:$8 sps:$4 sm:$0xff]   ;;  %v1748_v46 = vld [vmem:[%s1864_s19 + $0x70] ss:$8 sps:$4 sm:$0xff]  }
  0x1c   : > { %v1760_v47 = vld [vmem:[%s1864_s19 + $0xf0] ss:$8 sps:$4 sm:$0xff]  }
  0x1e   : > { %1554 = vmatpush3.bf16.msra.mxu0 %v1706_v9  ;;  %1669 = vmatpush3.bf16.msra.mxu1 %v1706_v9 }
  0x1f   : > { %1555 = vmatprep.subr.bf16.mxu0 %v1707_v10  ;;  %1662 = vmatprep.subr.bf16.mxu1 %v1707_v10 }
  0x22   : > { %1556 = vmatpush3.bf16.msra.mxu0 %v1708_v12  ;;  %1670 = vmatpush3.bf16.msra.mxu1 %v1708_v12 }
  0x23   : > { %1557 = vmatprep.subr.bf16.mxu0 %v1709_v13  ;;  %1663 = vmatprep.subr.bf16.mxu1 %v1709_v13 }
  0x26   : > { %1558 = vmatpush3.bf16.msra.mxu0 %v1710_v15  ;;  %1671 = vmatpush3.bf16.msra.mxu1 %v1710_v15 }
  0x27   : > { %1559 = vmatprep.subr.bf16.mxu0 %v1711_v16  ;;  %1664 = vmatprep.subr.bf16.mxu1 %v1711_v16 }
  0x2a   : > { %1560 = vmatpush3.bf16.msra.mxu0 %v1712_v17  ;;  %1672 = vmatpush3.bf16.msra.mxu1 %v1712_v17 }
  0x2d   : > { %693 = vmatmul.mubr.bf16.vlgmr.msra.gmra.mxu0 %v1713_v18  ;;  %757 = vmatmul.mubr.bf16.vlgmr.msra.gmra.mxu1 %v1725_v20 }
  0x2e   : > { %700 = vmatprep.mubr.bf16.mxu0 %v1716_v19  ;;  %764 = vmatprep.mubr.bf16.mxu1 %v1731_v21 }
  0x35   : > { %701 = vmatmul.mubr.bf16.gmra.mxu0 %v1718_v22  ;;  %765 = vmatmul.mubr.bf16.gmra.mxu1 %v1733_v24 }
  0x36   : > { %708 = vmatprep.mubr.bf16.mxu0 %v1719_v23  ;;  %772 = vmatprep.mubr.bf16.mxu1 %v1737_v25 }
  0x3d   : > { %709 = vmatmul.mubr.bf16.gmra.mxu0 %v1721_v26  ;;  %773 = vmatmul.mubr.bf16.gmra.mxu1 %v1739_v28 }
  0x3e   : > { %716 = vmatprep.mubr.bf16.mxu0 %v1722_v27  ;;  %780 = vmatprep.mubr.bf16.mxu1 %v1743_v29 }
  0x45   : > { %717 = vmatmul.mubr.bf16.gmra.mxu0 %v1724_v30  ;;  %781 = vmatmul.mubr.bf16.gmra.mxu1 %v1745_v32 }
  0x46   : > { %724 = vmatprep.mubr.bf16.mxu0 %v1728_v31  ;;  %788 = vmatprep.mubr.bf16.mxu1 %v1749_v33 }
  0x4d   : > { %725 = vmatmul.mubr.bf16.gmra.mxu0 %v1730_v34  ;;  %789 = vmatmul.mubr.bf16.gmra.mxu1 %v1751_v36 }
  0x4e   : > { %732 = vmatprep.mubr.bf16.mxu0 %v1734_v35  ;;  %796 = vmatprep.mubr.bf16.mxu1 %v1752_v37 }
  0x55   : > { %733 = vmatmul.mubr.bf16.gmra.mxu0 %v1736_v38  ;;  %797 = vmatmul.mubr.bf16.gmra.mxu1 %v1754_v40 }
  0x56   : > { %740 = vmatprep.mubr.bf16.mxu0 %v1740_v39  ;;  %804 = vmatprep.mubr.bf16.mxu1 %v1755_v41 }
  0x5d   : > { %741 = vmatmul.mubr.bf16.gmra.mxu0 %v1742_v42  ;;  %805 = vmatmul.mubr.bf16.gmra.mxu1 %v1757_v44 }
  0x5e   : > { %748 = vmatprep.mubr.bf16.mxu0 %v1746_v43  ;;  %812 = vmatprep.mubr.bf16.mxu1 %v1758_v45 }
  0x65   : > { %749 = vmatmul.mubr.bf16.gmra.mxu0 %v1748_v46  ;;  %813 = vmatmul.mubr.bf16.gmra.mxu1 %v1760_v47 }
  0xed   : > { %v1561_v48 = vpop.f32.mrf.mxu0  ;;  %v1609_v49 = vpop.f32.mrf.mxu1 }
  0xef   : > { %v1562_v50 = vpop.f32.mrf.mxu0  ;;  %v1610_v51 = vpop.f32.mrf.mxu1 }
  0xf0   : > { %v1920_v55 = vadd.f32 %v1610_v51, %v1609_v49  ;;  %v1922_v56 = vadd.f32 %v1562_v50, %v1561_v48 }
  0xf1   : > { %v1564_v52 = vpop.f32.mrf.mxu0  ;;  %v1612_v53 = vpop.f32.mrf.mxu1 }
  0xf2   : > { %v1118_v45 = vmul.f32 %v1922_v56, %v1922_v56 }
  0xf3   : > { %v1565_v54 = vpop.f32.mrf.mxu0  ;;  %v1613_v58 = vpop.f32.mrf.mxu1 }
  0xf4   : > { %v1924_v57 = vadd.f32 %v1565_v54, %v1564_v52  ;;  %v1931_v60 = vadd.f32 %v1613_v58, %v1612_v53 }
  0xf5   : > { %v1567_v59 = vpop.f32.mrf.mxu0  ;;  %v1615_v62 = vpop.f32.mrf.mxu1 }
  0xf6   : > { %v1453_v61 = vpack.c.bf16 %v1924_v57, %v1922_v56  ;;  %v1493_v0 = vpack.c.bf16 %v1931_v60, %v1920_v55  ;;  %v1119_v41 = vmul.f32 %v1924_v57, %v1924_v57  ;;  %v1080_v48 = vadd.f32 %v1924_v57, %v1922_v56 }
  0xf7   : > { %v1568_v63 = vpop.f32.mrf.mxu0  ;;  %v1616_v1 = vpop.f32.mrf.mxu1 }
  0xf8   : > { %1454 = vst [vmem:[%s1929_s12] sm:$0xff] %v1453_v61   ;;  %1537 = vst [vmem:[%s1929_s12 + $0x40] sm:$0xff] %v1493_v0   ;;  %v1939_v5 = vadd.f32 %v1616_v1, %v1615_v62  ;;  %v1569_v6 = vadd.f32 %v1568_v63, %v1567_v59  ;;  %v1150_v50 = vadd.f32 %v1119_v41, %v1118_v45 }
  0xf9   : > { %v1570_v2 = vpop.f32.mrf.mxu0  ;;  %v1618_v3 = vpop.f32.mrf.mxu1 }
  0xfa   : > { %v1120_v46 = vmul.f32 %v1569_v6, %v1569_v6  ;;  %v1081_v54 = vadd.f32 %v1569_v6, %v1080_v48 }
  0xfb   : > { %v1571_v4 = vpop.f32.mrf.mxu0  ;;  %v1619_v8 = vpop.f32.mrf.mxu1 }
  0xfc   : > { %v1572_v7 = vadd.f32 %v1571_v4, %v1570_v2  ;;  %v1941_v10 = vadd.f32 %v1619_v8, %v1618_v3  ;;  %v1151_v62 = vadd.f32 %v1150_v50, %v1120_v46 }
  0xfd   : > { %v1573_v9 = vpop.f32.mrf.mxu0  ;;  %v1621_v12 = vpop.f32.mrf.mxu1 }
  0xfe   : > { %v1458_v11 = vpack.c.bf16 %v1572_v7, %v1569_v6  ;;  %v1498_v14 = vpack.c.bf16 %v1941_v10, %v1939_v5  ;;  %v1121_v51 = vmul.f32 %v1572_v7, %v1572_v7  ;;  %v1082_v2 = vadd.f32 %v1572_v7, %v1081_v54 }
  0xff   : > { %v1574_v13 = vpop.f32.mrf.mxu0  ;;  %v1622_v15 = vpop.f32.mrf.mxu1 }
 0x100   : > { %1530 = vst [vmem:[%s1929_s12 + $0x8] sm:$0xff] %v1458_v11   ;;  %1538 = vst [vmem:[%s1929_s12 + $0x48] sm:$0xff] %v1498_v14   ;;  %v1947_v19 = vadd.f32 %v1622_v15, %v1621_v12  ;;  %v1575_v20 = vadd.f32 %v1574_v13, %v1573_v9  ;;  %v1152_v57 = vadd.f32 %v1151_v62, %v1121_v51 }
 0x101   : > { %v1576_v16 = vpop.f32.mrf.mxu0  ;;  %v1624_v17 = vpop.f32.mrf.mxu1 }
 0x102   : > { %v1122_v63 = vmul.f32 %v1575_v20, %v1575_v20  ;;  %v1083_v6 = vadd.f32 %v1575_v20, %v1082_v2 }
 0x103   : > { %v1577_v18 = vpop.f32.mrf.mxu0  ;;  %v1625_v22 = vpop.f32.mrf.mxu1 }
 0x104   : > { %v1578_v21 = vadd.f32 %v1577_v18, %v1576_v16  ;;  %v1949_v24 = vadd.f32 %v1625_v22, %v1624_v17  ;;  %v1153_v12 = vadd.f32 %v1152_v57, %v1122_v63 }
 0x105   : > { %v1579_v23 = vpop.f32.mrf.mxu0  ;;  %v1627_v26 = vpop.f32.mrf.mxu1 }
 0x106   : > { %v1463_v25 = vpack.c.bf16 %v1578_v21, %v1575_v20  ;;  %v1503_v28 = vpack.c.bf16 %v1949_v24, %v1947_v19  ;;  %v1123_v4 = vmul.f32 %v1578_v21, %v1578_v21  ;;  %v1084_v14 = vadd.f32 %v1578_v21, %v1083_v6 }
 0x107   : > { %v1580_v27 = vpop.f32.mrf.mxu0  ;;  %v1628_v29 = vpop.f32.mrf.mxu1 }
 0x108   : > { %1531 = vst [vmem:[%s1929_s12 + $0x10] sm:$0xff] %v1463_v25   ;;  %1539 = vst [vmem:[%s1929_s12 + $0x50] sm:$0xff] %v1503_v28   ;;  %v1955_v33 = vadd.f32 %v1628_v29, %v1627_v26  ;;  %v1581_v34 = vadd.f32 %v1580_v27, %v1579_v23  ;;  %v1154_v17 = vadd.f32 %v1153_v12, %v1123_v4 }
 0x109   : > { %v1582_v30 = vpop.f32.mrf.mxu0  ;;  %v1630_v31 = vpop.f32.mrf.mxu1 }
 0x10a   : > { %v1124_v15 = vmul.f32 %v1581_v34, %v1581_v34  ;;  %v1085_v22 = vadd.f32 %v1581_v34, %v1084_v14 }
 0x10b   : > { %v1583_v32 = vpop.f32.mrf.mxu0  ;;  %v1631_v36 = vpop.f32.mrf.mxu1 }
 0x10c   : > { %v1584_v35 = vadd.f32 %v1583_v32, %v1582_v30  ;;  %v1957_v38 = vadd.f32 %v1631_v36, %v1630_v31  ;;  %v1155_v29 = vadd.f32 %v1154_v17, %v1124_v15 }
 0x10d   : > { %v1585_v37 = vpop.f32.mrf.mxu0  ;;  %v1633_v40 = vpop.f32.mrf.mxu1 }
 0x10e   : > { %v1468_v39 = vpack.c.bf16 %v1584_v35, %v1581_v34  ;;  %v1508_v43 = vpack.c.bf16 %v1957_v38, %v1955_v33  ;;  %v1125_v23 = vmul.f32 %v1584_v35, %v1584_v35  ;;  %v1086_v30 = vadd.f32 %v1584_v35, %v1085_v22 }
 0x10f   : > { %v1586_v42 = vpop.f32.mrf.mxu0  ;;  %v1634_v44 = vpop.f32.mrf.mxu1 }
 0x110   : > { %1532 = vst [vmem:[%s1929_s12 + $0x18] sm:$0xff] %v1468_v39   ;;  %1540 = vst [vmem:[%s1929_s12 + $0x58] sm:$0xff] %v1508_v43   ;;  %v1969_v53 = vadd.f32 %v1634_v44, %v1633_v40  ;;  %v1587_v58 = vadd.f32 %v1586_v42, %v1585_v37  ;;  %v1156_v39 = vadd.f32 %v1155_v29, %v1125_v23 }
 0x111   : > { %v1588_v47 = vpop.f32.mrf.mxu0  ;;  %v1636_v49 = vpop.f32.mrf.mxu1 }
 0x112   : > { %v1126_v31 = vmul.f32 %v1587_v58, %v1587_v58  ;;  %v1087_v34 = vadd.f32 %v1587_v58, %v1086_v30 }
 0x113   : > { %v1589_v52 = vpop.f32.mrf.mxu0  ;;  %v1637_v61 = vpop.f32.mrf.mxu1 }
 0x114   : > { %v1590_v59 = vadd.f32 %v1589_v52, %v1588_v47  ;;  %v1971_v1 = vadd.f32 %v1637_v61, %v1636_v49  ;;  %v1157_v43 = vadd.f32 %v1156_v39, %v1126_v31 }
 0x115   : > { %v1591_v0 = vpop.f32.mrf.mxu0  ;;  %v1639_v56 = vpop.f32.mrf.mxu1 }
 0x116   : > { %v1473_v3 = vpack.c.bf16 %v1590_v59, %v1587_v58  ;;  %v1513_v9 = vpack.c.bf16 %v1971_v1, %v1969_v53  ;;  %v1127_v40 = vmul.f32 %v1590_v59, %v1590_v59  ;;  %v1088_v44 = vadd.f32 %v1590_v59, %v1087_v34 }
 0x117   : > { %v1592_v8 = vpop.f32.mrf.mxu0  ;;  %v1640_v11 = vpop.f32.mrf.mxu1 }
 0x118   : > { %1533 = vst [vmem:[%s1929_s12 + $0x20] sm:$0xff] %v1473_v3   ;;  %1541 = vst [vmem:[%s1929_s12 + $0x60] sm:$0xff] %v1513_v9   ;;  %v1977_v7 = vadd.f32 %v1640_v11, %v1639_v56  ;;  %v1593_v25 = vadd.f32 %v1592_v8, %v1591_v0  ;;  %v1158_v49 = vadd.f32 %v1157_v43, %v1127_v40 }
 0x119   : > { %v1594_v13 = vpop.f32.mrf.mxu0  ;;  %v1642_v16 = vpop.f32.mrf.mxu1  ;;  %v1136_v40 = vmul.f32 %v1939_v5, %v1939_v5  ;;  %v1137_v43 = vmul.f32 %v1941_v10, %v1941_v10 }
 0x11a   : > { %v1128_v45 = vmul.f32 %v1593_v25, %v1593_v25  ;;  %v1089_v50 = vadd.f32 %v1593_v25, %v1088_v44 }
 0x11b   : > { %v1595_v18 = vpop.f32.mrf.mxu0  ;;  %v1643_v27 = vpop.f32.mrf.mxu1 }
 0x11c   : > { %v1596_v26 = vadd.f32 %v1595_v18, %v1594_v13  ;;  %v1979_v28 = vadd.f32 %v1643_v27, %v1642_v16  ;;  %v1159_v62 = vadd.f32 %v1158_v49, %v1128_v45  ;;  %v1138_v45 = vmul.f32 %v1947_v19, %v1947_v19 }
 0x11d   : > { %v1597_v20 = vpop.f32.mrf.mxu0  ;;  %v1645_v32 = vpop.f32.mrf.mxu1 }
 0x11e   : > { %v1478_v21 = vpack.c.bf16 %v1596_v26, %v1593_v25  ;;  %v1518_v37 = vpack.c.bf16 %v1979_v28, %v1977_v7  ;;  %v1129_v51 = vmul.f32 %v1596_v26, %v1596_v26  ;;  %v1090_v63 = vadd.f32 %v1596_v26, %v1089_v50 }
 0x11f   : > { %v1598_v36 = vpop.f32.mrf.mxu0  ;;  %v1646_v41 = vpop.f32.mrf.mxu1 }
 0x120   : > { %1534 = vst [vmem:[%s1929_s12 + $0x28] sm:$0xff] %v1478_v21   ;;  %1542 = vst [vmem:[%s1929_s12 + $0x68] sm:$0xff] %v1518_v37   ;;  %v1599_v46 = vadd.f32 %v1598_v36, %v1597_v20  ;;  %v1985_v48 = vadd.f32 %v1646_v41, %v1645_v32  ;;  %v1160_v57 = vadd.f32 %v1159_v62, %v1129_v51 }
 0x121   : > { %v1600_v42 = vpop.f32.mrf.mxu0  ;;  %v1648_v47 = vpop.f32.mrf.mxu1  ;;  %v1134_v21 = vmul.f32 %v1920_v55, %v1920_v55  ;;  %v1135_v37 = vmul.f32 %v1931_v60, %v1931_v60 }
 0x122   : > { %v1130_v0 = vmul.f32 %v1599_v46, %v1599_v46  ;;  %v1091_v4 = vadd.f32 %v1599_v46, %v1090_v63  ;;  %v1143_v63 = vmul.f32 %v1971_v1, %v1971_v1 }
 0x123   : > { %v1601_v35 = vpop.f32.mrf.mxu0  ;;  %v1649_v54 = vpop.f32.mrf.mxu1 }
 0x124   : > { %v1602_v52 = vadd.f32 %v1601_v35, %v1600_v42  ;;  %v1987_v61 = vadd.f32 %v1649_v54, %v1648_v47  ;;  %v1161_v12 = vadd.f32 %v1160_v57, %v1130_v0 }
 0x125   : > { %v1603_v58 = vpop.f32.mrf.mxu0  ;;  %v1651_v2 = vpop.f32.mrf.mxu1 }
 0x126   : > { %v1483_v59 = vpack.c.bf16 %v1602_v52, %v1599_v46  ;;  %v1523_v56 = vpack.c.bf16 %v1987_v61, %v1985_v48  ;;  %v1131_v8 = vmul.f32 %v1602_v52, %v1602_v52  ;;  %v1092_v13 = vadd.f32 %v1602_v52, %v1091_v4 }
 0x127   : > { %v1604_v3 = vpop.f32.mrf.mxu0  ;;  %v1652_v6 = vpop.f32.mrf.mxu1 }
 0x128   : > { %1535 = vst [vmem:[%s1929_s12 + $0x30] sm:$0xff] %v1483_v59   ;;  %v1605_v9 = vadd.f32 %v1604_v3, %v1603_v58  ;;  %1543 = vst [vmem:[%s1929_s12 + $0x70] sm:$0xff] %v1523_v56   ;;  %v1653_v17 = vadd.f32 %v1652_v6, %v1651_v2  ;;  %v1162_v18 = vadd.f32 %v1161_v12, %v1131_v8 }
 0x129   : > { %v1606_v11 = vpop.f32.mrf.mxu0  ;;  %v1654_v15 = vpop.f32.mrf.mxu1  ;;  %v1144_v2 = vmul.f32 %v1977_v7, %v1977_v7 }
 0x12a   : > { %v1132_v14 = vmul.f32 %v1605_v9, %v1605_v9  ;;  %v1093_v22 = vadd.f32 %v1605_v9, %v1092_v13 }
 0x12b   : > { %v1607_v16 = vpop.f32.mrf.mxu0  ;;  %v1655_v25 = vpop.f32.mrf.mxu1 }
 0x12c   : > { %v1608_v23 = vadd.f32 %v1607_v16, %v1606_v11  ;;  %v1656_v26 = vadd.f32 %v1655_v25, %v1654_v15  ;;  %v1163_v27 = vadd.f32 %v1162_v18, %v1132_v14  ;;  %v1148_v11 = vmul.f32 %v1653_v17, %v1653_v17 }
 0x12e   : > { %v1488_v20 = vpack.c.bf16 %v1608_v23, %v1605_v9  ;;  %v1094_v29 = vadd.f32 %v1608_v23, %v1093_v22  ;;  %v1133_v30 = vmul.f32 %v1608_v23, %v1608_v23  ;;  %v1528_v31 = vpack.c.bf16 %v1656_v26, %v1653_v17 }
 0x12f   : > { %v1149_v14 = vmul.f32 %v1656_v26, %v1656_v26 }
 0x130   : > { %1536 = vst [vmem:[%s1929_s12 + $0x38] sm:$0xff] %v1488_v20   ;;  %v1095_v32 = vadd.f32 %v1920_v55, %v1094_v29  ;;  %v1164_v36 = vadd.f32 %v1163_v27, %v1133_v30  ;;  %1544 = vst [vmem:[%s1929_s12 + $0x78] sm:$0xff] %v1528_v31  }
 0x132   : > { %v1096_v39 = vadd.f32 %v1931_v60, %v1095_v32  ;;  %v1165_v34 = vadd.f32 %v1164_v36, %v1134_v21  ;;  %v1139_v60 = vmul.f32 %v1949_v24, %v1949_v24 }
 0x134   : > { %v1097_v41 = vadd.f32 %v1939_v5, %v1096_v39  ;;  %v1166_v42 = vadd.f32 %v1165_v34, %v1135_v37  ;;  %v1140_v5 = vmul.f32 %v1955_v33, %v1955_v33 }
 0x136   : > { %v1098_v44 = vadd.f32 %v1941_v10, %v1097_v41  ;;  %v1167_v55 = vadd.f32 %v1166_v42, %v1136_v40  ;;  %v1141_v10 = vmul.f32 %v1957_v38, %v1957_v38 }
 0x138   : > { %v1168_v46 = vadd.f32 %v1167_v55, %v1137_v43  ;;  %v1099_v47 = vadd.f32 %v1947_v19, %v1098_v44  ;;  %v1142_v19 = vmul.f32 %v1969_v53, %v1969_v53 }
 0x13a   : > { %v1100_v35 = vadd.f32 %v1949_v24, %v1099_v47  ;;  %v1169_v49 = vadd.f32 %v1168_v46, %v1138_v45 }
 0x13c   : > { %v1101_v50 = vadd.f32 %v1955_v33, %v1100_v35  ;;  %v1170_v51 = vadd.f32 %v1169_v49, %v1139_v60 }
 0x13e   : > { %v1102_v52 = vadd.f32 %v1957_v38, %v1101_v50  ;;  %v1171_v54 = vadd.f32 %v1170_v51, %v1140_v5 }
 0x140   : > { %v1103_v58 = vadd.f32 %v1969_v53, %v1102_v52  ;;  %v1172_v62 = vadd.f32 %v1171_v54, %v1141_v10  ;;  %v1145_v53 = vmul.f32 %v1979_v28, %v1979_v28 }
 0x142   : > { %v1104_v24 = vadd.f32 %v1971_v1, %v1103_v58  ;;  %v1173_v0 = vadd.f32 %v1172_v62, %v1142_v19  ;;  %v1146_v1 = vmul.f32 %v1985_v48, %v1985_v48 }
 0x144   : > { %v1174_v33 = vadd.f32 %v1173_v0, %v1143_v63  ;;  %v1105_v59 = vadd.f32 %v1977_v7, %v1104_v24  ;;  %v1147_v7 = vmul.f32 %v1987_v61, %v1987_v61 }
 0x146   : > { %v1175_v38 = vadd.f32 %v1174_v33, %v1144_v2  ;;  %v1106_v3 = vadd.f32 %v1979_v28, %v1105_v59 }
 0x148   : > { %v1176_v56 = vadd.f32 %v1175_v38, %v1145_v53  ;;  %v1107_v57 = vadd.f32 %v1985_v48, %v1106_v3 }
 0x14a   : > { %v1177_v4 = vadd.f32 %v1176_v56, %v1146_v1  ;;  %v1108_v8 = vadd.f32 %v1987_v61, %v1107_v57 }
 0x14c   : > { %v1178_v9 = vadd.f32 %v1177_v4, %v1147_v7  ;;  %v1109_v6 = vadd.f32 %v1653_v17, %v1108_v8 }
 0x14e   : > { %v1179_v12 = vadd.f32 %v1178_v9, %v1148_v11  ;;  %v1110_v13 = vadd.f32 %v1656_v26, %v1109_v6 }
 0x150   : > { %v1111_v28 = vrot.slane %v1110_v13, 4  ;;  %v1180_v15 = vadd.f32 %v1179_v12, %v1149_v14 }
 0x152   : > { %v1112_v16 = vadd.f32 %v1111_v28, %v1110_v13  ;;  %v1181_v18 = vrot.slane %v1180_v15, 4 }
 0x154   : > { %v1113_v22 = vrot.slane %v1112_v16, 2  ;;  %v1182_v48 = vadd.f32 %v1181_v18, %v1180_v15 }
 0x156   : > { %v1114_v23 = vadd.f32 %v1113_v22, %v1112_v16  ;;  %v1183_v25 = vrot.slane %v1182_v48, 2 }
 0x158   : > { %v1115_v27 = vrot.slane %v1114_v23, 1  ;;  %v1184_v20 = vadd.f32 %v1183_v25, %v1182_v48 }
 0x15a   : > { %v1116_v61 = vadd.f32 %v1115_v27, %v1114_v23  ;;  %v1185_v17 = vrot.slane %v1184_v20, 1 }
 0x15c   : > { %1117 = vst [vmem:[%s267_s14] sm:$0x1] %v1116_v61  ;;  %v1186_v26 = vadd.f32 %v1185_v17, %v1184_v20 }
 0x15e   : > { %1187 = vst [vmem:[%s270_s22] sm:$0x1] %v1186_v26 }
 0x15f PF: > { %s15_s17 = sadd.s32 1, %s1783_s17   ;;  %s2059_s15 = smov %s1779_s16 }
 0x160   : > { %p12_p6 = scmp.ge.s32.totalorder %s15_s17, 4   ;;  %s2060_s16 = smov %s2062_s18 }
 0x162   :  { %14 = sbr.rel (!%p12_p6) target bundleno = 2 (0x2), region = 93 }

// kernel: resnet18_forward.47
= control target key start
LH: loop header
LB: loop body
LE: loop exit
PB: predicated region body
PF: predicated region fallthrough
CT: control target
= control target key end

     0   :  { %vm153_vm0 = vcmask 519168   ;;  %s1385_s0 = inlined_call_operand.vmem [shape: bf16[9,128,64], index: 0, kind: input, shape index: {}]   ;;  %s1386_s1 = inlined_call_operand.vmem [shape: bf16[128,64], index: 1, kind: output, shape index: {}]  }
   0x1   :  { %v9_v0 = vld [vmem:[%s1385_s0] sm:$0xf]  ;;  %v10_v12 = vld [vmem:[%s1385_s0 + $0x4] sm:$0xf]  ;;  %v11_v33 = vld [vmem:[%s1385_s0 + $0x8] sm:$0xf] }
   0x2   :  { %v25_v1 = vld [vmem:[%s1385_s0 + $0x40] sm:$0xf]  ;;  %v156_v4 = vsel %vm153_vm0, %v9_v0, 4286644096  ;;  %v26_v13 = vld [vmem:[%s1385_s0 + $0x44] sm:$0xf] }
   0x3   :  { %v41_v2 = vld [vmem:[%s1385_s0 + $0x80] sm:$0xf]  ;;  %v159_v5 = vsel %vm153_vm0, %v25_v1, 4286644096  ;;  %v42_v14 = vld [vmem:[%s1385_s0 + $0x84] sm:$0xf] }
   0x4   :  { %v57_v3 = vld [vmem:[%s1385_s0 + $0xc0] sm:$0xf]  ;;  %v163_v6 = vsel %vm153_vm0, %v41_v2, 4286644096  ;;  %v161_v8 = vmax.bf16 %v159_v5, %v156_v4  ;;  %v58_v19 = vld [vmem:[%s1385_s0 + $0xc4] sm:$0xf] }
   0x5   :  { %v73_v7 = vld [vmem:[%s1385_s0 + $0x100] sm:$0xf]  ;;  %v167_v10 = vsel %vm153_vm0, %v57_v3, 4286644096  ;;  %v191_v20 = vsel %vm153_vm0, %v10_v12, 4286644096 }
   0x6   :  { %v89_v9 = vld [vmem:[%s1385_s0 + $0x140] sm:$0xf]  ;;  %v165_v11 = vmax.bf16 %v163_v6, %v161_v8  ;;  %v171_v15 = vsel %vm153_vm0, %v73_v7, 4286644096  ;;  %v194_v21 = vsel %vm153_vm0, %v26_v13, 4286644096 }
   0x7   :  { %v105_v16 = vld [vmem:[%s1385_s0 + $0x180] sm:$0xf]  ;;  %v175_v18 = vsel %vm153_vm0, %v89_v9, 4286644096  ;;  %v198_v22 = vsel %vm153_vm0, %v42_v14, 4286644096  ;;  %v196_v27 = vmax.bf16 %v194_v21, %v191_v20 }
   0x8   :  { %v169_v17 = vmax.bf16 %v167_v10, %v165_v11  ;;  %v121_v23 = vld [vmem:[%s1385_s0 + $0x1c0] sm:$0xf]  ;;  %v74_v26 = vld [vmem:[%s1385_s0 + $0x104] sm:$0xf]  ;;  %v179_v28 = vsel %vm153_vm0, %v105_v16, 4286644096 }
   0x9   :  { %v137_v24 = vld [vmem:[%s1385_s0 + $0x200] sm:$0xf]  ;;  %v90_v29 = vld [vmem:[%s1385_s0 + $0x144] sm:$0xf]  ;;  %v202_v30 = vsel %vm153_vm0, %v58_v19, 4286644096  ;;  %v200_v32 = vmax.bf16 %v198_v22, %v196_v27 }
   0xa   :  { %v173_v25 = vmax.bf16 %v171_v15, %v169_v17  ;;  %v27_v34 = vld [vmem:[%s1385_s0 + $0x48] sm:$0xf]  ;;  %v183_v36 = vsel %vm153_vm0, %v121_v23, 4286644096  ;;  %v187_v37 = vsel %vm153_vm0, %v137_v24, 4286644096 }
   0xb   :  { %v43_v35 = vld [vmem:[%s1385_s0 + $0x88] sm:$0xf]  ;;  %v206_v38 = vsel %vm153_vm0, %v74_v26, 4286644096  ;;  %v106_v40 = vld [vmem:[%s1385_s0 + $0x184] sm:$0xf]  ;;  %v204_v41 = vmax.bf16 %v202_v30, %v200_v32 }
   0xc   :  { %v177_v31 = vmax.bf16 %v175_v18, %v173_v25  ;;  %v210_v42 = vsel %vm153_vm0, %v90_v29, 4286644096  ;;  %v59_v43 = vld [vmem:[%s1385_s0 + $0xc8] sm:$0xf]  ;;  %v226_v44 = vsel %vm153_vm0, %v11_v33, 4286644096 }
   0xd   :  { %v229_v45 = vsel %vm153_vm0, %v27_v34, 4286644096  ;;  %v233_v46 = vsel %vm153_vm0, %v43_v35, 4286644096  ;;  %v122_v48 = vld [vmem:[%s1385_s0 + $0x1c4] sm:$0xf]  ;;  %v208_v50 = vmax.bf16 %v206_v38, %v204_v41 }
   0xe   :  { %v181_v39 = vmax.bf16 %v179_v28, %v177_v31  ;;  %v138_v49 = vld [vmem:[%s1385_s0 + $0x204] sm:$0xf]  ;;  %v75_v51 = vld [vmem:[%s1385_s0 + $0x108] sm:$0xf]  ;;  %v231_v52 = vmax.bf16 %v229_v45, %v226_v44  ;;  %v214_v53 = vsel %vm153_vm0, %v106_v40, 4286644096 }
   0xf   :  { %v91_v54 = vld [vmem:[%s1385_s0 + $0x148] sm:$0xf]  ;;  %v237_v55 = vsel %vm153_vm0, %v59_v43, 4286644096  ;;  %v212_v57 = vmax.bf16 %v210_v42, %v208_v50  ;;  %v12_v59 = vld [vmem:[%s1385_s0 + $0xc] sm:$0xf] }
  0x10   :  { %v185_v47 = vmax.bf16 %v183_v36, %v181_v39  ;;  %v235_v58 = vmax.bf16 %v233_v46, %v231_v52  ;;  %v28_v60 = vld [vmem:[%s1385_s0 + $0x4c] sm:$0xf]  ;;  %v218_v62 = vsel %vm153_vm0, %v122_v48, 4286644096  ;;  %v222_v63 = vsel %vm153_vm0, %v138_v49, 4286644096 }
  0x11   :  { %v44_v61 = vld [vmem:[%s1385_s0 + $0x8c] sm:$0xf]  ;;  %v241_v0 = vsel %vm153_vm0, %v75_v51, 4286644096  ;;  %v216_v1 = vmax.bf16 %v214_v53, %v212_v57  ;;  %v107_v2 = vld [vmem:[%s1385_s0 + $0x188] sm:$0xf] }
  0x12   :  { %v189_v56 = vmax.bf16 %v187_v37, %v185_v47  ;;  %v239_v3 = vmax.bf16 %v237_v55, %v235_v58  ;;  %v245_v4 = vsel %vm153_vm0, %v91_v54, 4286644096  ;;  %v60_v5 = vld [vmem:[%s1385_s0 + $0xcc] sm:$0xf]  ;;  %v261_v6 = vsel %vm153_vm0, %v12_v59, 4286644096 }
  0x13   :  { %v264_v7 = vsel %vm153_vm0, %v28_v60, 4286644096  ;;  %v268_v8 = vsel %vm153_vm0, %v44_v61, 4286644096  ;;  %v220_v9 = vmax.bf16 %v218_v62, %v216_v1  ;;  %v123_v10 = vld [vmem:[%s1385_s0 + $0x1c8] sm:$0xf] }
  0x14   :  { %715 = vst.msk [vmem:[%s1386_s1] sm:$0xf] %vm153_vm0, %v189_v56  ;;  %v139_v11 = vld [vmem:[%s1385_s0 + $0x208] sm:$0xf]  ;;  %v243_v12 = vmax.bf16 %v241_v0, %v239_v3  ;;  %v76_v13 = vld [vmem:[%s1385_s0 + $0x10c] sm:$0xf]  ;;  %v266_v14 = vmax.bf16 %v264_v7, %v261_v6 }
  0x15   :  { %v249_v15 = vsel %vm153_vm0, %v107_v2, 4286644096  ;;  %v92_v16 = vld [vmem:[%s1385_s0 + $0x14c] sm:$0xf]  ;;  %v272_v17 = vsel %vm153_vm0, %v60_v5, 4286644096  ;;  %v224_v18 = vmax.bf16 %v222_v63, %v220_v9 }
  0x16   :  { %v247_v19 = vmax.bf16 %v245_v4, %v243_v12  ;;  %v270_v20 = vmax.bf16 %v268_v8, %v266_v14  ;;  %v13_v21 = vld [vmem:[%s1385_s0 + $0x10] sm:$0xf]  ;;  %v253_v24 = vsel %vm153_vm0, %v123_v10, 4286644096  ;;  %v257_v25 = vsel %vm153_vm0, %v139_v11, 4286644096 }
  0x17   :  { %v29_v22 = vld [vmem:[%s1385_s0 + $0x50] sm:$0xf]  ;;  %v276_v26 = vsel %vm153_vm0, %v76_v13, 4286644096  ;;  %716 = vst.msk [vmem:[%s1386_s1 + $0x4] sm:$0xf] %vm153_vm0, %v224_v18 }
  0x18   :  { %v45_v23 = vld [vmem:[%s1385_s0 + $0x90] sm:$0xf]  ;;  %v251_v27 = vmax.bf16 %v249_v15, %v247_v19  ;;  %v108_v28 = vld [vmem:[%s1385_s0 + $0x18c] sm:$0xf]  ;;  %v274_v29 = vmax.bf16 %v272_v17, %v270_v20  ;;  %v280_v30 = vsel %vm153_vm0, %v92_v16, 4286644096 }
  0x19   :  { %v61_v31 = vld [vmem:[%s1385_s0 + $0xd0] sm:$0xf]  ;;  %v296_v32 = vsel %vm153_vm0, %v13_v21, 4286644096  ;;  %v299_v33 = vsel %vm153_vm0, %v29_v22, 4286644096 }
  0x1a   :  { %v303_v34 = vsel %vm153_vm0, %v45_v23, 4286644096  ;;  %v255_v35 = vmax.bf16 %v253_v24, %v251_v27  ;;  %v124_v36 = vld [vmem:[%s1385_s0 + $0x1cc] sm:$0xf]  ;;  %v278_v38 = vmax.bf16 %v276_v26, %v274_v29  ;;  %v77_v39 = vld [vmem:[%s1385_s0 + $0x110] sm:$0xf]  ;;  %v301_v40 = vmax.bf16 %v299_v33, %v296_v32 }
  0x1b   :  { %v140_v37 = vld [vmem:[%s1385_s0 + $0x20c] sm:$0xf]  ;;  %v284_v41 = vsel %vm153_vm0, %v108_v28, 4286644096  ;;  %v93_v42 = vld [vmem:[%s1385_s0 + $0x150] sm:$0xf] }
  0x1c   :  { %v307_v43 = vsel %vm153_vm0, %v61_v31, 4286644096  ;;  %v259_v44 = vmax.bf16 %v257_v25, %v255_v35  ;;  %v282_v45 = vmax.bf16 %v280_v30, %v278_v38  ;;  %v305_v46 = vmax.bf16 %v303_v34, %v301_v40  ;;  %v14_v47 = vld [vmem:[%s1385_s0 + $0x14] sm:$0xf]  ;;  %v109_v54 = vld [vmem:[%s1385_s0 + $0x190] sm:$0xf] }
  0x1d   :  { %v30_v48 = vld [vmem:[%s1385_s0 + $0x54] sm:$0xf]  ;;  %v288_v50 = vsel %vm153_vm0, %v124_v36, 4286644096  ;;  %v292_v51 = vsel %vm153_vm0, %v140_v37, 4286644096 }
  0x1e   :  { %v46_v49 = vld [vmem:[%s1385_s0 + $0x94] sm:$0xf]  ;;  %v311_v52 = vsel %vm153_vm0, %v77_v39, 4286644096  ;;  %717 = vst.msk [vmem:[%s1386_s1 + $0x8] sm:$0xf] %vm153_vm0, %v259_v44  ;;  %v286_v53 = vmax.bf16 %v284_v41, %v282_v45  ;;  %v309_v55 = vmax.bf16 %v307_v43, %v305_v46 }
  0x1f   :  { %v315_v56 = vsel %vm153_vm0, %v93_v42, 4286644096  ;;  %v62_v57 = vld [vmem:[%s1385_s0 + $0xd4] sm:$0xf]  ;;  %v331_v58 = vsel %vm153_vm0, %v14_v47, 4286644096 }
  0x20   :  { %v334_v59 = vsel %vm153_vm0, %v30_v48, 4286644096  ;;  %v338_v60 = vsel %vm153_vm0, %v46_v49, 4286644096  ;;  %v290_v61 = vmax.bf16 %v288_v50, %v286_v53  ;;  %v125_v62 = vld [vmem:[%s1385_s0 + $0x1d0] sm:$0xf]  ;;  %v313_v0 = vmax.bf16 %v311_v52, %v309_v55 }
  0x21   :  { %v141_v63 = vld [vmem:[%s1385_s0 + $0x210] sm:$0xf]  ;;  %v78_v1 = vld [vmem:[%s1385_s0 + $0x114] sm:$0xf]  ;;  %v336_v2 = vmax.bf16 %v334_v59, %v331_v58  ;;  %v319_v3 = vsel %vm153_vm0, %v109_v54, 4286644096 }
  0x22   :  { %v94_v4 = vld [vmem:[%s1385_s0 + $0x154] sm:$0xf]  ;;  %v342_v5 = vsel %vm153_vm0, %v62_v57, 4286644096  ;;  %v294_v6 = vmax.bf16 %v292_v51, %v290_v61  ;;  %v317_v7 = vmax.bf16 %v315_v56, %v313_v0  ;;  %v15_v9 = vld [vmem:[%s1385_s0 + $0x18] sm:$0xf] }
  0x23   :  { %v340_v8 = vmax.bf16 %v338_v60, %v336_v2  ;;  %v31_v10 = vld [vmem:[%s1385_s0 + $0x58] sm:$0xf]  ;;  %v323_v12 = vsel %vm153_vm0, %v125_v62, 4286644096  ;;  %v327_v13 = vsel %vm153_vm0, %v141_v63, 4286644096 }
  0x24   :  { %v47_v11 = vld [vmem:[%s1385_s0 + $0x98] sm:$0xf]  ;;  %v346_v14 = vsel %vm153_vm0, %v78_v1, 4286644096  ;;  %718 = vst.msk [vmem:[%s1386_s1 + $0xc] sm:$0xf] %vm153_vm0, %v294_v6  ;;  %v321_v15 = vmax.bf16 %v319_v3, %v317_v7 }
  0x25   :  { %v110_v16 = vld [vmem:[%s1385_s0 + $0x194] sm:$0xf]  ;;  %v344_v17 = vmax.bf16 %v342_v5, %v340_v8  ;;  %v350_v18 = vsel %vm153_vm0, %v94_v4, 4286644096  ;;  %v63_v19 = vld [vmem:[%s1385_s0 + $0xd8] sm:$0xf] }
  0x26   :  { %v366_v20 = vsel %vm153_vm0, %v15_v9, 4286644096  ;;  %v369_v21 = vsel %vm153_vm0, %v31_v10, 4286644096  ;;  %v373_v22 = vsel %vm153_vm0, %v47_v11, 4286644096  ;;  %v325_v23 = vmax.bf16 %v323_v12, %v321_v15 }
  0x27   :  { %v126_v24 = vld [vmem:[%s1385_s0 + $0x1d4] sm:$0xf]  ;;  %v348_v26 = vmax.bf16 %v346_v14, %v344_v17  ;;  %v79_v27 = vld [vmem:[%s1385_s0 + $0x118] sm:$0xf]  ;;  %v371_v28 = vmax.bf16 %v369_v21, %v366_v20  ;;  %v354_v29 = vsel %vm153_vm0, %v110_v16, 4286644096 }
  0x28   :  { %v142_v25 = vld [vmem:[%s1385_s0 + $0x214] sm:$0xf]  ;;  %v95_v30 = vld [vmem:[%s1385_s0 + $0x158] sm:$0xf]  ;;  %v377_v31 = vsel %vm153_vm0, %v63_v19, 4286644096  ;;  %v329_v32 = vmax.bf16 %v327_v13, %v325_v23 }
  0x29   :  { %v352_v33 = vmax.bf16 %v350_v18, %v348_v26  ;;  %v375_v34 = vmax.bf16 %v373_v22, %v371_v28  ;;  %v16_v35 = vld [vmem:[%s1385_s0 + $0x1c] sm:$0xf]  ;;  %v358_v38 = vsel %vm153_vm0, %v126_v24, 4286644096  ;;  %v362_v39 = vsel %vm153_vm0, %v142_v25, 4286644096 }
  0x2a   :  { %v32_v36 = vld [vmem:[%s1385_s0 + $0x5c] sm:$0xf]  ;;  %v381_v40 = vsel %vm153_vm0, %v79_v27, 4286644096  ;;  %719 = vst.msk [vmem:[%s1386_s1 + $0x10] sm:$0xf] %vm153_vm0, %v329_v32 }
  0x2b   :  { %v48_v37 = vld [vmem:[%s1385_s0 + $0x9c] sm:$0xf]  ;;  %v356_v41 = vmax.bf16 %v354_v29, %v352_v33  ;;  %v111_v42 = vld [vmem:[%s1385_s0 + $0x198] sm:$0xf]  ;;  %v379_v43 = vmax.bf16 %v377_v31, %v375_v34  ;;  %v385_v44 = vsel %vm153_vm0, %v95_v30, 4286644096 }
  0x2c   :  { %v64_v45 = vld [vmem:[%s1385_s0 + $0xdc] sm:$0xf]  ;;  %v401_v46 = vsel %vm153_vm0, %v16_v35, 4286644096  ;;  %v404_v47 = vsel %vm153_vm0, %v32_v36, 4286644096 }
  0x2d   :  { %v408_v48 = vsel %vm153_vm0, %v48_v37, 4286644096  ;;  %v360_v49 = vmax.bf16 %v358_v38, %v356_v41  ;;  %v127_v50 = vld [vmem:[%s1385_s0 + $0x1d8] sm:$0xf]  ;;  %v383_v52 = vmax.bf16 %v381_v40, %v379_v43  ;;  %v80_v53 = vld [vmem:[%s1385_s0 + $0x11c] sm:$0xf]  ;;  %v406_v54 = vmax.bf16 %v404_v47, %v401_v46 }
  0x2e   :  { %v143_v51 = vld [vmem:[%s1385_s0 + $0x218] sm:$0xf]  ;;  %v389_v55 = vsel %vm153_vm0, %v111_v42, 4286644096  ;;  %v96_v56 = vld [vmem:[%s1385_s0 + $0x15c] sm:$0xf] }
  0x2f   :  { %v412_v57 = vsel %vm153_vm0, %v64_v45, 4286644096  ;;  %v364_v58 = vmax.bf16 %v362_v39, %v360_v49  ;;  %v387_v59 = vmax.bf16 %v385_v44, %v383_v52  ;;  %v410_v60 = vmax.bf16 %v408_v48, %v406_v54  ;;  %v17_v61 = vld [vmem:[%s1385_s0 + $0x20] sm:$0xf]  ;;  %v112_v4 = vld [vmem:[%s1385_s0 + $0x19c] sm:$0xf] }
  0x30   :  { %v33_v62 = vld [vmem:[%s1385_s0 + $0x60] sm:$0xf]  ;;  %v393_v0 = vsel %vm153_vm0, %v127_v50, 4286644096  ;;  %v397_v1 = vsel %vm153_vm0, %v143_v51, 4286644096 }
  0x31   :  { %v49_v63 = vld [vmem:[%s1385_s0 + $0xa0] sm:$0xf]  ;;  %v416_v2 = vsel %vm153_vm0, %v80_v53, 4286644096  ;;  %720 = vst.msk [vmem:[%s1386_s1 + $0x14] sm:$0xf] %vm153_vm0, %v364_v58  ;;  %v391_v3 = vmax.bf16 %v389_v55, %v387_v59  ;;  %v414_v5 = vmax.bf16 %v412_v57, %v410_v60 }
  0x32   :  { %v420_v6 = vsel %vm153_vm0, %v96_v56, 4286644096  ;;  %v65_v7 = vld [vmem:[%s1385_s0 + $0xe0] sm:$0xf]  ;;  %v436_v8 = vsel %vm153_vm0, %v17_v61, 4286644096 }
  0x33   :  { %v439_v9 = vsel %vm153_vm0, %v33_v62, 4286644096  ;;  %v443_v10 = vsel %vm153_vm0, %v49_v63, 4286644096  ;;  %v395_v11 = vmax.bf16 %v393_v0, %v391_v3  ;;  %v128_v12 = vld [vmem:[%s1385_s0 + $0x1dc] sm:$0xf]  ;;  %v418_v14 = vmax.bf16 %v416_v2, %v414_v5 }
  0x34   :  { %v144_v13 = vld [vmem:[%s1385_s0 + $0x21c] sm:$0xf]  ;;  %v81_v15 = vld [vmem:[%s1385_s0 + $0x120] sm:$0xf]  ;;  %v441_v16 = vmax.bf16 %v439_v9, %v436_v8  ;;  %v424_v17 = vsel %vm153_vm0, %v112_v4, 4286644096 }
  0x35   :  { %v97_v18 = vld [vmem:[%s1385_s0 + $0x160] sm:$0xf]  ;;  %v447_v19 = vsel %vm153_vm0, %v65_v7, 4286644096  ;;  %v399_v20 = vmax.bf16 %v397_v1, %v395_v11  ;;  %v422_v21 = vmax.bf16 %v420_v6, %v418_v14  ;;  %v18_v23 = vld [vmem:[%s1385_s0 + $0x24] sm:$0xf] }
  0x36   :  { %v445_v22 = vmax.bf16 %v443_v10, %v441_v16  ;;  %v34_v24 = vld [vmem:[%s1385_s0 + $0x64] sm:$0xf]  ;;  %v428_v26 = vsel %vm153_vm0, %v128_v12, 4286644096  ;;  %v432_v27 = vsel %vm153_vm0, %v144_v13, 4286644096 }
  0x37   :  { %v50_v25 = vld [vmem:[%s1385_s0 + $0xa4] sm:$0xf]  ;;  %v451_v28 = vsel %vm153_vm0, %v81_v15, 4286644096  ;;  %721 = vst.msk [vmem:[%s1386_s1 + $0x18] sm:$0xf] %vm153_vm0, %v399_v20  ;;  %v426_v29 = vmax.bf16 %v424_v17, %v422_v21 }
  0x38   :  { %v113_v30 = vld [vmem:[%s1385_s0 + $0x1a0] sm:$0xf]  ;;  %v449_v31 = vmax.bf16 %v447_v19, %v445_v22  ;;  %v455_v32 = vsel %vm153_vm0, %v97_v18, 4286644096  ;;  %v66_v33 = vld [vmem:[%s1385_s0 + $0xe4] sm:$0xf] }
  0x39   :  { %v471_v34 = vsel %vm153_vm0, %v18_v23, 4286644096  ;;  %v474_v35 = vsel %vm153_vm0, %v34_v24, 4286644096  ;;  %v478_v36 = vsel %vm153_vm0, %v50_v25, 4286644096  ;;  %v430_v37 = vmax.bf16 %v428_v26, %v426_v29 }
  0x3a   :  { %v129_v38 = vld [vmem:[%s1385_s0 + $0x1e0] sm:$0xf]  ;;  %v453_v40 = vmax.bf16 %v451_v28, %v449_v31  ;;  %v82_v41 = vld [vmem:[%s1385_s0 + $0x124] sm:$0xf]  ;;  %v476_v42 = vmax.bf16 %v474_v35, %v471_v34  ;;  %v459_v43 = vsel %vm153_vm0, %v113_v30, 4286644096 }
  0x3b   :  { %v145_v39 = vld [vmem:[%s1385_s0 + $0x220] sm:$0xf]  ;;  %v98_v44 = vld [vmem:[%s1385_s0 + $0x164] sm:$0xf]  ;;  %v482_v45 = vsel %vm153_vm0, %v66_v33, 4286644096  ;;  %v434_v46 = vmax.bf16 %v432_v27, %v430_v37 }
  0x3c   :  { %v457_v47 = vmax.bf16 %v455_v32, %v453_v40  ;;  %v480_v48 = vmax.bf16 %v478_v36, %v476_v42  ;;  %v19_v49 = vld [vmem:[%s1385_s0 + $0x28] sm:$0xf]  ;;  %v463_v52 = vsel %vm153_vm0, %v129_v38, 4286644096  ;;  %v467_v53 = vsel %vm153_vm0, %v145_v39, 4286644096 }
  0x3d   :  { %v35_v50 = vld [vmem:[%s1385_s0 + $0x68] sm:$0xf]  ;;  %v486_v54 = vsel %vm153_vm0, %v82_v41, 4286644096  ;;  %722 = vst.msk [vmem:[%s1386_s1 + $0x1c] sm:$0xf] %vm153_vm0, %v434_v46 }
  0x3e   :  { %v51_v51 = vld [vmem:[%s1385_s0 + $0xa8] sm:$0xf]  ;;  %v461_v55 = vmax.bf16 %v459_v43, %v457_v47  ;;  %v114_v56 = vld [vmem:[%s1385_s0 + $0x1a4] sm:$0xf]  ;;  %v484_v57 = vmax.bf16 %v482_v45, %v480_v48  ;;  %v490_v58 = vsel %vm153_vm0, %v98_v44, 4286644096 }
  0x3f   :  { %v67_v59 = vld [vmem:[%s1385_s0 + $0xe8] sm:$0xf]  ;;  %v506_v60 = vsel %vm153_vm0, %v19_v49, 4286644096  ;;  %v509_v61 = vsel %vm153_vm0, %v35_v50, 4286644096 }
  0x40   :  { %v513_v62 = vsel %vm153_vm0, %v51_v51, 4286644096  ;;  %v465_v63 = vmax.bf16 %v463_v52, %v461_v55  ;;  %v130_v0 = vld [vmem:[%s1385_s0 + $0x1e4] sm:$0xf]  ;;  %v488_v2 = vmax.bf16 %v486_v54, %v484_v57  ;;  %v83_v3 = vld [vmem:[%s1385_s0 + $0x128] sm:$0xf]  ;;  %v511_v4 = vmax.bf16 %v509_v61, %v506_v60 }
  0x41   :  { %v146_v1 = vld [vmem:[%s1385_s0 + $0x224] sm:$0xf]  ;;  %v494_v5 = vsel %vm153_vm0, %v114_v56, 4286644096  ;;  %v99_v6 = vld [vmem:[%s1385_s0 + $0x168] sm:$0xf] }
  0x42   :  { %v517_v7 = vsel %vm153_vm0, %v67_v59, 4286644096  ;;  %v469_v8 = vmax.bf16 %v467_v53, %v465_v63  ;;  %v492_v9 = vmax.bf16 %v490_v58, %v488_v2  ;;  %v515_v10 = vmax.bf16 %v513_v62, %v511_v4  ;;  %v20_v11 = vld [vmem:[%s1385_s0 + $0x2c] sm:$0xf]  ;;  %v115_v18 = vld [vmem:[%s1385_s0 + $0x1a8] sm:$0xf] }
  0x43   :  { %v36_v12 = vld [vmem:[%s1385_s0 + $0x6c] sm:$0xf]  ;;  %v498_v14 = vsel %vm153_vm0, %v130_v0, 4286644096  ;;  %v502_v15 = vsel %vm153_vm0, %v146_v1, 4286644096 }
  0x44   :  { %v52_v13 = vld [vmem:[%s1385_s0 + $0xac] sm:$0xf]  ;;  %v521_v16 = vsel %vm153_vm0, %v83_v3, 4286644096  ;;  %723 = vst.msk [vmem:[%s1386_s1 + $0x20] sm:$0xf] %vm153_vm0, %v469_v8  ;;  %v496_v17 = vmax.bf16 %v494_v5, %v492_v9  ;;  %v519_v19 = vmax.bf16 %v517_v7, %v515_v10 }
  0x45   :  { %v525_v20 = vsel %vm153_vm0, %v99_v6, 4286644096  ;;  %v68_v21 = vld [vmem:[%s1385_s0 + $0xec] sm:$0xf]  ;;  %v541_v22 = vsel %vm153_vm0, %v20_v11, 4286644096 }
  0x46   :  { %v544_v23 = vsel %vm153_vm0, %v36_v12, 4286644096  ;;  %v548_v24 = vsel %vm153_vm0, %v52_v13, 4286644096  ;;  %v500_v25 = vmax.bf16 %v498_v14, %v496_v17  ;;  %v131_v26 = vld [vmem:[%s1385_s0 + $0x1e8] sm:$0xf]  ;;  %v523_v28 = vmax.bf16 %v521_v16, %v519_v19 }
  0x47   :  { %v147_v27 = vld [vmem:[%s1385_s0 + $0x228] sm:$0xf]  ;;  %v84_v29 = vld [vmem:[%s1385_s0 + $0x12c] sm:$0xf]  ;;  %v546_v30 = vmax.bf16 %v544_v23, %v541_v22  ;;  %v529_v31 = vsel %vm153_vm0, %v115_v18, 4286644096 }
  0x48   :  { %v100_v32 = vld [vmem:[%s1385_s0 + $0x16c] sm:$0xf]  ;;  %v552_v33 = vsel %vm153_vm0, %v68_v21, 4286644096  ;;  %v504_v34 = vmax.bf16 %v502_v15, %v500_v25  ;;  %v527_v35 = vmax.bf16 %v525_v20, %v523_v28  ;;  %v21_v37 = vld [vmem:[%s1385_s0 + $0x30] sm:$0xf] }
  0x49   :  { %v550_v36 = vmax.bf16 %v548_v24, %v546_v30  ;;  %v37_v38 = vld [vmem:[%s1385_s0 + $0x70] sm:$0xf]  ;;  %v533_v40 = vsel %vm153_vm0, %v131_v26, 4286644096  ;;  %v537_v41 = vsel %vm153_vm0, %v147_v27, 4286644096 }
  0x4a   :  { %v53_v39 = vld [vmem:[%s1385_s0 + $0xb0] sm:$0xf]  ;;  %v556_v42 = vsel %vm153_vm0, %v84_v29, 4286644096  ;;  %724 = vst.msk [vmem:[%s1386_s1 + $0x24] sm:$0xf] %vm153_vm0, %v504_v34  ;;  %v531_v43 = vmax.bf16 %v529_v31, %v527_v35 }
  0x4b   :  { %v116_v44 = vld [vmem:[%s1385_s0 + $0x1ac] sm:$0xf]  ;;  %v554_v45 = vmax.bf16 %v552_v33, %v550_v36  ;;  %v560_v46 = vsel %vm153_vm0, %v100_v32, 4286644096  ;;  %v69_v47 = vld [vmem:[%s1385_s0 + $0xf0] sm:$0xf] }
  0x4c   :  { %v576_v48 = vsel %vm153_vm0, %v21_v37, 4286644096  ;;  %v579_v49 = vsel %vm153_vm0, %v37_v38, 4286644096  ;;  %v583_v50 = vsel %vm153_vm0, %v53_v39, 4286644096  ;;  %v535_v51 = vmax.bf16 %v533_v40, %v531_v43 }
  0x4d   :  { %v132_v52 = vld [vmem:[%s1385_s0 + $0x1ec] sm:$0xf]  ;;  %v558_v54 = vmax.bf16 %v556_v42, %v554_v45  ;;  %v85_v55 = vld [vmem:[%s1385_s0 + $0x130] sm:$0xf]  ;;  %v581_v56 = vmax.bf16 %v579_v49, %v576_v48  ;;  %v564_v57 = vsel %vm153_vm0, %v116_v44, 4286644096 }
  0x4e   :  { %v148_v53 = vld [vmem:[%s1385_s0 + $0x22c] sm:$0xf]  ;;  %v101_v58 = vld [vmem:[%s1385_s0 + $0x170] sm:$0xf]  ;;  %v587_v59 = vsel %vm153_vm0, %v69_v47, 4286644096  ;;  %v539_v60 = vmax.bf16 %v537_v41, %v535_v51 }
  0x4f   :  { %v562_v61 = vmax.bf16 %v560_v46, %v558_v54  ;;  %v585_v62 = vmax.bf16 %v583_v50, %v581_v56  ;;  %v22_v63 = vld [vmem:[%s1385_s0 + $0x34] sm:$0xf]  ;;  %v568_v2 = vsel %vm153_vm0, %v132_v52, 4286644096  ;;  %v572_v3 = vsel %vm153_vm0, %v148_v53, 4286644096 }
  0x50   :  { %v38_v0 = vld [vmem:[%s1385_s0 + $0x74] sm:$0xf]  ;;  %v591_v4 = vsel %vm153_vm0, %v85_v55, 4286644096  ;;  %725 = vst.msk [vmem:[%s1386_s1 + $0x28] sm:$0xf] %vm153_vm0, %v539_v60 }
  0x51   :  { %v54_v1 = vld [vmem:[%s1385_s0 + $0xb4] sm:$0xf]  ;;  %v566_v5 = vmax.bf16 %v564_v57, %v562_v61  ;;  %v117_v6 = vld [vmem:[%s1385_s0 + $0x1b0] sm:$0xf]  ;;  %v589_v7 = vmax.bf16 %v587_v59, %v585_v62  ;;  %v595_v8 = vsel %vm153_vm0, %v101_v58, 4286644096 }
  0x52   :  { %v70_v9 = vld [vmem:[%s1385_s0 + $0xf4] sm:$0xf]  ;;  %v611_v10 = vsel %vm153_vm0, %v22_v63, 4286644096  ;;  %v614_v11 = vsel %vm153_vm0, %v38_v0, 4286644096 }
  0x53   :  { %v618_v12 = vsel %vm153_vm0, %v54_v1, 4286644096  ;;  %v570_v13 = vmax.bf16 %v568_v2, %v566_v5  ;;  %v133_v14 = vld [vmem:[%s1385_s0 + $0x1f0] sm:$0xf]  ;;  %v593_v16 = vmax.bf16 %v591_v4, %v589_v7  ;;  %v86_v17 = vld [vmem:[%s1385_s0 + $0x134] sm:$0xf]  ;;  %v616_v18 = vmax.bf16 %v614_v11, %v611_v10 }
  0x54   :  { %v149_v15 = vld [vmem:[%s1385_s0 + $0x230] sm:$0xf]  ;;  %v599_v19 = vsel %vm153_vm0, %v117_v6, 4286644096  ;;  %v102_v20 = vld [vmem:[%s1385_s0 + $0x174] sm:$0xf] }
  0x55   :  { %v622_v21 = vsel %vm153_vm0, %v70_v9, 4286644096  ;;  %v574_v22 = vmax.bf16 %v572_v3, %v570_v13  ;;  %v597_v23 = vmax.bf16 %v595_v8, %v593_v16  ;;  %v620_v24 = vmax.bf16 %v618_v12, %v616_v18  ;;  %v23_v25 = vld [vmem:[%s1385_s0 + $0x38] sm:$0xf]  ;;  %v118_v32 = vld [vmem:[%s1385_s0 + $0x1b4] sm:$0xf] }
  0x56   :  { %v39_v26 = vld [vmem:[%s1385_s0 + $0x78] sm:$0xf]  ;;  %v603_v28 = vsel %vm153_vm0, %v133_v14, 4286644096  ;;  %v607_v29 = vsel %vm153_vm0, %v149_v15, 4286644096 }
  0x57   :  { %v55_v27 = vld [vmem:[%s1385_s0 + $0xb8] sm:$0xf]  ;;  %v626_v30 = vsel %vm153_vm0, %v86_v17, 4286644096  ;;  %726 = vst.msk [vmem:[%s1386_s1 + $0x2c] sm:$0xf] %vm153_vm0, %v574_v22  ;;  %v601_v31 = vmax.bf16 %v599_v19, %v597_v23  ;;  %v624_v33 = vmax.bf16 %v622_v21, %v620_v24 }
  0x58   :  { %v630_v34 = vsel %vm153_vm0, %v102_v20, 4286644096  ;;  %v71_v35 = vld [vmem:[%s1385_s0 + $0xf8] sm:$0xf]  ;;  %v646_v36 = vsel %vm153_vm0, %v23_v25, 4286644096 }
  0x59   :  { %v649_v37 = vsel %vm153_vm0, %v39_v26, 4286644096  ;;  %v653_v38 = vsel %vm153_vm0, %v55_v27, 4286644096  ;;  %v605_v39 = vmax.bf16 %v603_v28, %v601_v31  ;;  %v134_v40 = vld [vmem:[%s1385_s0 + $0x1f4] sm:$0xf]  ;;  %v628_v42 = vmax.bf16 %v626_v30, %v624_v33 }
  0x5a   :  { %v150_v41 = vld [vmem:[%s1385_s0 + $0x234] sm:$0xf]  ;;  %v87_v43 = vld [vmem:[%s1385_s0 + $0x138] sm:$0xf]  ;;  %v651_v44 = vmax.bf16 %v649_v37, %v646_v36  ;;  %v634_v45 = vsel %vm153_vm0, %v118_v32, 4286644096 }
  0x5b   :  { %v103_v46 = vld [vmem:[%s1385_s0 + $0x178] sm:$0xf]  ;;  %v657_v47 = vsel %vm153_vm0, %v71_v35, 4286644096  ;;  %v609_v48 = vmax.bf16 %v607_v29, %v605_v39  ;;  %v632_v49 = vmax.bf16 %v630_v34, %v628_v42  ;;  %v24_v51 = vld [vmem:[%s1385_s0 + $0x3c] sm:$0xf] }
  0x5c   :  { %v655_v50 = vmax.bf16 %v653_v38, %v651_v44  ;;  %v40_v52 = vld [vmem:[%s1385_s0 + $0x7c] sm:$0xf]  ;;  %v638_v54 = vsel %vm153_vm0, %v134_v40, 4286644096  ;;  %v642_v55 = vsel %vm153_vm0, %v150_v41, 4286644096 }
  0x5d   :  { %v56_v53 = vld [vmem:[%s1385_s0 + $0xbc] sm:$0xf]  ;;  %v661_v56 = vsel %vm153_vm0, %v87_v43, 4286644096  ;;  %727 = vst.msk [vmem:[%s1386_s1 + $0x30] sm:$0xf] %vm153_vm0, %v609_v48  ;;  %v636_v57 = vmax.bf16 %v634_v45, %v632_v49 }
  0x5e   :  { %v119_v58 = vld [vmem:[%s1385_s0 + $0x1b8] sm:$0xf]  ;;  %v659_v59 = vmax.bf16 %v657_v47, %v655_v50  ;;  %v665_v60 = vsel %vm153_vm0, %v103_v46, 4286644096  ;;  %v72_v61 = vld [vmem:[%s1385_s0 + $0xfc] sm:$0xf] }
  0x5f   :  { %v681_v62 = vsel %vm153_vm0, %v24_v51, 4286644096  ;;  %v684_v63 = vsel %vm153_vm0, %v40_v52, 4286644096  ;;  %v688_v0 = vsel %vm153_vm0, %v56_v53, 4286644096  ;;  %v640_v1 = vmax.bf16 %v638_v54, %v636_v57 }
  0x60   :  { %v135_v2 = vld [vmem:[%s1385_s0 + $0x1f8] sm:$0xf]  ;;  %v663_v3 = vmax.bf16 %v661_v56, %v659_v59  ;;  %v88_v4 = vld [vmem:[%s1385_s0 + $0x13c] sm:$0xf]  ;;  %v686_v5 = vmax.bf16 %v684_v63, %v681_v62  ;;  %v669_v6 = vsel %vm153_vm0, %v119_v58, 4286644096 }
  0x61   :  { %v692_v7 = vsel %vm153_vm0, %v72_v61, 4286644096  ;;  %v644_v8 = vmax.bf16 %v642_v55, %v640_v1  ;;  %v151_v9 = vld [vmem:[%s1385_s0 + $0x238] sm:$0xf]  ;;  %v104_v11 = vld [vmem:[%s1385_s0 + $0x17c] sm:$0xf] }
  0x62   :  { %v667_v10 = vmax.bf16 %v665_v60, %v663_v3  ;;  %v690_v12 = vmax.bf16 %v688_v0, %v686_v5  ;;  %v673_v13 = vsel %vm153_vm0, %v135_v2, 4286644096  ;;  %v696_v14 = vsel %vm153_vm0, %v88_v4, 4286644096  ;;  %v120_v16 = vld [vmem:[%s1385_s0 + $0x1bc] sm:$0xf] }
  0x63   :  { %728 = vst.msk [vmem:[%s1386_s1 + $0x34] sm:$0xf] %vm153_vm0, %v644_v8  ;;  %v677_v18 = vsel %vm153_vm0, %v151_v9, 4286644096  ;;  %v700_v19 = vsel %vm153_vm0, %v104_v11, 4286644096 }
  0x64   :  { %v671_v15 = vmax.bf16 %v669_v6, %v667_v10  ;;  %v694_v17 = vmax.bf16 %v692_v7, %v690_v12  ;;  %v136_v21 = vld [vmem:[%s1385_s0 + $0x1fc] sm:$0xf]  ;;  %v704_v23 = vsel %vm153_vm0, %v120_v16, 4286644096 }
  0x65   :  { %v152_v25 = vld [vmem:[%s1385_s0 + $0x23c] sm:$0xf]  ;;  %v708_v27 = vsel %vm153_vm0, %v136_v21, 4286644096 }
  0x66   :  { %v675_v20 = vmax.bf16 %v673_v13, %v671_v15  ;;  %v698_v22 = vmax.bf16 %v696_v14, %v694_v17  ;;  %v712_v29 = vsel %vm153_vm0, %v152_v25, 4286644096 }
  0x68   :  { %v679_v24 = vmax.bf16 %v677_v18, %v675_v20  ;;  %v702_v26 = vmax.bf16 %v700_v19, %v698_v22 }
  0x6a   :  { %729 = vst.msk [vmem:[%s1386_s1 + $0x38] sm:$0xf] %vm153_vm0, %v679_v24  ;;  %v706_v28 = vmax.bf16 %v704_v23, %v702_v26 }
  0x6c   :  { %v710_v30 = vmax.bf16 %v708_v27, %v706_v28 }
  0x6e   :  { %v714_v31 = vmax.bf16 %v712_v29, %v710_v30 }
  0x70   :  { %730 = vst.msk [vmem:[%s1386_s1 + $0x3c] sm:$0xf] %vm153_vm0, %v714_v31 }

// kernel: resnet18_forward.48
= control target key start
LH: loop header
LB: loop body
LE: loop exit
PB: predicated region body
PF: predicated region fallthrough
CT: control target
= control target key end

     0   :  { %s1559_s15 = smov 0   ;;  %s1561_s16 = smov 0   ;;  %s1749_s0 = inlined_call_operand.vmem [shape: bf16[128,640], index: 0, kind: input, shape index: {}]   ;;  %s1750_s1 = inlined_call_operand.vmem [shape: bf16[640,128], index: 1, kind: input, shape index: {}]   ;;  %s1751_s2 = inlined_call_operand.vmem [shape: bf16[128,128], index: 2, kind: output, shape index: {0}]   ;;  %s1752_s3 = inlined_call_operand.vmem [shape: f32[2,1,128], index: 3, kind: output, shape index: {1}]   ;;  %s1753_s4 = inlined_call_operand.vmem [shape: f32[2,1,128], index: 4, kind: output, shape index: {2}]  }
   0x1   :  { %s1563_s17 = smov 0  }
   0x2 LB: > { %s27_s18 = sadd.s32 1, %s1528_s16  ;;  %p1179_p0 = scmp.ge.s32.totalorder %s1532_s17, 1  ;;  %s1532_s17 = sphi %s1563_s17, %s15_s17   ;;  %s1528_s16 = sphi %s1561_s16, %s1755_s16   ;;  %s1524_s15 = sphi %s1559_s15, %s1754_s15  }
   0x3   : > { %p29_p1 = scmp.ge.s32.totalorder %s27_s18, 2  ;;  %p199_p2 = scmp.lt.s32.totalorder %s1532_s17, 3 }
   0x5   : > { %s1757_s18 = smov (%p29_p1, %s27_s18), 0  ;;  %p200_p3 = pnand %p1179_p0, %p199_p2 }
   0x6   : > { %s1180_s27 = sshll.u32 (!%p200_p3), %s1524_s15, 3  ;;  %p265_p5 = scmp.lt.s32.totalorder (!%p200_p3), %s1524_s15, 1 }
   0x7   : > { %203 = sbr.rel (%p200_p3) target bundleno = 309 (0x135), region = 28  ;;  %p243_p4 = scmp.lt.s32.totalorder (!%p200_p3), %s1180_s27, 15 }
   0xc   : > { %v1442_v0 = vld [vmem:[%s1750_s1 + $0x78] sm:$0xff]   ;;  %v1446_v4 = vld [vmem:[%s1750_s1 + $0x70] sm:$0xff]   ;;  %v1450_v8 = vld [vmem:[%s1750_s1 + $0x68] sm:$0xff]   ;;  %s1759_s27 = smov (!%p243_p4, %s1180_s27), 15  ;;  %s1761_s15 = smov (!%p265_p5, %s1524_s15), 1 }
   0xd   : > { %v1443_v1 = vld [vmem:[%s1750_s1 + $0xf8] sm:$0xff]   ;;  %1285 = vmatprep.subr.bf16.mxu0 %v1442_v0  ;;  %v1447_v5 = vld [vmem:[%s1750_s1 + $0xf0] sm:$0xff]   ;;  %v1451_v9 = vld [vmem:[%s1750_s1 + $0xe8] sm:$0xff]   ;;  %s1417_s29 = smul.u32 20, %s1759_s27  ;;  %s267_s23 = scalar_lea.vmem %s1752_s3, %s1761_s15 }
   0xe   : > { %v1444_v2 = vld [vmem:[%s1750_s1 + $0x38] sm:$0xff]   ;;  %1325 = vmatprep.subr.bf16.mxu1 %v1443_v1  ;;  %v1448_v6 = vld [vmem:[%s1750_s1 + $0x30] sm:$0xff]   ;;  %v1452_v10 = vld [vmem:[%s1750_s1 + $0x28] sm:$0xff]   ;;  %s270_s26 = scalar_lea.vmem %s1753_s4, %s1761_s15 }
   0xf   : > { %v1445_v3 = vld [vmem:[%s1750_s1 + $0xb8] sm:$0xff]   ;;  %1286 = vmatpush3.bf16.msra.mxu0 %v1444_v2  ;;  %v1449_v7 = vld [vmem:[%s1750_s1 + $0xb0] sm:$0xff]   ;;  %v1453_v11 = vld [vmem:[%s1750_s1 + $0xa8] sm:$0xff]   ;;  %s1676_s14 = scalar_lea.vmem %s1749_s0, %s1417_s29 }
  0x10   : > { %1326 = vmatpush3.bf16.msra.mxu1 %v1445_v3  ;;  %1287 = vmatprep.subr.bf16.mxu0 %v1446_v4  ;;  %v1454_v12 = vld [vmem:[%s1750_s1 + $0x60] sm:$0xff]   ;;  %v1458_v16 = vld [vmem:[%s1750_s1 + $0x58] sm:$0xff]   ;;  %v1462_v20 = vld [vmem:[%s1750_s1 + $0x50] sm:$0xff]  }
  0x11   : > { %1327 = vmatprep.subr.bf16.mxu1 %v1447_v5  ;;  %v1455_v13 = vld [vmem:[%s1750_s1 + $0xe0] sm:$0xff]   ;;  %v1459_v17 = vld [vmem:[%s1750_s1 + $0xd8] sm:$0xff]   ;;  %v1463_v21 = vld [vmem:[%s1750_s1 + $0xd0] sm:$0xff]  }
  0x12   : > { %v1456_v14 = vld [vmem:[%s1750_s1 + $0x20] sm:$0xff]   ;;  %v1460_v18 = vld [vmem:[%s1750_s1 + $0x18] sm:$0xff]   ;;  %v1464_v22 = vld [vmem:[%s1750_s1 + $0x10] sm:$0xff]  }
  0x13   : > { %1288 = vmatpush3.bf16.msra.mxu0 %v1448_v6  ;;  %v1457_v15 = vld [vmem:[%s1750_s1 + $0xa0] sm:$0xff]   ;;  %v1461_v19 = vld [vmem:[%s1750_s1 + $0x98] sm:$0xff]   ;;  %v1465_v23 = vld [vmem:[%s1750_s1 + $0x90] sm:$0xff]  }
  0x14   : > { %1328 = vmatpush3.bf16.msra.mxu1 %v1449_v7  ;;  %1289 = vmatprep.subr.bf16.mxu0 %v1450_v8  ;;  %v1466_v24 = vld [vmem:[%s1750_s1 + $0x48] sm:$0xff]   ;;  %v1470_v28 = vld [vmem:[%s1750_s1 + $0x40] sm:$0xff]   ;;  %v1480_v36 = vld [vmem:[%s1750_s1 + $0x138] sm:$0xff]  }
  0x15   : > { %1329 = vmatprep.subr.bf16.mxu1 %v1451_v9  ;;  %v1467_v25 = vld [vmem:[%s1750_s1 + $0xc8] sm:$0xff]   ;;  %v1471_v29 = vld [vmem:[%s1750_s1 + $0xc0] sm:$0xff]   ;;  %v1481_v37 = vld [vmem:[%s1750_s1 + $0x130] sm:$0xff]  }
  0x16   : > { %v1468_v26 = vld [vmem:[%s1750_s1 + $0x8] sm:$0xff]   ;;  %v1472_v30 = vld [vmem:[%s1750_s1] sm:$0xff]   ;;  %v1492_v45 = vld [vmem:[%s1676_s14 + $0x5c] ss:$20 sps:$4 sm:$0xff]  }
  0x17   : > { %1290 = vmatpush3.bf16.msra.mxu0 %v1452_v10  ;;  %v1469_v27 = vld [vmem:[%s1750_s1 + $0x88] sm:$0xff]   ;;  %v1473_v31 = vld [vmem:[%s1750_s1 + $0x80] sm:$0xff]   ;;  %v1496_v46 = vld [vmem:[%s1750_s1 + $0x118] sm:$0xff]  }
  0x18   : > { %1330 = vmatpush3.bf16.msra.mxu1 %v1453_v11  ;;  %1291 = vmatprep.subr.bf16.mxu0 %v1454_v12  ;;  %v1474_v32 = vld [vmem:[%s1676_s14] ss:$20 sps:$4 sm:$0xff]   ;;  %v1476_v33 = vld [vmem:[%s1676_s14 + $0x4] ss:$20 sps:$4 sm:$0xff]   ;;  %v1477_v34 = vld [vmem:[%s1676_s14 + $0x8] ss:$20 sps:$4 sm:$0xff]  }
  0x19   : > { %1331 = vmatprep.subr.bf16.mxu1 %v1455_v13  ;;  %v1479_v35 = vld [vmem:[%s1676_s14 + $0xc] ss:$20 sps:$4 sm:$0xff]   ;;  %772 = vmatprep.mubr.bf16.mxu0 %v1476_v33  ;;  %v1484_v39 = vld [vmem:[%s1676_s14 + $0x34] ss:$20 sps:$4 sm:$0xff]   ;;  %v1487_v42 = vld [vmem:[%s1676_s14 + $0x30] ss:$20 sps:$4 sm:$0xff]  }
  0x1a   : > { %837 = vmatprep.mubr.bf16.mxu1 %v1479_v35  ;;  %v1482_v38 = vld [vmem:[%s1676_s14 + $0x2c] ss:$20 sps:$4 sm:$0xff]   ;;  %v1486_v40 = vld [vmem:[%s1676_s14 + $0x28] ss:$20 sps:$4 sm:$0xff]   ;;  %v1494_v47 = vld [vmem:[%s1676_s14 + $0x50] ss:$20 sps:$4 sm:$0xff]  }
  0x1b   : > { %1292 = vmatpush3.bf16.msra.mxu0 %v1456_v14  ;;  %v1488_v41 = vld [vmem:[%s1750_s1 + $0x128] sm:$0xff]   ;;  %v1489_v44 = vld [vmem:[%s1750_s1 + $0x120] sm:$0xff]   ;;  %v1498_v49 = vld [vmem:[%s1676_s14 + $0x7c] ss:$20 sps:$4 sm:$0xff]  }
  0x1c   : > { %1332 = vmatpush3.bf16.msra.mxu1 %v1457_v15  ;;  %1293 = vmatprep.subr.bf16.mxu0 %v1458_v16  ;;  %v1490_v43 = vld [vmem:[%s1676_s14 + $0x54] ss:$20 sps:$4 sm:$0xff]   ;;  %v1495_v48 = vld [vmem:[%s1676_s14 + $0x58] ss:$20 sps:$4 sm:$0xff]   ;;  %v1506_v55 = vld [vmem:[%s1676_s14 + $0x10] ss:$20 sps:$4 sm:$0xff]  }
  0x1d   : > { %1333 = vmatprep.subr.bf16.mxu1 %v1459_v17  ;;  %v1500_v50 = vld [vmem:[%s1676_s14 + $0x84] ss:$20 sps:$4 sm:$0xff]   ;;  %v1497_v51 = vld [vmem:[%s1750_s1 + $0x110] sm:$0xff]   ;;  %v1504_v52 = vld [vmem:[%s1750_s1 + $0x108] sm:$0xff]  }
  0x1e   : > { %v1502_v53 = vld [vmem:[%s1676_s14 + $0x78] ss:$20 sps:$4 sm:$0xff]   ;;  %v1503_v54 = vld [vmem:[%s1676_s14 + $0x80] ss:$20 sps:$4 sm:$0xff]   ;;  %v1509_v59 = vld [vmem:[%s1676_s14 + $0x88] ss:$20 sps:$4 sm:$0xff]  }
  0x1f   : > { %1294 = vmatpush3.bf16.msra.mxu0 %v1460_v18  ;;  %v1507_v56 = vld [vmem:[%s1676_s14 + $0x60] ss:$20 sps:$4 sm:$0xff]   ;;  %v1508_v58 = vld [vmem:[%s1676_s14 + $0x38] ss:$20 sps:$4 sm:$0xff]   ;;  %s1183_s14 = sshll.u32 %s1759_s27, 2 }
  0x20   : > { %1334 = vmatpush3.bf16.msra.mxu1 %v1461_v19  ;;  %1295 = vmatprep.subr.bf16.mxu0 %v1462_v20  ;;  %v1505_v57 = vld [vmem:[%s1750_s1 + $0x100] sm:$0xff]   ;;  %s263_s21 = scalar_lea.vmem %s1751_s2, %s1183_s14 }
  0x21   : > { %1335 = vmatprep.subr.bf16.mxu1 %v1463_v21 }
  0x23   : > { %1296 = vmatpush3.bf16.msra.mxu0 %v1464_v22 }
  0x24   : > { %1336 = vmatpush3.bf16.msra.mxu1 %v1465_v23  ;;  %1297 = vmatprep.subr.bf16.mxu0 %v1466_v24 }
  0x25   : > { %1337 = vmatprep.subr.bf16.mxu1 %v1467_v25 }
  0x27   : > { %1298 = vmatpush3.bf16.msra.mxu0 %v1468_v26 }
  0x28   : > { %1338 = vmatpush3.bf16.msra.mxu1 %v1469_v27  ;;  %1299 = vmatprep.subr.bf16.mxu0 %v1470_v28 }
  0x29   : > { %1339 = vmatprep.subr.bf16.mxu1 %v1471_v29 }
  0x2b   : > { %1300 = vmatpush3.bf16.msra.mxu0 %v1472_v30 }
  0x2c   : > { %1340 = vmatpush3.bf16.msra.mxu1 %v1473_v31  ;;  %1377 = vmatprep.subr.bf16.mxu0 %v1480_v36 }
  0x2d   : > { %1401 = vmatprep.subr.bf16.mxu1 %v1480_v36 }
  0x2e   : > { %773 = vmatmul.mubr.bf16.vlgmr.msra.gmra.mxu0 %v1474_v32 }
  0x2f   : > { %838 = vmatmul.mubr.bf16.vlgmr.msra.gmra.mxu1 %v1477_v34  ;;  %1378 = vmatpush3.bf16.msra.mxu0 %v1480_v36 }
  0x30   : > { %1409 = vmatpush3.bf16.msra.mxu1 %v1480_v36  ;;  %1379 = vmatprep.subr.bf16.mxu0 %v1481_v37 }
  0x31   : > { %1402 = vmatprep.subr.bf16.mxu1 %v1481_v37  ;;  %780 = vmatprep.mubr.bf16.mxu0 %v1482_v38 }
  0x32   : > { %845 = vmatprep.mubr.bf16.mxu1 %v1484_v39 }
  0x33   : > { %1380 = vmatpush3.bf16.msra.mxu0 %v1481_v37 }
  0x34   : > { %1410 = vmatpush3.bf16.msra.mxu1 %v1481_v37  ;;  %1381 = vmatprep.subr.bf16.mxu0 %v1488_v41 }
  0x35   : > { %1403 = vmatprep.subr.bf16.mxu1 %v1488_v41 }
  0x36   : > { %781 = vmatmul.mubr.bf16.gmra.mxu0 %v1486_v40 }
  0x37   : > { %846 = vmatmul.mubr.bf16.gmra.mxu1 %v1487_v42  ;;  %788 = vmatprep.mubr.bf16.mxu0 %v1490_v43 }
  0x38   : > { %1382 = vmatpush3.bf16.msra.mxu0 %v1488_v41  ;;  %853 = vmatprep.mubr.bf16.mxu1 %v1492_v45 }
  0x39   : > { %1411 = vmatpush3.bf16.msra.mxu1 %v1488_v41  ;;  %1383 = vmatprep.subr.bf16.mxu0 %v1489_v44 }
  0x3a   : > { %1404 = vmatprep.subr.bf16.mxu1 %v1489_v44 }
  0x3c   : > { %1384 = vmatpush3.bf16.msra.mxu0 %v1489_v44 }
  0x3d   : > { %1412 = vmatpush3.bf16.msra.mxu1 %v1489_v44  ;;  %1385 = vmatprep.subr.bf16.mxu0 %v1496_v46 }
  0x3e   : > { %789 = vmatmul.mubr.bf16.gmra.mxu0 %v1494_v47  ;;  %1405 = vmatprep.subr.bf16.mxu1 %v1496_v46 }
  0x3f   : > { %854 = vmatmul.mubr.bf16.gmra.mxu1 %v1495_v48  ;;  %796 = vmatprep.mubr.bf16.mxu0 %v1498_v49 }
  0x40   : > { %1386 = vmatpush3.bf16.msra.mxu0 %v1496_v46  ;;  %861 = vmatprep.mubr.bf16.mxu1 %v1500_v50 }
  0x41   : > { %1413 = vmatpush3.bf16.msra.mxu1 %v1496_v46  ;;  %1387 = vmatprep.subr.bf16.mxu0 %v1497_v51 }
  0x42   : > { %1406 = vmatprep.subr.bf16.mxu1 %v1497_v51 }
  0x44   : > { %1388 = vmatpush3.bf16.msra.mxu0 %v1497_v51 }
  0x45   : > { %1414 = vmatpush3.bf16.msra.mxu1 %v1497_v51  ;;  %1389 = vmatprep.subr.bf16.mxu0 %v1504_v52 }
  0x46   : > { %797 = vmatmul.mubr.bf16.gmra.mxu0 %v1502_v53  ;;  %1407 = vmatprep.subr.bf16.mxu1 %v1504_v52 }
  0x47   : > { %862 = vmatmul.mubr.bf16.gmra.mxu1 %v1503_v54  ;;  %1393 = vmatprep.mubr.bf16.mxu0 %v1506_v55 }
  0x48   : > { %1390 = vmatpush3.bf16.msra.mxu0 %v1504_v52  ;;  %1397 = vmatprep.mubr.bf16.mxu1 %v1507_v56 }
  0x49   : > { %1415 = vmatpush3.bf16.msra.mxu1 %v1504_v52  ;;  %1391 = vmatprep.subr.bf16.mxu0 %v1505_v57 }
  0x4a   : > { %1408 = vmatprep.subr.bf16.mxu1 %v1505_v57 }
  0x4c   : > { %1392 = vmatpush3.bf16.msra.mxu0 %v1505_v57 }
  0x4d   : > { %1416 = vmatpush3.bf16.msra.mxu1 %v1505_v57 }
  0x4f   : > { %1394 = vmatmul.mubr.bf16.vlgmr.msra.gmra.mxu0 %v1508_v58 }
  0x50   : > { %1398 = vmatmul.mubr.bf16.vlgmr.msra.gmra.mxu1 %v1509_v59 }
  0xee   : > { %v1301_v60 = vpop.f32.mrf.mxu0 }
  0xef   : > { %v1341_v61 = vpop.f32.mrf.mxu1 }
  0xf0   : > { %v1302_v62 = vpop.f32.mrf.mxu0 }
  0xf1   : > { %v1342_v63 = vpop.f32.mrf.mxu1  ;;  %v1303_v27 = vadd.f32 %v1302_v62, %v1301_v60 }
  0xf2   : > { %v1304_v0 = vpop.f32.mrf.mxu0  ;;  %v1343_v28 = vadd.f32 %v1342_v63, %v1341_v61 }
  0xf3   : > { %v1344_v1 = vpop.f32.mrf.mxu1 }
  0xf4   : > { %v1305_v2 = vpop.f32.mrf.mxu0  ;;  %v840_v48 = vadd.f32 %v1343_v28, %v1303_v27 }
  0xf5   : > { %v1345_v3 = vpop.f32.mrf.mxu1  ;;  %v1306_v39 = vadd.f32 %v1305_v2, %v1304_v0 }
  0xf6   : > { %v1307_v4 = vpop.f32.mrf.mxu0  ;;  %v1346_v40 = vadd.f32 %v1345_v3, %v1344_v1 }
  0xf7   : > { %v1347_v5 = vpop.f32.mrf.mxu1 }
  0xf8   : > { %v1308_v6 = vpop.f32.mrf.mxu0  ;;  %v843_v58 = vadd.f32 %v1346_v40, %v1306_v39 }
  0xf9   : > { %v1348_v7 = vpop.f32.mrf.mxu1  ;;  %v1309_v30 = vadd.f32 %v1308_v6, %v1307_v4 }
  0xfa   : > { %v1310_v8 = vpop.f32.mrf.mxu0  ;;  %v1349_v31 = vadd.f32 %v1348_v7, %v1347_v5 }
  0xfb   : > { %v1350_v9 = vpop.f32.mrf.mxu1 }
  0xfc   : > { %v1311_v10 = vpop.f32.mrf.mxu0  ;;  %v848_v47 = vadd.f32 %v1349_v31, %v1309_v30 }
  0xfd   : > { %v1351_v11 = vpop.f32.mrf.mxu1  ;;  %v1312_v32 = vadd.f32 %v1311_v10, %v1310_v8 }
  0xfe   : > { %v1313_v12 = vpop.f32.mrf.mxu0  ;;  %v1352_v33 = vadd.f32 %v1351_v11, %v1350_v9 }
  0xff   : > { %v1353_v13 = vpop.f32.mrf.mxu1 }
 0x100   : > { %v1314_v14 = vpop.f32.mrf.mxu0  ;;  %v851_v50 = vadd.f32 %v1352_v33, %v1312_v32 }
 0x101   : > { %v1354_v15 = vpop.f32.mrf.mxu1  ;;  %v1315_v42 = vadd.f32 %v1314_v14, %v1313_v12 }
 0x102   : > { %v1316_v16 = vpop.f32.mrf.mxu0  ;;  %v1355_v43 = vadd.f32 %v1354_v15, %v1353_v13 }
 0x103   : > { %v1356_v17 = vpop.f32.mrf.mxu1 }
 0x104   : > { %v1317_v18 = vpop.f32.mrf.mxu0  ;;  %v856_v60 = vadd.f32 %v1355_v43, %v1315_v42 }
 0x105   : > { %v1357_v19 = vpop.f32.mrf.mxu1  ;;  %v1318_v44 = vadd.f32 %v1317_v18, %v1316_v16 }
 0x106   : > { %v1319_v20 = vpop.f32.mrf.mxu0  ;;  %v1358_v45 = vadd.f32 %v1357_v19, %v1356_v17 }
 0x107   : > { %v1359_v21 = vpop.f32.mrf.mxu1 }
 0x108   : > { %v1320_v22 = vpop.f32.mrf.mxu0  ;;  %v859_v63 = vadd.f32 %v1358_v45, %v1318_v44 }
 0x109   : > { %v1360_v23 = vpop.f32.mrf.mxu1  ;;  %v1321_v34 = vadd.f32 %v1320_v22, %v1319_v20 }
 0x10a   : > { %v1322_v24 = vpop.f32.mrf.mxu0  ;;  %v1361_v35 = vadd.f32 %v1360_v23, %v1359_v21 }
 0x10b   : > { %v1362_v25 = vpop.f32.mrf.mxu1 }
 0x10c   : > { %v1323_v26 = vpop.f32.mrf.mxu0  ;;  %v864_v51 = vadd.f32 %v1361_v35, %v1321_v34 }
 0x10d   : > { %v1363_v29 = vpop.f32.mrf.mxu1  ;;  %v1324_v36 = vadd.f32 %v1323_v26, %v1322_v24 }
 0x10e   : > { %v1364_v37 = vadd.f32 %v1363_v29, %v1362_v25 }
 0x10f   : > { %v1395_v38 = vpop.f32.mrf.mxu0 }
 0x110   : > { %v1399_v41 = vpop.f32.mrf.mxu1  ;;  %v867_v53 = vadd.f32 %v1364_v37, %v1324_v36  ;;  %v913_v54 = vadd.f32 %v1395_v38, %v848_v47 }
 0x111   : > { %v904_v46 = vpop.f32.mrf.mxu0  ;;  %v929_v59 = vadd.f32 %v1399_v41, %v864_v51 }
 0x112   : > { %v920_v49 = vpop.f32.mrf.mxu1  ;;  %v905_v55 = vadd.f32 %v904_v46, %v840_v48  ;;  %v1018_v11 = vmul.f32 %v913_v54, %v913_v54 }
 0x113   : > { %v1396_v52 = vpop.f32.mrf.mxu0  ;;  %v921_v3 = vadd.f32 %v920_v49, %v856_v60  ;;  %v1022_v23 = vmul.f32 %v929_v59, %v929_v59 }
 0x114   : > { %v916_v56 = vadd.f32 %v1396_v52, %v851_v50  ;;  %v1400_v57 = vpop.f32.mrf.mxu1  ;;  %v1016_v6 = vmul.f32 %v905_v55, %v905_v55 }
 0x115   : > { %v932_v61 = vadd.f32 %v1400_v57, %v867_v53  ;;  %v907_v62 = vpop.f32.mrf.mxu0  ;;  %v1020_v17 = vmul.f32 %v921_v3, %v921_v3 }
 0x116   : > { %v1270_v0 = vpack.c.bf16 %v916_v56, %v913_v54  ;;  %v908_v1 = vadd.f32 %v907_v62, %v843_v58  ;;  %v923_v2 = vpop.f32.mrf.mxu1  ;;  %v1019_v14 = vmul.f32 %v916_v56, %v916_v56 }
 0x117   : > { %v1280_v4 = vpack.c.bf16 %v932_v61, %v929_v59  ;;  %v924_v5 = vadd.f32 %v923_v2, %v859_v63  ;;  %v1023_v26 = vmul.f32 %v932_v61, %v932_v61 }
 0x118   : > { %1282 = vst [vmem:[%s263_s21 + $0x8] sm:$0xff] %v1270_v0   ;;  %v1265_v7 = vpack.c.bf16 %v908_v1, %v905_v55  ;;  %v1002_v8 = vadd.f32 %v908_v1, %v905_v55  ;;  %v1017_v9 = vmul.f32 %v908_v1, %v908_v1 }
 0x119   : > { %1284 = vst [vmem:[%s263_s21 + $0x18] sm:$0xff] %v1280_v4   ;;  %v1275_v10 = vpack.c.bf16 %v924_v5, %v921_v3  ;;  %v1021_v21 = vmul.f32 %v924_v5, %v924_v5 }
 0x11a   : > { %1266 = vst [vmem:[%s263_s21] sm:$0xff] %v1265_v7   ;;  %v1003_v12 = vadd.f32 %v1002_v8, %v913_v54  ;;  %v1024_v13 = vadd.f32 %v1017_v9, %v1016_v6 }
 0x11b   : > { %1283 = vst [vmem:[%s263_s21 + $0x10] sm:$0xff] %v1275_v10  }
 0x11c   : > { %v1025_v15 = vadd.f32 %v1024_v13, %v1018_v11  ;;  %v1004_v16 = vadd.f32 %v1003_v12, %v916_v56 }
 0x11e   : > { %v1005_v18 = vadd.f32 %v1004_v16, %v921_v3  ;;  %v1026_v19 = vadd.f32 %v1025_v15, %v1019_v14 }
 0x120   : > { %v1006_v20 = vadd.f32 %v1005_v18, %v924_v5  ;;  %v1027_v22 = vadd.f32 %v1026_v19, %v1020_v17 }
 0x122   : > { %v1007_v24 = vadd.f32 %v1006_v20, %v929_v59  ;;  %v1028_v25 = vadd.f32 %v1027_v22, %v1021_v21 }
 0x124   : > { %v1008_v27 = vadd.f32 %v1007_v24, %v932_v61  ;;  %v1029_v28 = vadd.f32 %v1028_v25, %v1022_v23 }
 0x126   : > { %v1009_v29 = vrot.slane %v1008_v27, 4  ;;  %v1030_v30 = vadd.f32 %v1029_v28, %v1023_v26 }
 0x128   : > { %v1010_v31 = vadd.f32 %v1009_v29, %v1008_v27  ;;  %v1031_v32 = vrot.slane %v1030_v30, 4 }
 0x12a   : > { %v1011_v33 = vrot.slane %v1010_v31, 2  ;;  %v1032_v34 = vadd.f32 %v1031_v32, %v1030_v30 }
 0x12c   : > { %v1012_v35 = vadd.f32 %v1011_v33, %v1010_v31  ;;  %v1033_v36 = vrot.slane %v1032_v34, 2 }
 0x12e   : > { %v1013_v37 = vrot.slane %v1012_v35, 1  ;;  %v1034_v38 = vadd.f32 %v1033_v36, %v1032_v34 }
 0x130   : > { %v1014_v39 = vadd.f32 %v1013_v37, %v1012_v35  ;;  %v1035_v40 = vrot.slane %v1034_v38, 1 }
 0x132   : > { %1015 = vst [vmem:[%s267_s23] sm:$0x1] %v1014_v39  ;;  %v1036_v41 = vadd.f32 %v1035_v40, %v1034_v38 }
 0x134   : > { %1037 = vst [vmem:[%s270_s26] sm:$0x1] %v1036_v41 }
 0x135 PF: > { %s15_s17 = sadd.s32 1, %s1532_s17   ;;  %s1754_s15 = smov %s1528_s16 }
 0x136   : > { %p12_p6 = scmp.ge.s32.totalorder %s15_s17, 4   ;;  %s1755_s16 = smov %s1757_s18 }
 0x138   :  { %14 = sbr.rel (!%p12_p6) target bundleno = 2 (0x2), region = 93 }

// kernel: resnet18_forward.49
= control target key start
LH: loop header
LB: loop body
LE: loop exit
PB: predicated region body
PF: predicated region fallthrough
CT: control target
= control target key end

     0   :  { %s422_s0 = inlined_call_operand.vmem [shape: bf16[128,128], index: 0, kind: input, shape index: {}]   ;;  %s423_s1 = inlined_call_operand.vmem [shape: f32[1,128], index: 1, kind: input, shape index: {}]   ;;  %s424_s2 = inlined_call_operand.vmem [shape: f32[1,128], index: 2, kind: input, shape index: {}]   ;;  %s425_s3 = inlined_call_operand.vmem [shape: bf16[128,128], index: 3, kind: output, shape index: {}]  }
   0x1   :  { %v227_v0 = vld [vmem:[%s422_s0] sm:$0xff]   ;;  %v298_v4 = vld [vmem:[%s422_s0 + $0x8] sm:$0xff]   ;;  %v299_v5 = vld [vmem:[%s422_s0 + $0x10] sm:$0xff]  }
   0x2   :  { %v338_v1 = vld [vmem:[%s423_s1] ss:$0 sm:$0xff]  ;;  %v228_v2 = vunpack.c.l.bf16 %v227_v0  ;;  %v229_v3 = vunpack.c.h.bf16 %v227_v0  ;;  %v300_v6 = vld [vmem:[%s422_s0 + $0x18] sm:$0xff]   ;;  %v232_v8 = vunpack.c.l.bf16 %v298_v4  ;;  %v233_v9 = vunpack.c.h.bf16 %v298_v4  ;;  %v302_v33 = vld [vmem:[%s422_s0 + $0x28] sm:$0xff]  }
   0x3   :  { %v352_v7 = vld [vmem:[%s424_s2] ss:$0 sm:$0xff]  ;;  %v236_v10 = vunpack.c.l.bf16 %v299_v5  ;;  %v237_v11 = vunpack.c.h.bf16 %v299_v5  ;;  %v240_v14 = vunpack.c.l.bf16 %v300_v6  ;;  %v241_v15 = vunpack.c.h.bf16 %v300_v6  ;;  %v303_v38 = vld [vmem:[%s422_s0 + $0x30] sm:$0xff]   ;;  %v304_v43 = vld [vmem:[%s422_s0 + $0x38] sm:$0xff]  }
   0x4   :  { %v53_v12 = vmul.f32 %v228_v2, %v338_v1  ;;  %v54_v13 = vmul.f32 %v229_v3, %v338_v1  ;;  %v55_v16 = vmul.f32 %v232_v8, %v338_v1  ;;  %v56_v17 = vmul.f32 %v233_v9, %v338_v1  ;;  %v301_v28 = vld [vmem:[%s422_s0 + $0x20] sm:$0xff]  }
   0x5   :  { %v57_v18 = vmul.f32 %v236_v10, %v338_v1  ;;  %v58_v19 = vmul.f32 %v237_v11, %v338_v1  ;;  %v59_v22 = vmul.f32 %v240_v14, %v338_v1  ;;  %v60_v23 = vmul.f32 %v241_v15, %v338_v1 }
   0x6   :  { %v76_v20 = vadd.f32 %v352_v7, %v53_v12  ;;  %v77_v21 = vadd.f32 %v352_v7, %v54_v13  ;;  %v78_v24 = vadd.f32 %v352_v7, %v55_v16  ;;  %v79_v25 = vadd.f32 %v352_v7, %v56_v17 }
   0x7   :  { %v80_v26 = vadd.f32 %v352_v7, %v57_v18  ;;  %v81_v27 = vadd.f32 %v352_v7, %v58_v19  ;;  %v82_v31 = vadd.f32 %v352_v7, %v59_v22  ;;  %v83_v32 = vadd.f32 %v352_v7, %v60_v23 }
   0x8   :  { %v92_v29 = vmax.f32 %v76_v20, 0.0  ;;  %v93_v30 = vmax.f32 %v77_v21, 0.0  ;;  %v94_v34 = vmax.f32 %v78_v24, 0.0  ;;  %v95_v35 = vmax.f32 %v79_v25, 0.0 }
   0x9   :  { %v96_v36 = vmax.f32 %v80_v26, 0.0  ;;  %v97_v37 = vmax.f32 %v81_v27, 0.0  ;;  %v98_v40 = vmax.f32 %v82_v31, 0.0  ;;  %v99_v41 = vmax.f32 %v83_v32, 0.0 }
   0xa   :  { %v261_v39 = vpack.c.bf16 %v93_v30, %v92_v29  ;;  %v244_v42 = vunpack.c.l.bf16 %v301_v28  ;;  %v266_v44 = vpack.c.bf16 %v95_v35, %v94_v34  ;;  %v245_v46 = vunpack.c.h.bf16 %v301_v28 }
   0xb   :  { %v271_v45 = vpack.c.bf16 %v97_v37, %v96_v36  ;;  %v248_v47 = vunpack.c.l.bf16 %v302_v33  ;;  %v276_v48 = vpack.c.bf16 %v99_v41, %v98_v40  ;;  %v249_v50 = vunpack.c.h.bf16 %v302_v33 }
   0xc   :  { %262 = vst [vmem:[%s425_s3] sm:$0xff] %v261_v39   ;;  %v61_v49 = vmul.f32 %v244_v42, %v338_v1  ;;  %v252_v51 = vunpack.c.l.bf16 %v303_v38  ;;  %305 = vst [vmem:[%s425_s3 + $0x8] sm:$0xff] %v266_v44   ;;  %v62_v52 = vmul.f32 %v245_v46, %v338_v1  ;;  %v253_v54 = vunpack.c.h.bf16 %v303_v38 }
   0xd   :  { %306 = vst [vmem:[%s425_s3 + $0x10] sm:$0xff] %v271_v45   ;;  %v63_v53 = vmul.f32 %v248_v47, %v338_v1  ;;  %v256_v55 = vunpack.c.l.bf16 %v304_v43  ;;  %307 = vst [vmem:[%s425_s3 + $0x18] sm:$0xff] %v276_v48   ;;  %v64_v57 = vmul.f32 %v249_v50, %v338_v1  ;;  %v257_v59 = vunpack.c.h.bf16 %v304_v43 }
   0xe   :  { %v84_v56 = vadd.f32 %v352_v7, %v61_v49  ;;  %v65_v58 = vmul.f32 %v252_v51, %v338_v1  ;;  %v85_v60 = vadd.f32 %v352_v7, %v62_v52  ;;  %v66_v62 = vmul.f32 %v253_v54, %v338_v1 }
   0xf   :  { %v86_v61 = vadd.f32 %v352_v7, %v63_v53  ;;  %v67_v63 = vmul.f32 %v256_v55, %v338_v1  ;;  %v87_v2 = vadd.f32 %v352_v7, %v64_v57  ;;  %v68_v4 = vmul.f32 %v257_v59, %v338_v1 }
  0x10   :  { %v100_v0 = vmax.f32 %v84_v56, 0.0  ;;  %v88_v3 = vadd.f32 %v352_v7, %v65_v58  ;;  %v101_v5 = vmax.f32 %v85_v60, 0.0  ;;  %v89_v8 = vadd.f32 %v352_v7, %v66_v62 }
  0x11   :  { %v102_v6 = vmax.f32 %v86_v61, 0.0  ;;  %v90_v9 = vadd.f32 %v352_v7, %v67_v63  ;;  %v103_v10 = vmax.f32 %v87_v2, 0.0  ;;  %v91_v12 = vadd.f32 %v352_v7, %v68_v4 }
  0x12   :  { %v104_v11 = vmax.f32 %v88_v3, 0.0  ;;  %v281_v13 = vpack.c.bf16 %v101_v5, %v100_v0  ;;  %v105_v14 = vmax.f32 %v89_v8, 0.0 }
  0x13   :  { %v106_v15 = vmax.f32 %v90_v9, 0.0  ;;  %v286_v16 = vpack.c.bf16 %v103_v10, %v102_v6  ;;  %v107_v17 = vmax.f32 %v91_v12, 0.0 }
  0x14   :  { %308 = vst [vmem:[%s425_s3 + $0x20] sm:$0xff] %v281_v13   ;;  %v291_v1 = vpack.c.bf16 %v105_v14, %v104_v11 }
  0x15   :  { %309 = vst [vmem:[%s425_s3 + $0x28] sm:$0xff] %v286_v16   ;;  %v296_v18 = vpack.c.bf16 %v107_v17, %v106_v15 }
  0x16   :  { %310 = vst [vmem:[%s425_s3 + $0x30] sm:$0xff] %v291_v1  }
  0x17   :  { %311 = vst [vmem:[%s425_s3 + $0x38] sm:$0xff] %v296_v18  }

// kernel: resnet18_forward.51
= control target key start
LH: loop header
LB: loop body
LE: loop exit
PB: predicated region body
PF: predicated region fallthrough
CT: control target
= control target key end

     0   :  { %s541_s0 = inlined_call_operand.vmem [shape: bf16[128,128], index: 0, kind: input, shape index: {}]   ;;  %s542_s1 = inlined_call_operand.vmem [shape: bf16[128,128], index: 1, kind: input, shape index: {}]   ;;  %s543_s2 = inlined_call_operand.vmem [shape: f32[1,128], index: 2, kind: input, shape index: {}]   ;;  %s544_s3 = inlined_call_operand.vmem [shape: f32[1,128], index: 3, kind: input, shape index: {}]   ;;  %s545_s4 = inlined_call_operand.vmem [shape: bf16[128,128], index: 4, kind: output, shape index: {}]  }
   0x1   :  { %v278_v0 = vld [vmem:[%s541_s0] sm:$0xff]   ;;  %v381_v5 = vld [vmem:[%s541_s0 + $0x8] sm:$0xff]   ;;  %v382_v12 = vld [vmem:[%s541_s0 + $0x10] sm:$0xff]  }
   0x2   :  { %v433_v1 = vld [vmem:[%s543_s2] ss:$0 sm:$0xff]  ;;  %v279_v2 = vunpack.c.l.bf16 %v278_v0  ;;  %v280_v3 = vunpack.c.h.bf16 %v278_v0  ;;  %v388_v6 = vld [vmem:[%s542_s1 + $0x8] sm:$0xff]   ;;  %v283_v10 = vunpack.c.l.bf16 %v381_v5  ;;  %v284_v11 = vunpack.c.h.bf16 %v381_v5  ;;  %v389_v13 = vld [vmem:[%s542_s1 + $0x10] sm:$0xff]  }
   0x3   :  { %v310_v4 = vld [vmem:[%s542_s1] sm:$0xff]   ;;  %v315_v16 = vunpack.c.l.bf16 %v388_v6  ;;  %v316_v17 = vunpack.c.h.bf16 %v388_v6  ;;  %v287_v20 = vunpack.c.l.bf16 %v382_v12  ;;  %v288_v21 = vunpack.c.h.bf16 %v382_v12  ;;  %v383_v22 = vld [vmem:[%s541_s0 + $0x18] sm:$0xff]   ;;  %v385_v54 = vld [vmem:[%s541_s0 + $0x28] sm:$0xff]  }
   0x4   :  { %v447_v7 = vld [vmem:[%s544_s3] ss:$0 sm:$0xff]  ;;  %v311_v8 = vunpack.c.l.bf16 %v310_v4  ;;  %v312_v9 = vunpack.c.h.bf16 %v310_v4  ;;  %v56_v14 = vmul.f32 %v279_v2, %v433_v1  ;;  %v57_v15 = vmul.f32 %v280_v3, %v433_v1  ;;  %v390_v39 = vld [vmem:[%s542_s1 + $0x18] sm:$0xff]   ;;  %v392_v63 = vld [vmem:[%s542_s1 + $0x28] sm:$0xff]  }
   0x5   :  { %v58_v18 = vmul.f32 %v283_v10, %v433_v1  ;;  %v59_v19 = vmul.f32 %v284_v11, %v433_v1  ;;  %v319_v25 = vunpack.c.l.bf16 %v389_v13  ;;  %v320_v26 = vunpack.c.h.bf16 %v389_v13  ;;  %v384_v48 = vld [vmem:[%s541_s0 + $0x20] sm:$0xff]   ;;  %v386_v5 = vld [vmem:[%s541_s0 + $0x30] sm:$0xff]  }
   0x6   :  { %v79_v23 = vadd.f32 %v447_v7, %v56_v14  ;;  %v80_v24 = vadd.f32 %v447_v7, %v57_v15  ;;  %v60_v29 = vmul.f32 %v287_v20, %v433_v1  ;;  %v61_v30 = vmul.f32 %v288_v21, %v433_v1  ;;  %v391_v49 = vld [vmem:[%s542_s1 + $0x20] sm:$0xff]   ;;  %v393_v11 = vld [vmem:[%s542_s1 + $0x30] sm:$0xff]   ;;  %v387_v20 = vld [vmem:[%s541_s0 + $0x38] sm:$0xff]  }
   0x7   :  { %v81_v27 = vadd.f32 %v447_v7, %v58_v18  ;;  %v82_v28 = vadd.f32 %v447_v7, %v59_v19  ;;  %v291_v33 = vunpack.c.l.bf16 %v383_v22  ;;  %v292_v34 = vunpack.c.h.bf16 %v383_v22 }
   0x8   :  { %v127_v31 = vadd.f32 %v311_v8, %v79_v23  ;;  %v128_v32 = vadd.f32 %v312_v9, %v80_v24  ;;  %v83_v37 = vadd.f32 %v447_v7, %v60_v29  ;;  %v84_v38 = vadd.f32 %v447_v7, %v61_v30 }
   0x9   :  { %v129_v35 = vadd.f32 %v315_v16, %v81_v27  ;;  %v130_v36 = vadd.f32 %v316_v17, %v82_v28  ;;  %v62_v42 = vmul.f32 %v291_v33, %v433_v1  ;;  %v63_v43 = vmul.f32 %v292_v34, %v433_v1  ;;  %v394_v33 = vld [vmem:[%s542_s1 + $0x38] sm:$0xff]  }
   0xa   :  { %v143_v40 = vmax.f32 %v127_v31, 0.0  ;;  %v144_v41 = vmax.f32 %v128_v32, 0.0  ;;  %v131_v46 = vadd.f32 %v319_v25, %v83_v37  ;;  %v132_v47 = vadd.f32 %v320_v26, %v84_v38 }
   0xb   :  { %v145_v44 = vmax.f32 %v129_v35, 0.0  ;;  %v146_v45 = vmax.f32 %v130_v36, 0.0  ;;  %v85_v51 = vadd.f32 %v447_v7, %v62_v42  ;;  %v86_v52 = vadd.f32 %v447_v7, %v63_v43 }
   0xc   :  { %v344_v50 = vpack.c.bf16 %v144_v41, %v143_v40  ;;  %v323_v53 = vunpack.c.l.bf16 %v390_v39  ;;  %v147_v56 = vmax.f32 %v131_v46, 0.0  ;;  %v148_v57 = vmax.f32 %v132_v47, 0.0 }
   0xd   :  { %v349_v55 = vpack.c.bf16 %v146_v45, %v145_v44  ;;  %v324_v58 = vunpack.c.h.bf16 %v390_v39  ;;  %v295_v60 = vunpack.c.l.bf16 %v384_v48  ;;  %v296_v61 = vunpack.c.h.bf16 %v384_v48 }
   0xe   :  { %345 = vst [vmem:[%s545_s4] sm:$0xff] %v344_v50   ;;  %v133_v59 = vadd.f32 %v323_v53, %v85_v51  ;;  %v327_v62 = vunpack.c.l.bf16 %v391_v49  ;;  %v354_v0 = vpack.c.bf16 %v148_v57, %v147_v56  ;;  %v328_v3 = vunpack.c.h.bf16 %v391_v49 }
   0xf   :  { %395 = vst [vmem:[%s545_s4 + $0x8] sm:$0xff] %v349_v55   ;;  %v134_v2 = vadd.f32 %v324_v58, %v86_v52  ;;  %v299_v4 = vunpack.c.l.bf16 %v385_v54  ;;  %v64_v8 = vmul.f32 %v295_v60, %v433_v1  ;;  %v65_v9 = vmul.f32 %v296_v61, %v433_v1 }
  0x10   :  { %v149_v6 = vmax.f32 %v133_v59, 0.0  ;;  %v300_v10 = vunpack.c.h.bf16 %v385_v54  ;;  %396 = vst [vmem:[%s545_s4 + $0x10] sm:$0xff] %v354_v0   ;;  %v331_v14 = vunpack.c.l.bf16 %v392_v63  ;;  %v332_v15 = vunpack.c.h.bf16 %v392_v63 }
  0x11   :  { %v150_v12 = vmax.f32 %v134_v2, 0.0  ;;  %v66_v13 = vmul.f32 %v299_v4, %v433_v1  ;;  %v87_v16 = vadd.f32 %v447_v7, %v64_v8  ;;  %v88_v17 = vadd.f32 %v447_v7, %v65_v9 }
  0x12   :  { %v67_v18 = vmul.f32 %v300_v10, %v433_v1  ;;  %v303_v19 = vunpack.c.l.bf16 %v386_v5  ;;  %v304_v23 = vunpack.c.h.bf16 %v386_v5  ;;  %v335_v24 = vunpack.c.l.bf16 %v393_v11 }
  0x13   :  { %v359_v21 = vpack.c.bf16 %v150_v12, %v149_v6  ;;  %v89_v22 = vadd.f32 %v447_v7, %v66_v13  ;;  %v135_v25 = vadd.f32 %v327_v62, %v87_v16  ;;  %v136_v26 = vadd.f32 %v328_v3, %v88_v17 }
  0x14   :  { %v90_v27 = vadd.f32 %v447_v7, %v67_v18  ;;  %v68_v28 = vmul.f32 %v303_v19, %v433_v1  ;;  %v69_v30 = vmul.f32 %v304_v23, %v433_v1  ;;  %v336_v31 = vunpack.c.h.bf16 %v393_v11 }
  0x15   :  { %397 = vst [vmem:[%s545_s4 + $0x18] sm:$0xff] %v359_v21   ;;  %v137_v29 = vadd.f32 %v331_v14, %v89_v22  ;;  %v307_v32 = vunpack.c.l.bf16 %v387_v20  ;;  %v151_v34 = vmax.f32 %v135_v25, 0.0  ;;  %v152_v35 = vmax.f32 %v136_v26, 0.0 }
  0x16   :  { %v138_v36 = vadd.f32 %v332_v15, %v90_v27  ;;  %v91_v37 = vadd.f32 %v447_v7, %v68_v28  ;;  %v92_v39 = vadd.f32 %v447_v7, %v69_v30  ;;  %v308_v40 = vunpack.c.h.bf16 %v387_v20 }
  0x17   :  { %v153_v38 = vmax.f32 %v137_v29, 0.0  ;;  %v70_v41 = vmul.f32 %v307_v32, %v433_v1  ;;  %v364_v42 = vpack.c.bf16 %v152_v35, %v151_v34  ;;  %v339_v45 = vunpack.c.l.bf16 %v394_v33 }
  0x18   :  { %v154_v43 = vmax.f32 %v138_v36, 0.0  ;;  %v139_v44 = vadd.f32 %v335_v24, %v91_v37  ;;  %v140_v46 = vadd.f32 %v336_v31, %v92_v39  ;;  %v71_v47 = vmul.f32 %v308_v40, %v433_v1 }
  0x19   :  { %v93_v48 = vadd.f32 %v447_v7, %v70_v41  ;;  %v340_v49 = vunpack.c.h.bf16 %v394_v33  ;;  %398 = vst [vmem:[%s545_s4 + $0x20] sm:$0xff] %v364_v42  }
  0x1a   :  { %v369_v50 = vpack.c.bf16 %v154_v43, %v153_v38  ;;  %v155_v51 = vmax.f32 %v139_v44, 0.0  ;;  %v156_v52 = vmax.f32 %v140_v46, 0.0  ;;  %v94_v53 = vadd.f32 %v447_v7, %v71_v47 }
  0x1b   :  { %v141_v54 = vadd.f32 %v339_v45, %v93_v48 }
  0x1c   :  { %399 = vst [vmem:[%s545_s4 + $0x28] sm:$0xff] %v369_v50   ;;  %v374_v55 = vpack.c.bf16 %v156_v52, %v155_v51  ;;  %v142_v56 = vadd.f32 %v340_v49, %v94_v53 }
  0x1d   :  { %v157_v1 = vmax.f32 %v141_v54, 0.0 }
  0x1e   :  { %400 = vst [vmem:[%s545_s4 + $0x30] sm:$0xff] %v374_v55   ;;  %v158_v57 = vmax.f32 %v142_v56, 0.0 }
  0x20   :  { %v379_v58 = vpack.c.bf16 %v158_v57, %v157_v1 }
  0x22   :  { %401 = vst [vmem:[%s545_s4 + $0x38] sm:$0xff] %v379_v58  }

// kernel: resnet18_forward.57
= control target key start
LH: loop header
LB: loop body
LE: loop exit
PB: predicated region body
PF: predicated region fallthrough
CT: control target
= control target key end

     0   :  { %s140_s0 = inlined_call_operand.vmem [shape: bf16[32,128], index: 0, kind: input, shape index: {}]   ;;  %s141_s1 = inlined_call_operand.vmem [shape: f32[1,128], index: 1, kind: input, shape index: {}]   ;;  %s142_s2 = inlined_call_operand.vmem [shape: f32[1,128], index: 2, kind: input, shape index: {}]   ;;  %s143_s3 = inlined_call_operand.vmem [shape: bf16[32,128], index: 3, kind: output, shape index: {}]  }
   0x1   :  { %v83_v0 = vld [vmem:[%s140_s0] sm:$0xff]   ;;  %v100_v4 = vld [vmem:[%s140_s0 + $0x8] sm:$0xff]  }
   0x2   :  { %v72_v1 = vld [vmem:[%s141_s1] ss:$0 sm:$0xff]  ;;  %v84_v2 = vunpack.c.l.bf16 %v83_v0  ;;  %v85_v3 = vunpack.c.h.bf16 %v83_v0  ;;  %v88_v6 = vunpack.c.l.bf16 %v100_v4  ;;  %v89_v7 = vunpack.c.h.bf16 %v100_v4 }
   0x3   :  { %v73_v5 = vld [vmem:[%s142_s2] ss:$0 sm:$0xff] }
   0x4   :  { %v29_v8 = vmul.f32 %v84_v2, %v72_v1  ;;  %v30_v9 = vmul.f32 %v85_v3, %v72_v1  ;;  %v31_v10 = vmul.f32 %v88_v6, %v72_v1  ;;  %v32_v11 = vmul.f32 %v89_v7, %v72_v1 }
   0x6   :  { %v40_v12 = vadd.f32 %v73_v5, %v29_v8  ;;  %v41_v13 = vadd.f32 %v73_v5, %v30_v9  ;;  %v42_v14 = vadd.f32 %v73_v5, %v31_v10  ;;  %v43_v15 = vadd.f32 %v73_v5, %v32_v11 }
   0x8   :  { %v44_v16 = vmax.f32 %v40_v12, 0.0  ;;  %v45_v17 = vmax.f32 %v41_v13, 0.0  ;;  %v46_v18 = vmax.f32 %v42_v14, 0.0  ;;  %v47_v19 = vmax.f32 %v43_v15, 0.0 }
   0xa   :  { %v93_v20 = vpack.c.bf16 %v45_v17, %v44_v16  ;;  %v98_v21 = vpack.c.bf16 %v47_v19, %v46_v18 }
   0xc   :  { %94 = vst [vmem:[%s143_s3] sm:$0xff] %v93_v20   ;;  %101 = vst [vmem:[%s143_s3 + $0x8] sm:$0xff] %v98_v21  }

// kernel: resnet18_forward.56
= control target key start
LH: loop header
LB: loop body
LE: loop exit
PB: predicated region body
PF: predicated region fallthrough
CT: control target
= control target key end

     0   :  { %s1192_s15 = smov 0   ;;  %s1194_s16 = smov 0   ;;  %s1367_s0 = inlined_call_operand.vmem [shape: bf16[32,640], index: 0, kind: input, shape index: {}]   ;;  %s1368_s1 = inlined_call_operand.vmem [shape: bf16[640,128], index: 1, kind: input, shape index: {}]   ;;  %s1369_s2 = inlined_call_operand.vmem [shape: bf16[32,128], index: 2, kind: output, shape index: {0}]   ;;  %s1370_s3 = inlined_call_operand.vmem [shape: f32[2,1,128], index: 3, kind: output, shape index: {1}]   ;;  %s1371_s4 = inlined_call_operand.vmem [shape: f32[2,1,128], index: 4, kind: output, shape index: {2}]  }
   0x1   :  { %s1196_s17 = smov 0  }
   0x2 LB: > { %s27_s18 = sadd.s32 1, %s1159_s16  ;;  %p933_p0 = scmp.ge.s32.totalorder %s1163_s17, 1  ;;  %s1163_s17 = sphi %s1196_s17, %s15_s17   ;;  %s1159_s16 = sphi %s1194_s16, %s1373_s16   ;;  %s1155_s15 = sphi %s1192_s15, %s1372_s15  }
   0x3   : > { %p29_p1 = scmp.ge.s32.totalorder %s27_s18, 2  ;;  %p199_p2 = scmp.lt.s32.totalorder %s1163_s17, 3 }
   0x5   : > { %s1375_s18 = smov (%p29_p1, %s27_s18), 0  ;;  %p200_p3 = pnand %p933_p0, %p199_p2 }
   0x6   : > { %s934_s27 = sshll.u32 (!%p200_p3), %s1155_s15, 1  ;;  %p265_p5 = scmp.lt.s32.totalorder (!%p200_p3), %s1155_s15, 1 }
   0x7   : > { %203 = sbr.rel (%p200_p3) target bundleno = 294 (0x126), region = 28  ;;  %p243_p4 = scmp.lt.s32.totalorder (!%p200_p3), %s934_s27, 3 }
   0xc   : > { %v1094_v0 = vld [vmem:[%s1368_s1 + $0x78] sm:$0xff]   ;;  %v1098_v4 = vld [vmem:[%s1368_s1 + $0x70] sm:$0xff]   ;;  %v1102_v8 = vld [vmem:[%s1368_s1 + $0x68] sm:$0xff]   ;;  %s1377_s27 = smov (!%p243_p4, %s934_s27), 3  ;;  %v1165_v34 = vmov 0.0   ;;  %vm1166_vm0 = vmmov 0  }
   0xd   : > { %v1095_v1 = vld [vmem:[%s1368_s1 + $0xf8] sm:$0xff]   ;;  %994 = vmatprep.subr.bf16.mxu0 %v1094_v0  ;;  %v1099_v5 = vld [vmem:[%s1368_s1 + $0xf0] sm:$0xff]   ;;  %v1103_v9 = vld [vmem:[%s1368_s1 + $0xe8] sm:$0xff]   ;;  %s1067_s29 = smul.u32 20, %s1377_s27  ;;  %s1379_s15 = smov (!%p265_p5, %s1155_s15), 1 }
   0xe   : > { %v1096_v2 = vld [vmem:[%s1368_s1 + $0x38] sm:$0xff]   ;;  %1016 = vmatprep.subr.bf16.mxu1 %v1095_v1  ;;  %v1100_v6 = vld [vmem:[%s1368_s1 + $0x30] sm:$0xff]   ;;  %v1104_v10 = vld [vmem:[%s1368_s1 + $0x28] sm:$0xff]   ;;  %s267_s23 = scalar_lea.vmem %s1370_s3, %s1379_s15  ;;  %s270_s26 = scalar_lea.vmem %s1371_s4, %s1379_s15 }
   0xf   : > { %v1097_v3 = vld [vmem:[%s1368_s1 + $0xb8] sm:$0xff]   ;;  %995 = vmatpush3.bf16.msra.mxu0 %v1096_v2  ;;  %v1101_v7 = vld [vmem:[%s1368_s1 + $0xb0] sm:$0xff]   ;;  %v1105_v11 = vld [vmem:[%s1368_s1 + $0xa8] sm:$0xff]   ;;  %s1309_s14 = scalar_lea.vmem %s1367_s0, %s1067_s29 }
  0x10   : > { %1017 = vmatpush3.bf16.msra.mxu1 %v1097_v3  ;;  %996 = vmatprep.subr.bf16.mxu0 %v1098_v4  ;;  %v1106_v12 = vld [vmem:[%s1368_s1 + $0x60] sm:$0xff]   ;;  %v1110_v16 = vld [vmem:[%s1368_s1 + $0x58] sm:$0xff]   ;;  %v1114_v20 = vld [vmem:[%s1368_s1 + $0x50] sm:$0xff]  }
  0x11   : > { %1018 = vmatprep.subr.bf16.mxu1 %v1099_v5  ;;  %v1107_v13 = vld [vmem:[%s1368_s1 + $0xe0] sm:$0xff]   ;;  %v1111_v17 = vld [vmem:[%s1368_s1 + $0xd8] sm:$0xff]   ;;  %v1115_v21 = vld [vmem:[%s1368_s1 + $0xd0] sm:$0xff]  }
  0x12   : > { %v1108_v14 = vld [vmem:[%s1368_s1 + $0x20] sm:$0xff]   ;;  %v1112_v18 = vld [vmem:[%s1368_s1 + $0x18] sm:$0xff]   ;;  %v1116_v22 = vld [vmem:[%s1368_s1 + $0x10] sm:$0xff]  }
  0x13   : > { %997 = vmatpush3.bf16.msra.mxu0 %v1100_v6  ;;  %v1109_v15 = vld [vmem:[%s1368_s1 + $0xa0] sm:$0xff]   ;;  %v1113_v19 = vld [vmem:[%s1368_s1 + $0x98] sm:$0xff]   ;;  %v1117_v23 = vld [vmem:[%s1368_s1 + $0x90] sm:$0xff]  }
  0x14   : > { %1019 = vmatpush3.bf16.msra.mxu1 %v1101_v7  ;;  %998 = vmatprep.subr.bf16.mxu0 %v1102_v8  ;;  %v1118_v24 = vld [vmem:[%s1368_s1 + $0x48] sm:$0xff]   ;;  %v1122_v28 = vld [vmem:[%s1368_s1 + $0x40] sm:$0xff]   ;;  %v1132_v37 = vld [vmem:[%s1368_s1 + $0x138] sm:$0xff]  }
  0x15   : > { %1020 = vmatprep.subr.bf16.mxu1 %v1103_v9  ;;  %v1119_v25 = vld [vmem:[%s1368_s1 + $0xc8] sm:$0xff]   ;;  %v1123_v29 = vld [vmem:[%s1368_s1 + $0xc0] sm:$0xff]   ;;  %v1133_v38 = vld [vmem:[%s1368_s1 + $0x130] sm:$0xff]  }
  0x16   : > { %v1120_v26 = vld [vmem:[%s1368_s1 + $0x8] sm:$0xff]   ;;  %v1124_v30 = vld [vmem:[%s1368_s1] sm:$0xff]   ;;  %v1136_v41 = vld [vmem:[%s1368_s1 + $0x118] sm:$0xff]  }
  0x17   : > { %999 = vmatpush3.bf16.msra.mxu0 %v1104_v10  ;;  %v1121_v27 = vld [vmem:[%s1368_s1 + $0x88] sm:$0xff]   ;;  %v1125_v31 = vld [vmem:[%s1368_s1 + $0x80] sm:$0xff]   ;;  %v1137_v42 = vld [vmem:[%s1368_s1 + $0x110] sm:$0xff]  }
  0x18   : > { %1021 = vmatpush3.bf16.msra.mxu1 %v1105_v11  ;;  %1000 = vmatprep.subr.bf16.mxu0 %v1106_v12  ;;  %v1126_v32 = vld [vmem:[%s1309_s14] ss:$20 sps:$4 sm:$0xff]   ;;  %v1128_v33 = vld [vmem:[%s1309_s14 + $0x4] ss:$20 sps:$4 sm:$0xff]   ;;  %v1129_v35 = vld [vmem:[%s1309_s14 + $0x8] ss:$20 sps:$4 sm:$0xff]  }
  0x19   : > { %1022 = vmatprep.subr.bf16.mxu1 %v1107_v13  ;;  %v1131_v36 = vld [vmem:[%s1309_s14 + $0xc] ss:$20 sps:$4 sm:$0xff]   ;;  %664 = vmatprep.mubr.bf16.mxu0 %v1128_v33  ;;  %v1140_v45 = vld [vmem:[%s1309_s14 + $0x10] ss:$20 sps:$4 sm:$0xff]   ;;  %s937_s14 = sshll.u32 %s1377_s27, 2 }
  0x1a   : > { %705 = vmatprep.mubr.bf16.mxu1 %v1131_v36  ;;  %v1134_v39 = vld [vmem:[%s1368_s1 + $0x128] sm:$0xff]   ;;  %v1135_v40 = vld [vmem:[%s1368_s1 + $0x120] sm:$0xff]   ;;  %s263_s21 = scalar_lea.vmem %s1369_s2, %s937_s14 }
  0x1b   : > { %1001 = vmatpush3.bf16.msra.mxu0 %v1108_v14  ;;  %v1138_v43 = vld [vmem:[%s1368_s1 + $0x108] sm:$0xff]   ;;  %v1139_v44 = vld [vmem:[%s1368_s1 + $0x100] sm:$0xff]  }
  0x1c   : > { %1023 = vmatpush3.bf16.msra.mxu1 %v1109_v15  ;;  %1002 = vmatprep.subr.bf16.mxu0 %v1110_v16 }
  0x1d   : > { %1024 = vmatprep.subr.bf16.mxu1 %v1111_v17 }
  0x1f   : > { %1003 = vmatpush3.bf16.msra.mxu0 %v1112_v18 }
  0x20   : > { %1025 = vmatpush3.bf16.msra.mxu1 %v1113_v19  ;;  %1004 = vmatprep.subr.bf16.mxu0 %v1114_v20 }
  0x21   : > { %1026 = vmatprep.subr.bf16.mxu1 %v1115_v21 }
  0x23   : > { %1005 = vmatpush3.bf16.msra.mxu0 %v1116_v22 }
  0x24   : > { %1027 = vmatpush3.bf16.msra.mxu1 %v1117_v23  ;;  %1006 = vmatprep.subr.bf16.mxu0 %v1118_v24 }
  0x25   : > { %1028 = vmatprep.subr.bf16.mxu1 %v1119_v25 }
  0x27   : > { %1007 = vmatpush3.bf16.msra.mxu0 %v1120_v26 }
  0x28   : > { %1029 = vmatpush3.bf16.msra.mxu1 %v1121_v27  ;;  %1008 = vmatprep.subr.bf16.mxu0 %v1122_v28 }
  0x29   : > { %1030 = vmatprep.subr.bf16.mxu1 %v1123_v29 }
  0x2b   : > { %1009 = vmatpush3.bf16.msra.mxu0 %v1124_v30 }
  0x2c   : > { %1031 = vmatpush3.bf16.msra.mxu1 %v1125_v31  ;;  %1047 = vmatprep.subr.bf16.mxu0 %v1165_v34 }
  0x2e   : > { %665 = vmatmul.mubr.bf16.vlgmr.msra.gmra.mxu0 %v1126_v32 }
  0x2f   : > { %706 = vmatmul.mubr.bf16.vlgmr.msra.gmra.mxu1 %v1129_v35  ;;  %1048 = vmatpush3.bf16.msra.mxu0 %v1132_v37 }
  0x30   : > { %1049 = vmatprep.subr.bf16.mxu0 %v1165_v34  ;;  %1063 = vmatprep.mubr.msk.bf16.mxu0 %vm1166_vm0, %v1165_v34 }
  0x33   : > { %1050 = vmatpush3.bf16.msra.mxu0 %v1133_v38 }
  0x34   : > { %1051 = vmatprep.subr.bf16.mxu0 %v1165_v34 }
  0x37   : > { %1052 = vmatpush3.bf16.msra.mxu0 %v1134_v39 }
  0x38   : > { %1053 = vmatprep.subr.bf16.mxu0 %v1165_v34 }
  0x3b   : > { %1054 = vmatpush3.bf16.msra.mxu0 %v1135_v40 }
  0x3c   : > { %1055 = vmatprep.subr.bf16.mxu0 %v1165_v34 }
  0x3f   : > { %1056 = vmatpush3.bf16.msra.mxu0 %v1136_v41 }
  0x40   : > { %1057 = vmatprep.subr.bf16.mxu0 %v1165_v34 }
  0x43   : > { %1058 = vmatpush3.bf16.msra.mxu0 %v1137_v42 }
  0x44   : > { %1059 = vmatprep.subr.bf16.mxu0 %v1165_v34 }
  0x47   : > { %1060 = vmatpush3.bf16.msra.mxu0 %v1138_v43 }
  0x48   : > { %1061 = vmatprep.subr.bf16.mxu0 %v1165_v34 }
  0x4b   : > { %1062 = vmatpush3.bf16.msra.mxu0 %v1139_v44 }
  0x4e   : > { %1064 = vmatmul.mubr.bf16.vlgmr.msra.gmra.mxu0 %v1140_v45 }
  0xee   : > { %v1010_v46 = vpop.f32.mrf.mxu0 }
  0xef   : > { %v1032_v47 = vpop.f32.mrf.mxu1 }
  0xf0   : > { %v1011_v48 = vpop.f32.mrf.mxu0 }
  0xf1   : > { %v1033_v49 = vpop.f32.mrf.mxu1  ;;  %v1012_v54 = vadd.f32 %v1011_v48, %v1010_v46 }
  0xf2   : > { %v1013_v50 = vpop.f32.mrf.mxu0  ;;  %v1034_v55 = vadd.f32 %v1033_v49, %v1032_v47 }
  0xf3   : > { %v1035_v51 = vpop.f32.mrf.mxu1 }
  0xf4   : > { %v1014_v52 = vpop.f32.mrf.mxu0  ;;  %v708_v59 = vadd.f32 %v1034_v55, %v1012_v54 }
  0xf5   : > { %v1036_v53 = vpop.f32.mrf.mxu1  ;;  %v1015_v56 = vadd.f32 %v1014_v52, %v1013_v50 }
  0xf6   : > { %v1037_v57 = vadd.f32 %v1036_v53, %v1035_v51 }
  0xf8   : > { %v711_v62 = vadd.f32 %v1037_v57, %v1015_v56 }
 0x10e   : > { %v748_v58 = vpop.f32.mrf.mxu0 }
 0x10f   : > { %v749_v61 = vadd.f32 %v748_v58, %v708_v59 }
 0x110   : > { %v1065_v60 = vpop.f32.mrf.mxu0 }
 0x111   : > { %v782_v2 = vmul.f32 %v749_v61, %v749_v61 }
 0x112   : > { %v751_v63 = vpop.f32.mrf.mxu0 }
 0x113   : > { %v752_v0 = vadd.f32 %v751_v63, %v711_v62 }
 0x114   : > { %v1066_v1 = vpop.f32.mrf.mxu0 }
 0x115   : > { %v992_v3 = vpack.c.bf16 %v752_v0, %v749_v61  ;;  %v774_v4 = vadd.f32 %v752_v0, %v749_v61  ;;  %v783_v5 = vmul.f32 %v752_v0, %v752_v0 }
 0x117   : > { %993 = vst [vmem:[%s263_s21] sm:$0xff] %v992_v3   ;;  %v775_v6 = vrot.slane %v774_v4, 4  ;;  %v784_v7 = vadd.f32 %v783_v5, %v782_v2 }
 0x119   : > { %v776_v8 = vadd.f32 %v775_v6, %v774_v4  ;;  %v785_v9 = vrot.slane %v784_v7, 4 }
 0x11b   : > { %v777_v10 = vrot.slane %v776_v8, 2  ;;  %v786_v11 = vadd.f32 %v785_v9, %v784_v7 }
 0x11d   : > { %v778_v12 = vadd.f32 %v777_v10, %v776_v8  ;;  %v787_v13 = vrot.slane %v786_v11, 2 }
 0x11f   : > { %v779_v14 = vrot.slane %v778_v12, 1  ;;  %v788_v15 = vadd.f32 %v787_v13, %v786_v11 }
 0x121   : > { %v780_v16 = vadd.f32 %v779_v14, %v778_v12  ;;  %v789_v17 = vrot.slane %v788_v15, 1 }
 0x123   : > { %781 = vst [vmem:[%s267_s23] sm:$0x1] %v780_v16  ;;  %v790_v18 = vadd.f32 %v789_v17, %v788_v15 }
 0x125   : > { %791 = vst [vmem:[%s270_s26] sm:$0x1] %v790_v18 }
 0x126 PF: > { %s15_s17 = sadd.s32 1, %s1163_s17   ;;  %s1372_s15 = smov %s1159_s16 }
 0x127   : > { %p12_p6 = scmp.ge.s32.totalorder %s15_s17, 4   ;;  %s1373_s16 = smov %s1375_s18 }
 0x129   :  { %14 = sbr.rel (!%p12_p6) target bundleno = 2 (0x2), region = 93 }

// kernel: resnet18_forward.60
= control target key start
LH: loop header
LB: loop body
LE: loop exit
PB: predicated region body
PF: predicated region fallthrough
CT: control target
= control target key end

     0   :  { %s136_s0 = inlined_call_operand.vmem [shape: bf16[32,128], index: 0, kind: input, shape index: {}]   ;;  %s137_s1 = inlined_call_operand.vmem [shape: f32[1,128], index: 1, kind: input, shape index: {}]   ;;  %s138_s2 = inlined_call_operand.vmem [shape: f32[1,128], index: 2, kind: input, shape index: {}]   ;;  %s139_s3 = inlined_call_operand.vmem [shape: bf16[32,128], index: 3, kind: output, shape index: {}]  }
   0x1   :  { %v79_v0 = vld [vmem:[%s136_s0] sm:$0xff]   ;;  %v96_v4 = vld [vmem:[%s136_s0 + $0x8] sm:$0xff]  }
   0x2   :  { %v68_v1 = vld [vmem:[%s137_s1] ss:$0 sm:$0xff]  ;;  %v80_v2 = vunpack.c.l.bf16 %v79_v0  ;;  %v81_v3 = vunpack.c.h.bf16 %v79_v0  ;;  %v84_v6 = vunpack.c.l.bf16 %v96_v4  ;;  %v85_v7 = vunpack.c.h.bf16 %v96_v4 }
   0x3   :  { %v69_v5 = vld [vmem:[%s138_s2] ss:$0 sm:$0xff] }
   0x4   :  { %v29_v8 = vmul.f32 %v80_v2, %v68_v1  ;;  %v30_v9 = vmul.f32 %v81_v3, %v68_v1  ;;  %v31_v10 = vmul.f32 %v84_v6, %v68_v1  ;;  %v32_v11 = vmul.f32 %v85_v7, %v68_v1 }
   0x6   :  { %v40_v12 = vadd.f32 %v69_v5, %v29_v8  ;;  %v41_v13 = vadd.f32 %v69_v5, %v30_v9  ;;  %v42_v14 = vadd.f32 %v69_v5, %v31_v10  ;;  %v43_v15 = vadd.f32 %v69_v5, %v32_v11 }
   0x8   :  { %v89_v16 = vpack.c.bf16 %v41_v13, %v40_v12  ;;  %v94_v17 = vpack.c.bf16 %v43_v15, %v42_v14 }
   0xa   :  { %90 = vst [vmem:[%s139_s3] sm:$0xff] %v89_v16   ;;  %97 = vst [vmem:[%s139_s3 + $0x8] sm:$0xff] %v94_v17  }

// kernel: resnet18_forward.59
= control target key start
LH: loop header
LB: loop body
LE: loop exit
PB: predicated region body
PF: predicated region fallthrough
CT: control target
= control target key end

     0   :  { %s700_s15 = smov 0   ;;  %s702_s16 = smov 0   ;;  %s768_s0 = inlined_call_operand.vmem [shape: bf16[32,128], index: 0, kind: input, shape index: {}]   ;;  %s769_s1 = inlined_call_operand.vmem [shape: bf16[128,128], index: 1, kind: input, shape index: {}]   ;;  %s770_s2 = inlined_call_operand.vmem [shape: bf16[32,128], index: 2, kind: output, shape index: {0}]   ;;  %s771_s3 = inlined_call_operand.vmem [shape: f32[2,1,128], index: 3, kind: output, shape index: {1}]   ;;  %s772_s4 = inlined_call_operand.vmem [shape: f32[2,1,128], index: 4, kind: output, shape index: {2}]  }
   0x1   :  { %s704_s17 = smov 0  }
   0x2 LB: > { %s27_s18 = sadd.s32 1, %s667_s16  ;;  %p560_p0 = scmp.ge.s32.totalorder %s671_s17, 1  ;;  %s671_s17 = sphi %s704_s17, %s15_s17   ;;  %s667_s16 = sphi %s702_s16, %s774_s16   ;;  %s663_s15 = sphi %s700_s15, %s773_s15  }
   0x3   : > { %p29_p1 = scmp.ge.s32.totalorder %s27_s18, 2  ;;  %p196_p2 = scmp.lt.s32.totalorder %s671_s17, 3 }
   0x5   : > { %s776_s18 = smov (%p29_p1, %s27_s18), 0  ;;  %p197_p3 = pnand %p560_p0, %p196_p2 }
   0x6   : > { %s561_s23 = sshll.u32 (!%p197_p3), %s663_s15, 1  ;;  %p257_p5 = scmp.lt.s32.totalorder (!%p197_p3), %s663_s15, 1 }
   0x7   : > { %200 = sbr.rel (%p197_p3) target bundleno = 259 (0x103), region = 28  ;;  %p237_p4 = scmp.lt.s32.totalorder (!%p197_p3), %s561_s23, 3 }
   0xc   : > { %v640_v0 = vld [vmem:[%s769_s1 + $0x38] sm:$0xff]   ;;  %v673_v1 = vmov 0.0   ;;  %v641_v2 = vld [vmem:[%s769_s1 + $0x30] sm:$0xff]   ;;  %vm674_vm0 = vmmov 0   ;;  %s778_s23 = smov (!%p237_p4, %s561_s23), 3  ;;  %v642_v3 = vld [vmem:[%s769_s1 + $0x28] sm:$0xff]  }
   0xd   : > { %594 = vmatprep.subr.bf16.mxu0 %v673_v1  ;;  %610 = vmatprep.mubr.msk.bf16.mxu0 %vm674_vm0, %v673_v1  ;;  %s562_s26 = sshll.u32 %s778_s23, 2  ;;  %v643_v4 = vld [vmem:[%s769_s1 + $0x20] sm:$0xff]   ;;  %v644_v5 = vld [vmem:[%s769_s1 + $0x18] sm:$0xff]   ;;  %v645_v6 = vld [vmem:[%s769_s1 + $0x10] sm:$0xff]   ;;  %s780_s15 = smov (!%p257_p5, %s663_s15), 1 }
   0xe   : > { %595 = vmatpush3.bf16.msra.mxu0 %v640_v0  ;;  %s243_s29 = scalar_lea.vmem %s768_s0, %s562_s26  ;;  %v646_v7 = vld [vmem:[%s769_s1 + $0x8] sm:$0xff]   ;;  %v647_v8 = vld [vmem:[%s769_s1] sm:$0xff]   ;;  %s255_s20 = scalar_lea.vmem %s770_s2, %s562_s26 }
   0xf   : > { %596 = vmatprep.subr.bf16.mxu0 %v673_v1  ;;  %v648_v9 = vld [vmem:[%s243_s29] sm:$0xff]   ;;  %s259_s23 = scalar_lea.vmem %s771_s3, %s780_s15  ;;  %s262_s26 = scalar_lea.vmem %s772_s4, %s780_s15 }
  0x12   : > { %597 = vmatpush3.bf16.msra.mxu0 %v641_v2 }
  0x13   : > { %598 = vmatprep.subr.bf16.mxu0 %v673_v1 }
  0x16   : > { %599 = vmatpush3.bf16.msra.mxu0 %v642_v3 }
  0x17   : > { %600 = vmatprep.subr.bf16.mxu0 %v673_v1 }
  0x1a   : > { %601 = vmatpush3.bf16.msra.mxu0 %v643_v4 }
  0x1b   : > { %602 = vmatprep.subr.bf16.mxu0 %v673_v1 }
  0x1e   : > { %603 = vmatpush3.bf16.msra.mxu0 %v644_v5 }
  0x1f   : > { %604 = vmatprep.subr.bf16.mxu0 %v673_v1 }
  0x22   : > { %605 = vmatpush3.bf16.msra.mxu0 %v645_v6 }
  0x23   : > { %606 = vmatprep.subr.bf16.mxu0 %v673_v1 }
  0x26   : > { %607 = vmatpush3.bf16.msra.mxu0 %v646_v7 }
  0x27   : > { %608 = vmatprep.subr.bf16.mxu0 %v673_v1 }
  0x2a   : > { %609 = vmatpush3.bf16.msra.mxu0 %v647_v8 }
  0x2d   : > { %611 = vmatmul.mubr.bf16.vlgmr.msra.gmra.mxu0 %v648_v9 }
  0xed   : > { %v378_v10 = vpop.f32.mrf.mxu0 }
  0xee   : > { %v412_v13 = vmul.f32 %v378_v10, %v378_v10 }
  0xef   : > { %v612_v11 = vpop.f32.mrf.mxu0 }
  0xf1   : > { %v381_v12 = vpop.f32.mrf.mxu0 }
  0xf2   : > { %v583_v14 = vpack.c.bf16 %v381_v12, %v378_v10  ;;  %v404_v15 = vadd.f32 %v381_v12, %v378_v10  ;;  %v413_v16 = vmul.f32 %v381_v12, %v381_v12 }
  0xf3   : > { %v613_v17 = vpop.f32.mrf.mxu0 }
  0xf4   : > { %584 = vst [vmem:[%s255_s20] sm:$0xff] %v583_v14   ;;  %v405_v18 = vrot.slane %v404_v15, 4  ;;  %v414_v19 = vadd.f32 %v413_v16, %v412_v13 }
  0xf6   : > { %v406_v20 = vadd.f32 %v405_v18, %v404_v15  ;;  %v415_v21 = vrot.slane %v414_v19, 4 }
  0xf8   : > { %v407_v22 = vrot.slane %v406_v20, 2  ;;  %v416_v23 = vadd.f32 %v415_v21, %v414_v19 }
  0xfa   : > { %v408_v24 = vadd.f32 %v407_v22, %v406_v20  ;;  %v417_v25 = vrot.slane %v416_v23, 2 }
  0xfc   : > { %v409_v26 = vrot.slane %v408_v24, 1  ;;  %v418_v27 = vadd.f32 %v417_v25, %v416_v23 }
  0xfe   : > { %v410_v28 = vadd.f32 %v409_v26, %v408_v24  ;;  %v419_v29 = vrot.slane %v418_v27, 1 }
 0x100   : > { %411 = vst [vmem:[%s259_s23] sm:$0x1] %v410_v28  ;;  %v420_v30 = vadd.f32 %v419_v29, %v418_v27 }
 0x102   : > { %421 = vst [vmem:[%s262_s26] sm:$0x1] %v420_v30 }
 0x103 PF: > { %s15_s17 = sadd.s32 1, %s671_s17   ;;  %s773_s15 = smov %s667_s16 }
 0x104   : > { %p12_p6 = scmp.ge.s32.totalorder %s15_s17, 4   ;;  %s774_s16 = smov %s776_s18 }
 0x106   :  { %14 = sbr.rel (!%p12_p6) target bundleno = 2 (0x2), region = 93 }

// kernel: resnet18_forward.58
= control target key start
LH: loop header
LB: loop body
LE: loop exit
PB: predicated region body
PF: predicated region fallthrough
CT: control target
= control target key end

     0   :  { %s1057_s15 = smov 0   ;;  %s1059_s16 = smov 0   ;;  %s1207_s0 = inlined_call_operand.vmem [shape: bf16[32,1152], index: 0, kind: input, shape index: {}]   ;;  %s1208_s1 = inlined_call_operand.vmem [shape: bf16[1152,128], index: 1, kind: input, shape index: {}]   ;;  %s1209_s2 = inlined_call_operand.vmem [shape: bf16[32,128], index: 2, kind: output, shape index: {0}]   ;;  %s1210_s3 = inlined_call_operand.vmem [shape: f32[2,1,128], index: 3, kind: output, shape index: {1}]   ;;  %s1211_s4 = inlined_call_operand.vmem [shape: f32[2,1,128], index: 4, kind: output, shape index: {2}]  }
   0x1   :  { %s1061_s17 = smov 0   ;;  %s1063_s18 = smov 0  }
   0x2   :  { %s1065_s19 = smov 0   ;;  %s1067_s20 = smov 0  }
   0x3   :  { %s1069_s21 = smov 0  }
   0x4 LB: > { %s24_s22 = sadd.s32 1, %s1019_s19  ;;  %s27_s23 = sadd.s32 1, %s1023_s20  ;;  %s1027_s21 = sphi %s1069_s21, %s15_s21   ;;  %s1023_s20 = sphi %s1067_s20, %s1217_s20   ;;  %s1019_s19 = sphi %s1065_s19, %s1216_s19   ;;  %s1015_s18 = sphi %s1063_s18, %s1215_s18   ;;  %s1011_s17 = sphi %s1061_s17, %s1214_s17   ;;  %s1007_s16 = sphi %s1059_s16, %s1213_s16   ;;  %s1003_s15 = sphi %s1057_s15, %s1212_s15  }
   0x5   : > { %p25_p0 = scmp.ge.s32.totalorder %s24_s22, 3  ;;  %p43_p1 = scmp.ne.s32.totalorder %s1007_s16, %s1003_s15 }
   0x6   : > { %p44_p2 = scmp.eq.s32.totalorder %s1027_s21, 0  ;;  %s36_s27 = sadd.s32 1, %s1007_s16 }
   0x7   : > { %s1219_s22 = smov (%p25_p0, %s24_s22), 0  ;;  %s1221_s23 = smov (!%p25_p0, %s27_s23), %s1023_s20 }
   0x8   : > { %p45_p3 = por %p44_p2, %p43_p1  ;;  %p29_p4 = scmp.ge.s32.totalorder %s1221_s23, 2 }
   0x9   : > { %s32_s24 = ssub.s32 %s1019_s19, %s1219_s22  ;;  %p780_p6 = scmp.ge.s32.totalorder %s1027_s21, 6 }
   0xa   : > { %s1223_s23 = smov (%p29_p4, %s1221_s23), 0 }
   0xb   : > { %s31_s25 = ssub.s32 %s1023_s20, %s1223_s23  ;;  %173 = sbr.rel (%p780_p6) target bundleno = 27 (0x1b), region = 16 }
   0xc   : > { %s33_s26 = sor.u32 %s32_s24, %s31_s25 }
   0xd   : > { %p34_p5 = scmp.eq.s32.totalorder %s33_s26, 0 }
   0xf   : > { %s1108_s28 = scalar_select %p34_p5, %s1007_s16, %s36_s27  }
  0x10   : > { %176 = sbr.rel (!%p45_p3) target bundleno = 27 (0x1b), region = 20  ;;  %s178_s29 = sand.u32 (%p45_p3), 1, %s1007_s16  }
  0x11   : > { %s182_s30 = smul.u32 (%p45_p3), 3, %s1019_s19 }
  0x12   : > { %s883_s5 = smul.u32 (%p45_p3), 24, %s178_s29 }
  0x13   : > { %s884_s6 = smul.u32 (%p45_p3), 18, %s1023_s20 }
  0x14   : > { %s180_s12 = scalar_lea.vmem (%p45_p3), [#allocation3], %s883_s5 }
  0x15   : > { %s184_s7 = sadd.s32 %s884_s6, %s182_s30 }
  0x16   : > { %s783_s8 = sshll.u32 %s184_s7, 2 }
  0x17   : > { %s186_s11 = scalar_lea.vmem %s1207_s0, %s783_s8 }
  0x18   : > { %v201_v0 = vld [vmem:[%s186_s11] sm:$0xff]  ;;  %v784_v2 = vld [vmem:[%s186_s11 + $0x8] sm:$0xf]  ;;  %v786_v3 = vld [vmem:[%s186_s11 + $0x2c] sm:$0xf] }
  0x19   : > { %v203_v1 = vld [vmem:[%s186_s11 + $0x24] sm:$0xff]  ;;  %202 = vst [vmem:[%s180_s12] sm:$0xff] %v201_v0  ;;  %785 = vst [vmem:[%s180_s12 + $0x8] sm:$0xf] %v784_v2 }
  0x1a   : > { %204 = vst [vmem:[%s180_s12 + $0xc] sm:$0xff] %v203_v1  ;;  %787 = vst [vmem:[%s180_s12 + $0x14] sm:$0xf] %v786_v3 }
  0x1b PF: > { %p788_p7 = scmp.ge.s32.totalorder %s1027_s21, 1  ;;  %p230_p8 = scmp.lt.s32.totalorder %s1027_s21, 7 }
  0x1d   : > { %p231_p9 = pnand %p788_p7, %p230_p8 }
  0x1e   : > { %s237_s13 = sand.u32 (!%p231_p9), 1, %s1003_s15   ;;  %s275_s14 = smul.u32 (!%p231_p9), 48, %s1011_s17 }
  0x1f   : > { %234 = sbr.rel (%p231_p9) target bundleno = 312 (0x138), region = 50  ;;  %s790_s25 = sshll.u32 (!%p231_p9), %s1015_s18, 1 }
  0x20   : > { %s885_s24 = smul.u32 (!%p231_p9), 24, %s237_s13  ;;  %p276_p10 = scmp.lt.s32.totalorder (!%p231_p9), %s275_s14, 143 }
  0x21   : > { %p282_p11 = scmp.lt.s32.totalorder (!%p231_p9), %s790_s25, 3  ;;  %p287_p12 = scmp.lt.s32.totalorder (!%p231_p9), %s1015_s18, 1 }
  0x22   : > { %p792_p13 = scmp.ne.s32.totalorder (!%p231_p9), %s1011_s17, 0 }
  0x24   : > { %s1225_s14 = smov (!%p276_p10, %s275_s14), 143  ;;  %s1227_s25 = smov (!%p282_p11, %s790_s25), 3 }
  0x25   : > { %s789_s26 = sshll.u32 %s1225_s14, 2  ;;  %s791_s5 = sshll.u32 %s1227_s25, 2 }
  0x26   : > { %s1126_s30 = scalar_lea.vmem %s1208_s1, %s789_s26  ;;  %s1131_s8 = scalar_lea.vmem %s1209_s2, %s791_s5 }
  0x27   : > { %s1229_s18 = smov (!%p287_p12, %s1015_s18), 1  ;;  %s1144_s14 = scalar_lea.vmem [#allocation3], %s885_s24 }
  0x28   : > { %s289_s10 = scalar_lea.vmem %s1210_s3, %s1229_s18  ;;  %s292_s13 = scalar_lea.vmem %s1211_s4, %s1229_s18 }
  0x29   : > { %297 = sbr.rel (%p792_p13) target bundleno = 48 (0x30), region = 58 }
  0x2e   : > { %v1029_v4 = vmov 0.0  }
  0x2f   : > { %298 = vst [vmem:[#allocation2] sm:$0xff] %v1029_v4  ;;  %299 = vst [vmem:[#allocation2 + $0x8] sm:$0xff] %v1029_v4 }
  0x30 PF: > { %v945_v5 = vld [vmem:[%s1126_s30 + $0x78] sm:$0xff]   ;;  %v1030_v6 = vmov 0.0   ;;  %vm1031_vm0 = vmmov 0   ;;  %v948_v9 = vld [vmem:[%s1126_s30 + $0x70] sm:$0xff]   ;;  %v951_v12 = vld [vmem:[%s1126_s30 + $0x68] sm:$0xff]   ;;  %p820_p0 = scmp.ne.s32.totalorder %s1011_s17, 2 }
  0x31   : > { %863 = vmatprep.subr.bf16.mxu1 %v1030_v6  ;;  %v946_v7 = vld [vmem:[%s1126_s30 + $0xb8] sm:$0xff]   ;;  %832 = vmatprep.subr.bf16.mxu0 %v945_v5  ;;  %v949_v10 = vld [vmem:[%s1126_s30 + $0xb0] sm:$0xff]   ;;  %v952_v13 = vld [vmem:[%s1126_s30 + $0xa8] sm:$0xff]  }
  0x32   : > { %v947_v8 = vld [vmem:[%s1126_s30 + $0x38] sm:$0xff]   ;;  %879 = vmatprep.mubr.msk.bf16.mxu1 %vm1031_vm0, %v1030_v6  ;;  %864 = vmatpush3.bf16.msra.mxu1 %v946_v7  ;;  %v950_v11 = vld [vmem:[%s1126_s30 + $0x30] sm:$0xff]   ;;  %v953_v14 = vld [vmem:[%s1126_s30 + $0x28] sm:$0xff]  }
  0x33   : > { %833 = vmatpush3.bf16.msra.mxu0 %v947_v8  ;;  %865 = vmatprep.subr.bf16.mxu1 %v1030_v6  ;;  %v954_v15 = vld [vmem:[%s1126_s30 + $0x60] sm:$0xff]   ;;  %v957_v18 = vld [vmem:[%s1126_s30 + $0x58] sm:$0xff]   ;;  %v960_v21 = vld [vmem:[%s1126_s30 + $0x50] sm:$0xff]  }
  0x34   : > { %834 = vmatprep.subr.bf16.mxu0 %v948_v9  ;;  %v955_v16 = vld [vmem:[%s1126_s30 + $0xa0] sm:$0xff]   ;;  %v958_v19 = vld [vmem:[%s1126_s30 + $0x98] sm:$0xff]   ;;  %v961_v22 = vld [vmem:[%s1126_s30 + $0x90] sm:$0xff]  }
  0x35   : > { %v956_v17 = vld [vmem:[%s1126_s30 + $0x20] sm:$0xff]   ;;  %v959_v20 = vld [vmem:[%s1126_s30 + $0x18] sm:$0xff]   ;;  %v962_v23 = vld [vmem:[%s1126_s30 + $0x10] sm:$0xff]  }
  0x36   : > { %866 = vmatpush3.bf16.msra.mxu1 %v949_v10  ;;  %v963_v24 = vld [vmem:[%s1126_s30 + $0x48] sm:$0xff]   ;;  %v966_v27 = vld [vmem:[%s1126_s30 + $0x40] sm:$0xff]  }
  0x37   : > { %835 = vmatpush3.bf16.msra.mxu0 %v950_v11  ;;  %867 = vmatprep.subr.bf16.mxu1 %v1030_v6  ;;  %v964_v25 = vld [vmem:[%s1126_s30 + $0x88] sm:$0xff]   ;;  %v967_v29 = vld [vmem:[%s1126_s30 + $0x80] sm:$0xff]  }
  0x38   : > { %836 = vmatprep.subr.bf16.mxu0 %v951_v12  ;;  %v965_v26 = vld [vmem:[%s1126_s30 + $0x8] sm:$0xff]   ;;  %v968_v30 = vld [vmem:[%s1126_s30] sm:$0xff]  }
  0x39   : > { %v971_v28 = vld [vmem:[%s1144_s14 + $0x4] ss:$12 sps:$4 sm:$0xff]   ;;  %v972_v31 = vld [vmem:[%s1144_s14 + $0x8] ss:$12 sps:$4 sm:$0xff]   ;;  %v969_v32 = vld [vmem:[%s1144_s14] ss:$12 sps:$4 sm:$0xff]  }
  0x3a   : > { %868 = vmatpush3.bf16.msra.mxu1 %v952_v13  ;;  %546 = vmatprep.mubr.bf16.mxu0 %v971_v28  ;;  %v300_v39 = vld [vmem:[#allocation2] sm:$0xff]  ;;  %v301_v46 = vld [vmem:[#allocation2 + $0x8] sm:$0xff] }
  0x3b   : > { %837 = vmatpush3.bf16.msra.mxu0 %v953_v14  ;;  %869 = vmatprep.subr.bf16.mxu1 %v1030_v6 }
  0x3c   : > { %838 = vmatprep.subr.bf16.mxu0 %v954_v15 }
  0x3e   : > { %870 = vmatpush3.bf16.msra.mxu1 %v955_v16 }
  0x3f   : > { %839 = vmatpush3.bf16.msra.mxu0 %v956_v17  ;;  %871 = vmatprep.subr.bf16.mxu1 %v1030_v6 }
  0x40   : > { %840 = vmatprep.subr.bf16.mxu0 %v957_v18 }
  0x42   : > { %872 = vmatpush3.bf16.msra.mxu1 %v958_v19 }
  0x43   : > { %841 = vmatpush3.bf16.msra.mxu0 %v959_v20  ;;  %873 = vmatprep.subr.bf16.mxu1 %v1030_v6 }
  0x44   : > { %842 = vmatprep.subr.bf16.mxu0 %v960_v21 }
  0x46   : > { %874 = vmatpush3.bf16.msra.mxu1 %v961_v22 }
  0x47   : > { %843 = vmatpush3.bf16.msra.mxu0 %v962_v23  ;;  %875 = vmatprep.subr.bf16.mxu1 %v1030_v6 }
  0x48   : > { %844 = vmatprep.subr.bf16.mxu0 %v963_v24 }
  0x4a   : > { %876 = vmatpush3.bf16.msra.mxu1 %v964_v25 }
  0x4b   : > { %845 = vmatpush3.bf16.msra.mxu0 %v965_v26  ;;  %877 = vmatprep.subr.bf16.mxu1 %v1030_v6 }
  0x4c   : > { %846 = vmatprep.subr.bf16.mxu0 %v966_v27 }
  0x4e   : > { %878 = vmatpush3.bf16.msra.mxu1 %v967_v29 }
  0x4f   : > { %847 = vmatpush3.bf16.msra.mxu0 %v968_v30 }
  0x51   : > { %880 = vmatmul.mubr.bf16.vlgmr.msra.gmra.mxu1 %v972_v31 }
  0x52   : > { %547 = vmatmul.mubr.bf16.vlgmr.msra.gmra.mxu0 %v969_v32 }
 0x111   : > { %v589_v33 = vpop.f32.mrf.mxu1 }
 0x112   : > { %v848_v34 = vpop.f32.mrf.mxu0 }
 0x113   : > { %v881_v35 = vpop.f32.mrf.mxu1 }
 0x114   : > { %v849_v36 = vpop.f32.mrf.mxu0 }
 0x115   : > { %v850_v37 = vadd.f32 %v849_v36, %v848_v34  ;;  %v592_v38 = vpop.f32.mrf.mxu1 }
 0x116   : > { %v851_v40 = vpop.f32.mrf.mxu0 }
 0x117   : > { %v590_v41 = vadd.f32 %v850_v37, %v589_v33  ;;  %v882_v42 = vpop.f32.mrf.mxu1 }
 0x118   : > { %v852_v43 = vpop.f32.mrf.mxu0 }
 0x119   : > { %v596_v44 = vadd.f32 %v590_v41, %v300_v39  ;;  %v853_v45 = vadd.f32 %v852_v43, %v851_v40 }
 0x11b   : > { %598 = vst [vmem:[#allocation2] sm:$0xff] %v596_v44  ;;  %v593_v47 = vadd.f32 %v853_v45, %v592_v38  ;;  %603 = sbr.rel (%p820_p0) target bundleno = 312 (0x138), region = 62 }
 0x11d   : > { %v597_v48 = vadd.f32 %v593_v47, %v301_v46 }
 0x11f   : > { %599 = vst [vmem:[#allocation2 + $0x8] sm:$0xff] %v597_v48 }
 0x122   : > { %v604_v49 = vld [vmem:[#allocation2] sm:$0xff] }
 0x123   : > { %v624_v53 = vmul.f32 %v604_v49, %v604_v49 }
 0x126   : > { %v605_v50 = vld [vmem:[#allocation2 + $0x8] sm:$0xff] }
 0x127   : > { %v830_v51 = vpack.c.bf16 %v605_v50, %v604_v49  ;;  %v616_v52 = vadd.f32 %v605_v50, %v604_v49  ;;  %v625_v54 = vmul.f32 %v605_v50, %v605_v50 }
 0x129   : > { %831 = vst [vmem:[%s1131_s8] sm:$0xff] %v830_v51   ;;  %v617_v55 = vrot.slane %v616_v52, 4  ;;  %v626_v56 = vadd.f32 %v625_v54, %v624_v53 }
 0x12b   : > { %v618_v57 = vadd.f32 %v617_v55, %v616_v52  ;;  %v627_v58 = vrot.slane %v626_v56, 4 }
 0x12d   : > { %v619_v59 = vrot.slane %v618_v57, 2  ;;  %v628_v60 = vadd.f32 %v627_v58, %v626_v56 }
 0x12f   : > { %v620_v61 = vadd.f32 %v619_v59, %v618_v57  ;;  %v629_v62 = vrot.slane %v628_v60, 2 }
 0x131   : > { %v621_v63 = vrot.slane %v620_v61, 1  ;;  %v630_v0 = vadd.f32 %v629_v62, %v628_v60 }
 0x133   : > { %v622_v1 = vadd.f32 %v621_v63, %v620_v61  ;;  %v631_v2 = vrot.slane %v630_v0, 1 }
 0x135   : > { %623 = vst [vmem:[%s289_s10] sm:$0x1] %v622_v1  ;;  %v632_v3 = vadd.f32 %v631_v2, %v630_v0 }
 0x137   : > { %633 = vst [vmem:[%s292_s13] sm:$0x1] %v632_v3 }
 0x138 PF: > { %s15_s21 = sadd.s32 1, %s1027_s21   ;;  %s1212_s15 = smov %s1007_s16 }
 0x139   : > { %p12_p1 = scmp.ge.s32.totalorder %s15_s21, 8   ;;  %s1213_s16 = smov %s1108_s28 }
 0x13a   : > { %s1214_s17 = smov %s1019_s19  ;;  %s1215_s18 = smov %s1023_s20 }
 0x13b   : > { %s1216_s19 = smov %s1219_s22  ;;  %s1217_s20 = smov %s1223_s23 }
 0x13c   :  { %14 = sbr.rel (!%p12_p1) target bundleno = 4 (0x4), region = 130 }

// kernel: resnet18_forward.61
= control target key start
LH: loop header
LB: loop body
LE: loop exit
PB: predicated region body
PF: predicated region fallthrough
CT: control target
= control target key end

     0   :  { %s175_s0 = inlined_call_operand.vmem [shape: bf16[32,128], index: 0, kind: input, shape index: {}]   ;;  %s176_s1 = inlined_call_operand.vmem [shape: bf16[32,128], index: 1, kind: input, shape index: {}]   ;;  %s177_s2 = inlined_call_operand.vmem [shape: f32[1,128], index: 2, kind: input, shape index: {}]   ;;  %s178_s3 = inlined_call_operand.vmem [shape: f32[1,128], index: 3, kind: input, shape index: {}]   ;;  %s179_s4 = inlined_call_operand.vmem [shape: bf16[32,128], index: 4, kind: output, shape index: {}]  }
   0x1   :  { %v98_v0 = vld [vmem:[%s175_s0] sm:$0xff]   ;;  %v123_v5 = vld [vmem:[%s175_s0 + $0x8] sm:$0xff]  }
   0x2   :  { %v87_v1 = vld [vmem:[%s177_s2] ss:$0 sm:$0xff]  ;;  %v99_v2 = vunpack.c.l.bf16 %v98_v0  ;;  %v100_v3 = vunpack.c.h.bf16 %v98_v0  ;;  %v124_v6 = vld [vmem:[%s176_s1 + $0x8] sm:$0xff]   ;;  %v103_v8 = vunpack.c.l.bf16 %v123_v5  ;;  %v104_v9 = vunpack.c.h.bf16 %v123_v5 }
   0x3   :  { %v106_v4 = vld [vmem:[%s176_s1] sm:$0xff]   ;;  %v111_v16 = vunpack.c.l.bf16 %v124_v6  ;;  %v112_v17 = vunpack.c.h.bf16 %v124_v6 }
   0x4   :  { %v88_v7 = vld [vmem:[%s178_s3] ss:$0 sm:$0xff]  ;;  %v32_v10 = vmul.f32 %v99_v2, %v87_v1  ;;  %v33_v11 = vmul.f32 %v100_v3, %v87_v1  ;;  %v107_v12 = vunpack.c.l.bf16 %v106_v4  ;;  %v108_v13 = vunpack.c.h.bf16 %v106_v4 }
   0x5   :  { %v34_v14 = vmul.f32 %v103_v8, %v87_v1  ;;  %v35_v15 = vmul.f32 %v104_v9, %v87_v1 }
   0x6   :  { %v43_v18 = vadd.f32 %v88_v7, %v32_v10  ;;  %v44_v19 = vadd.f32 %v88_v7, %v33_v11 }
   0x7   :  { %v45_v20 = vadd.f32 %v88_v7, %v34_v14  ;;  %v46_v21 = vadd.f32 %v88_v7, %v35_v15 }
   0x8   :  { %v55_v22 = vadd.f32 %v107_v12, %v43_v18  ;;  %v56_v23 = vadd.f32 %v108_v13, %v44_v19 }
   0x9   :  { %v57_v24 = vadd.f32 %v111_v16, %v45_v20  ;;  %v58_v25 = vadd.f32 %v112_v17, %v46_v21 }
   0xa   :  { %v59_v26 = vmax.f32 %v55_v22, 0.0  ;;  %v60_v27 = vmax.f32 %v56_v23, 0.0 }
   0xb   :  { %v61_v28 = vmax.f32 %v57_v24, 0.0  ;;  %v62_v29 = vmax.f32 %v58_v25, 0.0 }
   0xc   :  { %v116_v30 = vpack.c.bf16 %v60_v27, %v59_v26 }
   0xd   :  { %v121_v31 = vpack.c.bf16 %v62_v29, %v61_v28 }
   0xe   :  { %117 = vst [vmem:[%s179_s4] sm:$0xff] %v116_v30  }
   0xf   :  { %125 = vst [vmem:[%s179_s4 + $0x8] sm:$0xff] %v121_v31  }

// kernel: resnet18_forward.67
= control target key start
LH: loop header
LB: loop body
LE: loop exit
PB: predicated region body
PF: predicated region fallthrough
CT: control target
= control target key end

     0   :  { %v22_v0 = vlaneseq  ;;  %s116_s0 = inlined_call_operand.vmem [shape: bf16[16,256], index: 0, kind: input, shape index: {}]   ;;  %s117_s1 = inlined_call_operand.vmem [shape: f32[1,256], index: 1, kind: input, shape index: {}]   ;;  %s118_s2 = inlined_call_operand.vmem [shape: f32[1,256], index: 2, kind: input, shape index: {}]   ;;  %s119_s3 = inlined_call_operand.vmem [shape: bf16[16,256], index: 3, kind: output, shape index: {}]  }
   0x1   :  { %v14_v1 = vld [vmem:[%s116_s0] sm:$0xff]  ;;  %v15_v3 = vld [vmem:[%s116_s0 + $0x8] sm:$0xff] }
   0x2   :  { %v23_v2 = vshrl.u32 %v22_v0, 7  ;;  %v16_v4 = vunpack.c.l.bf16 %v14_v1  ;;  %v17_v5 = vunpack.c.h.bf16 %v14_v1  ;;  %v20_v6 = vld [vmem:[%s117_s1] sm:$0x3]  ;;  %v18_v10 = vunpack.c.l.bf16 %v15_v3 }
   0x3   :  { %v36_v7 = vld [vmem:[%s118_s2] sm:$0x3]  ;;  %v19_v11 = vunpack.c.h.bf16 %v15_v3 }
   0x4   :  { %v24_v8 = vsub.s32 0, %v23_v2  ;;  %v28_v9 = vsub.s32 1, %v23_v2 }
   0x6   :  { %v25_v12 = vrot.slane %v20_v6, %v24_v8  ;;  %v29_v13 = vrot.slane %v20_v6, %v28_v9  ;;  %v41_v14 = vrot.slane %v36_v7, %v24_v8  ;;  %v45_v15 = vrot.slane %v36_v7, %v28_v9 }
   0x8   :  { %v32_v16 = vmul.f32 %v25_v12, %v16_v4  ;;  %v33_v17 = vmul.f32 %v29_v13, %v17_v5  ;;  %v34_v18 = vmul.f32 %v25_v12, %v18_v10  ;;  %v35_v19 = vmul.f32 %v29_v13, %v19_v11 }
   0xa   :  { %v48_v20 = vadd.f32 %v41_v14, %v32_v16  ;;  %v49_v21 = vadd.f32 %v45_v15, %v33_v17  ;;  %v50_v22 = vadd.f32 %v41_v14, %v34_v18  ;;  %v51_v23 = vadd.f32 %v45_v15, %v35_v19 }
   0xc   :  { %v52_v24 = vmax.f32 %v48_v20, 0.0  ;;  %v53_v25 = vmax.f32 %v49_v21, 0.0  ;;  %v54_v26 = vmax.f32 %v50_v22, 0.0  ;;  %v55_v27 = vmax.f32 %v51_v23, 0.0 }
   0xe   :  { %v76_v28 = vpack.c.bf16 %v53_v25, %v52_v24  ;;  %v77_v29 = vpack.c.bf16 %v55_v27, %v54_v26 }
  0x10   :  { %68 = vst [vmem:[%s119_s3] sm:$0xff] %v76_v28  ;;  %69 = vst [vmem:[%s119_s3 + $0x8] sm:$0xff] %v77_v29 }

// kernel: resnet18_forward.66
= control target key start
LH: loop header
LB: loop body
LE: loop exit
PB: predicated region body
PF: predicated region fallthrough
CT: control target
= control target key end

     0   :  { %s1223_s15 = smov 0   ;;  %s1225_s16 = smov 0   ;;  %s1357_s0 = inlined_call_operand.vmem [shape: bf16[16,1152], index: 0, kind: input, shape index: {}]   ;;  %s1358_s1 = inlined_call_operand.vmem [shape: bf16[1152,256], index: 1, kind: input, shape index: {}]   ;;  %s1359_s2 = inlined_call_operand.vmem [shape: bf16[16,256], index: 2, kind: output, shape index: {0}]   ;;  %s1360_s3 = inlined_call_operand.vmem [shape: f32[1,1,256], index: 3, kind: output, shape index: {1}]   ;;  %s1361_s4 = inlined_call_operand.vmem [shape: f32[1,1,256], index: 4, kind: output, shape index: {2}]  }
   0x1   :  { %s1227_s17 = smov 0   ;;  %s1229_s18 = smov 0  }
   0x2   :  { %s1231_s19 = smov 0  }
   0x3 LB: > { %s24_s20 = sadd.s32 1, %s1189_s18  ;;  %p43_p1 = scmp.ne.s32.totalorder %s1181_s16, %s1177_s15  ;;  %s1193_s19 = sphi %s1231_s19, %s15_s19   ;;  %s1189_s18 = sphi %s1229_s18, %s1365_s18   ;;  %s1185_s17 = sphi %s1227_s17, %s1364_s17   ;;  %s1181_s16 = sphi %s1225_s16, %s1363_s16   ;;  %s1177_s15 = sphi %s1223_s15, %s1362_s15  }
   0x4   : > { %p25_p0 = scmp.ge.s32.totalorder %s24_s20, 3  ;;  %p44_p2 = scmp.eq.s32.totalorder %s1193_s19, 0 }
   0x5   : > { %s36_s22 = sadd.s32 1, %s1181_s16  ;;  %p960_p5 = scmp.ge.s32.totalorder %s1193_s19, 3 }
   0x6   : > { %s1367_s20 = smov (%p25_p0, %s24_s20), 0  ;;  %p45_p3 = por %p44_p2, %p43_p1 }
   0x7   : > { %s32_s21 = ssub.s32 %s1189_s18, %s1367_s20  ;;  %173 = sbr.rel (%p960_p5) target bundleno = 19 (0x13), region = 16 }
   0x8   : > { %p34_p4 = scmp.eq.s32.totalorder %s32_s21, 0 }
   0xa   : > { %s1258_s23 = scalar_select %p34_p4, %s1181_s16, %s36_s22  }
   0xc   : > { %176 = sbr.rel (!%p45_p3) target bundleno = 19 (0x13), region = 20  ;;  %s178_s24 = sand.u32 (%p45_p3), 1, %s1181_s16  }
   0xd   : > { %s1030_s25 = smul.u32 (%p45_p3), 12, %s1189_s18 }
   0xe   : > { %s1034_s26 = smul.u32 (%p45_p3), 24, %s178_s24 }
   0xf   : > { %s186_s29 = scalar_lea.vmem (%p45_p3), %s1357_s0, %s1030_s25 }
  0x10   : > { %v201_v0 = vld [vmem:[%s186_s29] sm:$0xff] (%p45_p3)  ;;  %v962_v2 = vld [vmem:[%s186_s29 + $0x8] sm:$0xf] (%p45_p3)  ;;  %s180_s30 = scalar_lea.vmem (%p45_p3), [#allocation3], %s1034_s26  ;;  %v964_v3 = vld [vmem:[%s186_s29 + $0x2c] sm:$0xf] (%p45_p3) }
  0x11   : > { %v203_v1 = vld [vmem:[%s186_s29 + $0x24] sm:$0xff]  ;;  %202 = vst [vmem:[%s180_s30] sm:$0xff] %v201_v0  ;;  %963 = vst [vmem:[%s180_s30 + $0x8] sm:$0xf] %v962_v2 }
  0x12   : > { %204 = vst [vmem:[%s180_s30 + $0xc] sm:$0xff] %v203_v1  ;;  %965 = vst [vmem:[%s180_s30 + $0x14] sm:$0xf] %v964_v3 }
  0x13 PF: > { %p966_p6 = scmp.ge.s32.totalorder %s1193_s19, 1  ;;  %p231_p7 = scmp.lt.s32.totalorder %s1193_s19, 4 }
  0x15   : > { %p232_p8 = pnand %p966_p6, %p231_p7 }
  0x16   : > { %s238_s5 = sand.u32 (!%p232_p8), 1, %s1177_s15   ;;  %s280_s6 = smul.u32 (!%p232_p8), 48, %s1185_s17 }
  0x17   : > { %235 = sbr.rel (%p232_p8) target bundleno = 335 (0x14f), region = 50  ;;  %p969_p10 = scmp.ne.s32.totalorder (!%p232_p8), %s1185_s17, 0 }
  0x18   : > { %s1035_s7 = smul.u32 (!%p232_p8), 24, %s238_s5  ;;  %p281_p9 = scmp.lt.s32.totalorder (!%p232_p8), %s280_s6, 143 }
  0x1a   : > { %s1275_s12 = scalar_lea.vmem (!%p232_p8), [#allocation3], %s1035_s7 }
  0x1c   : > { %s1369_s6 = smov (!%p281_p9, %s280_s6), 143  ;;  %306 = sbr.rel (%p969_p10) target bundleno = 36 (0x24), region = 58 }
  0x1d   : > { %s1031_s8 = sshll.u32 %s1369_s6, 3 }
  0x1e   : > { %s1273_s11 = scalar_lea.vmem %s1358_s1, %s1031_s8 }
  0x21   : > { %v1195_v4 = vmov 0.0  }
  0x22   : > { %307 = vst [vmem:[#allocation2 + $0x10] sm:$0xff] %v1195_v4  ;;  %308 = vst [vmem:[#allocation2] sm:$0xff] %v1195_v4 }
  0x23   : > { %309 = vst [vmem:[#allocation2 + $0x18] sm:$0xff] %v1195_v4  ;;  %310 = vst [vmem:[#allocation2 + $0x8] sm:$0xff] %v1195_v4 }
  0x24 PF: > { %v1079_v5 = vld [vmem:[%s1273_s11 + $0x74] ss:$8 sps:$4 sm:$0xff]   ;;  %v1081_v6 = vld [vmem:[%s1273_s11 + $0x70] ss:$8 sps:$4 sm:$0xff]   ;;  %v1196_v7 = vmov 0   ;;  %p1021_p11 = scmp.ne.s32.totalorder %s1185_s17, 2 }
  0x25   : > { %698 = vmatprep.mubr.bf16.mxu1 %v1196_v7  ;;  %623 = vmatprep.subr.bf16.mxu0 %v1079_v5  ;;  %v1082_v8 = vld [vmem:[%s1273_s11 + $0x64] ss:$8 sps:$4 sm:$0xff]   ;;  %v1084_v9 = vld [vmem:[%s1273_s11 + $0x60] ss:$8 sps:$4 sm:$0xff]   ;;  %v1085_v10 = vld [vmem:[%s1273_s11 + $0x54] ss:$8 sps:$4 sm:$0xff]  }
  0x26   : > { %624 = vmatpush1.bf16.msra.mxu0 %v1081_v6  ;;  %v1087_v11 = vld [vmem:[%s1273_s11 + $0x50] ss:$8 sps:$4 sm:$0xff]   ;;  %v1088_v12 = vld [vmem:[%s1273_s11 + $0x44] ss:$8 sps:$4 sm:$0xff]   ;;  %v1100_v13 = vld [vmem:[%s1273_s11 + $0x174] ss:$8 sps:$4 sm:$0xff]  }
  0x27   : > { %625 = vmatprep.subr.bf16.mxu0 %v1082_v8  ;;  %v1102_v14 = vld [vmem:[%s1273_s11 + $0x170] ss:$8 sps:$4 sm:$0xff]   ;;  %v1090_v15 = vld [vmem:[%s1273_s11 + $0x40] ss:$8 sps:$4 sm:$0xff]   ;;  %v1091_v16 = vld [vmem:[%s1273_s11 + $0x34] ss:$8 sps:$4 sm:$0xff]   ;;  %666 = vmatprep.subr.bf16.mxu1 %v1100_v13 }
  0x28   : > { %v1106_v17 = vld [vmem:[%s1273_s11 + $0x164] ss:$8 sps:$4 sm:$0xff]   ;;  %667 = vmatpush1.bf16.msra.mxu1 %v1102_v14  ;;  %v1108_v18 = vld [vmem:[%s1273_s11 + $0x160] ss:$8 sps:$4 sm:$0xff]   ;;  %v1093_v19 = vld [vmem:[%s1273_s11 + $0x30] ss:$8 sps:$4 sm:$0xff]  }
  0x29   : > { %668 = vmatprep.subr.bf16.mxu1 %v1106_v17  ;;  %v1112_v20 = vld [vmem:[%s1273_s11 + $0x154] ss:$8 sps:$4 sm:$0xff]   ;;  %v1094_v21 = vld [vmem:[%s1273_s11 + $0x24] ss:$8 sps:$4 sm:$0xff]   ;;  %v1114_v22 = vld [vmem:[%s1273_s11 + $0x150] ss:$8 sps:$4 sm:$0xff]  }
  0x2a   : > { %626 = vmatpush1.bf16.msra.mxu0 %v1084_v9  ;;  %v1118_v23 = vld [vmem:[%s1273_s11 + $0x144] ss:$8 sps:$4 sm:$0xff]   ;;  %v1096_v24 = vld [vmem:[%s1273_s11 + $0x20] ss:$8 sps:$4 sm:$0xff]   ;;  %v1097_v25 = vld [vmem:[%s1273_s11 + $0x14] ss:$8 sps:$4 sm:$0xff]  }
  0x2b   : > { %627 = vmatprep.subr.bf16.mxu0 %v1085_v10  ;;  %v1120_v26 = vld [vmem:[%s1273_s11 + $0x140] ss:$8 sps:$4 sm:$0xff]   ;;  %v1124_v27 = vld [vmem:[%s1273_s11 + $0x134] ss:$8 sps:$4 sm:$0xff]   ;;  %v1099_v28 = vld [vmem:[%s1273_s11 + $0x10] ss:$8 sps:$4 sm:$0xff]  }
  0x2c   : > { %669 = vmatpush1.bf16.msra.mxu1 %v1108_v18  ;;  %v1103_v29 = vld [vmem:[%s1273_s11 + $0x4] ss:$8 sps:$4 sm:$0xff]   ;;  %v1126_v30 = vld [vmem:[%s1273_s11 + $0x130] ss:$8 sps:$4 sm:$0xff]   ;;  %v1105_v32 = vld [vmem:[%s1273_s11] ss:$8 sps:$4 sm:$0xff]  }
  0x2d   : > { %670 = vmatprep.subr.bf16.mxu1 %v1112_v20  ;;  %v1130_v31 = vld [vmem:[%s1273_s11 + $0x124] ss:$8 sps:$4 sm:$0xff]   ;;  %v1109_v33 = vld [vmem:[%s1273_s11 + $0xf4] ss:$8 sps:$4 sm:$0xff]   ;;  %v1132_v34 = vld [vmem:[%s1273_s11 + $0x120] ss:$8 sps:$4 sm:$0xff]  }
  0x2e   : > { %628 = vmatpush1.bf16.msra.mxu0 %v1087_v11  ;;  %v1136_v35 = vld [vmem:[%s1273_s11 + $0x114] ss:$8 sps:$4 sm:$0xff]   ;;  %v1111_v36 = vld [vmem:[%s1273_s11 + $0xf0] ss:$8 sps:$4 sm:$0xff]   ;;  %v1115_v37 = vld [vmem:[%s1273_s11 + $0xe4] ss:$8 sps:$4 sm:$0xff]  }
  0x2f   : > { %629 = vmatprep.subr.bf16.mxu0 %v1088_v12  ;;  %v1138_v38 = vld [vmem:[%s1273_s11 + $0x110] ss:$8 sps:$4 sm:$0xff]   ;;  %v1142_v39 = vld [vmem:[%s1273_s11 + $0x104] ss:$8 sps:$4 sm:$0xff]   ;;  %v1117_v41 = vld [vmem:[%s1273_s11 + $0xe0] ss:$8 sps:$4 sm:$0xff]  }
  0x30   : > { %671 = vmatpush1.bf16.msra.mxu1 %v1114_v22  ;;  %v1154_v40 = vld [vmem:[%s1275_s12 + $0x4] ss:$12 sps:$4 sm:$0xff]   ;;  %v1148_v46 = vld [vmem:[%s1275_s12 + $0x8] ss:$12 sps:$4 sm:$0xff]   ;;  %v1152_v56 = vld [vmem:[%s1275_s12] ss:$12 sps:$4 sm:$0xff]  }
  0x31   : > { %672 = vmatprep.subr.bf16.mxu1 %v1118_v23  ;;  %v1121_v42 = vld [vmem:[%s1273_s11 + $0xd4] ss:$8 sps:$4 sm:$0xff]   ;;  %655 = vmatprep.mubr.bf16.mxu0 %v1154_v40  ;;  %v1144_v43 = vld [vmem:[%s1273_s11 + $0x100] ss:$8 sps:$4 sm:$0xff]   ;;  %v1123_v44 = vld [vmem:[%s1273_s11 + $0xd0] ss:$8 sps:$4 sm:$0xff]  }
  0x32   : > { %630 = vmatpush1.bf16.msra.mxu0 %v1090_v15  ;;  %v1127_v45 = vld [vmem:[%s1273_s11 + $0xc4] ss:$8 sps:$4 sm:$0xff]   ;;  %v1129_v47 = vld [vmem:[%s1273_s11 + $0xc0] ss:$8 sps:$4 sm:$0xff]   ;;  %v1133_v48 = vld [vmem:[%s1273_s11 + $0xb4] ss:$8 sps:$4 sm:$0xff]  }
  0x33   : > { %631 = vmatprep.subr.bf16.mxu0 %v1091_v16  ;;  %v1135_v49 = vld [vmem:[%s1273_s11 + $0xb0] ss:$8 sps:$4 sm:$0xff]   ;;  %v1139_v50 = vld [vmem:[%s1273_s11 + $0xa4] ss:$8 sps:$4 sm:$0xff]   ;;  %v1141_v51 = vld [vmem:[%s1273_s11 + $0xa0] ss:$8 sps:$4 sm:$0xff]  }
  0x34   : > { %673 = vmatpush1.bf16.msra.mxu1 %v1120_v26  ;;  %v1145_v52 = vld [vmem:[%s1273_s11 + $0x94] ss:$8 sps:$4 sm:$0xff]   ;;  %v1147_v53 = vld [vmem:[%s1273_s11 + $0x90] ss:$8 sps:$4 sm:$0xff]   ;;  %v1149_v54 = vld [vmem:[%s1273_s11 + $0x84] ss:$8 sps:$4 sm:$0xff]  }
  0x35   : > { %674 = vmatprep.subr.bf16.mxu1 %v1124_v27  ;;  %v1151_v55 = vld [vmem:[%s1273_s11 + $0x80] ss:$8 sps:$4 sm:$0xff]   ;;  %v311_v59 = vld [vmem:[#allocation2 + $0x10] sm:$0xff]  ;;  %v313_v3 = vld [vmem:[#allocation2 + $0x18] sm:$0xff] }
  0x36   : > { %632 = vmatpush1.bf16.msra.mxu0 %v1093_v19  ;;  %v312_v63 = vld [vmem:[#allocation2] sm:$0xff]  ;;  %v314_v8 = vld [vmem:[#allocation2 + $0x8] sm:$0xff] }
  0x37   : > { %633 = vmatprep.subr.bf16.mxu0 %v1094_v21 }
  0x38   : > { %675 = vmatpush1.bf16.msra.mxu1 %v1126_v30 }
  0x39   : > { %676 = vmatprep.subr.bf16.mxu1 %v1130_v31 }
  0x3a   : > { %634 = vmatpush1.bf16.msra.mxu0 %v1096_v24 }
  0x3b   : > { %635 = vmatprep.subr.bf16.mxu0 %v1097_v25 }
  0x3c   : > { %677 = vmatpush1.bf16.msra.mxu1 %v1132_v34 }
  0x3d   : > { %678 = vmatprep.subr.bf16.mxu1 %v1136_v35 }
  0x3e   : > { %636 = vmatpush1.bf16.msra.mxu0 %v1099_v28 }
  0x3f   : > { %637 = vmatprep.subr.bf16.mxu0 %v1103_v29 }
  0x40   : > { %679 = vmatpush1.bf16.msra.mxu1 %v1138_v38 }
  0x41   : > { %680 = vmatprep.subr.bf16.mxu1 %v1142_v39 }
  0x42   : > { %638 = vmatpush1.bf16.msra.mxu0 %v1105_v32 }
  0x43   : > { %639 = vmatprep.subr.bf16.mxu0 %v1109_v33 }
  0x44   : > { %681 = vmatpush1.bf16.msra.mxu1 %v1144_v43 }
  0x46   : > { %640 = vmatpush2.bf16.msra.mxu0 %v1111_v36 }
  0x47   : > { %641 = vmatprep.subr.bf16.mxu0 %v1115_v37  ;;  %699 = vmatmul.mubr.bf16.vlgmr.msra.gmra.mxu1 %v1148_v46 }
  0x4a   : > { %642 = vmatpush2.bf16.msra.mxu0 %v1117_v41 }
  0x4b   : > { %643 = vmatprep.subr.bf16.mxu0 %v1121_v42 }
  0x4e   : > { %644 = vmatpush2.bf16.msra.mxu0 %v1123_v44 }
  0x4f   : > { %645 = vmatprep.subr.bf16.mxu0 %v1127_v45 }
  0x52   : > { %646 = vmatpush2.bf16.msra.mxu0 %v1129_v47 }
  0x53   : > { %647 = vmatprep.subr.bf16.mxu0 %v1133_v48 }
  0x56   : > { %648 = vmatpush2.bf16.msra.mxu0 %v1135_v49 }
  0x57   : > { %649 = vmatprep.subr.bf16.mxu0 %v1139_v50 }
  0x5a   : > { %650 = vmatpush2.bf16.msra.mxu0 %v1141_v51 }
  0x5b   : > { %651 = vmatprep.subr.bf16.mxu0 %v1145_v52 }
  0x5e   : > { %652 = vmatpush2.bf16.msra.mxu0 %v1147_v53 }
  0x5f   : > { %653 = vmatprep.subr.bf16.mxu0 %v1149_v54 }
  0x62   : > { %654 = vmatpush2.bf16.msra.mxu0 %v1151_v55 }
  0x65   : > { %656 = vmatmul.mubr.bf16.vlgmr.msra.gmra.mxu0 %v1152_v56 }
 0x107   : > { %v700_v57 = vpop.f32.mrf.mxu1 }
 0x109   : > { %v702_v58 = vpop.f32.mrf.mxu1 }
 0x10b   : > { %v704_v62 = vpop.f32.mrf.mxu1 }
 0x10d   : > { %v706_v7 = vpop.f32.mrf.mxu1 }
 0x125   : > { %v657_v60 = vpop.f32.mrf.mxu0 }
 0x126   : > { %v701_v61 = vadd.f32 %v700_v57, %v657_v60 }
 0x127   : > { %v659_v0 = vpop.f32.mrf.mxu0 }
 0x128   : > { %v709_v1 = vadd.f32 %v701_v61, %v311_v59  ;;  %v703_v2 = vadd.f32 %v702_v58, %v659_v0 }
 0x129   : > { %v661_v4 = vpop.f32.mrf.mxu0 }
 0x12a   : > { %713 = vst [vmem:[#allocation2 + $0x10] sm:$0xff] %v709_v1  ;;  %v710_v5 = vadd.f32 %v703_v2, %v312_v63  ;;  %v705_v6 = vadd.f32 %v704_v62, %v661_v4 }
 0x12b   : > { %v663_v9 = vpop.f32.mrf.mxu0 }
 0x12c   : > { %714 = vst [vmem:[#allocation2] sm:$0xff] %v710_v5  ;;  %v711_v10 = vadd.f32 %v705_v6, %v313_v3  ;;  %v707_v11 = vadd.f32 %v706_v7, %v663_v9  ;;  %720 = sbr.rel (%p1021_p11) target bundleno = 335 (0x14f), region = 62 }
 0x12e   : > { %715 = vst [vmem:[#allocation2 + $0x18] sm:$0xff] %v711_v10  ;;  %v712_v12 = vadd.f32 %v707_v11, %v314_v8 }
 0x130   : > { %716 = vst [vmem:[#allocation2 + $0x8] sm:$0xff] %v712_v12 }
 0x131   : > { %v721_v13 = vld [vmem:[#allocation2 + $0x10] sm:$0xff]  ;;  %v759_v30 = vlaneseq  ;;  %v1197_v34 = vmov 1966171168  }
 0x132   : > { %v776_v17 = vmul.f32 %v721_v13, %v721_v13  ;;  %v757_v35 = vunpack.c.l.s4 %v1197_v34 }
 0x133   : > { %v722_v14 = vld [vmem:[#allocation2] sm:$0xff]  ;;  %v760_v41 = vshrl.u32 %v759_v30, 7  ;;  %vm773_vm0 = vcmp.lt.s32.totalorder %v759_v30, 256 }
 0x134   : > { %v1032_v16 = vpack.c.bf16 %v722_v14, %v721_v13  ;;  %v777_v18 = vmul.f32 %v722_v14, %v722_v14  ;;  %v758_v45 = vunpack.c.0.s8 %v757_v35 }
 0x135   : > { %v723_v15 = vld [vmem:[#allocation2 + $0x18] sm:$0xff] }
 0x136   : > { %v739_v20 = vadd.f32 %v723_v15, %v721_v13  ;;  %v778_v23 = vmul.f32 %v723_v15, %v723_v15  ;;  %737 = vst [vmem:[%s1359_s2] sm:$0xff] %v1032_v16  ;;  %v761_v52 = vsub.s32 %v758_v45, %v760_v41 }
 0x137   : > { %v724_v19 = vld [vmem:[#allocation2 + $0x8] sm:$0xff] }
 0x138   : > { %v1033_v21 = vpack.c.bf16 %v724_v19, %v723_v15  ;;  %v746_v22 = vadd.f32 %v724_v19, %v722_v14  ;;  %v779_v24 = vmul.f32 %v724_v19, %v724_v19  ;;  %v740_v25 = vrot.slane %v739_v20, 4 }
 0x139   : > { %v780_v27 = vadd.f32 %v778_v23, %v776_v17 }
 0x13a   : > { %738 = vst [vmem:[%s1359_s2 + $0x8] sm:$0xff] %v1033_v21  ;;  %v747_v26 = vrot.slane %v746_v22, 4  ;;  %v787_v28 = vadd.f32 %v779_v24, %v777_v18  ;;  %v741_v29 = vadd.f32 %v740_v25, %v739_v20 }
 0x13b   : > { %v781_v32 = vrot.slane %v780_v27, 4 }
 0x13c   : > { %v748_v31 = vadd.f32 %v747_v26, %v746_v22  ;;  %v788_v33 = vrot.slane %v787_v28, 4  ;;  %v742_v36 = vrot.slane %v741_v29, 2 }
 0x13d   : > { %v782_v38 = vadd.f32 %v781_v32, %v780_v27 }
 0x13e   : > { %v749_v37 = vrot.slane %v748_v31, 2  ;;  %v789_v39 = vadd.f32 %v788_v33, %v787_v28  ;;  %v743_v40 = vadd.f32 %v742_v36, %v741_v29 }
 0x13f   : > { %v783_v43 = vrot.slane %v782_v38, 2 }
 0x140   : > { %v750_v42 = vadd.f32 %v749_v37, %v748_v31  ;;  %v790_v44 = vrot.slane %v789_v39, 2  ;;  %v744_v46 = vrot.slane %v743_v40, 1 }
 0x141   : > { %v784_v48 = vadd.f32 %v783_v43, %v782_v38 }
 0x142   : > { %v751_v47 = vrot.slane %v750_v42, 1  ;;  %v791_v49 = vadd.f32 %v790_v44, %v789_v39  ;;  %v745_v50 = vadd.f32 %v744_v46, %v743_v40 }
 0x143   : > { %v785_v53 = vrot.slane %v784_v48, 1 }
 0x144   : > { %v752_v51 = vadd.f32 %v751_v47, %v750_v42  ;;  %v792_v54 = vrot.slane %v791_v49, 1 }
 0x145   : > { %v786_v56 = vadd.f32 %v785_v53, %v784_v48 }
 0x146   : > { %v755_v55 = vcombine.low %v745_v50, %v752_v51  ;;  %v793_v57 = vadd.f32 %v792_v54, %v791_v49 }
 0x148   : > { %v762_v58 = vrot.slane %v755_v55, %v761_v52  ;;  %v796_v59 = vcombine.low %v786_v56, %v793_v57 }
 0x14a   : > { %v769_v60 = vrot.slane %v762_v58, %v761_v52  ;;  %v803_v61 = vrot.slane %v796_v59, %v761_v52 }
 0x14c   : > { %775 = vst.msk [vmem:[%s1360_s3] sm:$0x3] %vm773_vm0, %v769_v60  ;;  %v810_v62 = vrot.slane %v803_v61, %v761_v52 }
 0x14e   : > { %812 = vst.msk [vmem:[%s1361_s4] sm:$0x3] %vm773_vm0, %v810_v62 }
 0x14f PF: > { %s15_s19 = sadd.s32 1, %s1193_s19   ;;  %s1362_s15 = smov %s1181_s16 }
 0x150   : > { %p12_p12 = scmp.ge.s32.totalorder %s15_s19, 5   ;;  %s1363_s16 = smov %s1258_s23 }
 0x151   : > { %s1364_s17 = smov %s1189_s18  ;;  %s1365_s18 = smov %s1367_s20 }
 0x152   :  { %14 = sbr.rel (!%p12_p12) target bundleno = 3 (0x3), region = 130 }

// kernel: resnet18_forward.70
= control target key start
LH: loop header
LB: loop body
LE: loop exit
PB: predicated region body
PF: predicated region fallthrough
CT: control target
= control target key end

     0   :  { %v22_v0 = vlaneseq  ;;  %s112_s0 = inlined_call_operand.vmem [shape: bf16[16,256], index: 0, kind: input, shape index: {}]   ;;  %s113_s1 = inlined_call_operand.vmem [shape: f32[1,256], index: 1, kind: input, shape index: {}]   ;;  %s114_s2 = inlined_call_operand.vmem [shape: f32[1,256], index: 2, kind: input, shape index: {}]   ;;  %s115_s3 = inlined_call_operand.vmem [shape: bf16[16,256], index: 3, kind: output, shape index: {}]  }
   0x1   :  { %v14_v1 = vld [vmem:[%s112_s0] sm:$0xff]  ;;  %v15_v3 = vld [vmem:[%s112_s0 + $0x8] sm:$0xff] }
   0x2   :  { %v23_v2 = vshrl.u32 %v22_v0, 7  ;;  %v16_v4 = vunpack.c.l.bf16 %v14_v1  ;;  %v17_v5 = vunpack.c.h.bf16 %v14_v1  ;;  %v20_v6 = vld [vmem:[%s113_s1] sm:$0x3]  ;;  %v18_v10 = vunpack.c.l.bf16 %v15_v3 }
   0x3   :  { %v36_v7 = vld [vmem:[%s114_s2] sm:$0x3]  ;;  %v19_v11 = vunpack.c.h.bf16 %v15_v3 }
   0x4   :  { %v24_v8 = vsub.s32 0, %v23_v2  ;;  %v28_v9 = vsub.s32 1, %v23_v2 }
   0x6   :  { %v25_v12 = vrot.slane %v20_v6, %v24_v8  ;;  %v29_v13 = vrot.slane %v20_v6, %v28_v9  ;;  %v41_v14 = vrot.slane %v36_v7, %v24_v8  ;;  %v45_v15 = vrot.slane %v36_v7, %v28_v9 }
   0x8   :  { %v32_v16 = vmul.f32 %v25_v12, %v16_v4  ;;  %v33_v17 = vmul.f32 %v29_v13, %v17_v5  ;;  %v34_v18 = vmul.f32 %v25_v12, %v18_v10  ;;  %v35_v19 = vmul.f32 %v29_v13, %v19_v11 }
   0xa   :  { %v48_v20 = vadd.f32 %v41_v14, %v32_v16  ;;  %v49_v21 = vadd.f32 %v45_v15, %v33_v17  ;;  %v50_v22 = vadd.f32 %v41_v14, %v34_v18  ;;  %v51_v23 = vadd.f32 %v45_v15, %v35_v19 }
   0xc   :  { %v72_v24 = vpack.c.bf16 %v49_v21, %v48_v20  ;;  %v73_v25 = vpack.c.bf16 %v51_v23, %v50_v22 }
   0xe   :  { %64 = vst [vmem:[%s115_s3] sm:$0xff] %v72_v24  ;;  %65 = vst [vmem:[%s115_s3 + $0x8] sm:$0xff] %v73_v25 }

// kernel: resnet18_forward.69
= control target key start
LH: loop header
LB: loop body
LE: loop exit
PB: predicated region body
PF: predicated region fallthrough
CT: control target
= control target key end

     0   :  { %v337_v1 = vmov 0   ;;  %v338_v35 = vmov 1966171168   ;;  %v223_v41 = vlaneseq  ;;  %s427_s1 = inlined_call_operand.vmem [shape: bf16[128,256], index: 1, kind: input, shape index: {}]   ;;  %s428_s0 = inlined_call_operand.vmem [shape: bf16[16,128], index: 0, kind: input, shape index: {}]   ;;  %s429_s2 = inlined_call_operand.vmem [shape: bf16[16,256], index: 2, kind: output, shape index: {0}]   ;;  %s430_s3 = inlined_call_operand.vmem [shape: f32[1,1,256], index: 3, kind: output, shape index: {1}]   ;;  %s431_s4 = inlined_call_operand.vmem [shape: f32[1,1,256], index: 4, kind: output, shape index: {2}]  }
   0x1   :  { %v312_v0 = vld [vmem:[%s427_s1 + $0x74] ss:$8 sps:$4 sm:$0xff]   ;;  %163 = vmatprep.mubr.bf16.mxu0 %v337_v1  ;;  %v314_v2 = vld [vmem:[%s427_s1 + $0x70] ss:$8 sps:$4 sm:$0xff]   ;;  %v315_v3 = vld [vmem:[%s427_s1 + $0x64] ss:$8 sps:$4 sm:$0xff]   ;;  %v221_v36 = vunpack.c.l.s4 %v338_v35 }
   0x2   :  { %131 = vmatprep.subr.bf16.mxu0 %v312_v0  ;;  %v317_v4 = vld [vmem:[%s427_s1 + $0x60] ss:$8 sps:$4 sm:$0xff]   ;;  %v318_v5 = vld [vmem:[%s427_s1 + $0x54] ss:$8 sps:$4 sm:$0xff]   ;;  %v320_v6 = vld [vmem:[%s427_s1 + $0x50] ss:$8 sps:$4 sm:$0xff]  }
   0x3   :  { %132 = vmatpush1.bf16.msra.mxu0 %v314_v2  ;;  %v321_v7 = vld [vmem:[%s427_s1 + $0x44] ss:$8 sps:$4 sm:$0xff]   ;;  %v323_v8 = vld [vmem:[%s427_s1 + $0x40] ss:$8 sps:$4 sm:$0xff]   ;;  %v324_v9 = vld [vmem:[%s427_s1 + $0x34] ss:$8 sps:$4 sm:$0xff]   ;;  %v222_v46 = vunpack.c.0.s8 %v221_v36 }
   0x4   :  { %133 = vmatprep.subr.bf16.mxu0 %v315_v3  ;;  %v326_v10 = vld [vmem:[%s427_s1 + $0x30] ss:$8 sps:$4 sm:$0xff]   ;;  %v327_v11 = vld [vmem:[%s427_s1 + $0x24] ss:$8 sps:$4 sm:$0xff]   ;;  %v329_v12 = vld [vmem:[%s427_s1 + $0x20] ss:$8 sps:$4 sm:$0xff]  }
   0x5   :  { %v330_v13 = vld [vmem:[%s427_s1 + $0x14] ss:$8 sps:$4 sm:$0xff]   ;;  %v332_v14 = vld [vmem:[%s427_s1 + $0x10] ss:$8 sps:$4 sm:$0xff]   ;;  %v333_v15 = vld [vmem:[%s427_s1 + $0x4] ss:$8 sps:$4 sm:$0xff]  }
   0x6   :  { %v335_v16 = vld [vmem:[%s427_s1] ss:$8 sps:$4 sm:$0xff]   ;;  %v224_v51 = vshrl.u32 %v223_v41, 7  ;;  %vm237_vm0 = vcmp.lt.s32.totalorder %v223_v41, 256 }
   0x7   :  { %134 = vmatpush1.bf16.msra.mxu0 %v317_v4  ;;  %v336_v17 = vld [vmem:[%s428_s0] sm:$0xff]  }
   0x8   :  { %135 = vmatprep.subr.bf16.mxu0 %v318_v5  ;;  %v225_v58 = vsub.s32 %v222_v46, %v224_v51 }
   0xb   :  { %136 = vmatpush1.bf16.msra.mxu0 %v320_v6 }
   0xc   :  { %137 = vmatprep.subr.bf16.mxu0 %v321_v7 }
   0xf   :  { %138 = vmatpush1.bf16.msra.mxu0 %v323_v8 }
  0x10   :  { %139 = vmatprep.subr.bf16.mxu0 %v324_v9 }
  0x13   :  { %140 = vmatpush1.bf16.msra.mxu0 %v326_v10 }
  0x14   :  { %141 = vmatprep.subr.bf16.mxu0 %v327_v11 }
  0x17   :  { %142 = vmatpush1.bf16.msra.mxu0 %v329_v12 }
  0x18   :  { %143 = vmatprep.subr.bf16.mxu0 %v330_v13 }
  0x1b   :  { %144 = vmatpush1.bf16.msra.mxu0 %v332_v14 }
  0x1c   :  { %145 = vmatprep.subr.bf16.mxu0 %v333_v15 }
  0x1f   :  { %146 = vmatpush1.bf16.msra.mxu0 %v335_v16 }
  0x22   :  { %164 = vmatmul.mubr.bf16.vlgmr.msra.gmra.mxu0 %v336_v17 }
  0xe2   :  { %v165_v18 = vpop.f32.mrf.mxu0 }
  0xe3   :  { %v240_v22 = vmul.f32 %v165_v18, %v165_v18 }
  0xe4   :  { %v167_v19 = vpop.f32.mrf.mxu0 }
  0xe5   :  { %v308_v20 = vpack.c.bf16 %v167_v19, %v165_v18  ;;  %v241_v30 = vmul.f32 %v167_v19, %v167_v19 }
  0xe6   :  { %v169_v21 = vpop.f32.mrf.mxu0 }
  0xe7   :  { %v203_v23 = vadd.f32 %v169_v21, %v165_v18  ;;  %v242_v24 = vmul.f32 %v169_v21, %v169_v21  ;;  %201 = vst [vmem:[%s429_s2] sm:$0xff] %v308_v20 }
  0xe8   :  { %v171_v25 = vpop.f32.mrf.mxu0 }
  0xe9   :  { %v204_v26 = vrot.slane %v203_v23, 4  ;;  %v244_v27 = vadd.f32 %v242_v24, %v240_v22  ;;  %v309_v28 = vpack.c.bf16 %v171_v25, %v169_v21  ;;  %v210_v29 = vadd.f32 %v171_v25, %v167_v19 }
  0xea   :  { %v243_v31 = vmul.f32 %v171_v25, %v171_v25 }
  0xeb   :  { %v205_v32 = vadd.f32 %v204_v26, %v203_v23  ;;  %v245_v33 = vrot.slane %v244_v27, 4  ;;  %202 = vst [vmem:[%s429_s2 + $0x8] sm:$0xff] %v309_v28  ;;  %v211_v34 = vrot.slane %v210_v29, 4 }
  0xec   :  { %v251_v37 = vadd.f32 %v243_v31, %v241_v30 }
  0xed   :  { %v206_v38 = vrot.slane %v205_v32, 2  ;;  %v246_v39 = vadd.f32 %v245_v33, %v244_v27  ;;  %v212_v40 = vadd.f32 %v211_v34, %v210_v29 }
  0xee   :  { %v252_v42 = vrot.slane %v251_v37, 4 }
  0xef   :  { %v207_v43 = vadd.f32 %v206_v38, %v205_v32  ;;  %v247_v44 = vrot.slane %v246_v39, 2  ;;  %v213_v45 = vrot.slane %v212_v40, 2 }
  0xf0   :  { %v253_v47 = vadd.f32 %v252_v42, %v251_v37 }
  0xf1   :  { %v208_v48 = vrot.slane %v207_v43, 1  ;;  %v248_v49 = vadd.f32 %v247_v44, %v246_v39  ;;  %v214_v50 = vadd.f32 %v213_v45, %v212_v40 }
  0xf2   :  { %v254_v52 = vrot.slane %v253_v47, 2 }
  0xf3   :  { %v215_v53 = vrot.slane %v214_v50, 1  ;;  %v249_v54 = vrot.slane %v248_v49, 1  ;;  %v209_v56 = vadd.f32 %v208_v48, %v207_v43 }
  0xf4   :  { %v255_v55 = vadd.f32 %v254_v52, %v253_v47 }
  0xf5   :  { %v216_v57 = vadd.f32 %v215_v53, %v214_v50  ;;  %v250_v61 = vadd.f32 %v249_v54, %v248_v49 }
  0xf6   :  { %v256_v59 = vrot.slane %v255_v55, 1 }
  0xf7   :  { %v219_v60 = vcombine.low %v209_v56, %v216_v57 }
  0xf8   :  { %v257_v62 = vadd.f32 %v256_v59, %v255_v55 }
  0xf9   :  { %v226_v63 = vrot.slane %v219_v60, %v225_v58 }
  0xfa   :  { %v260_v0 = vcombine.low %v250_v61, %v257_v62 }
  0xfb   :  { %v233_v1 = vrot.slane %v226_v63, %v225_v58 }
  0xfc   :  { %v267_v2 = vrot.slane %v260_v0, %v225_v58 }
  0xfd   :  { %239 = vst.msk [vmem:[%s430_s3] sm:$0x3] %vm237_vm0, %v233_v1 }
  0xfe   :  { %v274_v3 = vrot.slane %v267_v2, %v225_v58 }
 0x100   :  { %276 = vst.msk [vmem:[%s431_s4] sm:$0x3] %vm237_vm0, %v274_v3 }

// kernel: resnet18_forward.68
= control target key start
LH: loop header
LB: loop body
LE: loop exit
PB: predicated region body
PF: predicated region fallthrough
CT: control target
= control target key end

     0   :  { %s1681_s15 = smov 0   ;;  %s1683_s16 = smov 0   ;;  %s1866_s0 = inlined_call_operand.vmem [shape: bf16[16,2304], index: 0, kind: input, shape index: {}]   ;;  %s1867_s1 = inlined_call_operand.vmem [shape: bf16[2304,256], index: 1, kind: input, shape index: {}]   ;;  %s1868_s2 = inlined_call_operand.vmem [shape: bf16[16,256], index: 2, kind: output, shape index: {0}]   ;;  %s1869_s3 = inlined_call_operand.vmem [shape: f32[1,1,256], index: 3, kind: output, shape index: {1}]   ;;  %s1870_s4 = inlined_call_operand.vmem [shape: f32[1,1,256], index: 4, kind: output, shape index: {2}]  }
   0x1   :  { %s1685_s17 = smov 0   ;;  %s1687_s18 = smov 0  }
   0x2   :  { %s1689_s19 = smov 0  }
   0x3 LB: > { %s24_s20 = sadd.s32 1, %s1648_s18  ;;  %p43_p1 = scmp.ne.s32.totalorder %s1640_s16, %s1636_s15  ;;  %s1652_s19 = sphi %s1689_s19, %s15_s19   ;;  %s1648_s18 = sphi %s1687_s18, %s1874_s18   ;;  %s1644_s17 = sphi %s1685_s17, %s1873_s17   ;;  %s1640_s16 = sphi %s1683_s16, %s1872_s16   ;;  %s1636_s15 = sphi %s1681_s15, %s1871_s15  }
   0x4   : > { %p25_p0 = scmp.ge.s32.totalorder %s24_s20, 3  ;;  %p44_p2 = scmp.eq.s32.totalorder %s1652_s19, 0 }
   0x5   : > { %s36_s22 = sadd.s32 1, %s1640_s16  ;;  %p1296_p5 = scmp.ge.s32.totalorder %s1652_s19, 3 }
   0x6   : > { %s1876_s20 = smov (%p25_p0, %s24_s20), 0  ;;  %p45_p3 = por %p44_p2, %p43_p1 }
   0x7   : > { %s32_s21 = ssub.s32 %s1648_s18, %s1876_s20  ;;  %173 = sbr.rel (%p1296_p5) target bundleno = 20 (0x14), region = 16 }
   0x8   : > { %p34_p4 = scmp.eq.s32.totalorder %s32_s21, 0 }
   0xa   : > { %s1716_s23 = scalar_select %p34_p4, %s1640_s16, %s36_s22  }
   0xc   : > { %176 = sbr.rel (!%p45_p3) target bundleno = 20 (0x14), region = 20  ;;  %s178_s24 = sand.u32 (%p45_p3), 1, %s1640_s16  }
   0xd   : > { %s1413_s25 = smul.u32 (%p45_p3), 24, %s1648_s18 }
   0xe   : > { %s1417_s26 = smul.u32 (%p45_p3), 48, %s178_s24 }
   0xf   : > { %s186_s29 = scalar_lea.vmem (%p45_p3), %s1866_s0, %s1413_s25 }
  0x10   : > { %v199_v0 = vld [vmem:[%s186_s29] sm:$0xff] (%p45_p3)  ;;  %v201_v1 = vld [vmem:[%s186_s29 + $0x8] sm:$0xff] (%p45_p3)  ;;  %v203_v2 = vld [vmem:[%s186_s29 + $0x10] sm:$0xff] (%p45_p3)  ;;  %s180_s30 = scalar_lea.vmem (%p45_p3), [#allocation3], %s1417_s26 }
  0x11   : > { %200 = vst [vmem:[%s180_s30] sm:$0xff] %v199_v0  ;;  %202 = vst [vmem:[%s180_s30 + $0x8] sm:$0xff] %v201_v1  ;;  %v205_v3 = vld [vmem:[%s186_s29 + $0x48] sm:$0xff]  ;;  %v207_v4 = vld [vmem:[%s186_s29 + $0x50] sm:$0xff] }
  0x12   : > { %204 = vst [vmem:[%s180_s30 + $0x10] sm:$0xff] %v203_v2  ;;  %v209_v5 = vld [vmem:[%s186_s29 + $0x58] sm:$0xff]  ;;  %206 = vst [vmem:[%s180_s30 + $0x18] sm:$0xff] %v205_v3 }
  0x13   : > { %208 = vst [vmem:[%s180_s30 + $0x20] sm:$0xff] %v207_v4  ;;  %210 = vst [vmem:[%s180_s30 + $0x28] sm:$0xff] %v209_v5 }
  0x14 PF: > { %p1298_p6 = scmp.ge.s32.totalorder %s1652_s19, 1  ;;  %p225_p7 = scmp.lt.s32.totalorder %s1652_s19, 4 }
  0x16   : > { %p226_p8 = pnand %p1298_p6, %p225_p7 }
  0x17   : > { %s232_s5 = sand.u32 (!%p226_p8), 1, %s1636_s15   ;;  %s274_s6 = smul.u32 (!%p226_p8), 96, %s1644_s17 }
  0x18   : > { %229 = sbr.rel (%p226_p8) target bundleno = 400 (0x190), region = 47  ;;  %p1301_p10 = scmp.ne.s32.totalorder (!%p226_p8), %s1644_s17, 0 }
  0x19   : > { %s1418_s7 = smul.u32 (!%p226_p8), 48, %s232_s5  ;;  %p275_p9 = scmp.lt.s32.totalorder (!%p226_p8), %s274_s6, 287 }
  0x1b   : > { %s1733_s12 = scalar_lea.vmem (!%p226_p8), [#allocation3], %s1418_s7 }
  0x1d   : > { %s1878_s6 = smov (!%p275_p9, %s274_s6), 287  ;;  %299 = sbr.rel (%p1301_p10) target bundleno = 37 (0x25), region = 55 }
  0x1e   : > { %s1414_s8 = sshll.u32 %s1878_s6, 3 }
  0x1f   : > { %s1731_s11 = scalar_lea.vmem %s1867_s1, %s1414_s8 }
  0x22   : > { %v1654_v6 = vmov 0.0  }
  0x23   : > { %300 = vst [vmem:[#allocation2 + $0x10] sm:$0xff] %v1654_v6  ;;  %301 = vst [vmem:[#allocation2] sm:$0xff] %v1654_v6 }
  0x24   : > { %302 = vst [vmem:[#allocation2 + $0x18] sm:$0xff] %v1654_v6  ;;  %303 = vst [vmem:[#allocation2 + $0x8] sm:$0xff] %v1654_v6 }
  0x25 PF: > { %v1461_v7 = vld [vmem:[%s1731_s11 + $0x74] ss:$8 sps:$4 sm:$0xff]   ;;  %v1465_v9 = vld [vmem:[%s1731_s11 + $0x70] ss:$8 sps:$4 sm:$0xff]   ;;  %v1467_v11 = vld [vmem:[%s1731_s11 + $0x64] ss:$8 sps:$4 sm:$0xff]  }
  0x26   : > { %v1463_v8 = vld [vmem:[%s1731_s11 + $0x174] ss:$8 sps:$4 sm:$0xff]   ;;  %920 = vmatprep.subr.bf16.mxu0 %v1461_v7  ;;  %v1466_v10 = vld [vmem:[%s1731_s11 + $0x170] ss:$8 sps:$4 sm:$0xff]   ;;  %v1469_v12 = vld [vmem:[%s1731_s11 + $0x164] ss:$8 sps:$4 sm:$0xff]  }
  0x27   : > { %963 = vmatprep.subr.bf16.mxu1 %v1463_v8  ;;  %921 = vmatpush1.bf16.msra.mxu0 %v1465_v9  ;;  %v1471_v13 = vld [vmem:[%s1731_s11 + $0x60] ss:$8 sps:$4 sm:$0xff]   ;;  %v1473_v15 = vld [vmem:[%s1731_s11 + $0x54] ss:$8 sps:$4 sm:$0xff]   ;;  %v1477_v17 = vld [vmem:[%s1731_s11 + $0x50] ss:$8 sps:$4 sm:$0xff]  }
  0x28   : > { %964 = vmatpush1.bf16.msra.mxu1 %v1466_v10  ;;  %922 = vmatprep.subr.bf16.mxu0 %v1467_v11  ;;  %v1472_v14 = vld [vmem:[%s1731_s11 + $0x160] ss:$8 sps:$4 sm:$0xff]   ;;  %v1475_v16 = vld [vmem:[%s1731_s11 + $0x154] ss:$8 sps:$4 sm:$0xff]   ;;  %v1478_v18 = vld [vmem:[%s1731_s11 + $0x150] ss:$8 sps:$4 sm:$0xff]  }
  0x29   : > { %965 = vmatprep.subr.bf16.mxu1 %v1469_v12  ;;  %v1479_v19 = vld [vmem:[%s1731_s11 + $0x44] ss:$8 sps:$4 sm:$0xff]   ;;  %v1483_v21 = vld [vmem:[%s1731_s11 + $0x40] ss:$8 sps:$4 sm:$0xff]   ;;  %v1485_v23 = vld [vmem:[%s1731_s11 + $0x34] ss:$8 sps:$4 sm:$0xff]  }
  0x2a   : > { %v1481_v20 = vld [vmem:[%s1731_s11 + $0x144] ss:$8 sps:$4 sm:$0xff]   ;;  %v1484_v22 = vld [vmem:[%s1731_s11 + $0x140] ss:$8 sps:$4 sm:$0xff]   ;;  %v1487_v24 = vld [vmem:[%s1731_s11 + $0x134] ss:$8 sps:$4 sm:$0xff]  }
  0x2b   : > { %923 = vmatpush1.bf16.msra.mxu0 %v1471_v13  ;;  %v1489_v25 = vld [vmem:[%s1731_s11 + $0x30] ss:$8 sps:$4 sm:$0xff]   ;;  %v1491_v27 = vld [vmem:[%s1731_s11 + $0x24] ss:$8 sps:$4 sm:$0xff]   ;;  %v1495_v29 = vld [vmem:[%s1731_s11 + $0x20] ss:$8 sps:$4 sm:$0xff]  }
  0x2c   : > { %966 = vmatpush1.bf16.msra.mxu1 %v1472_v14  ;;  %924 = vmatprep.subr.bf16.mxu0 %v1473_v15  ;;  %v1490_v26 = vld [vmem:[%s1731_s11 + $0x130] ss:$8 sps:$4 sm:$0xff]   ;;  %v1493_v28 = vld [vmem:[%s1731_s11 + $0x124] ss:$8 sps:$4 sm:$0xff]   ;;  %v1496_v30 = vld [vmem:[%s1731_s11 + $0x120] ss:$8 sps:$4 sm:$0xff]  }
  0x2d   : > { %967 = vmatprep.subr.bf16.mxu1 %v1475_v16  ;;  %v1497_v31 = vld [vmem:[%s1731_s11 + $0x14] ss:$8 sps:$4 sm:$0xff]   ;;  %v1501_v33 = vld [vmem:[%s1731_s11 + $0x10] ss:$8 sps:$4 sm:$0xff]   ;;  %v1503_v35 = vld [vmem:[%s1731_s11 + $0x4] ss:$8 sps:$4 sm:$0xff]  }
  0x2e   : > { %v1499_v32 = vld [vmem:[%s1731_s11 + $0x114] ss:$8 sps:$4 sm:$0xff]   ;;  %v1502_v34 = vld [vmem:[%s1731_s11 + $0x110] ss:$8 sps:$4 sm:$0xff]   ;;  %v1505_v36 = vld [vmem:[%s1731_s11 + $0x104] ss:$8 sps:$4 sm:$0xff]  }
  0x2f   : > { %925 = vmatpush1.bf16.msra.mxu0 %v1477_v17  ;;  %v1507_v37 = vld [vmem:[%s1731_s11] ss:$8 sps:$4 sm:$0xff]   ;;  %v1509_v39 = vld [vmem:[%s1731_s11 + $0xf4] ss:$8 sps:$4 sm:$0xff]   ;;  %v1513_v41 = vld [vmem:[%s1731_s11 + $0xf0] ss:$8 sps:$4 sm:$0xff]  }
  0x30   : > { %968 = vmatpush1.bf16.msra.mxu1 %v1478_v18  ;;  %926 = vmatprep.subr.bf16.mxu0 %v1479_v19  ;;  %v1508_v38 = vld [vmem:[%s1731_s11 + $0x100] ss:$8 sps:$4 sm:$0xff]   ;;  %v1511_v40 = vld [vmem:[%s1731_s11 + $0x1f4] ss:$8 sps:$4 sm:$0xff]   ;;  %v1514_v42 = vld [vmem:[%s1731_s11 + $0x1f0] ss:$8 sps:$4 sm:$0xff]  }
  0x31   : > { %969 = vmatprep.subr.bf16.mxu1 %v1481_v20  ;;  %v1515_v43 = vld [vmem:[%s1731_s11 + $0xe4] ss:$8 sps:$4 sm:$0xff]   ;;  %v1519_v45 = vld [vmem:[%s1731_s11 + $0xe0] ss:$8 sps:$4 sm:$0xff]   ;;  %v1521_v47 = vld [vmem:[%s1731_s11 + $0xd4] ss:$8 sps:$4 sm:$0xff]  }
  0x32   : > { %v1517_v44 = vld [vmem:[%s1731_s11 + $0x1e4] ss:$8 sps:$4 sm:$0xff]   ;;  %v1520_v46 = vld [vmem:[%s1731_s11 + $0x1e0] ss:$8 sps:$4 sm:$0xff]   ;;  %v1523_v48 = vld [vmem:[%s1731_s11 + $0x1d4] ss:$8 sps:$4 sm:$0xff]  }
  0x33   : > { %927 = vmatpush1.bf16.msra.mxu0 %v1483_v21  ;;  %v1525_v49 = vld [vmem:[%s1731_s11 + $0xd0] ss:$8 sps:$4 sm:$0xff]   ;;  %v1527_v51 = vld [vmem:[%s1731_s11 + $0xc4] ss:$8 sps:$4 sm:$0xff]   ;;  %v1531_v53 = vld [vmem:[%s1731_s11 + $0xc0] ss:$8 sps:$4 sm:$0xff]  }
  0x34   : > { %970 = vmatpush1.bf16.msra.mxu1 %v1484_v22  ;;  %928 = vmatprep.subr.bf16.mxu0 %v1485_v23  ;;  %v1526_v50 = vld [vmem:[%s1731_s11 + $0x1d0] ss:$8 sps:$4 sm:$0xff]   ;;  %v1529_v52 = vld [vmem:[%s1731_s11 + $0x1c4] ss:$8 sps:$4 sm:$0xff]   ;;  %v1532_v54 = vld [vmem:[%s1731_s11 + $0x1c0] ss:$8 sps:$4 sm:$0xff]  }
  0x35   : > { %971 = vmatprep.subr.bf16.mxu1 %v1487_v24  ;;  %v1533_v55 = vld [vmem:[%s1731_s11 + $0xb4] ss:$8 sps:$4 sm:$0xff]   ;;  %v1537_v59 = vld [vmem:[%s1731_s11 + $0xb0] ss:$8 sps:$4 sm:$0xff]   ;;  %v1539_v61 = vld [vmem:[%s1731_s11 + $0xa4] ss:$8 sps:$4 sm:$0xff]  }
  0x36   : > { %v1559_v56 = vld [vmem:[%s1733_s12 + $0x4] ss:$24 sps:$4 sm:$0xff]   ;;  %v1538_v60 = vld [vmem:[%s1731_s11 + $0x1b0] ss:$8 sps:$4 sm:$0xff]   ;;  %v1543_v63 = vld [vmem:[%s1731_s11 + $0xa0] ss:$8 sps:$4 sm:$0xff]  }
  0x37   : > { %929 = vmatpush1.bf16.msra.mxu0 %v1489_v25  ;;  %v1535_v57 = vld [vmem:[%s1731_s11 + $0x1b4] ss:$8 sps:$4 sm:$0xff]   ;;  %952 = vmatprep.mubr.bf16.mxu0 %v1559_v56  ;;  %v1541_v62 = vld [vmem:[%s1731_s11 + $0x1a4] ss:$8 sps:$4 sm:$0xff]   ;;  %v1544_v0 = vld [vmem:[%s1731_s11 + $0x1a0] ss:$8 sps:$4 sm:$0xff]  }
  0x38   : > { %972 = vmatpush1.bf16.msra.mxu1 %v1490_v26  ;;  %930 = vmatprep.subr.bf16.mxu0 %v1491_v27  ;;  %v1562_v58 = vld [vmem:[%s1733_s12 + $0xc] ss:$24 sps:$4 sm:$0xff]   ;;  %v1549_v3 = vld [vmem:[%s1731_s11 + $0x90] ss:$8 sps:$4 sm:$0xff]   ;;  %v1555_v7 = vld [vmem:[%s1731_s11 + $0x80] ss:$8 sps:$4 sm:$0xff]  }
  0x39   : > { %973 = vmatprep.subr.bf16.mxu1 %v1493_v28  ;;  %995 = vmatprep.mubr.bf16.mxu1 %v1562_v58  ;;  %v1545_v1 = vld [vmem:[%s1731_s11 + $0x94] ss:$8 sps:$4 sm:$0xff]   ;;  %v1550_v4 = vld [vmem:[%s1731_s11 + $0x190] ss:$8 sps:$4 sm:$0xff]   ;;  %v1551_v5 = vld [vmem:[%s1731_s11 + $0x84] ss:$8 sps:$4 sm:$0xff]  }
  0x3a   : > { %v1547_v2 = vld [vmem:[%s1731_s11 + $0x194] ss:$8 sps:$4 sm:$0xff]   ;;  %v1553_v6 = vld [vmem:[%s1731_s11 + $0x184] ss:$8 sps:$4 sm:$0xff]   ;;  %v1556_v8 = vld [vmem:[%s1731_s11 + $0x180] ss:$8 sps:$4 sm:$0xff]  }
  0x3b   : > { %931 = vmatpush1.bf16.msra.mxu0 %v1495_v29  ;;  %v1565_v9 = vld [vmem:[%s1731_s11 + $0x274] ss:$8 sps:$4 sm:$0xff]   ;;  %v1557_v10 = vld [vmem:[%s1733_s12] ss:$24 sps:$4 sm:$0xff]   ;;  %v1568_v13 = vld [vmem:[%s1731_s11 + $0x264] ss:$8 sps:$4 sm:$0xff]  }
  0x3c   : > { %974 = vmatpush1.bf16.msra.mxu1 %v1496_v30  ;;  %932 = vmatprep.subr.bf16.mxu0 %v1497_v31  ;;  %v1560_v11 = vld [vmem:[%s1733_s12 + $0x8] ss:$24 sps:$4 sm:$0xff]   ;;  %v1613_v14 = vld [vmem:[%s1733_s12 + $0x14] ss:$24 sps:$4 sm:$0xff]   ;;  %p1404_p11 = scmp.ne.s32.totalorder %s1644_s17, 2 }
  0x3d   : > { %975 = vmatprep.subr.bf16.mxu1 %v1499_v32  ;;  %v1563_v12 = vld [vmem:[%s1731_s11 + $0x270] ss:$8 sps:$4 sm:$0xff]   ;;  %v1566_v15 = vld [vmem:[%s1731_s11 + $0x260] ss:$8 sps:$4 sm:$0xff]   ;;  %v1571_v16 = vld [vmem:[%s1731_s11 + $0x254] ss:$8 sps:$4 sm:$0xff]  }
  0x3e   : > { %v1569_v17 = vld [vmem:[%s1731_s11 + $0x250] ss:$8 sps:$4 sm:$0xff]   ;;  %v1574_v18 = vld [vmem:[%s1731_s11 + $0x244] ss:$8 sps:$4 sm:$0xff]   ;;  %v1572_v19 = vld [vmem:[%s1731_s11 + $0x240] ss:$8 sps:$4 sm:$0xff]  }
  0x3f   : > { %933 = vmatpush1.bf16.msra.mxu0 %v1501_v33  ;;  %v1577_v20 = vld [vmem:[%s1731_s11 + $0x234] ss:$8 sps:$4 sm:$0xff]   ;;  %v1575_v21 = vld [vmem:[%s1731_s11 + $0x230] ss:$8 sps:$4 sm:$0xff]   ;;  %v1580_v22 = vld [vmem:[%s1731_s11 + $0x224] ss:$8 sps:$4 sm:$0xff]  }
  0x40   : > { %976 = vmatpush1.bf16.msra.mxu1 %v1502_v34  ;;  %934 = vmatprep.subr.bf16.mxu0 %v1503_v35  ;;  %v1578_v23 = vld [vmem:[%s1731_s11 + $0x220] ss:$8 sps:$4 sm:$0xff]   ;;  %v1583_v24 = vld [vmem:[%s1731_s11 + $0x214] ss:$8 sps:$4 sm:$0xff]   ;;  %v1581_v25 = vld [vmem:[%s1731_s11 + $0x210] ss:$8 sps:$4 sm:$0xff]  }
  0x41   : > { %977 = vmatprep.subr.bf16.mxu1 %v1505_v36  ;;  %v1586_v26 = vld [vmem:[%s1731_s11 + $0x204] ss:$8 sps:$4 sm:$0xff]   ;;  %v1584_v27 = vld [vmem:[%s1731_s11 + $0x200] ss:$8 sps:$4 sm:$0xff]   ;;  %v1589_v28 = vld [vmem:[%s1731_s11 + $0x2f4] ss:$8 sps:$4 sm:$0xff]  }
  0x42   : > { %v1587_v29 = vld [vmem:[%s1731_s11 + $0x2f0] ss:$8 sps:$4 sm:$0xff]   ;;  %v1592_v30 = vld [vmem:[%s1731_s11 + $0x2e4] ss:$8 sps:$4 sm:$0xff]   ;;  %v1590_v31 = vld [vmem:[%s1731_s11 + $0x2e0] ss:$8 sps:$4 sm:$0xff]  }
  0x43   : > { %935 = vmatpush1.bf16.msra.mxu0 %v1507_v37  ;;  %v1595_v32 = vld [vmem:[%s1731_s11 + $0x2d4] ss:$8 sps:$4 sm:$0xff]   ;;  %v1593_v33 = vld [vmem:[%s1731_s11 + $0x2d0] ss:$8 sps:$4 sm:$0xff]   ;;  %v1598_v34 = vld [vmem:[%s1731_s11 + $0x2c4] ss:$8 sps:$4 sm:$0xff]  }
  0x44   : > { %978 = vmatpush1.bf16.msra.mxu1 %v1508_v38  ;;  %936 = vmatprep.subr.bf16.mxu0 %v1509_v39  ;;  %v1596_v35 = vld [vmem:[%s1731_s11 + $0x2c0] ss:$8 sps:$4 sm:$0xff]   ;;  %v1601_v36 = vld [vmem:[%s1731_s11 + $0x2b4] ss:$8 sps:$4 sm:$0xff]   ;;  %v1599_v37 = vld [vmem:[%s1731_s11 + $0x2b0] ss:$8 sps:$4 sm:$0xff]  }
  0x45   : > { %979 = vmatprep.subr.bf16.mxu1 %v1511_v40  ;;  %v1604_v38 = vld [vmem:[%s1731_s11 + $0x2a4] ss:$8 sps:$4 sm:$0xff]   ;;  %v1602_v39 = vld [vmem:[%s1731_s11 + $0x2a0] ss:$8 sps:$4 sm:$0xff]   ;;  %v1607_v40 = vld [vmem:[%s1731_s11 + $0x294] ss:$8 sps:$4 sm:$0xff]  }
  0x46   : > { %v305_v58 = vld [vmem:[#allocation2] sm:$0xff] }
  0x47   : > { %937 = vmatpush2.bf16.msra.mxu0 %v1513_v41  ;;  %v1605_v41 = vld [vmem:[%s1731_s11 + $0x290] ss:$8 sps:$4 sm:$0xff]  }
  0x48   : > { %980 = vmatpush2.bf16.msra.mxu1 %v1514_v42  ;;  %938 = vmatprep.subr.bf16.mxu0 %v1515_v43  ;;  %v1610_v42 = vld [vmem:[%s1731_s11 + $0x284] ss:$8 sps:$4 sm:$0xff]   ;;  %v1608_v43 = vld [vmem:[%s1731_s11 + $0x280] ss:$8 sps:$4 sm:$0xff]  }
  0x49   : > { %981 = vmatprep.subr.bf16.mxu1 %v1517_v44  ;;  %v1611_v44 = vld [vmem:[%s1733_s12 + $0x10] ss:$24 sps:$4 sm:$0xff]  }
  0x4b   : > { %939 = vmatpush2.bf16.msra.mxu0 %v1519_v45 }
  0x4c   : > { %982 = vmatpush2.bf16.msra.mxu1 %v1520_v46  ;;  %940 = vmatprep.subr.bf16.mxu0 %v1521_v47 }
  0x4d   : > { %983 = vmatprep.subr.bf16.mxu1 %v1523_v48 }
  0x4f   : > { %941 = vmatpush2.bf16.msra.mxu0 %v1525_v49 }
  0x50   : > { %984 = vmatpush2.bf16.msra.mxu1 %v1526_v50  ;;  %942 = vmatprep.subr.bf16.mxu0 %v1527_v51 }
  0x51   : > { %985 = vmatprep.subr.bf16.mxu1 %v1529_v52 }
  0x53   : > { %943 = vmatpush2.bf16.msra.mxu0 %v1531_v53  ;;  %v304_v53 = vld [vmem:[#allocation2 + $0x10] sm:$0xff] }
  0x54   : > { %986 = vmatpush2.bf16.msra.mxu1 %v1532_v54  ;;  %944 = vmatprep.subr.bf16.mxu0 %v1533_v55 }
  0x55   : > { %987 = vmatprep.subr.bf16.mxu1 %v1535_v57 }
  0x57   : > { %945 = vmatpush2.bf16.msra.mxu0 %v1537_v59 }
  0x58   : > { %988 = vmatpush2.bf16.msra.mxu1 %v1538_v60  ;;  %946 = vmatprep.subr.bf16.mxu0 %v1539_v61 }
  0x59   : > { %989 = vmatprep.subr.bf16.mxu1 %v1541_v62 }
  0x5b   : > { %947 = vmatpush2.bf16.msra.mxu0 %v1543_v63  ;;  %v306_v63 = vld [vmem:[#allocation2 + $0x18] sm:$0xff] }
  0x5c   : > { %990 = vmatpush2.bf16.msra.mxu1 %v1544_v0  ;;  %948 = vmatprep.subr.bf16.mxu0 %v1545_v1 }
  0x5d   : > { %991 = vmatprep.subr.bf16.mxu1 %v1547_v2 }
  0x5f   : > { %949 = vmatpush2.bf16.msra.mxu0 %v1549_v3 }
  0x60   : > { %992 = vmatpush2.bf16.msra.mxu1 %v1550_v4  ;;  %950 = vmatprep.subr.bf16.mxu0 %v1551_v5  ;;  %v307_v4 = vld [vmem:[#allocation2 + $0x8] sm:$0xff] }
  0x61   : > { %993 = vmatprep.subr.bf16.mxu1 %v1553_v6 }
  0x63   : > { %951 = vmatpush2.bf16.msra.mxu0 %v1555_v7 }
  0x64   : > { %994 = vmatpush2.bf16.msra.mxu1 %v1556_v8  ;;  %1006 = vmatprep.subr.bf16.mxu0 %v1565_v9 }
  0x66   : > { %953 = vmatmul.mubr.bf16.vlgmr.msra.gmra.mxu0 %v1557_v10 }
  0x67   : > { %996 = vmatmul.mubr.bf16.vlgmr.msra.gmra.mxu1 %v1560_v11  ;;  %1007 = vmatpush1.bf16.msra.mxu0 %v1563_v12 }
  0x68   : > { %1008 = vmatprep.subr.bf16.mxu0 %v1568_v13  ;;  %1038 = vmatprep.mubr.bf16.mxu0 %v1613_v14 }
  0x6b   : > { %1009 = vmatpush1.bf16.msra.mxu0 %v1566_v15 }
  0x6c   : > { %1010 = vmatprep.subr.bf16.mxu0 %v1571_v16 }
  0x6f   : > { %1011 = vmatpush1.bf16.msra.mxu0 %v1569_v17 }
  0x70   : > { %1012 = vmatprep.subr.bf16.mxu0 %v1574_v18 }
  0x73   : > { %1013 = vmatpush1.bf16.msra.mxu0 %v1572_v19 }
  0x74   : > { %1014 = vmatprep.subr.bf16.mxu0 %v1577_v20 }
  0x77   : > { %1015 = vmatpush1.bf16.msra.mxu0 %v1575_v21 }
  0x78   : > { %1016 = vmatprep.subr.bf16.mxu0 %v1580_v22 }
  0x7b   : > { %1017 = vmatpush1.bf16.msra.mxu0 %v1578_v23 }
  0x7c   : > { %1018 = vmatprep.subr.bf16.mxu0 %v1583_v24 }
  0x7f   : > { %1019 = vmatpush1.bf16.msra.mxu0 %v1581_v25 }
  0x80   : > { %1020 = vmatprep.subr.bf16.mxu0 %v1586_v26 }
  0x83   : > { %1021 = vmatpush1.bf16.msra.mxu0 %v1584_v27 }
  0x84   : > { %1022 = vmatprep.subr.bf16.mxu0 %v1589_v28 }
  0x87   : > { %1023 = vmatpush2.bf16.msra.mxu0 %v1587_v29 }
  0x88   : > { %1024 = vmatprep.subr.bf16.mxu0 %v1592_v30 }
  0x8b   : > { %1025 = vmatpush2.bf16.msra.mxu0 %v1590_v31 }
  0x8c   : > { %1026 = vmatprep.subr.bf16.mxu0 %v1595_v32 }
  0x8f   : > { %1027 = vmatpush2.bf16.msra.mxu0 %v1593_v33 }
  0x90   : > { %1028 = vmatprep.subr.bf16.mxu0 %v1598_v34 }
  0x93   : > { %1029 = vmatpush2.bf16.msra.mxu0 %v1596_v35 }
  0x94   : > { %1030 = vmatprep.subr.bf16.mxu0 %v1601_v36 }
  0x97   : > { %1031 = vmatpush2.bf16.msra.mxu0 %v1599_v37 }
  0x98   : > { %1032 = vmatprep.subr.bf16.mxu0 %v1604_v38 }
  0x9b   : > { %1033 = vmatpush2.bf16.msra.mxu0 %v1602_v39 }
  0x9c   : > { %1034 = vmatprep.subr.bf16.mxu0 %v1607_v40 }
  0x9f   : > { %1035 = vmatpush2.bf16.msra.mxu0 %v1605_v41 }
  0xa0   : > { %1036 = vmatprep.subr.bf16.mxu0 %v1610_v42 }
  0xa3   : > { %1037 = vmatpush2.bf16.msra.mxu0 %v1608_v43 }
  0xa6   : > { %1039 = vmatmul.mubr.bf16.vlgmr.msra.gmra.mxu0 %v1611_v44 }
 0x126   : > { %v954_v45 = vpop.f32.mrf.mxu0 }
 0x127   : > { %v997_v46 = vpop.f32.mrf.mxu1 }
 0x128   : > { %v956_v47 = vpop.f32.mrf.mxu0  ;;  %v998_v52 = vadd.f32 %v997_v46, %v954_v45 }
 0x129   : > { %v999_v48 = vpop.f32.mrf.mxu1 }
 0x12a   : > { %v958_v49 = vpop.f32.mrf.mxu0  ;;  %v1000_v55 = vadd.f32 %v999_v48, %v956_v47 }
 0x12b   : > { %v1001_v50 = vpop.f32.mrf.mxu1 }
 0x12c   : > { %v960_v51 = vpop.f32.mrf.mxu0  ;;  %v1002_v60 = vadd.f32 %v1001_v50, %v958_v49 }
 0x12d   : > { %v1003_v57 = vpop.f32.mrf.mxu1 }
 0x12e   : > { %v1004_v1 = vadd.f32 %v1003_v57, %v960_v51 }
 0x166   : > { %v1040_v54 = vpop.f32.mrf.mxu0 }
 0x167   : > { %v1041_v56 = vadd.f32 %v1040_v54, %v998_v52 }
 0x168   : > { %v1042_v59 = vpop.f32.mrf.mxu0 }
 0x169   : > { %v1049_v61 = vadd.f32 %v1041_v56, %v304_v53  ;;  %v1043_v62 = vadd.f32 %v1042_v59, %v1000_v55 }
 0x16a   : > { %v1044_v0 = vpop.f32.mrf.mxu0 }
 0x16b   : > { %1053 = vst [vmem:[#allocation2 + $0x10] sm:$0xff] %v1049_v61  ;;  %v1050_v2 = vadd.f32 %v1043_v62, %v305_v58  ;;  %v1045_v3 = vadd.f32 %v1044_v0, %v1002_v60 }
 0x16c   : > { %v1046_v5 = vpop.f32.mrf.mxu0 }
 0x16d   : > { %1054 = vst [vmem:[#allocation2] sm:$0xff] %v1050_v2  ;;  %v1051_v6 = vadd.f32 %v1045_v3, %v306_v63  ;;  %v1047_v7 = vadd.f32 %v1046_v5, %v1004_v1  ;;  %1060 = sbr.rel (%p1404_p11) target bundleno = 400 (0x190), region = 59 }
 0x16f   : > { %1055 = vst [vmem:[#allocation2 + $0x18] sm:$0xff] %v1051_v6  ;;  %v1052_v8 = vadd.f32 %v1047_v7, %v307_v4 }
 0x171   : > { %1056 = vst [vmem:[#allocation2 + $0x8] sm:$0xff] %v1052_v8 }
 0x172   : > { %v1061_v9 = vld [vmem:[#allocation2 + $0x10] sm:$0xff]  ;;  %v1099_v26 = vlaneseq  ;;  %v1655_v30 = vmov 1966171168  }
 0x173   : > { %v1116_v13 = vmul.f32 %v1061_v9, %v1061_v9  ;;  %v1097_v31 = vunpack.c.l.s4 %v1655_v30 }
 0x174   : > { %v1062_v10 = vld [vmem:[#allocation2] sm:$0xff]  ;;  %v1100_v37 = vshrl.u32 %v1099_v26, 7  ;;  %vm1113_vm0 = vcmp.lt.s32.totalorder %v1099_v26, 256 }
 0x175   : > { %v1415_v12 = vpack.c.bf16 %v1062_v10, %v1061_v9  ;;  %v1117_v14 = vmul.f32 %v1062_v10, %v1062_v10  ;;  %v1098_v41 = vunpack.c.0.s8 %v1097_v31 }
 0x176   : > { %v1063_v11 = vld [vmem:[#allocation2 + $0x18] sm:$0xff] }
 0x177   : > { %v1079_v16 = vadd.f32 %v1063_v11, %v1061_v9  ;;  %v1118_v19 = vmul.f32 %v1063_v11, %v1063_v11  ;;  %1077 = vst [vmem:[%s1868_s2] sm:$0xff] %v1415_v12  ;;  %v1101_v48 = vsub.s32 %v1098_v41, %v1100_v37 }
 0x178   : > { %v1064_v15 = vld [vmem:[#allocation2 + $0x8] sm:$0xff] }
 0x179   : > { %v1416_v17 = vpack.c.bf16 %v1064_v15, %v1063_v11  ;;  %v1086_v18 = vadd.f32 %v1064_v15, %v1062_v10  ;;  %v1119_v20 = vmul.f32 %v1064_v15, %v1064_v15  ;;  %v1080_v21 = vrot.slane %v1079_v16, 4 }
 0x17a   : > { %v1120_v23 = vadd.f32 %v1118_v19, %v1116_v13 }
 0x17b   : > { %1078 = vst [vmem:[%s1868_s2 + $0x8] sm:$0xff] %v1416_v17  ;;  %v1087_v22 = vrot.slane %v1086_v18, 4  ;;  %v1127_v24 = vadd.f32 %v1119_v20, %v1117_v14  ;;  %v1081_v25 = vadd.f32 %v1080_v21, %v1079_v16 }
 0x17c   : > { %v1121_v28 = vrot.slane %v1120_v23, 4 }
 0x17d   : > { %v1088_v27 = vadd.f32 %v1087_v22, %v1086_v18  ;;  %v1128_v29 = vrot.slane %v1127_v24, 4  ;;  %v1082_v32 = vrot.slane %v1081_v25, 2 }
 0x17e   : > { %v1122_v34 = vadd.f32 %v1121_v28, %v1120_v23 }
 0x17f   : > { %v1089_v33 = vrot.slane %v1088_v27, 2  ;;  %v1129_v35 = vadd.f32 %v1128_v29, %v1127_v24  ;;  %v1083_v36 = vadd.f32 %v1082_v32, %v1081_v25 }
 0x180   : > { %v1123_v39 = vrot.slane %v1122_v34, 2 }
 0x181   : > { %v1090_v38 = vadd.f32 %v1089_v33, %v1088_v27  ;;  %v1130_v40 = vrot.slane %v1129_v35, 2  ;;  %v1084_v42 = vrot.slane %v1083_v36, 1 }
 0x182   : > { %v1124_v44 = vadd.f32 %v1123_v39, %v1122_v34 }
 0x183   : > { %v1091_v43 = vrot.slane %v1090_v38, 1  ;;  %v1131_v45 = vadd.f32 %v1130_v40, %v1129_v35  ;;  %v1085_v46 = vadd.f32 %v1084_v42, %v1083_v36 }
 0x184   : > { %v1125_v49 = vrot.slane %v1124_v44, 1 }
 0x185   : > { %v1092_v47 = vadd.f32 %v1091_v43, %v1090_v38  ;;  %v1132_v50 = vrot.slane %v1131_v45, 1 }
 0x186   : > { %v1126_v52 = vadd.f32 %v1125_v49, %v1124_v44 }
 0x187   : > { %v1095_v51 = vcombine.low %v1085_v46, %v1092_v47  ;;  %v1133_v53 = vadd.f32 %v1132_v50, %v1131_v45 }
 0x189   : > { %v1102_v54 = vrot.slane %v1095_v51, %v1101_v48  ;;  %v1136_v55 = vcombine.low %v1126_v52, %v1133_v53 }
 0x18b   : > { %v1109_v56 = vrot.slane %v1102_v54, %v1101_v48  ;;  %v1143_v57 = vrot.slane %v1136_v55, %v1101_v48 }
 0x18d   : > { %1115 = vst.msk [vmem:[%s1869_s3] sm:$0x3] %vm1113_vm0, %v1109_v56  ;;  %v1150_v58 = vrot.slane %v1143_v57, %v1101_v48 }
 0x18f   : > { %1152 = vst.msk [vmem:[%s1870_s4] sm:$0x3] %vm1113_vm0, %v1150_v58 }
 0x190 PF: > { %s15_s19 = sadd.s32 1, %s1652_s19   ;;  %s1871_s15 = smov %s1640_s16 }
 0x191   : > { %p12_p12 = scmp.ge.s32.totalorder %s15_s19, 5   ;;  %s1872_s16 = smov %s1716_s23 }
 0x192   : > { %s1873_s17 = smov %s1648_s18  ;;  %s1874_s18 = smov %s1876_s20 }
 0x193   :  { %14 = sbr.rel (!%p12_p12) target bundleno = 3 (0x3), region = 121 }

// kernel: resnet18_forward.71
= control target key start
LH: loop header
LB: loop body
LE: loop exit
PB: predicated region body
PF: predicated region fallthrough
CT: control target
= control target key end

     0   :  { %v25_v0 = vlaneseq  ;;  %s140_s0 = inlined_call_operand.vmem [shape: bf16[16,256], index: 0, kind: input, shape index: {}]   ;;  %s141_s2 = inlined_call_operand.vmem [shape: f32[1,256], index: 2, kind: input, shape index: {}]   ;;  %s142_s3 = inlined_call_operand.vmem [shape: f32[1,256], index: 3, kind: input, shape index: {}]   ;;  %s143_s1 = inlined_call_operand.vmem [shape: bf16[16,256], index: 1, kind: input, shape index: {}]   ;;  %s144_s4 = inlined_call_operand.vmem [shape: bf16[16,256], index: 4, kind: output, shape index: {}]  }
   0x1   :  { %v17_v1 = vld [vmem:[%s140_s0] sm:$0xff]  ;;  %v18_v3 = vld [vmem:[%s140_s0 + $0x8] sm:$0xff] }
   0x2   :  { %v26_v2 = vshrl.u32 %v25_v0, 7  ;;  %v19_v4 = vunpack.c.l.bf16 %v17_v1  ;;  %v20_v5 = vunpack.c.h.bf16 %v17_v1  ;;  %v23_v6 = vld [vmem:[%s141_s2] sm:$0x3]  ;;  %v21_v11 = vunpack.c.l.bf16 %v18_v3  ;;  %v56_v13 = vld [vmem:[%s143_s1 + $0x8] sm:$0xff] }
   0x3   :  { %v39_v7 = vld [vmem:[%s142_s3] sm:$0x3]  ;;  %v22_v12 = vunpack.c.h.bf16 %v18_v3  ;;  %v59_v20 = vunpack.c.l.bf16 %v56_v13  ;;  %v60_v21 = vunpack.c.h.bf16 %v56_v13 }
   0x4   :  { %v27_v8 = vsub.s32 0, %v26_v2  ;;  %v31_v9 = vsub.s32 1, %v26_v2  ;;  %v55_v10 = vld [vmem:[%s143_s1] sm:$0xff] }
   0x5   :  { %v57_v18 = vunpack.c.l.bf16 %v55_v10  ;;  %v58_v19 = vunpack.c.h.bf16 %v55_v10 }
   0x6   :  { %v28_v14 = vrot.slane %v23_v6, %v27_v8  ;;  %v32_v15 = vrot.slane %v23_v6, %v31_v9  ;;  %v44_v16 = vrot.slane %v39_v7, %v27_v8  ;;  %v48_v17 = vrot.slane %v39_v7, %v31_v9 }
   0x8   :  { %v35_v22 = vmul.f32 %v28_v14, %v19_v4  ;;  %v36_v23 = vmul.f32 %v32_v15, %v20_v5  ;;  %v37_v24 = vmul.f32 %v28_v14, %v21_v11  ;;  %v38_v25 = vmul.f32 %v32_v15, %v22_v12 }
   0xa   :  { %v51_v26 = vadd.f32 %v44_v16, %v35_v22  ;;  %v52_v27 = vadd.f32 %v48_v17, %v36_v23  ;;  %v53_v28 = vadd.f32 %v44_v16, %v37_v24  ;;  %v54_v29 = vadd.f32 %v48_v17, %v38_v25 }
   0xc   :  { %v61_v30 = vadd.f32 %v57_v18, %v51_v26  ;;  %v62_v31 = vadd.f32 %v58_v19, %v52_v27  ;;  %v63_v32 = vadd.f32 %v59_v20, %v53_v28  ;;  %v64_v33 = vadd.f32 %v60_v21, %v54_v29 }
   0xe   :  { %v65_v34 = vmax.f32 %v61_v30, 0.0  ;;  %v66_v35 = vmax.f32 %v62_v31, 0.0  ;;  %v67_v36 = vmax.f32 %v63_v32, 0.0  ;;  %v68_v37 = vmax.f32 %v64_v33, 0.0 }
  0x10   :  { %v89_v38 = vpack.c.bf16 %v66_v35, %v65_v34  ;;  %v90_v39 = vpack.c.bf16 %v68_v37, %v67_v36 }
  0x12   :  { %81 = vst [vmem:[%s144_s4] sm:$0xff] %v89_v38  ;;  %82 = vst [vmem:[%s144_s4 + $0x8] sm:$0xff] %v90_v39 }

// kernel: resnet18_forward.77
= control target key start
LH: loop header
LB: loop body
LE: loop exit
PB: predicated region body
PF: predicated region fallthrough
CT: control target
= control target key end

     0   :  { %v28_v0 = vlaneseq  ;;  %s184_s0 = inlined_call_operand.vmem [shape: bf16[16,512], index: 0, kind: input, shape index: {}]   ;;  %s185_s1 = inlined_call_operand.vmem [shape: f32[1,512], index: 1, kind: input, shape index: {}]   ;;  %s186_s2 = inlined_call_operand.vmem [shape: f32[1,512], index: 2, kind: input, shape index: {}]   ;;  %s187_s3 = inlined_call_operand.vmem [shape: bf16[16,512], index: 3, kind: output, shape index: {}]  }
   0x1   :  { %v14_v1 = vld [vmem:[%s184_s0] sm:$0xff]  ;;  %v15_v3 = vld [vmem:[%s184_s0 + $0x8] sm:$0xff]  ;;  %v16_v4 = vld [vmem:[%s184_s0 + $0x10] sm:$0xff] }
   0x2   :  { %v29_v2 = vshrl.u32 %v28_v0, 7  ;;  %v17_v5 = vld [vmem:[%s184_s0 + $0x18] sm:$0xff]  ;;  %v18_v6 = vunpack.c.l.bf16 %v14_v1  ;;  %v19_v7 = vunpack.c.h.bf16 %v14_v1  ;;  %v26_v8 = vld [vmem:[%s185_s1] sm:$0xf]  ;;  %v22_v10 = vunpack.c.l.bf16 %v16_v4 }
   0x3   :  { %v56_v9 = vld [vmem:[%s186_s2] sm:$0xf]  ;;  %v23_v11 = vunpack.c.h.bf16 %v16_v4  ;;  %v20_v16 = vunpack.c.l.bf16 %v15_v3  ;;  %v21_v17 = vunpack.c.h.bf16 %v15_v3  ;;  %v24_v18 = vunpack.c.l.bf16 %v17_v5 }
   0x4   :  { %v30_v12 = vsub.s32 0, %v29_v2  ;;  %v34_v13 = vsub.s32 1, %v29_v2  ;;  %v38_v14 = vsub.s32 2, %v29_v2  ;;  %v42_v15 = vsub.s32 3, %v29_v2 }
   0x5   :  { %v25_v19 = vunpack.c.h.bf16 %v17_v5 }
   0x6   :  { %v31_v20 = vrot.slane %v26_v8, %v30_v12  ;;  %v35_v21 = vrot.slane %v26_v8, %v34_v13  ;;  %v61_v22 = vrot.slane %v56_v9, %v30_v12  ;;  %v65_v23 = vrot.slane %v56_v9, %v34_v13 }
   0x7   :  { %v39_v24 = vrot.slane %v26_v8, %v38_v14  ;;  %v43_v25 = vrot.slane %v26_v8, %v42_v15  ;;  %v69_v26 = vrot.slane %v56_v9, %v38_v14  ;;  %v73_v27 = vrot.slane %v56_v9, %v42_v15 }
   0x8   :  { %v48_v28 = vmul.f32 %v31_v20, %v18_v6  ;;  %v49_v29 = vmul.f32 %v35_v21, %v19_v7  ;;  %v52_v30 = vmul.f32 %v31_v20, %v22_v10  ;;  %v53_v31 = vmul.f32 %v35_v21, %v23_v11 }
   0x9   :  { %v50_v32 = vmul.f32 %v39_v24, %v20_v16  ;;  %v51_v33 = vmul.f32 %v43_v25, %v21_v17  ;;  %v54_v34 = vmul.f32 %v39_v24, %v24_v18  ;;  %v55_v35 = vmul.f32 %v43_v25, %v25_v19 }
   0xa   :  { %v78_v36 = vadd.f32 %v61_v22, %v48_v28  ;;  %v79_v37 = vadd.f32 %v65_v23, %v49_v29  ;;  %v82_v38 = vadd.f32 %v61_v22, %v52_v30  ;;  %v83_v39 = vadd.f32 %v65_v23, %v53_v31 }
   0xb   :  { %v80_v40 = vadd.f32 %v69_v26, %v50_v32  ;;  %v81_v41 = vadd.f32 %v73_v27, %v51_v33  ;;  %v84_v42 = vadd.f32 %v69_v26, %v54_v34  ;;  %v85_v43 = vadd.f32 %v73_v27, %v55_v35 }
   0xc   :  { %v86_v44 = vmax.f32 %v78_v36, 0.0  ;;  %v87_v45 = vmax.f32 %v79_v37, 0.0  ;;  %v90_v46 = vmax.f32 %v82_v38, 0.0  ;;  %v91_v47 = vmax.f32 %v83_v39, 0.0 }
   0xd   :  { %v88_v48 = vmax.f32 %v80_v40, 0.0  ;;  %v89_v49 = vmax.f32 %v81_v41, 0.0  ;;  %v92_v50 = vmax.f32 %v84_v42, 0.0  ;;  %v93_v51 = vmax.f32 %v85_v43, 0.0 }
   0xe   :  { %v130_v52 = vpack.c.bf16 %v87_v45, %v86_v44  ;;  %v132_v53 = vpack.c.bf16 %v91_v47, %v90_v46 }
   0xf   :  { %v131_v54 = vpack.c.bf16 %v89_v49, %v88_v48  ;;  %v133_v55 = vpack.c.bf16 %v93_v51, %v92_v50 }
  0x10   :  { %118 = vst [vmem:[%s187_s3] sm:$0xff] %v130_v52  ;;  %120 = vst [vmem:[%s187_s3 + $0x10] sm:$0xff] %v132_v53 }
  0x11   :  { %119 = vst [vmem:[%s187_s3 + $0x8] sm:$0xff] %v131_v54  ;;  %121 = vst [vmem:[%s187_s3 + $0x18] sm:$0xff] %v133_v55 }

// kernel: resnet18_forward.76
= control target key start
LH: loop header
LB: loop body
LE: loop exit
PB: predicated region body
PF: predicated region fallthrough
CT: control target
= control target key end

     0   :  { %s2718_s15 = smov 0   ;;  %s2720_s16 = smov 0   ;;  %s3027_s0 = inlined_call_operand.vmem [shape: bf16[16,2304], index: 0, kind: input, shape index: {}]   ;;  %s3028_s1 = inlined_call_operand.vmem [shape: bf16[2304,512], index: 1, kind: input, shape index: {}]   ;;  %s3029_s2 = inlined_call_operand.vmem [shape: bf16[16,512], index: 2, kind: output, shape index: {0}]   ;;  %s3030_s3 = inlined_call_operand.vmem [shape: f32[1,1,512], index: 3, kind: output, shape index: {1}]   ;;  %s3031_s4 = inlined_call_operand.vmem [shape: f32[1,1,512], index: 4, kind: output, shape index: {2}]  }
   0x1   :  { %s2722_s17 = smov 0   ;;  %s2724_s18 = smov 0  }
   0x2   :  { %s2726_s19 = smov 0  }
   0x3 LB: > { %s24_s20 = sadd.s32 1, %s2685_s18  ;;  %p43_p1 = scmp.ne.s32.totalorder %s2677_s16, %s2673_s15  ;;  %s2689_s19 = sphi %s2726_s19, %s15_s19   ;;  %s2685_s18 = sphi %s2724_s18, %s3035_s18   ;;  %s2681_s17 = sphi %s2722_s17, %s3034_s17   ;;  %s2677_s16 = sphi %s2720_s16, %s3033_s16   ;;  %s2673_s15 = sphi %s2718_s15, %s3032_s15  }
   0x4   : > { %p25_p0 = scmp.ge.s32.totalorder %s24_s20, 3  ;;  %p44_p2 = scmp.eq.s32.totalorder %s2689_s19, 0 }
   0x5   : > { %s36_s22 = sadd.s32 1, %s2677_s16  ;;  %p2089_p5 = scmp.ge.s32.totalorder %s2689_s19, 3 }
   0x6   : > { %s3037_s20 = smov (%p25_p0, %s24_s20), 0  ;;  %p45_p3 = por %p44_p2, %p43_p1 }
   0x7   : > { %s32_s21 = ssub.s32 %s2685_s18, %s3037_s20  ;;  %173 = sbr.rel (%p2089_p5) target bundleno = 20 (0x14), region = 16 }
   0x8   : > { %p34_p4 = scmp.eq.s32.totalorder %s32_s21, 0 }
   0xa   : > { %s2753_s23 = scalar_select %p34_p4, %s2677_s16, %s36_s22  }
   0xc   : > { %176 = sbr.rel (!%p45_p3) target bundleno = 20 (0x14), region = 20  ;;  %s178_s24 = sand.u32 (%p45_p3), 1, %s2677_s16  }
   0xd   : > { %s2304_s25 = smul.u32 (%p45_p3), 24, %s2685_s18 }
   0xe   : > { %s2310_s26 = smul.u32 (%p45_p3), 48, %s178_s24 }
   0xf   : > { %s186_s29 = scalar_lea.vmem (%p45_p3), %s3027_s0, %s2304_s25 }
  0x10   : > { %v199_v0 = vld [vmem:[%s186_s29] sm:$0xff] (%p45_p3)  ;;  %v201_v1 = vld [vmem:[%s186_s29 + $0x8] sm:$0xff] (%p45_p3)  ;;  %v203_v2 = vld [vmem:[%s186_s29 + $0x10] sm:$0xff] (%p45_p3)  ;;  %s180_s30 = scalar_lea.vmem (%p45_p3), [#allocation3], %s2310_s26 }
  0x11   : > { %200 = vst [vmem:[%s180_s30] sm:$0xff] %v199_v0  ;;  %202 = vst [vmem:[%s180_s30 + $0x8] sm:$0xff] %v201_v1  ;;  %v205_v3 = vld [vmem:[%s186_s29 + $0x48] sm:$0xff]  ;;  %v207_v4 = vld [vmem:[%s186_s29 + $0x50] sm:$0xff] }
  0x12   : > { %204 = vst [vmem:[%s180_s30 + $0x10] sm:$0xff] %v203_v2  ;;  %v209_v5 = vld [vmem:[%s186_s29 + $0x58] sm:$0xff]  ;;  %206 = vst [vmem:[%s180_s30 + $0x18] sm:$0xff] %v205_v3 }
  0x13   : > { %208 = vst [vmem:[%s180_s30 + $0x20] sm:$0xff] %v207_v4  ;;  %210 = vst [vmem:[%s180_s30 + $0x28] sm:$0xff] %v209_v5 }
  0x14 PF: > { %p2091_p6 = scmp.ge.s32.totalorder %s2689_s19, 1  ;;  %p225_p7 = scmp.lt.s32.totalorder %s2689_s19, 4 }
  0x16   : > { %p226_p8 = pnand %p2091_p6, %p225_p7 }
  0x17   : > { %s232_s5 = sand.u32 (!%p226_p8), 1, %s2673_s15   ;;  %s274_s6 = smul.u32 (!%p226_p8), 96, %s2681_s17 }
  0x18   : > { %229 = sbr.rel (%p226_p8) target bundleno = 470 (0x1d6), region = 47  ;;  %p2094_p10 = scmp.ne.s32.totalorder (!%p226_p8), %s2681_s17, 0 }
  0x19   : > { %s2311_s7 = smul.u32 (!%p226_p8), 48, %s232_s5  ;;  %p275_p9 = scmp.lt.s32.totalorder (!%p226_p8), %s274_s6, 287 }
  0x1b   : > { %s2770_s12 = scalar_lea.vmem (!%p226_p8), [#allocation3], %s2311_s7 }
  0x1d   : > { %s3039_s6 = smov (!%p275_p9, %s274_s6), 287  ;;  %299 = sbr.rel (%p2094_p10) target bundleno = 39 (0x27), region = 55 }
  0x1e   : > { %s2305_s8 = sshll.u32 %s3039_s6, 4 }
  0x1f   : > { %s2768_s11 = scalar_lea.vmem %s3028_s1, %s2305_s8 }
  0x22   : > { %v2691_v6 = vmov 0.0  }
  0x23   : > { %300 = vst [vmem:[#allocation2 + $0x30] sm:$0xff] %v2691_v6  ;;  %301 = vst [vmem:[#allocation2] sm:$0xff] %v2691_v6 }
  0x24   : > { %302 = vst [vmem:[#allocation2 + $0x18] sm:$0xff] %v2691_v6  ;;  %303 = vst [vmem:[#allocation2 + $0x10] sm:$0xff] %v2691_v6 }
  0x25   : > { %304 = vst [vmem:[#allocation2 + $0x8] sm:$0xff] %v2691_v6  ;;  %305 = vst [vmem:[#allocation2 + $0x20] sm:$0xff] %v2691_v6 }
  0x26   : > { %306 = vst [vmem:[#allocation2 + $0x28] sm:$0xff] %v2691_v6  ;;  %307 = vst [vmem:[#allocation2 + $0x38] sm:$0xff] %v2691_v6 }
  0x27 PF: > { %v2354_v7 = vld [vmem:[%s2768_s11 + $0xe4] ss:$16 sps:$4 sm:$0xff]   ;;  %v2358_v9 = vld [vmem:[%s2768_s11 + $0xe0] ss:$16 sps:$4 sm:$0xff]   ;;  %p2293_p11 = scmp.ne.s32.totalorder %s2681_s17, 2 }
  0x28   : > { %v2356_v8 = vld [vmem:[%s2768_s11 + $0x2e4] ss:$16 sps:$4 sm:$0xff]   ;;  %1504 = vmatprep.subr.bf16.mxu0 %v2354_v7  ;;  %v2359_v10 = vld [vmem:[%s2768_s11 + $0x2e0] ss:$16 sps:$4 sm:$0xff]  }
  0x29   : > { %1547 = vmatprep.subr.bf16.mxu1 %v2356_v8  ;;  %v2360_v11 = vld [vmem:[%s2768_s11 + $0xc4] ss:$16 sps:$4 sm:$0xff]   ;;  %1505 = vmatpush1.bf16.msra.mxu0 %v2358_v9  ;;  %v2364_v13 = vld [vmem:[%s2768_s11 + $0xc0] ss:$16 sps:$4 sm:$0xff]  }
  0x2a   : > { %1548 = vmatpush1.bf16.msra.mxu1 %v2359_v10  ;;  %v2362_v12 = vld [vmem:[%s2768_s11 + $0x2c4] ss:$16 sps:$4 sm:$0xff]   ;;  %1506 = vmatprep.subr.bf16.mxu0 %v2360_v11  ;;  %v2365_v14 = vld [vmem:[%s2768_s11 + $0x2c0] ss:$16 sps:$4 sm:$0xff]   ;;  %v2461_v10 = vld [vmem:[%s2768_s11 + $0xec] ss:$16 sps:$4 sm:$0xff]  }
  0x2b   : > { %1549 = vmatprep.subr.bf16.mxu1 %v2362_v12  ;;  %v2366_v15 = vld [vmem:[%s2768_s11 + $0xa4] ss:$16 sps:$4 sm:$0xff]   ;;  %v2370_v17 = vld [vmem:[%s2768_s11 + $0xa0] ss:$16 sps:$4 sm:$0xff]  }
  0x2c   : > { %v2368_v16 = vld [vmem:[%s2768_s11 + $0x2a4] ss:$16 sps:$4 sm:$0xff]   ;;  %v2371_v18 = vld [vmem:[%s2768_s11 + $0x2a0] ss:$16 sps:$4 sm:$0xff]  }
  0x2d   : > { %1507 = vmatpush1.bf16.msra.mxu0 %v2364_v13  ;;  %v2372_v19 = vld [vmem:[%s2768_s11 + $0x84] ss:$16 sps:$4 sm:$0xff]   ;;  %v2376_v21 = vld [vmem:[%s2768_s11 + $0x80] ss:$16 sps:$4 sm:$0xff]  }
  0x2e   : > { %1550 = vmatpush1.bf16.msra.mxu1 %v2365_v14  ;;  %1508 = vmatprep.subr.bf16.mxu0 %v2366_v15  ;;  %v2374_v20 = vld [vmem:[%s2768_s11 + $0x284] ss:$16 sps:$4 sm:$0xff]   ;;  %v2377_v22 = vld [vmem:[%s2768_s11 + $0x280] ss:$16 sps:$4 sm:$0xff]   ;;  %v2459_v14 = vld [vmem:[%s2768_s11 + $0xe8] ss:$16 sps:$4 sm:$0xff]  }
  0x2f   : > { %1551 = vmatprep.subr.bf16.mxu1 %v2368_v16  ;;  %v2378_v23 = vld [vmem:[%s2768_s11 + $0x64] ss:$16 sps:$4 sm:$0xff]   ;;  %v2382_v25 = vld [vmem:[%s2768_s11 + $0x60] ss:$16 sps:$4 sm:$0xff]   ;;  %v2467_v16 = vld [vmem:[%s2768_s11 + $0xcc] ss:$16 sps:$4 sm:$0xff]  }
  0x30   : > { %v2380_v24 = vld [vmem:[%s2768_s11 + $0x264] ss:$16 sps:$4 sm:$0xff]   ;;  %v2383_v26 = vld [vmem:[%s2768_s11 + $0x260] ss:$16 sps:$4 sm:$0xff]  }
  0x31   : > { %1509 = vmatpush1.bf16.msra.mxu0 %v2370_v17  ;;  %v2384_v27 = vld [vmem:[%s2768_s11 + $0x44] ss:$16 sps:$4 sm:$0xff]   ;;  %v2388_v29 = vld [vmem:[%s2768_s11 + $0x40] ss:$16 sps:$4 sm:$0xff]  }
  0x32   : > { %1552 = vmatpush1.bf16.msra.mxu1 %v2371_v18  ;;  %1510 = vmatprep.subr.bf16.mxu0 %v2372_v19  ;;  %v2386_v28 = vld [vmem:[%s2768_s11 + $0x244] ss:$16 sps:$4 sm:$0xff]   ;;  %v2389_v30 = vld [vmem:[%s2768_s11 + $0x240] ss:$16 sps:$4 sm:$0xff]   ;;  %v2465_v18 = vld [vmem:[%s2768_s11 + $0xc8] ss:$16 sps:$4 sm:$0xff]  }
  0x33   : > { %1553 = vmatprep.subr.bf16.mxu1 %v2374_v20  ;;  %v2390_v31 = vld [vmem:[%s2768_s11 + $0x24] ss:$16 sps:$4 sm:$0xff]   ;;  %v2394_v33 = vld [vmem:[%s2768_s11 + $0x20] ss:$16 sps:$4 sm:$0xff]   ;;  %v2473_v20 = vld [vmem:[%s2768_s11 + $0xac] ss:$16 sps:$4 sm:$0xff]  }
  0x34   : > { %v2392_v32 = vld [vmem:[%s2768_s11 + $0x224] ss:$16 sps:$4 sm:$0xff]   ;;  %v2395_v34 = vld [vmem:[%s2768_s11 + $0x220] ss:$16 sps:$4 sm:$0xff]  }
  0x35   : > { %1511 = vmatpush1.bf16.msra.mxu0 %v2376_v21  ;;  %v2396_v35 = vld [vmem:[%s2768_s11 + $0x4] ss:$16 sps:$4 sm:$0xff]   ;;  %v2400_v37 = vld [vmem:[%s2768_s11] ss:$16 sps:$4 sm:$0xff]  }
  0x36   : > { %1554 = vmatpush1.bf16.msra.mxu1 %v2377_v22  ;;  %1512 = vmatprep.subr.bf16.mxu0 %v2378_v23  ;;  %v2398_v36 = vld [vmem:[%s2768_s11 + $0x204] ss:$16 sps:$4 sm:$0xff]   ;;  %v2401_v38 = vld [vmem:[%s2768_s11 + $0x200] ss:$16 sps:$4 sm:$0xff]   ;;  %v2471_v22 = vld [vmem:[%s2768_s11 + $0xa8] ss:$16 sps:$4 sm:$0xff]  }
  0x37   : > { %1555 = vmatprep.subr.bf16.mxu1 %v2380_v24  ;;  %v2402_v39 = vld [vmem:[%s2768_s11 + $0x1e4] ss:$16 sps:$4 sm:$0xff]   ;;  %v2406_v41 = vld [vmem:[%s2768_s11 + $0x1e0] ss:$16 sps:$4 sm:$0xff]   ;;  %v2479_v24 = vld [vmem:[%s2768_s11 + $0x8c] ss:$16 sps:$4 sm:$0xff]  }
  0x38   : > { %v2404_v40 = vld [vmem:[%s2768_s11 + $0x3e4] ss:$16 sps:$4 sm:$0xff]   ;;  %v2407_v42 = vld [vmem:[%s2768_s11 + $0x3e0] ss:$16 sps:$4 sm:$0xff]  }
  0x39   : > { %1513 = vmatpush1.bf16.msra.mxu0 %v2382_v25  ;;  %v2408_v43 = vld [vmem:[%s2768_s11 + $0x1c4] ss:$16 sps:$4 sm:$0xff]   ;;  %v2412_v45 = vld [vmem:[%s2768_s11 + $0x1c0] ss:$16 sps:$4 sm:$0xff]  }
  0x3a   : > { %1556 = vmatpush1.bf16.msra.mxu1 %v2383_v26  ;;  %1514 = vmatprep.subr.bf16.mxu0 %v2384_v27  ;;  %v2410_v44 = vld [vmem:[%s2768_s11 + $0x3c4] ss:$16 sps:$4 sm:$0xff]   ;;  %v2413_v46 = vld [vmem:[%s2768_s11 + $0x3c0] ss:$16 sps:$4 sm:$0xff]   ;;  %v2477_v26 = vld [vmem:[%s2768_s11 + $0x88] ss:$16 sps:$4 sm:$0xff]  }
  0x3b   : > { %1557 = vmatprep.subr.bf16.mxu1 %v2386_v28  ;;  %v2414_v47 = vld [vmem:[%s2768_s11 + $0x1a4] ss:$16 sps:$4 sm:$0xff]   ;;  %v2418_v49 = vld [vmem:[%s2768_s11 + $0x1a0] ss:$16 sps:$4 sm:$0xff]   ;;  %v2485_v28 = vld [vmem:[%s2768_s11 + $0x6c] ss:$16 sps:$4 sm:$0xff]  }
  0x3c   : > { %v2416_v48 = vld [vmem:[%s2768_s11 + $0x3a4] ss:$16 sps:$4 sm:$0xff]   ;;  %v2419_v50 = vld [vmem:[%s2768_s11 + $0x3a0] ss:$16 sps:$4 sm:$0xff]  }
  0x3d   : > { %1515 = vmatpush1.bf16.msra.mxu0 %v2388_v29  ;;  %v2420_v51 = vld [vmem:[%s2768_s11 + $0x184] ss:$16 sps:$4 sm:$0xff]   ;;  %v2424_v53 = vld [vmem:[%s2768_s11 + $0x180] ss:$16 sps:$4 sm:$0xff]  }
  0x3e   : > { %1558 = vmatpush1.bf16.msra.mxu1 %v2389_v30  ;;  %1516 = vmatprep.subr.bf16.mxu0 %v2390_v31  ;;  %v2422_v52 = vld [vmem:[%s2768_s11 + $0x384] ss:$16 sps:$4 sm:$0xff]   ;;  %v2425_v54 = vld [vmem:[%s2768_s11 + $0x380] ss:$16 sps:$4 sm:$0xff]   ;;  %v2483_v30 = vld [vmem:[%s2768_s11 + $0x68] ss:$16 sps:$4 sm:$0xff]  }
  0x3f   : > { %1559 = vmatprep.subr.bf16.mxu1 %v2392_v32  ;;  %v2426_v55 = vld [vmem:[%s2768_s11 + $0x164] ss:$16 sps:$4 sm:$0xff]   ;;  %v2430_v59 = vld [vmem:[%s2768_s11 + $0x160] ss:$16 sps:$4 sm:$0xff]   ;;  %v2491_v32 = vld [vmem:[%s2768_s11 + $0x4c] ss:$16 sps:$4 sm:$0xff]  }
  0x40   : > { %v2452_v56 = vld [vmem:[%s2770_s12 + $0x4] ss:$24 sps:$4 sm:$0xff]   ;;  %v2431_v60 = vld [vmem:[%s2768_s11 + $0x360] ss:$16 sps:$4 sm:$0xff]  }
  0x41   : > { %1517 = vmatpush1.bf16.msra.mxu0 %v2394_v33  ;;  %v2428_v57 = vld [vmem:[%s2768_s11 + $0x364] ss:$16 sps:$4 sm:$0xff]   ;;  %1536 = vmatprep.mubr.bf16.mxu0 %v2452_v56  ;;  %v2436_v63 = vld [vmem:[%s2768_s11 + $0x140] ss:$16 sps:$4 sm:$0xff]  }
  0x42   : > { %1560 = vmatpush1.bf16.msra.mxu1 %v2395_v34  ;;  %1518 = vmatprep.subr.bf16.mxu0 %v2396_v35  ;;  %v2825_v58 = vld [vmem:[%s2770_s12 + $0xc] ss:$24 sps:$4 sm:$0xff]   ;;  %v2437_v0 = vld [vmem:[%s2768_s11 + $0x340] ss:$16 sps:$4 sm:$0xff]   ;;  %v2489_v34 = vld [vmem:[%s2768_s11 + $0x48] ss:$16 sps:$4 sm:$0xff]  }
  0x43   : > { %1561 = vmatprep.subr.bf16.mxu1 %v2398_v36  ;;  %1579 = vmatprep.mubr.bf16.mxu1 %v2825_v58  ;;  %v2432_v61 = vld [vmem:[%s2768_s11 + $0x144] ss:$16 sps:$4 sm:$0xff]   ;;  %v2442_v3 = vld [vmem:[%s2768_s11 + $0x120] ss:$16 sps:$4 sm:$0xff]   ;;  %v2497_v36 = vld [vmem:[%s2768_s11 + $0x2c] ss:$16 sps:$4 sm:$0xff]  }
  0x44   : > { %v2434_v62 = vld [vmem:[%s2768_s11 + $0x344] ss:$16 sps:$4 sm:$0xff]   ;;  %v2443_v4 = vld [vmem:[%s2768_s11 + $0x320] ss:$16 sps:$4 sm:$0xff]  }
  0x45   : > { %1519 = vmatpush1.bf16.msra.mxu0 %v2400_v37  ;;  %v2438_v1 = vld [vmem:[%s2768_s11 + $0x124] ss:$16 sps:$4 sm:$0xff]   ;;  %v2448_v7 = vld [vmem:[%s2768_s11 + $0x100] ss:$16 sps:$4 sm:$0xff]  }
  0x46   : > { %1562 = vmatpush1.bf16.msra.mxu1 %v2401_v38  ;;  %1520 = vmatprep.subr.bf16.mxu0 %v2402_v39  ;;  %v2440_v2 = vld [vmem:[%s2768_s11 + $0x324] ss:$16 sps:$4 sm:$0xff]   ;;  %v2449_v8 = vld [vmem:[%s2768_s11 + $0x300] ss:$16 sps:$4 sm:$0xff]   ;;  %v2495_v38 = vld [vmem:[%s2768_s11 + $0x28] ss:$16 sps:$4 sm:$0xff]  }
  0x47   : > { %1563 = vmatprep.subr.bf16.mxu1 %v2404_v40  ;;  %v2444_v5 = vld [vmem:[%s2768_s11 + $0x104] ss:$16 sps:$4 sm:$0xff]   ;;  %v2845_v11 = vld [vmem:[%s2770_s12] ss:$24 sps:$4 sm:$0xff]   ;;  %v2503_v40 = vld [vmem:[%s2768_s11 + $0xc] ss:$16 sps:$4 sm:$0xff]  }
  0x48   : > { %v2446_v6 = vld [vmem:[%s2768_s11 + $0x304] ss:$16 sps:$4 sm:$0xff]   ;;  %v2848_v12 = vld [vmem:[%s2770_s12 + $0x8] ss:$24 sps:$4 sm:$0xff]  }
  0x49   : > { %1521 = vmatpush2.bf16.msra.mxu0 %v2406_v41  ;;  %v2458_v9 = vld [vmem:[%s2768_s11 + $0x4e4] ss:$16 sps:$4 sm:$0xff]   ;;  %v2456_v13 = vld [vmem:[%s2768_s11 + $0x4e0] ss:$16 sps:$4 sm:$0xff]  }
  0x4a   : > { %1564 = vmatpush2.bf16.msra.mxu1 %v2407_v42  ;;  %1522 = vmatprep.subr.bf16.mxu0 %v2408_v43  ;;  %v2464_v15 = vld [vmem:[%s2768_s11 + $0x4c4] ss:$16 sps:$4 sm:$0xff]   ;;  %v2462_v17 = vld [vmem:[%s2768_s11 + $0x4c0] ss:$16 sps:$4 sm:$0xff]   ;;  %v2501_v43 = vld [vmem:[%s2768_s11 + $0x8] ss:$16 sps:$4 sm:$0xff]  }
  0x4b   : > { %1565 = vmatprep.subr.bf16.mxu1 %v2410_v44  ;;  %v2470_v19 = vld [vmem:[%s2768_s11 + $0x4a4] ss:$16 sps:$4 sm:$0xff]   ;;  %v2468_v21 = vld [vmem:[%s2768_s11 + $0x4a0] ss:$16 sps:$4 sm:$0xff]  }
  0x4c   : > { %v2476_v23 = vld [vmem:[%s2768_s11 + $0x484] ss:$16 sps:$4 sm:$0xff]   ;;  %v2474_v25 = vld [vmem:[%s2768_s11 + $0x480] ss:$16 sps:$4 sm:$0xff]  }
  0x4d   : > { %1523 = vmatpush2.bf16.msra.mxu0 %v2412_v45  ;;  %v2482_v27 = vld [vmem:[%s2768_s11 + $0x464] ss:$16 sps:$4 sm:$0xff]   ;;  %v2480_v29 = vld [vmem:[%s2768_s11 + $0x460] ss:$16 sps:$4 sm:$0xff]   ;;  %v2509_v45 = vld [vmem:[%s2768_s11 + $0x1ec] ss:$16 sps:$4 sm:$0xff]  }
  0x4e   : > { %1566 = vmatpush2.bf16.msra.mxu1 %v2413_v46  ;;  %1524 = vmatprep.subr.bf16.mxu0 %v2414_v47  ;;  %v2488_v31 = vld [vmem:[%s2768_s11 + $0x444] ss:$16 sps:$4 sm:$0xff]   ;;  %v2486_v33 = vld [vmem:[%s2768_s11 + $0x440] ss:$16 sps:$4 sm:$0xff]   ;;  %v2507_v47 = vld [vmem:[%s2768_s11 + $0x1e8] ss:$16 sps:$4 sm:$0xff]  }
  0x4f   : > { %1567 = vmatprep.subr.bf16.mxu1 %v2416_v48  ;;  %v2494_v35 = vld [vmem:[%s2768_s11 + $0x424] ss:$16 sps:$4 sm:$0xff]   ;;  %v2492_v37 = vld [vmem:[%s2768_s11 + $0x420] ss:$16 sps:$4 sm:$0xff]  }
  0x50   : > { %v2500_v39 = vld [vmem:[%s2768_s11 + $0x404] ss:$16 sps:$4 sm:$0xff]   ;;  %v2498_v42 = vld [vmem:[%s2768_s11 + $0x400] ss:$16 sps:$4 sm:$0xff]  }
  0x51   : > { %1525 = vmatpush2.bf16.msra.mxu0 %v2418_v49  ;;  %v2881_v41 = vld [vmem:[%s2770_s12 + $0x14] ss:$24 sps:$4 sm:$0xff]   ;;  %v2504_v46 = vld [vmem:[%s2768_s11 + $0x5e0] ss:$16 sps:$4 sm:$0xff]  }
  0x52   : > { %1568 = vmatpush2.bf16.msra.mxu1 %v2419_v50  ;;  %1526 = vmatprep.subr.bf16.mxu0 %v2420_v51  ;;  %v2506_v44 = vld [vmem:[%s2768_s11 + $0x5e4] ss:$16 sps:$4 sm:$0xff]   ;;  %v2515_v49 = vld [vmem:[%s2768_s11 + $0x1cc] ss:$16 sps:$4 sm:$0xff]   ;;  %v2510_v50 = vld [vmem:[%s2768_s11 + $0x5c0] ss:$16 sps:$4 sm:$0xff]  }
  0x53   : > { %1569 = vmatprep.subr.bf16.mxu1 %v2422_v52  ;;  %v2512_v48 = vld [vmem:[%s2768_s11 + $0x5c4] ss:$16 sps:$4 sm:$0xff]   ;;  %v2513_v51 = vld [vmem:[%s2768_s11 + $0x1c8] ss:$16 sps:$4 sm:$0xff]  }
  0x54   : > { %v2518_v52 = vld [vmem:[%s2768_s11 + $0x5a4] ss:$16 sps:$4 sm:$0xff]  }
  0x55   : > { %1527 = vmatpush2.bf16.msra.mxu0 %v2424_v53  ;;  %v2521_v53 = vld [vmem:[%s2768_s11 + $0x1ac] ss:$16 sps:$4 sm:$0xff]  }
  0x56   : > { %1570 = vmatpush2.bf16.msra.mxu1 %v2425_v54  ;;  %1528 = vmatprep.subr.bf16.mxu0 %v2426_v55  ;;  %v2516_v54 = vld [vmem:[%s2768_s11 + $0x5a0] ss:$16 sps:$4 sm:$0xff]   ;;  %v2519_v55 = vld [vmem:[%s2768_s11 + $0x1a8] ss:$16 sps:$4 sm:$0xff]  }
  0x57   : > { %1571 = vmatprep.subr.bf16.mxu1 %v2428_v57  ;;  %v2527_v57 = vld [vmem:[%s2768_s11 + $0x18c] ss:$16 sps:$4 sm:$0xff]  }
  0x59   : > { %1529 = vmatpush2.bf16.msra.mxu0 %v2430_v59  ;;  %v2522_v59 = vld [vmem:[%s2768_s11 + $0x580] ss:$16 sps:$4 sm:$0xff]  }
  0x5a   : > { %1572 = vmatpush2.bf16.msra.mxu1 %v2431_v60  ;;  %1530 = vmatprep.subr.bf16.mxu0 %v2432_v61  ;;  %v2525_v60 = vld [vmem:[%s2768_s11 + $0x188] ss:$16 sps:$4 sm:$0xff]   ;;  %v2530_v61 = vld [vmem:[%s2768_s11 + $0x564] ss:$16 sps:$4 sm:$0xff]  }
  0x5b   : > { %1573 = vmatprep.subr.bf16.mxu1 %v2434_v62  ;;  %v2533_v62 = vld [vmem:[%s2768_s11 + $0x16c] ss:$16 sps:$4 sm:$0xff]  }
  0x5d   : > { %1531 = vmatpush2.bf16.msra.mxu0 %v2436_v63  ;;  %v2528_v63 = vld [vmem:[%s2768_s11 + $0x560] ss:$16 sps:$4 sm:$0xff]  }
  0x5e   : > { %1574 = vmatpush2.bf16.msra.mxu1 %v2437_v0  ;;  %1532 = vmatprep.subr.bf16.mxu0 %v2438_v1  ;;  %v2531_v0 = vld [vmem:[%s2768_s11 + $0x168] ss:$16 sps:$4 sm:$0xff]   ;;  %v2536_v1 = vld [vmem:[%s2768_s11 + $0x544] ss:$16 sps:$4 sm:$0xff]  }
  0x5f   : > { %1575 = vmatprep.subr.bf16.mxu1 %v2440_v2  ;;  %v2539_v2 = vld [vmem:[%s2768_s11 + $0x14c] ss:$16 sps:$4 sm:$0xff]  }
  0x61   : > { %1533 = vmatpush2.bf16.msra.mxu0 %v2442_v3  ;;  %v2534_v3 = vld [vmem:[%s2768_s11 + $0x540] ss:$16 sps:$4 sm:$0xff]  }
  0x62   : > { %1576 = vmatpush2.bf16.msra.mxu1 %v2443_v4  ;;  %1534 = vmatprep.subr.bf16.mxu0 %v2444_v5  ;;  %v2537_v4 = vld [vmem:[%s2768_s11 + $0x148] ss:$16 sps:$4 sm:$0xff]   ;;  %v2542_v5 = vld [vmem:[%s2768_s11 + $0x524] ss:$16 sps:$4 sm:$0xff]  }
  0x63   : > { %1577 = vmatprep.subr.bf16.mxu1 %v2446_v6  ;;  %v2545_v6 = vld [vmem:[%s2768_s11 + $0x12c] ss:$16 sps:$4 sm:$0xff]  }
  0x65   : > { %1535 = vmatpush2.bf16.msra.mxu0 %v2448_v7  ;;  %v2540_v7 = vld [vmem:[%s2768_s11 + $0x520] ss:$16 sps:$4 sm:$0xff]  }
  0x66   : > { %1578 = vmatpush2.bf16.msra.mxu1 %v2449_v8  ;;  %1590 = vmatprep.subr.bf16.mxu0 %v2458_v9  ;;  %v2543_v8 = vld [vmem:[%s2768_s11 + $0x128] ss:$16 sps:$4 sm:$0xff]   ;;  %v2548_v9 = vld [vmem:[%s2768_s11 + $0x504] ss:$16 sps:$4 sm:$0xff]  }
  0x67   : > { %1633 = vmatprep.subr.bf16.mxu1 %v2461_v10  ;;  %v2551_v10 = vld [vmem:[%s2768_s11 + $0x10c] ss:$16 sps:$4 sm:$0xff]  }
  0x68   : > { %1537 = vmatmul.mubr.bf16.vlgmr.msra.gmra.mxu0 %v2845_v11 }
  0x69   : > { %1580 = vmatmul.mubr.bf16.vlgmr.msra.gmra.mxu1 %v2848_v12  ;;  %1591 = vmatpush1.bf16.msra.mxu0 %v2456_v13  ;;  %v2546_v13 = vld [vmem:[%s2768_s11 + $0x500] ss:$16 sps:$4 sm:$0xff]  }
  0x6a   : > { %1634 = vmatpush1.bf16.msra.mxu1 %v2459_v14  ;;  %1592 = vmatprep.subr.bf16.mxu0 %v2464_v15  ;;  %v2549_v14 = vld [vmem:[%s2768_s11 + $0x108] ss:$16 sps:$4 sm:$0xff]   ;;  %v2557_v15 = vld [vmem:[%s2768_s11 + $0x2ec] ss:$16 sps:$4 sm:$0xff]  }
  0x6b   : > { %1635 = vmatprep.subr.bf16.mxu1 %v2467_v16  ;;  %1665 = vmatprep.mubr.bf16.mxu1 %v2452_v56  ;;  %v2524_v56 = vld [vmem:[%s2768_s11 + $0x584] ss:$16 sps:$4 sm:$0xff]   ;;  %v2560_v16 = vld [vmem:[%s2768_s11 + $0x4ec] ss:$16 sps:$4 sm:$0xff]  }
  0x6c   : > { %1622 = vmatprep.mubr.bf16.mxu0 %v2881_v41 }
  0x6d   : > { %1593 = vmatpush1.bf16.msra.mxu0 %v2462_v17  ;;  %v2921_v17 = vld [vmem:[%s2770_s12 + $0x10] ss:$24 sps:$4 sm:$0xff]  }
  0x6e   : > { %1636 = vmatpush1.bf16.msra.mxu1 %v2465_v18  ;;  %1594 = vmatprep.subr.bf16.mxu0 %v2470_v19  ;;  %v2555_v18 = vld [vmem:[%s2768_s11 + $0x2e8] ss:$16 sps:$4 sm:$0xff]  }
  0x6f   : > { %1637 = vmatprep.subr.bf16.mxu1 %v2473_v20  ;;  %v2558_v19 = vld [vmem:[%s2768_s11 + $0x4e8] ss:$16 sps:$4 sm:$0xff]   ;;  %v2563_v20 = vld [vmem:[%s2768_s11 + $0x2cc] ss:$16 sps:$4 sm:$0xff]  }
  0x71   : > { %1595 = vmatpush1.bf16.msra.mxu0 %v2468_v21  ;;  %v2566_v21 = vld [vmem:[%s2768_s11 + $0x4cc] ss:$16 sps:$4 sm:$0xff]  }
  0x72   : > { %1638 = vmatpush1.bf16.msra.mxu1 %v2471_v22  ;;  %1596 = vmatprep.subr.bf16.mxu0 %v2476_v23  ;;  %v2561_v22 = vld [vmem:[%s2768_s11 + $0x2c8] ss:$16 sps:$4 sm:$0xff]  }
  0x73   : > { %1639 = vmatprep.subr.bf16.mxu1 %v2479_v24  ;;  %v2564_v23 = vld [vmem:[%s2768_s11 + $0x4c8] ss:$16 sps:$4 sm:$0xff]   ;;  %v2569_v24 = vld [vmem:[%s2768_s11 + $0x2ac] ss:$16 sps:$4 sm:$0xff]  }
  0x75   : > { %1597 = vmatpush1.bf16.msra.mxu0 %v2474_v25  ;;  %v2572_v25 = vld [vmem:[%s2768_s11 + $0x4ac] ss:$16 sps:$4 sm:$0xff]  }
  0x76   : > { %1640 = vmatpush1.bf16.msra.mxu1 %v2477_v26  ;;  %1598 = vmatprep.subr.bf16.mxu0 %v2482_v27  ;;  %v2570_v26 = vld [vmem:[%s2768_s11 + $0x4a8] ss:$16 sps:$4 sm:$0xff]   ;;  %v2575_v27 = vld [vmem:[%s2768_s11 + $0x28c] ss:$16 sps:$4 sm:$0xff]  }
  0x77   : > { %1641 = vmatprep.subr.bf16.mxu1 %v2485_v28  ;;  %v2578_v28 = vld [vmem:[%s2768_s11 + $0x48c] ss:$16 sps:$4 sm:$0xff]  }
  0x79   : > { %1599 = vmatpush1.bf16.msra.mxu0 %v2480_v29  ;;  %v2573_v29 = vld [vmem:[%s2768_s11 + $0x288] ss:$16 sps:$4 sm:$0xff]  }
  0x7a   : > { %1642 = vmatpush1.bf16.msra.mxu1 %v2483_v30  ;;  %1600 = vmatprep.subr.bf16.mxu0 %v2488_v31  ;;  %v2581_v30 = vld [vmem:[%s2768_s11 + $0x26c] ss:$16 sps:$4 sm:$0xff]  }
  0x7b   : > { %1643 = vmatprep.subr.bf16.mxu1 %v2491_v32  ;;  %v2584_v31 = vld [vmem:[%s2768_s11 + $0x46c] ss:$16 sps:$4 sm:$0xff]   ;;  %v2579_v32 = vld [vmem:[%s2768_s11 + $0x268] ss:$16 sps:$4 sm:$0xff]  }
  0x7d   : > { %1601 = vmatpush1.bf16.msra.mxu0 %v2486_v33  ;;  %v2582_v33 = vld [vmem:[%s2768_s11 + $0x468] ss:$16 sps:$4 sm:$0xff]  }
  0x7e   : > { %1644 = vmatpush1.bf16.msra.mxu1 %v2489_v34  ;;  %1602 = vmatprep.subr.bf16.mxu0 %v2494_v35  ;;  %v2587_v34 = vld [vmem:[%s2768_s11 + $0x24c] ss:$16 sps:$4 sm:$0xff]  }
  0x7f   : > { %1645 = vmatprep.subr.bf16.mxu1 %v2497_v36  ;;  %v2590_v35 = vld [vmem:[%s2768_s11 + $0x44c] ss:$16 sps:$4 sm:$0xff]   ;;  %v2585_v36 = vld [vmem:[%s2768_s11 + $0x248] ss:$16 sps:$4 sm:$0xff]  }
  0x81   : > { %1603 = vmatpush1.bf16.msra.mxu0 %v2492_v37  ;;  %v2588_v37 = vld [vmem:[%s2768_s11 + $0x448] ss:$16 sps:$4 sm:$0xff]  }
  0x82   : > { %1646 = vmatpush1.bf16.msra.mxu1 %v2495_v38  ;;  %1604 = vmatprep.subr.bf16.mxu0 %v2500_v39  ;;  %v2593_v38 = vld [vmem:[%s2768_s11 + $0x22c] ss:$16 sps:$4 sm:$0xff]  }
  0x83   : > { %1647 = vmatprep.subr.bf16.mxu1 %v2503_v40  ;;  %v2596_v39 = vld [vmem:[%s2768_s11 + $0x42c] ss:$16 sps:$4 sm:$0xff]   ;;  %v2591_v40 = vld [vmem:[%s2768_s11 + $0x228] ss:$16 sps:$4 sm:$0xff]  }
  0x85   : > { %1605 = vmatpush1.bf16.msra.mxu0 %v2498_v42  ;;  %v2599_v42 = vld [vmem:[%s2768_s11 + $0x20c] ss:$16 sps:$4 sm:$0xff]  }
  0x86   : > { %1648 = vmatpush1.bf16.msra.mxu1 %v2501_v43  ;;  %1606 = vmatprep.subr.bf16.mxu0 %v2506_v44  ;;  %v2602_v43 = vld [vmem:[%s2768_s11 + $0x40c] ss:$16 sps:$4 sm:$0xff]   ;;  %v2597_v44 = vld [vmem:[%s2768_s11 + $0x208] ss:$16 sps:$4 sm:$0xff]  }
  0x87   : > { %1649 = vmatprep.subr.bf16.mxu1 %v2509_v45  ;;  %v2600_v45 = vld [vmem:[%s2768_s11 + $0x408] ss:$16 sps:$4 sm:$0xff]  }
  0x89   : > { %1607 = vmatpush2.bf16.msra.mxu0 %v2504_v46  ;;  %v2605_v46 = vld [vmem:[%s2768_s11 + $0x3ec] ss:$16 sps:$4 sm:$0xff]  }
  0x8a   : > { %1650 = vmatpush2.bf16.msra.mxu1 %v2507_v47  ;;  %1608 = vmatprep.subr.bf16.mxu0 %v2512_v48  ;;  %v2608_v47 = vld [vmem:[%s2768_s11 + $0x5ec] ss:$16 sps:$4 sm:$0xff]   ;;  %v2603_v48 = vld [vmem:[%s2768_s11 + $0x3e8] ss:$16 sps:$4 sm:$0xff]  }
  0x8b   : > { %1651 = vmatprep.subr.bf16.mxu1 %v2515_v49  ;;  %v2606_v49 = vld [vmem:[%s2768_s11 + $0x5e8] ss:$16 sps:$4 sm:$0xff]  }
  0x8d   : > { %1609 = vmatpush2.bf16.msra.mxu0 %v2510_v50  ;;  %v2611_v50 = vld [vmem:[%s2768_s11 + $0x3cc] ss:$16 sps:$4 sm:$0xff]  }
  0x8e   : > { %1652 = vmatpush2.bf16.msra.mxu1 %v2513_v51  ;;  %1610 = vmatprep.subr.bf16.mxu0 %v2518_v52  ;;  %v2614_v51 = vld [vmem:[%s2768_s11 + $0x5cc] ss:$16 sps:$4 sm:$0xff]   ;;  %v2609_v52 = vld [vmem:[%s2768_s11 + $0x3c8] ss:$16 sps:$4 sm:$0xff]  }
  0x8f   : > { %1653 = vmatprep.subr.bf16.mxu1 %v2521_v53  ;;  %v2612_v53 = vld [vmem:[%s2768_s11 + $0x5c8] ss:$16 sps:$4 sm:$0xff]  }
  0x91   : > { %1611 = vmatpush2.bf16.msra.mxu0 %v2516_v54  ;;  %v2617_v54 = vld [vmem:[%s2768_s11 + $0x3ac] ss:$16 sps:$4 sm:$0xff]  }
  0x92   : > { %1654 = vmatpush2.bf16.msra.mxu1 %v2519_v55  ;;  %1612 = vmatprep.subr.bf16.mxu0 %v2524_v56  ;;  %v2620_v55 = vld [vmem:[%s2768_s11 + $0x5ac] ss:$16 sps:$4 sm:$0xff]   ;;  %v2615_v56 = vld [vmem:[%s2768_s11 + $0x3a8] ss:$16 sps:$4 sm:$0xff]  }
  0x93   : > { %1655 = vmatprep.subr.bf16.mxu1 %v2527_v57  ;;  %v2618_v57 = vld [vmem:[%s2768_s11 + $0x5a8] ss:$16 sps:$4 sm:$0xff]  }
  0x95   : > { %1613 = vmatpush2.bf16.msra.mxu0 %v2522_v59  ;;  %v2623_v59 = vld [vmem:[%s2768_s11 + $0x38c] ss:$16 sps:$4 sm:$0xff]  }
  0x96   : > { %1656 = vmatpush2.bf16.msra.mxu1 %v2525_v60  ;;  %1614 = vmatprep.subr.bf16.mxu0 %v2530_v61  ;;  %v2626_v60 = vld [vmem:[%s2768_s11 + $0x58c] ss:$16 sps:$4 sm:$0xff]   ;;  %v2621_v61 = vld [vmem:[%s2768_s11 + $0x388] ss:$16 sps:$4 sm:$0xff]  }
  0x97   : > { %1657 = vmatprep.subr.bf16.mxu1 %v2533_v62  ;;  %v2624_v62 = vld [vmem:[%s2768_s11 + $0x588] ss:$16 sps:$4 sm:$0xff]  }
  0x99   : > { %1615 = vmatpush2.bf16.msra.mxu0 %v2528_v63  ;;  %v2629_v63 = vld [vmem:[%s2768_s11 + $0x36c] ss:$16 sps:$4 sm:$0xff]  }
  0x9a   : > { %1658 = vmatpush2.bf16.msra.mxu1 %v2531_v0  ;;  %1616 = vmatprep.subr.bf16.mxu0 %v2536_v1  ;;  %v2632_v0 = vld [vmem:[%s2768_s11 + $0x56c] ss:$16 sps:$4 sm:$0xff]   ;;  %v2627_v1 = vld [vmem:[%s2768_s11 + $0x368] ss:$16 sps:$4 sm:$0xff]  }
  0x9b   : > { %1659 = vmatprep.subr.bf16.mxu1 %v2539_v2  ;;  %v2630_v2 = vld [vmem:[%s2768_s11 + $0x568] ss:$16 sps:$4 sm:$0xff]  }
  0x9d   : > { %1617 = vmatpush2.bf16.msra.mxu0 %v2534_v3  ;;  %v2635_v3 = vld [vmem:[%s2768_s11 + $0x34c] ss:$16 sps:$4 sm:$0xff]  }
  0x9e   : > { %1660 = vmatpush2.bf16.msra.mxu1 %v2537_v4  ;;  %1618 = vmatprep.subr.bf16.mxu0 %v2542_v5  ;;  %v2638_v4 = vld [vmem:[%s2768_s11 + $0x54c] ss:$16 sps:$4 sm:$0xff]   ;;  %v2633_v5 = vld [vmem:[%s2768_s11 + $0x348] ss:$16 sps:$4 sm:$0xff]  }
  0x9f   : > { %1661 = vmatprep.subr.bf16.mxu1 %v2545_v6  ;;  %v2636_v6 = vld [vmem:[%s2768_s11 + $0x548] ss:$16 sps:$4 sm:$0xff]  }
  0xa1   : > { %1619 = vmatpush2.bf16.msra.mxu0 %v2540_v7  ;;  %v2641_v7 = vld [vmem:[%s2768_s11 + $0x32c] ss:$16 sps:$4 sm:$0xff]  }
  0xa2   : > { %1662 = vmatpush2.bf16.msra.mxu1 %v2543_v8  ;;  %1620 = vmatprep.subr.bf16.mxu0 %v2548_v9  ;;  %v2644_v8 = vld [vmem:[%s2768_s11 + $0x52c] ss:$16 sps:$4 sm:$0xff]   ;;  %v2639_v9 = vld [vmem:[%s2768_s11 + $0x328] ss:$16 sps:$4 sm:$0xff]  }
  0xa3   : > { %1663 = vmatprep.subr.bf16.mxu1 %v2551_v10  ;;  %v2642_v10 = vld [vmem:[%s2768_s11 + $0x528] ss:$16 sps:$4 sm:$0xff]  }
  0xa5   : > { %1621 = vmatpush2.bf16.msra.mxu0 %v2546_v13  ;;  %v2647_v13 = vld [vmem:[%s2768_s11 + $0x30c] ss:$16 sps:$4 sm:$0xff]  }
  0xa6   : > { %1664 = vmatpush2.bf16.msra.mxu1 %v2549_v14  ;;  %1676 = vmatprep.subr.bf16.mxu0 %v2557_v15  ;;  %v2650_v14 = vld [vmem:[%s2768_s11 + $0x50c] ss:$16 sps:$4 sm:$0xff]   ;;  %v2645_v15 = vld [vmem:[%s2768_s11 + $0x308] ss:$16 sps:$4 sm:$0xff]  }
  0xa7   : > { %1719 = vmatprep.subr.bf16.mxu1 %v2560_v16  ;;  %v2648_v16 = vld [vmem:[%s2768_s11 + $0x508] ss:$16 sps:$4 sm:$0xff]  }
  0xa8   : > { %1623 = vmatmul.mubr.bf16.vlgmr.msra.gmra.mxu0 %v2921_v17 }
  0xa9   : > { %1666 = vmatmul.mubr.bf16.vlgmr.msra.gmra.mxu1 %v2845_v11  ;;  %1677 = vmatpush1.bf16.msra.mxu0 %v2555_v18  ;;  %v2567_v11 = vld [vmem:[%s2768_s11 + $0x2a8] ss:$16 sps:$4 sm:$0xff]  }
  0xaa   : > { %1720 = vmatpush1.bf16.msra.mxu1 %v2558_v19  ;;  %1678 = vmatprep.subr.bf16.mxu0 %v2563_v20 }
  0xab   : > { %1721 = vmatprep.subr.bf16.mxu1 %v2566_v21  ;;  %1708 = vmatprep.mubr.bf16.mxu0 %v2825_v58  ;;  %v2576_v58 = vld [vmem:[%s2768_s11 + $0x488] ss:$16 sps:$4 sm:$0xff]  }
  0xac   : > { %1751 = vmatprep.mubr.bf16.mxu1 %v2881_v41  ;;  %v2594_v41 = vld [vmem:[%s2768_s11 + $0x428] ss:$16 sps:$4 sm:$0xff]  }
  0xad   : > { %1679 = vmatpush1.bf16.msra.mxu0 %v2561_v22 }
  0xae   : > { %1722 = vmatpush1.bf16.msra.mxu1 %v2564_v23  ;;  %1680 = vmatprep.subr.bf16.mxu0 %v2569_v24 }
  0xaf   : > { %1723 = vmatprep.subr.bf16.mxu1 %v2572_v25 }
  0xb1   : > { %1681 = vmatpush1.bf16.msra.mxu0 %v2567_v11  ;;  %v308_v11 = vld [vmem:[#allocation2 + $0x30] sm:$0xff] }
  0xb2   : > { %1724 = vmatpush1.bf16.msra.mxu1 %v2570_v26  ;;  %1682 = vmatprep.subr.bf16.mxu0 %v2575_v27 }
  0xb3   : > { %1725 = vmatprep.subr.bf16.mxu1 %v2578_v28 }
  0xb5   : > { %1683 = vmatpush1.bf16.msra.mxu0 %v2573_v29 }
  0xb6   : > { %1726 = vmatpush1.bf16.msra.mxu1 %v2576_v58  ;;  %1684 = vmatprep.subr.bf16.mxu0 %v2581_v30  ;;  %v309_v58 = vld [vmem:[#allocation2] sm:$0xff] }
  0xb7   : > { %1727 = vmatprep.subr.bf16.mxu1 %v2584_v31 }
  0xb9   : > { %1685 = vmatpush1.bf16.msra.mxu0 %v2579_v32 }
  0xba   : > { %1728 = vmatpush1.bf16.msra.mxu1 %v2582_v33  ;;  %1686 = vmatprep.subr.bf16.mxu0 %v2587_v34  ;;  %v312_v33 = vld [vmem:[#allocation2 + $0x8] sm:$0xff] }
  0xbb   : > { %1729 = vmatprep.subr.bf16.mxu1 %v2590_v35 }
  0xbd   : > { %1687 = vmatpush1.bf16.msra.mxu0 %v2585_v36 }
  0xbe   : > { %1730 = vmatpush1.bf16.msra.mxu1 %v2588_v37  ;;  %1688 = vmatprep.subr.bf16.mxu0 %v2593_v38  ;;  %v313_v37 = vld [vmem:[#allocation2 + $0x20] sm:$0xff] }
  0xbf   : > { %1731 = vmatprep.subr.bf16.mxu1 %v2596_v39 }
  0xc1   : > { %1689 = vmatpush1.bf16.msra.mxu0 %v2591_v40 }
  0xc2   : > { %1732 = vmatpush1.bf16.msra.mxu1 %v2594_v41  ;;  %1690 = vmatprep.subr.bf16.mxu0 %v2599_v42 }
  0xc3   : > { %1733 = vmatprep.subr.bf16.mxu1 %v2602_v43 }
  0xc5   : > { %1691 = vmatpush1.bf16.msra.mxu0 %v2597_v44 }
  0xc6   : > { %1734 = vmatpush1.bf16.msra.mxu1 %v2600_v45  ;;  %1692 = vmatprep.subr.bf16.mxu0 %v2605_v46 }
  0xc7   : > { %1735 = vmatprep.subr.bf16.mxu1 %v2608_v47 }
  0xc9   : > { %1693 = vmatpush2.bf16.msra.mxu0 %v2603_v48 }
  0xca   : > { %1736 = vmatpush2.bf16.msra.mxu1 %v2606_v49  ;;  %1694 = vmatprep.subr.bf16.mxu0 %v2611_v50  ;;  %v310_v49 = vld [vmem:[#allocation2 + $0x18] sm:$0xff] }
  0xcb   : > { %1737 = vmatprep.subr.bf16.mxu1 %v2614_v51 }
  0xcd   : > { %1695 = vmatpush2.bf16.msra.mxu0 %v2609_v52 }
  0xce   : > { %1738 = vmatpush2.bf16.msra.mxu1 %v2612_v53  ;;  %1696 = vmatprep.subr.bf16.mxu0 %v2617_v54  ;;  %v311_v54 = vld [vmem:[#allocation2 + $0x10] sm:$0xff] }
  0xcf   : > { %1739 = vmatprep.subr.bf16.mxu1 %v2620_v55 }
  0xd1   : > { %1697 = vmatpush2.bf16.msra.mxu0 %v2615_v56 }
  0xd2   : > { %1740 = vmatpush2.bf16.msra.mxu1 %v2618_v57  ;;  %1698 = vmatprep.subr.bf16.mxu0 %v2623_v59 }
  0xd3   : > { %1741 = vmatprep.subr.bf16.mxu1 %v2626_v60 }
  0xd5   : > { %1699 = vmatpush2.bf16.msra.mxu0 %v2621_v61  ;;  %v314_v61 = vld [vmem:[#allocation2 + $0x28] sm:$0xff] }
  0xd6   : > { %1742 = vmatpush2.bf16.msra.mxu1 %v2624_v62  ;;  %1700 = vmatprep.subr.bf16.mxu0 %v2629_v63 }
  0xd7   : > { %1743 = vmatprep.subr.bf16.mxu1 %v2632_v0 }
  0xd9   : > { %1701 = vmatpush2.bf16.msra.mxu0 %v2627_v1 }
  0xda   : > { %1744 = vmatpush2.bf16.msra.mxu1 %v2630_v2  ;;  %1702 = vmatprep.subr.bf16.mxu0 %v2635_v3  ;;  %v315_v2 = vld [vmem:[#allocation2 + $0x38] sm:$0xff] }
  0xdb   : > { %1745 = vmatprep.subr.bf16.mxu1 %v2638_v4 }
  0xdd   : > { %1703 = vmatpush2.bf16.msra.mxu0 %v2633_v5 }
  0xde   : > { %1746 = vmatpush2.bf16.msra.mxu1 %v2636_v6  ;;  %1704 = vmatprep.subr.bf16.mxu0 %v2641_v7 }
  0xdf   : > { %1747 = vmatprep.subr.bf16.mxu1 %v2644_v8 }
  0xe1   : > { %1705 = vmatpush2.bf16.msra.mxu0 %v2639_v9 }
  0xe2   : > { %1748 = vmatpush2.bf16.msra.mxu1 %v2642_v10  ;;  %1706 = vmatprep.subr.bf16.mxu0 %v2647_v13 }
  0xe3   : > { %1749 = vmatprep.subr.bf16.mxu1 %v2650_v14 }
  0xe5   : > { %1707 = vmatpush2.bf16.msra.mxu0 %v2645_v15 }
  0xe6   : > { %1750 = vmatpush2.bf16.msra.mxu1 %v2648_v16 }
  0xe8   : > { %1709 = vmatmul.mubr.bf16.vlgmr.msra.gmra.mxu0 %v2848_v12 }
  0xe9   : > { %1752 = vmatmul.mubr.bf16.vlgmr.msra.gmra.mxu1 %v2921_v17 }
 0x128   : > { %v1538_v18 = vpop.f32.mrf.mxu0 }
 0x129   : > { %v1581_v19 = vpop.f32.mrf.mxu1 }
 0x12a   : > { %v1540_v20 = vpop.f32.mrf.mxu0  ;;  %v1582_v25 = vadd.f32 %v1581_v19, %v1538_v18 }
 0x12b   : > { %v1583_v21 = vpop.f32.mrf.mxu1 }
 0x12c   : > { %v1542_v22 = vpop.f32.mrf.mxu0  ;;  %v1584_v27 = vadd.f32 %v1583_v21, %v1540_v20 }
 0x12d   : > { %v1585_v23 = vpop.f32.mrf.mxu1 }
 0x12e   : > { %v1544_v24 = vpop.f32.mrf.mxu0  ;;  %v1586_v31 = vadd.f32 %v1585_v23, %v1542_v22 }
 0x12f   : > { %v1587_v29 = vpop.f32.mrf.mxu1 }
 0x130   : > { %v1588_v34 = vadd.f32 %v1587_v29, %v1544_v24 }
 0x168   : > { %v1624_v26 = vpop.f32.mrf.mxu0 }
 0x169   : > { %v1625_v28 = vadd.f32 %v1624_v26, %v1582_v25  ;;  %v1667_v42 = vpop.f32.mrf.mxu1 }
 0x16a   : > { %v1626_v30 = vpop.f32.mrf.mxu0 }
 0x16b   : > { %v1762_v32 = vadd.f32 %v1625_v28, %v308_v11  ;;  %v1627_v12 = vadd.f32 %v1626_v30, %v1584_v27  ;;  %v1669_v43 = vpop.f32.mrf.mxu1 }
 0x16c   : > { %v1628_v17 = vpop.f32.mrf.mxu0 }
 0x16d   : > { %1770 = vst [vmem:[#allocation2 + $0x30] sm:$0xff] %v1762_v32  ;;  %v1763_v35 = vadd.f32 %v1627_v12, %v309_v58  ;;  %v1629_v36 = vadd.f32 %v1628_v17, %v1586_v31  ;;  %v1671_v44 = vpop.f32.mrf.mxu1 }
 0x16e   : > { %v1630_v38 = vpop.f32.mrf.mxu0 }
 0x16f   : > { %1771 = vst [vmem:[#allocation2] sm:$0xff] %v1763_v35  ;;  %v1766_v39 = vadd.f32 %v1629_v36, %v312_v33  ;;  %v1631_v40 = vadd.f32 %v1630_v38, %v1588_v34  ;;  %v1673_v45 = vpop.f32.mrf.mxu1 }
 0x171   : > { %1774 = vst [vmem:[#allocation2 + $0x8] sm:$0xff] %v1766_v39  ;;  %v1767_v41 = vadd.f32 %v1631_v40, %v313_v37 }
 0x173   : > { %1775 = vst [vmem:[#allocation2 + $0x20] sm:$0xff] %v1767_v41 }
 0x1a8   : > { %v1710_v46 = vpop.f32.mrf.mxu0 }
 0x1a9   : > { %v1753_v47 = vpop.f32.mrf.mxu1  ;;  %v1711_v48 = vadd.f32 %v1710_v46, %v1667_v42 }
 0x1aa   : > { %v1712_v50 = vpop.f32.mrf.mxu0 }
 0x1ab   : > { %v1755_v51 = vpop.f32.mrf.mxu1  ;;  %v1754_v52 = vadd.f32 %v1753_v47, %v1711_v48  ;;  %v1713_v53 = vadd.f32 %v1712_v50, %v1669_v43 }
 0x1ac   : > { %v1714_v55 = vpop.f32.mrf.mxu0 }
 0x1ad   : > { %v1757_v56 = vpop.f32.mrf.mxu1  ;;  %v1764_v57 = vadd.f32 %v1754_v52, %v310_v49  ;;  %v1756_v59 = vadd.f32 %v1755_v51, %v1713_v53  ;;  %v1715_v60 = vadd.f32 %v1714_v55, %v1671_v44 }
 0x1ae   : > { %v1716_v62 = vpop.f32.mrf.mxu0 }
 0x1af   : > { %1772 = vst [vmem:[#allocation2 + $0x18] sm:$0xff] %v1764_v57  ;;  %v1765_v63 = vadd.f32 %v1756_v59, %v311_v54  ;;  %v1758_v0 = vadd.f32 %v1757_v56, %v1715_v60  ;;  %v1717_v1 = vadd.f32 %v1716_v62, %v1673_v45  ;;  %v1759_v3 = vpop.f32.mrf.mxu1 }
 0x1b1   : > { %1773 = vst [vmem:[#allocation2 + $0x10] sm:$0xff] %v1765_v63  ;;  %v1768_v4 = vadd.f32 %v1758_v0, %v314_v61  ;;  %v1760_v5 = vadd.f32 %v1759_v3, %v1717_v1  ;;  %1781 = sbr.rel (%p2293_p11) target bundleno = 470 (0x1d6), region = 59 }
 0x1b3   : > { %1776 = vst [vmem:[#allocation2 + $0x28] sm:$0xff] %v1768_v4  ;;  %v1769_v6 = vadd.f32 %v1760_v5, %v315_v2 }
 0x1b5   : > { %1777 = vst [vmem:[#allocation2 + $0x38] sm:$0xff] %v1769_v6 }
 0x1b6   : > { %v1782_v7 = vld [vmem:[#allocation2 + $0x30] sm:$0xff]  ;;  %v1783_v8 = vld [vmem:[#allocation2] sm:$0xff]  ;;  %v1784_v9 = vld [vmem:[#allocation2 + $0x18] sm:$0xff]  ;;  %v1855_v10 = vlaneseq }
 0x1b7   : > { %v2306_v13 = vpack.c.bf16 %v1783_v8, %v1782_v7  ;;  %v1880_v14 = vmul.f32 %v1782_v7, %v1782_v7  ;;  %v1881_v15 = vmul.f32 %v1783_v8, %v1783_v8  ;;  %v1882_v18 = vmul.f32 %v1784_v9, %v1784_v9  ;;  %v1786_v19 = vld [vmem:[#allocation2 + $0x8] sm:$0xff]  ;;  %v1787_v20 = vld [vmem:[#allocation2 + $0x20] sm:$0xff] }
 0x1b8   : > { %v1785_v16 = vld [vmem:[#allocation2 + $0x10] sm:$0xff]  ;;  %v2308_v23 = vpack.c.bf16 %v1787_v20, %v1786_v19  ;;  %v1818_v24 = vadd.f32 %v1786_v19, %v1782_v7  ;;  %v1825_v26 = vadd.f32 %v1787_v20, %v1783_v8  ;;  %v1884_v27 = vmul.f32 %v1786_v19, %v1786_v19 }
 0x1b9   : > { %v2307_v21 = vpack.c.bf16 %v1785_v16, %v1784_v9  ;;  %v1883_v22 = vmul.f32 %v1785_v16, %v1785_v16  ;;  %1814 = vst [vmem:[%s3029_s2] sm:$0xff] %v2306_v13  ;;  %v1885_v28 = vmul.f32 %v1787_v20, %v1787_v20  ;;  %v2692_v13 = vmov 1966171168  }
 0x1ba   : > { %v1788_v25 = vld [vmem:[#allocation2 + $0x28] sm:$0xff]  ;;  %1816 = vst [vmem:[%s3029_s2 + $0x10] sm:$0xff] %v2308_v23  ;;  %v1819_v58 = vrot.slane %v1818_v24, 4  ;;  %v1826_v12 = vrot.slane %v1825_v26, 4  ;;  %v1888_v33 = vadd.f32 %v1884_v27, %v1880_v14  ;;  %v1853_v14 = vunpack.c.l.s4 %v2692_v13 }
 0x1bb   : > { %1815 = vst [vmem:[%s3029_s2 + $0x8] sm:$0xff] %v2307_v21  ;;  %v1832_v30 = vadd.f32 %v1788_v25, %v1784_v9  ;;  %v1886_v32 = vmul.f32 %v1788_v25, %v1788_v25  ;;  %v1895_v17 = vadd.f32 %v1885_v28, %v1881_v15  ;;  %v1856_v15 = vshrl.u32 %v1855_v10, 7 }
 0x1bc   : > { %v1789_v11 = vld [vmem:[#allocation2 + $0x38] sm:$0xff]  ;;  %v1820_v35 = vadd.f32 %v1819_v58, %v1818_v24  ;;  %v1827_v39 = vadd.f32 %v1826_v12, %v1825_v26  ;;  %v1889_v40 = vrot.slane %v1888_v33, 4  ;;  %v1854_v21 = vunpack.c.0.s8 %v1853_v14 }
 0x1bd   : > { %v2309_v29 = vpack.c.bf16 %v1789_v11, %v1788_v25  ;;  %v1839_v31 = vadd.f32 %v1789_v11, %v1785_v16  ;;  %v1887_v34 = vmul.f32 %v1789_v11, %v1789_v11  ;;  %v1833_v36 = vrot.slane %v1832_v30, 4 }
 0x1be   : > { %v1902_v38 = vadd.f32 %v1886_v32, %v1882_v18  ;;  %v1896_v41 = vrot.slane %v1895_v17, 4  ;;  %v1821_v43 = vrot.slane %v1820_v35, 2  ;;  %v1828_v47 = vrot.slane %v1827_v39, 2 }
 0x1bf   : > { %1817 = vst [vmem:[%s3029_s2 + $0x18] sm:$0xff] %v2309_v29  ;;  %v1840_v37 = vrot.slane %v1839_v31, 4  ;;  %v1909_v42 = vadd.f32 %v1887_v34, %v1883_v22  ;;  %v1834_v44 = vadd.f32 %v1833_v36, %v1832_v30  ;;  %v1890_v48 = vadd.f32 %v1889_v40, %v1888_v33 }
 0x1c0   : > { %v1903_v46 = vrot.slane %v1902_v38, 4  ;;  %v1897_v49 = vadd.f32 %v1896_v41, %v1895_v17  ;;  %v1822_v51 = vadd.f32 %v1821_v43, %v1820_v35  ;;  %v1829_v55 = vadd.f32 %v1828_v47, %v1827_v39 }
 0x1c1   : > { %v1841_v45 = vadd.f32 %v1840_v37, %v1839_v31  ;;  %v1910_v50 = vrot.slane %v1909_v42, 4  ;;  %v1835_v52 = vrot.slane %v1834_v44, 2  ;;  %v1891_v56 = vrot.slane %v1890_v48, 2 }
 0x1c2   : > { %v1904_v54 = vadd.f32 %v1903_v46, %v1902_v38  ;;  %v1898_v57 = vrot.slane %v1897_v49, 2  ;;  %v1823_v60 = vrot.slane %v1822_v51, 1  ;;  %v1830_v0 = vrot.slane %v1829_v55, 1 }
 0x1c3   : > { %v1842_v53 = vrot.slane %v1841_v45, 2  ;;  %v1911_v59 = vadd.f32 %v1910_v50, %v1909_v42  ;;  %v1836_v61 = vadd.f32 %v1835_v52, %v1834_v44  ;;  %v1892_v1 = vadd.f32 %v1891_v56, %v1890_v48 }
 0x1c4   : > { %v1905_v63 = vrot.slane %v1904_v54, 2  ;;  %v1899_v2 = vadd.f32 %v1898_v57, %v1897_v49  ;;  %v1824_v7 = vadd.f32 %v1823_v60, %v1822_v51  ;;  %v1831_v9 = vadd.f32 %v1830_v0, %v1829_v55 }
 0x1c5   : > { %v1843_v62 = vadd.f32 %v1842_v53, %v1841_v45  ;;  %v1912_v3 = vrot.slane %v1911_v59, 2  ;;  %v1837_v4 = vrot.slane %v1836_v61, 1  ;;  %v1893_v19 = vrot.slane %v1892_v1, 1 }
 0x1c6   : > { %v1906_v6 = vadd.f32 %v1905_v63, %v1904_v54  ;;  %v1850_v20 = vcombine.low %v1824_v7, %v1831_v9  ;;  %v1900_v22 = vrot.slane %v1899_v2, 1  ;;  %v1857_v26 = vsub.s32 %v1854_v21, %v1856_v15 }
 0x1c7   : > { %v1844_v5 = vrot.slane %v1843_v62, 1  ;;  %v1913_v8 = vadd.f32 %v1912_v3, %v1911_v59  ;;  %v1838_v16 = vadd.f32 %v1837_v4, %v1836_v61  ;;  %v1894_v25 = vadd.f32 %v1893_v19, %v1892_v1 }
 0x1c8   : > { %v1907_v23 = vrot.slane %v1906_v6, 1  ;;  %v1901_v27 = vadd.f32 %v1900_v22, %v1899_v2  ;;  %v1858_v58 = vrot.slane %v1850_v20, %v1857_v26  ;;  %vm1877_vm0 = vcmp.lt.s32.totalorder %v1855_v10, 512 }
 0x1c9   : > { %v1845_v18 = vadd.f32 %v1844_v5, %v1843_v62  ;;  %v1914_v11 = vrot.slane %v1913_v8, 1 }
 0x1ca   : > { %v1908_v28 = vadd.f32 %v1907_v23, %v1906_v6  ;;  %v1920_v31 = vcombine.low %v1894_v25, %v1901_v27 }
 0x1cb   : > { %v1851_v24 = vcombine.low %v1838_v16, %v1845_v18  ;;  %v1915_v29 = vadd.f32 %v1914_v11, %v1913_v8 }
 0x1cc   : > { %v1928_v33 = vrot.slane %v1920_v31, %v1857_v26 }
 0x1cd   : > { %v1865_v30 = vrot.slane %v1851_v24, %v1857_v26  ;;  %v1921_v32 = vcombine.low %v1908_v28, %v1915_v29 }
 0x1cf   : > { %v1866_v12 = vcombine.low %v1858_v58, %v1865_v30  ;;  %v1935_v17 = vrot.slane %v1921_v32, %v1857_v26 }
 0x1d1   : > { %v1873_v34 = vrot.slane %v1866_v12, %v1857_v26  ;;  %v1936_v35 = vcombine.low %v1928_v33, %v1935_v17 }
 0x1d3   : > { %1879 = vst.msk [vmem:[%s3030_s3] sm:$0xf] %vm1877_vm0, %v1873_v34  ;;  %v1943_v36 = vrot.slane %v1936_v35, %v1857_v26 }
 0x1d5   : > { %1945 = vst.msk [vmem:[%s3031_s4] sm:$0xf] %vm1877_vm0, %v1943_v36 }
 0x1d6 PF: > { %s15_s19 = sadd.s32 1, %s2689_s19   ;;  %s3032_s15 = smov %s2677_s16 }
 0x1d7   : > { %p12_p12 = scmp.ge.s32.totalorder %s15_s19, 5   ;;  %s3033_s16 = smov %s2753_s23 }
 0x1d8   : > { %s3034_s17 = smov %s2685_s18  ;;  %s3035_s18 = smov %s3037_s20 }
 0x1d9   :  { %14 = sbr.rel (!%p12_p12) target bundleno = 3 (0x3), region = 121 }

// kernel: resnet18_forward.79
= control target key start
LH: loop header
LB: loop body
LE: loop exit
PB: predicated region body
PF: predicated region fallthrough
CT: control target
= control target key end

     0   :  { %s1132_s1 = inlined_call_operand.vmem [shape: bf16[256,512], index: 1, kind: input, shape index: {}]   ;;  %s1133_s0 = inlined_call_operand.vmem [shape: bf16[16,256], index: 0, kind: input, shape index: {}]   ;;  %s1134_s2 = inlined_call_operand.vmem [shape: bf16[16,512], index: 2, kind: output, shape index: {0}]   ;;  %s1135_s3 = inlined_call_operand.vmem [shape: f32[1,1,512], index: 3, kind: output, shape index: {1}]   ;;  %s1136_s4 = inlined_call_operand.vmem [shape: f32[1,1,512], index: 4, kind: output, shape index: {2}]  }
   0x1   :  { %v786_v0 = vld [vmem:[%s1132_s1 + $0xe4] ss:$16 sps:$4 sm:$0xff]   ;;  %v788_v1 = vld [vmem:[%s1132_s1 + $0xec] ss:$16 sps:$4 sm:$0xff]   ;;  %v790_v2 = vld [vmem:[%s1132_s1 + $0xe0] ss:$16 sps:$4 sm:$0xff]  }
   0x2   :  { %430 = vmatprep.subr.bf16.mxu0 %v786_v0  ;;  %v791_v3 = vld [vmem:[%s1132_s1 + $0xe8] ss:$16 sps:$4 sm:$0xff]   ;;  %473 = vmatprep.subr.bf16.mxu1 %v788_v1  ;;  %v792_v4 = vld [vmem:[%s1132_s1 + $0xc4] ss:$16 sps:$4 sm:$0xff]   ;;  %v794_v5 = vld [vmem:[%s1132_s1 + $0xcc] ss:$16 sps:$4 sm:$0xff]  }
   0x3   :  { %431 = vmatpush1.bf16.msra.mxu0 %v790_v2  ;;  %474 = vmatpush1.bf16.msra.mxu1 %v791_v3  ;;  %v796_v6 = vld [vmem:[%s1132_s1 + $0xc0] ss:$16 sps:$4 sm:$0xff]   ;;  %v797_v7 = vld [vmem:[%s1132_s1 + $0xc8] ss:$16 sps:$4 sm:$0xff]   ;;  %v798_v8 = vld [vmem:[%s1132_s1 + $0xa4] ss:$16 sps:$4 sm:$0xff]  }
   0x4   :  { %432 = vmatprep.subr.bf16.mxu0 %v792_v4  ;;  %475 = vmatprep.subr.bf16.mxu1 %v794_v5  ;;  %v800_v9 = vld [vmem:[%s1132_s1 + $0xac] ss:$16 sps:$4 sm:$0xff]   ;;  %v802_v10 = vld [vmem:[%s1132_s1 + $0xa0] ss:$16 sps:$4 sm:$0xff]   ;;  %v803_v11 = vld [vmem:[%s1132_s1 + $0xa8] ss:$16 sps:$4 sm:$0xff]  }
   0x5   :  { %v804_v12 = vld [vmem:[%s1132_s1 + $0x84] ss:$16 sps:$4 sm:$0xff]   ;;  %v806_v13 = vld [vmem:[%s1132_s1 + $0x8c] ss:$16 sps:$4 sm:$0xff]   ;;  %v808_v14 = vld [vmem:[%s1132_s1 + $0x80] ss:$16 sps:$4 sm:$0xff]  }
   0x6   :  { %v809_v15 = vld [vmem:[%s1132_s1 + $0x88] ss:$16 sps:$4 sm:$0xff]   ;;  %v810_v16 = vld [vmem:[%s1132_s1 + $0x64] ss:$16 sps:$4 sm:$0xff]   ;;  %v812_v17 = vld [vmem:[%s1132_s1 + $0x6c] ss:$16 sps:$4 sm:$0xff]  }
   0x7   :  { %433 = vmatpush1.bf16.msra.mxu0 %v796_v6  ;;  %476 = vmatpush1.bf16.msra.mxu1 %v797_v7  ;;  %v814_v18 = vld [vmem:[%s1132_s1 + $0x60] ss:$16 sps:$4 sm:$0xff]   ;;  %v815_v19 = vld [vmem:[%s1132_s1 + $0x68] ss:$16 sps:$4 sm:$0xff]   ;;  %v816_v20 = vld [vmem:[%s1132_s1 + $0x44] ss:$16 sps:$4 sm:$0xff]  }
   0x8   :  { %434 = vmatprep.subr.bf16.mxu0 %v798_v8  ;;  %477 = vmatprep.subr.bf16.mxu1 %v800_v9  ;;  %v818_v21 = vld [vmem:[%s1132_s1 + $0x4c] ss:$16 sps:$4 sm:$0xff]   ;;  %v820_v22 = vld [vmem:[%s1132_s1 + $0x40] ss:$16 sps:$4 sm:$0xff]   ;;  %v821_v23 = vld [vmem:[%s1132_s1 + $0x48] ss:$16 sps:$4 sm:$0xff]  }
   0x9   :  { %v822_v24 = vld [vmem:[%s1132_s1 + $0x24] ss:$16 sps:$4 sm:$0xff]   ;;  %v824_v25 = vld [vmem:[%s1132_s1 + $0x2c] ss:$16 sps:$4 sm:$0xff]   ;;  %v826_v26 = vld [vmem:[%s1132_s1 + $0x20] ss:$16 sps:$4 sm:$0xff]  }
   0xa   :  { %v827_v27 = vld [vmem:[%s1132_s1 + $0x28] ss:$16 sps:$4 sm:$0xff]   ;;  %v828_v28 = vld [vmem:[%s1132_s1 + $0x4] ss:$16 sps:$4 sm:$0xff]   ;;  %v830_v29 = vld [vmem:[%s1132_s1 + $0xc] ss:$16 sps:$4 sm:$0xff]  }
   0xb   :  { %435 = vmatpush1.bf16.msra.mxu0 %v802_v10  ;;  %478 = vmatpush1.bf16.msra.mxu1 %v803_v11  ;;  %v832_v30 = vld [vmem:[%s1132_s1] ss:$16 sps:$4 sm:$0xff]   ;;  %v833_v31 = vld [vmem:[%s1132_s1 + $0x8] ss:$16 sps:$4 sm:$0xff]   ;;  %v834_v32 = vld [vmem:[%s1132_s1 + $0x1e4] ss:$16 sps:$4 sm:$0xff]  }
   0xc   :  { %436 = vmatprep.subr.bf16.mxu0 %v804_v12  ;;  %479 = vmatprep.subr.bf16.mxu1 %v806_v13  ;;  %v836_v33 = vld [vmem:[%s1132_s1 + $0x1ec] ss:$16 sps:$4 sm:$0xff]   ;;  %v838_v34 = vld [vmem:[%s1132_s1 + $0x1e0] ss:$16 sps:$4 sm:$0xff]   ;;  %v839_v35 = vld [vmem:[%s1132_s1 + $0x1e8] ss:$16 sps:$4 sm:$0xff]  }
   0xd   :  { %v840_v36 = vld [vmem:[%s1132_s1 + $0x1c4] ss:$16 sps:$4 sm:$0xff]   ;;  %v842_v37 = vld [vmem:[%s1132_s1 + $0x1cc] ss:$16 sps:$4 sm:$0xff]   ;;  %v844_v38 = vld [vmem:[%s1132_s1 + $0x1c0] ss:$16 sps:$4 sm:$0xff]  }
   0xe   :  { %v845_v39 = vld [vmem:[%s1132_s1 + $0x1c8] ss:$16 sps:$4 sm:$0xff]   ;;  %v846_v40 = vld [vmem:[%s1132_s1 + $0x1a4] ss:$16 sps:$4 sm:$0xff]   ;;  %v848_v41 = vld [vmem:[%s1132_s1 + $0x1ac] ss:$16 sps:$4 sm:$0xff]  }
   0xf   :  { %437 = vmatpush1.bf16.msra.mxu0 %v808_v14  ;;  %480 = vmatpush1.bf16.msra.mxu1 %v809_v15  ;;  %v850_v42 = vld [vmem:[%s1132_s1 + $0x1a0] ss:$16 sps:$4 sm:$0xff]   ;;  %v851_v43 = vld [vmem:[%s1132_s1 + $0x1a8] ss:$16 sps:$4 sm:$0xff]   ;;  %v852_v44 = vld [vmem:[%s1132_s1 + $0x184] ss:$16 sps:$4 sm:$0xff]  }
  0x10   :  { %438 = vmatprep.subr.bf16.mxu0 %v810_v16  ;;  %481 = vmatprep.subr.bf16.mxu1 %v812_v17  ;;  %v854_v45 = vld [vmem:[%s1132_s1 + $0x18c] ss:$16 sps:$4 sm:$0xff]   ;;  %v856_v47 = vld [vmem:[%s1132_s1 + $0x180] ss:$16 sps:$4 sm:$0xff]   ;;  %v857_v48 = vld [vmem:[%s1132_s1 + $0x188] ss:$16 sps:$4 sm:$0xff]  }
  0x11   :  { %v884_v46 = vld [vmem:[%s1133_s0 + $0x4] ss:$8 sps:$4 sm:$0xff]   ;;  %v862_v51 = vld [vmem:[%s1132_s1 + $0x160] ss:$16 sps:$4 sm:$0xff]   ;;  %v863_v52 = vld [vmem:[%s1132_s1 + $0x168] ss:$16 sps:$4 sm:$0xff]  }
  0x12   :  { %v858_v49 = vld [vmem:[%s1132_s1 + $0x164] ss:$16 sps:$4 sm:$0xff]   ;;  %v860_v50 = vld [vmem:[%s1132_s1 + $0x16c] ss:$16 sps:$4 sm:$0xff]   ;;  %462 = vmatprep.mubr.bf16.mxu0 %v884_v46  ;;  %505 = vmatprep.mubr.bf16.mxu1 %v884_v46  ;;  %v868_v55 = vld [vmem:[%s1132_s1 + $0x140] ss:$16 sps:$4 sm:$0xff]  }
  0x13   :  { %439 = vmatpush1.bf16.msra.mxu0 %v814_v18  ;;  %482 = vmatpush1.bf16.msra.mxu1 %v815_v19  ;;  %v864_v53 = vld [vmem:[%s1132_s1 + $0x144] ss:$16 sps:$4 sm:$0xff]   ;;  %v866_v54 = vld [vmem:[%s1132_s1 + $0x14c] ss:$16 sps:$4 sm:$0xff]   ;;  %v869_v56 = vld [vmem:[%s1132_s1 + $0x148] ss:$16 sps:$4 sm:$0xff]  }
  0x14   :  { %440 = vmatprep.subr.bf16.mxu0 %v816_v20  ;;  %483 = vmatprep.subr.bf16.mxu1 %v818_v21  ;;  %v870_v57 = vld [vmem:[%s1132_s1 + $0x124] ss:$16 sps:$4 sm:$0xff]   ;;  %v872_v58 = vld [vmem:[%s1132_s1 + $0x12c] ss:$16 sps:$4 sm:$0xff]   ;;  %v874_v59 = vld [vmem:[%s1132_s1 + $0x120] ss:$16 sps:$4 sm:$0xff]  }
  0x15   :  { %v875_v60 = vld [vmem:[%s1132_s1 + $0x128] ss:$16 sps:$4 sm:$0xff]   ;;  %v876_v61 = vld [vmem:[%s1132_s1 + $0x104] ss:$16 sps:$4 sm:$0xff]   ;;  %v878_v62 = vld [vmem:[%s1132_s1 + $0x10c] ss:$16 sps:$4 sm:$0xff]  }
  0x16   :  { %v880_v63 = vld [vmem:[%s1132_s1 + $0x100] ss:$16 sps:$4 sm:$0xff]   ;;  %v881_v0 = vld [vmem:[%s1132_s1 + $0x108] ss:$16 sps:$4 sm:$0xff]   ;;  %v885_v6 = vmov 1966171168  }
  0x17   :  { %441 = vmatpush1.bf16.msra.mxu0 %v820_v22  ;;  %484 = vmatpush1.bf16.msra.mxu1 %v821_v23  ;;  %v882_v1 = vld [vmem:[%s1133_s0] ss:$8 sps:$4 sm:$0xff]   ;;  %v1109_v7 = vunpack.c.l.s4 %v885_v6  ;;  %v608_v22 = vlaneseq }
  0x18   :  { %442 = vmatprep.subr.bf16.mxu0 %v822_v24  ;;  %485 = vmatprep.subr.bf16.mxu1 %v824_v25 }
  0x19   :  { %v607_v21 = vunpack.c.0.s8 %v1109_v7  ;;  %vm630_vm0 = vcmp.lt.s32.totalorder %v608_v22, 512 }
  0x1b   :  { %443 = vmatpush1.bf16.msra.mxu0 %v826_v26  ;;  %486 = vmatpush1.bf16.msra.mxu1 %v827_v27 }
  0x1c   :  { %444 = vmatprep.subr.bf16.mxu0 %v828_v28  ;;  %487 = vmatprep.subr.bf16.mxu1 %v830_v29 }
  0x1f   :  { %445 = vmatpush1.bf16.msra.mxu0 %v832_v30  ;;  %488 = vmatpush1.bf16.msra.mxu1 %v833_v31 }
  0x20   :  { %446 = vmatprep.subr.bf16.mxu0 %v834_v32  ;;  %489 = vmatprep.subr.bf16.mxu1 %v836_v33 }
  0x23   :  { %447 = vmatpush2.bf16.msra.mxu0 %v838_v34  ;;  %490 = vmatpush2.bf16.msra.mxu1 %v839_v35 }
  0x24   :  { %448 = vmatprep.subr.bf16.mxu0 %v840_v36  ;;  %491 = vmatprep.subr.bf16.mxu1 %v842_v37 }
  0x27   :  { %449 = vmatpush2.bf16.msra.mxu0 %v844_v38  ;;  %492 = vmatpush2.bf16.msra.mxu1 %v845_v39 }
  0x28   :  { %450 = vmatprep.subr.bf16.mxu0 %v846_v40  ;;  %493 = vmatprep.subr.bf16.mxu1 %v848_v41 }
  0x2b   :  { %451 = vmatpush2.bf16.msra.mxu0 %v850_v42  ;;  %494 = vmatpush2.bf16.msra.mxu1 %v851_v43 }
  0x2c   :  { %452 = vmatprep.subr.bf16.mxu0 %v852_v44  ;;  %495 = vmatprep.subr.bf16.mxu1 %v854_v45 }
  0x2f   :  { %453 = vmatpush2.bf16.msra.mxu0 %v856_v47  ;;  %496 = vmatpush2.bf16.msra.mxu1 %v857_v48 }
  0x30   :  { %454 = vmatprep.subr.bf16.mxu0 %v858_v49  ;;  %497 = vmatprep.subr.bf16.mxu1 %v860_v50 }
  0x33   :  { %455 = vmatpush2.bf16.msra.mxu0 %v862_v51  ;;  %498 = vmatpush2.bf16.msra.mxu1 %v863_v52 }
  0x34   :  { %456 = vmatprep.subr.bf16.mxu0 %v864_v53  ;;  %499 = vmatprep.subr.bf16.mxu1 %v866_v54 }
  0x37   :  { %457 = vmatpush2.bf16.msra.mxu0 %v868_v55  ;;  %500 = vmatpush2.bf16.msra.mxu1 %v869_v56 }
  0x38   :  { %458 = vmatprep.subr.bf16.mxu0 %v870_v57  ;;  %501 = vmatprep.subr.bf16.mxu1 %v872_v58 }
  0x3b   :  { %459 = vmatpush2.bf16.msra.mxu0 %v874_v59  ;;  %502 = vmatpush2.bf16.msra.mxu1 %v875_v60  ;;  %v609_v59 = vshrl.u32 %v608_v22, 7 }
  0x3c   :  { %460 = vmatprep.subr.bf16.mxu0 %v876_v61  ;;  %503 = vmatprep.subr.bf16.mxu1 %v878_v62 }
  0x3f   :  { %461 = vmatpush2.bf16.msra.mxu0 %v880_v63  ;;  %504 = vmatpush2.bf16.msra.mxu1 %v881_v0 }
  0x42   :  { %463 = vmatmul.mubr.bf16.vlgmr.msra.gmra.mxu0 %v882_v1  ;;  %506 = vmatmul.mubr.bf16.vlgmr.msra.gmra.mxu1 %v882_v1 }
 0x102   :  { %v464_v2 = vpop.f32.mrf.mxu0  ;;  %v507_v3 = vpop.f32.mrf.mxu1 }
 0x103   :  { %v633_v10 = vmul.f32 %v464_v2, %v464_v2  ;;  %v635_v11 = vmul.f32 %v507_v3, %v507_v3 }
 0x104   :  { %v466_v4 = vpop.f32.mrf.mxu0  ;;  %v509_v5 = vpop.f32.mrf.mxu1 }
 0x105   :  { %v781_v8 = vpack.c.bf16 %v466_v4, %v464_v2  ;;  %v782_v9 = vpack.c.bf16 %v509_v5, %v507_v3  ;;  %v634_v18 = vmul.f32 %v466_v4, %v466_v4  ;;  %v636_v19 = vmul.f32 %v509_v5, %v509_v5 }
 0x106   :  { %v468_v12 = vpop.f32.mrf.mxu0  ;;  %v511_v13 = vpop.f32.mrf.mxu1 }
 0x107   :  { %567 = vst [vmem:[%s1134_s2] sm:$0xff] %v781_v8  ;;  %568 = vst [vmem:[%s1134_s2 + $0x8] sm:$0xff] %v782_v9  ;;  %v571_v14 = vadd.f32 %v468_v12, %v464_v2  ;;  %v637_v15 = vmul.f32 %v468_v12, %v468_v12  ;;  %v585_v16 = vadd.f32 %v511_v13, %v507_v3 }
 0x108   :  { %v639_v17 = vmul.f32 %v511_v13, %v511_v13  ;;  %v470_v20 = vpop.f32.mrf.mxu0  ;;  %v513_v23 = vpop.f32.mrf.mxu1  ;;  %v610_v8 = vsub.s32 %v607_v21, %v609_v59 }
 0x109   :  { %v572_v24 = vrot.slane %v571_v14, 4  ;;  %v641_v25 = vadd.f32 %v637_v15, %v633_v10  ;;  %v586_v26 = vrot.slane %v585_v16, 4  ;;  %v783_v28 = vpack.c.bf16 %v470_v20, %v468_v12 }
 0x10a   :  { %v655_v27 = vadd.f32 %v639_v17, %v635_v11  ;;  %v578_v29 = vadd.f32 %v470_v20, %v466_v4  ;;  %v638_v30 = vmul.f32 %v470_v20, %v470_v20  ;;  %v784_v31 = vpack.c.bf16 %v513_v23, %v511_v13 }
 0x10b   :  { %v573_v32 = vadd.f32 %v572_v24, %v571_v14  ;;  %v642_v33 = vrot.slane %v641_v25, 4  ;;  %v587_v34 = vadd.f32 %v586_v26, %v585_v16  ;;  %569 = vst [vmem:[%s1134_s2 + $0x10] sm:$0xff] %v783_v28  ;;  %v592_v38 = vadd.f32 %v513_v23, %v509_v5 }
 0x10c   :  { %v656_v35 = vrot.slane %v655_v27, 4  ;;  %v579_v36 = vrot.slane %v578_v29, 4  ;;  %v648_v37 = vadd.f32 %v638_v30, %v634_v18  ;;  %570 = vst [vmem:[%s1134_s2 + $0x18] sm:$0xff] %v784_v31  ;;  %v640_v39 = vmul.f32 %v513_v23, %v513_v23 }
 0x10d   :  { %v574_v40 = vrot.slane %v573_v32, 2  ;;  %v643_v41 = vadd.f32 %v642_v33, %v641_v25  ;;  %v588_v42 = vrot.slane %v587_v34, 2  ;;  %v593_v46 = vrot.slane %v592_v38, 4 }
 0x10e   :  { %v657_v43 = vadd.f32 %v656_v35, %v655_v27  ;;  %v580_v44 = vadd.f32 %v579_v36, %v578_v29  ;;  %v649_v45 = vrot.slane %v648_v37, 4  ;;  %v662_v47 = vadd.f32 %v640_v39, %v636_v19 }
 0x10f   :  { %v575_v48 = vadd.f32 %v574_v40, %v573_v32  ;;  %v644_v49 = vrot.slane %v643_v41, 2  ;;  %v589_v50 = vadd.f32 %v588_v42, %v587_v34  ;;  %v594_v54 = vadd.f32 %v593_v46, %v592_v38 }
 0x110   :  { %v658_v51 = vrot.slane %v657_v43, 2  ;;  %v581_v52 = vrot.slane %v580_v44, 2  ;;  %v650_v53 = vadd.f32 %v649_v45, %v648_v37  ;;  %v663_v55 = vrot.slane %v662_v47, 4 }
 0x111   :  { %v576_v56 = vrot.slane %v575_v48, 1  ;;  %v645_v57 = vadd.f32 %v644_v49, %v643_v41  ;;  %v595_v62 = vrot.slane %v594_v54, 2  ;;  %v590_v1 = vrot.slane %v589_v50, 1 }
 0x112   :  { %v659_v58 = vadd.f32 %v658_v51, %v657_v43  ;;  %v582_v60 = vadd.f32 %v581_v52, %v580_v44  ;;  %v651_v61 = vrot.slane %v650_v53, 2  ;;  %v664_v63 = vadd.f32 %v663_v55, %v662_v47 }
 0x113   :  { %v646_v0 = vrot.slane %v645_v57, 1  ;;  %v596_v4 = vadd.f32 %v595_v62, %v594_v54  ;;  %v577_v6 = vadd.f32 %v576_v56, %v575_v48  ;;  %v591_v14 = vadd.f32 %v590_v1, %v589_v50 }
 0x114   :  { %v583_v2 = vrot.slane %v582_v60, 1  ;;  %v652_v3 = vadd.f32 %v651_v61, %v650_v53  ;;  %v665_v5 = vrot.slane %v664_v63, 2  ;;  %v660_v7 = vrot.slane %v659_v58, 1 }
 0x115   :  { %v597_v11 = vrot.slane %v596_v4, 1  ;;  %v647_v13 = vadd.f32 %v646_v0, %v645_v57 }
 0x116   :  { %v584_v9 = vadd.f32 %v583_v2, %v582_v60  ;;  %v653_v10 = vrot.slane %v652_v3, 1  ;;  %v666_v12 = vadd.f32 %v665_v5, %v664_v63  ;;  %v661_v19 = vadd.f32 %v660_v7, %v659_v58 }
 0x117   :  { %v598_v17 = vadd.f32 %v597_v11, %v596_v4 }
 0x118   :  { %v603_v15 = vcombine.low %v577_v6, %v584_v9  ;;  %v654_v16 = vadd.f32 %v653_v10, %v652_v3  ;;  %v667_v18 = vrot.slane %v666_v12, 1 }
 0x119   :  { %v604_v24 = vcombine.low %v591_v14, %v598_v17 }
 0x11a   :  { %v611_v20 = vrot.slane %v603_v15, %v610_v8  ;;  %v673_v23 = vcombine.low %v647_v13, %v654_v16  ;;  %v668_v25 = vadd.f32 %v667_v18, %v666_v12 }
 0x11b   :  { %v618_v27 = vrot.slane %v604_v24, %v610_v8 }
 0x11c   :  { %v681_v26 = vrot.slane %v673_v23, %v610_v8  ;;  %v674_v28 = vcombine.low %v661_v19, %v668_v25 }
 0x11d   :  { %v619_v29 = vcombine.low %v611_v20, %v618_v27 }
 0x11e   :  { %v688_v21 = vrot.slane %v674_v28, %v610_v8 }
 0x11f   :  { %v626_v30 = vrot.slane %v619_v29, %v610_v8 }
 0x120   :  { %v689_v31 = vcombine.low %v681_v26, %v688_v21 }
 0x121   :  { %632 = vst.msk [vmem:[%s1135_s3] sm:$0xf] %vm630_vm0, %v626_v30 }
 0x122   :  { %v696_v32 = vrot.slane %v689_v31, %v610_v8 }
 0x124   :  { %698 = vst.msk [vmem:[%s1136_s4] sm:$0xf] %vm630_vm0, %v696_v32 }

// kernel: resnet18_forward.78
= control target key start
LH: loop header
LB: loop body
LE: loop exit
PB: predicated region body
PF: predicated region fallthrough
CT: control target
= control target key end

     0   :  { %s2718_s15 = smov 0   ;;  %s2720_s16 = smov 0   ;;  %s3027_s0 = inlined_call_operand.vmem [shape: bf16[16,4608], index: 0, kind: input, shape index: {}]   ;;  %s3028_s1 = inlined_call_operand.vmem [shape: bf16[4608,512], index: 1, kind: input, shape index: {}]   ;;  %s3029_s2 = inlined_call_operand.vmem [shape: bf16[16,512], index: 2, kind: output, shape index: {0}]   ;;  %s3030_s3 = inlined_call_operand.vmem [shape: f32[1,1,512], index: 3, kind: output, shape index: {1}]   ;;  %s3031_s4 = inlined_call_operand.vmem [shape: f32[1,1,512], index: 4, kind: output, shape index: {2}]  }
   0x1   :  { %s2722_s17 = smov 0   ;;  %s2724_s18 = smov 0  }
   0x2   :  { %s2726_s19 = smov 0  }
   0x3 LB: > { %s24_s20 = sadd.s32 1, %s2685_s18  ;;  %p43_p1 = scmp.ne.s32.totalorder %s2677_s16, %s2673_s15  ;;  %s2689_s19 = sphi %s2726_s19, %s15_s19   ;;  %s2685_s18 = sphi %s2724_s18, %s3035_s18   ;;  %s2681_s17 = sphi %s2722_s17, %s3034_s17   ;;  %s2677_s16 = sphi %s2720_s16, %s3033_s16   ;;  %s2673_s15 = sphi %s2718_s15, %s3032_s15  }
   0x4   : > { %p25_p0 = scmp.ge.s32.totalorder %s24_s20, 6  ;;  %p44_p2 = scmp.eq.s32.totalorder %s2689_s19, 0 }
   0x5   : > { %s36_s22 = sadd.s32 1, %s2677_s16  ;;  %p2089_p5 = scmp.ge.s32.totalorder %s2689_s19, 6 }
   0x6   : > { %s3037_s20 = smov (%p25_p0, %s24_s20), 0  ;;  %p45_p3 = por %p44_p2, %p43_p1 }
   0x7   : > { %s32_s21 = ssub.s32 %s2685_s18, %s3037_s20  ;;  %173 = sbr.rel (%p2089_p5) target bundleno = 20 (0x14), region = 16 }
   0x8   : > { %p34_p4 = scmp.eq.s32.totalorder %s32_s21, 0 }
   0xa   : > { %s2753_s23 = scalar_select %p34_p4, %s2677_s16, %s36_s22  }
   0xc   : > { %176 = sbr.rel (!%p45_p3) target bundleno = 20 (0x14), region = 20  ;;  %s178_s24 = sand.u32 (%p45_p3), 1, %s2677_s16  }
   0xd   : > { %s2304_s25 = smul.u32 (%p45_p3), 24, %s2685_s18 }
   0xe   : > { %s2310_s26 = smul.u32 (%p45_p3), 48, %s178_s24 }
   0xf   : > { %s186_s29 = scalar_lea.vmem (%p45_p3), %s3027_s0, %s2304_s25 }
  0x10   : > { %v199_v0 = vld [vmem:[%s186_s29] sm:$0xff] (%p45_p3)  ;;  %v201_v1 = vld [vmem:[%s186_s29 + $0x8] sm:$0xff] (%p45_p3)  ;;  %v203_v2 = vld [vmem:[%s186_s29 + $0x10] sm:$0xff] (%p45_p3)  ;;  %s180_s30 = scalar_lea.vmem (%p45_p3), [#allocation3], %s2310_s26 }
  0x11   : > { %200 = vst [vmem:[%s180_s30] sm:$0xff] %v199_v0  ;;  %202 = vst [vmem:[%s180_s30 + $0x8] sm:$0xff] %v201_v1  ;;  %v205_v3 = vld [vmem:[%s186_s29 + $0x90] sm:$0xff]  ;;  %v207_v4 = vld [vmem:[%s186_s29 + $0x98] sm:$0xff] }
  0x12   : > { %204 = vst [vmem:[%s180_s30 + $0x10] sm:$0xff] %v203_v2  ;;  %v209_v5 = vld [vmem:[%s186_s29 + $0xa0] sm:$0xff]  ;;  %206 = vst [vmem:[%s180_s30 + $0x18] sm:$0xff] %v205_v3 }
  0x13   : > { %208 = vst [vmem:[%s180_s30 + $0x20] sm:$0xff] %v207_v4  ;;  %210 = vst [vmem:[%s180_s30 + $0x28] sm:$0xff] %v209_v5 }
  0x14 PF: > { %p2091_p6 = scmp.ge.s32.totalorder %s2689_s19, 1  ;;  %p225_p7 = scmp.lt.s32.totalorder %s2689_s19, 7 }
  0x16   : > { %p226_p8 = pnand %p2091_p6, %p225_p7 }
  0x17   : > { %s232_s5 = sand.u32 (!%p226_p8), 1, %s2673_s15   ;;  %s274_s6 = smul.u32 (!%p226_p8), 96, %s2681_s17 }
  0x18   : > { %229 = sbr.rel (%p226_p8) target bundleno = 470 (0x1d6), region = 47  ;;  %p2094_p10 = scmp.ne.s32.totalorder (!%p226_p8), %s2681_s17, 0 }
  0x19   : > { %s2311_s7 = smul.u32 (!%p226_p8), 48, %s232_s5  ;;  %p275_p9 = scmp.lt.s32.totalorder (!%p226_p8), %s274_s6, 575 }
  0x1b   : > { %s2770_s12 = scalar_lea.vmem (!%p226_p8), [#allocation3], %s2311_s7 }
  0x1d   : > { %s3039_s6 = smov (!%p275_p9, %s274_s6), 575  ;;  %299 = sbr.rel (%p2094_p10) target bundleno = 39 (0x27), region = 55 }
  0x1e   : > { %s2305_s8 = sshll.u32 %s3039_s6, 4 }
  0x1f   : > { %s2768_s11 = scalar_lea.vmem %s3028_s1, %s2305_s8 }
  0x22   : > { %v2691_v6 = vmov 0.0  }
  0x23   : > { %300 = vst [vmem:[#allocation2 + $0x30] sm:$0xff] %v2691_v6  ;;  %301 = vst [vmem:[#allocation2] sm:$0xff] %v2691_v6 }
  0x24   : > { %302 = vst [vmem:[#allocation2 + $0x18] sm:$0xff] %v2691_v6  ;;  %303 = vst [vmem:[#allocation2 + $0x10] sm:$0xff] %v2691_v6 }
  0x25   : > { %304 = vst [vmem:[#allocation2 + $0x8] sm:$0xff] %v2691_v6  ;;  %305 = vst [vmem:[#allocation2 + $0x20] sm:$0xff] %v2691_v6 }
  0x26   : > { %306 = vst [vmem:[#allocation2 + $0x28] sm:$0xff] %v2691_v6  ;;  %307 = vst [vmem:[#allocation2 + $0x38] sm:$0xff] %v2691_v6 }
  0x27 PF: > { %v2354_v7 = vld [vmem:[%s2768_s11 + $0xe4] ss:$16 sps:$4 sm:$0xff]   ;;  %v2358_v9 = vld [vmem:[%s2768_s11 + $0xe0] ss:$16 sps:$4 sm:$0xff]   ;;  %p2293_p11 = scmp.ne.s32.totalorder %s2681_s17, 5 }
  0x28   : > { %v2356_v8 = vld [vmem:[%s2768_s11 + $0x2e4] ss:$16 sps:$4 sm:$0xff]   ;;  %1504 = vmatprep.subr.bf16.mxu0 %v2354_v7  ;;  %v2359_v10 = vld [vmem:[%s2768_s11 + $0x2e0] ss:$16 sps:$4 sm:$0xff]  }
  0x29   : > { %1547 = vmatprep.subr.bf16.mxu1 %v2356_v8  ;;  %v2360_v11 = vld [vmem:[%s2768_s11 + $0xc4] ss:$16 sps:$4 sm:$0xff]   ;;  %1505 = vmatpush1.bf16.msra.mxu0 %v2358_v9  ;;  %v2364_v13 = vld [vmem:[%s2768_s11 + $0xc0] ss:$16 sps:$4 sm:$0xff]  }
  0x2a   : > { %1548 = vmatpush1.bf16.msra.mxu1 %v2359_v10  ;;  %v2362_v12 = vld [vmem:[%s2768_s11 + $0x2c4] ss:$16 sps:$4 sm:$0xff]   ;;  %1506 = vmatprep.subr.bf16.mxu0 %v2360_v11  ;;  %v2365_v14 = vld [vmem:[%s2768_s11 + $0x2c0] ss:$16 sps:$4 sm:$0xff]   ;;  %v2461_v10 = vld [vmem:[%s2768_s11 + $0xec] ss:$16 sps:$4 sm:$0xff]  }
  0x2b   : > { %1549 = vmatprep.subr.bf16.mxu1 %v2362_v12  ;;  %v2366_v15 = vld [vmem:[%s2768_s11 + $0xa4] ss:$16 sps:$4 sm:$0xff]   ;;  %v2370_v17 = vld [vmem:[%s2768_s11 + $0xa0] ss:$16 sps:$4 sm:$0xff]  }
  0x2c   : > { %v2368_v16 = vld [vmem:[%s2768_s11 + $0x2a4] ss:$16 sps:$4 sm:$0xff]   ;;  %v2371_v18 = vld [vmem:[%s2768_s11 + $0x2a0] ss:$16 sps:$4 sm:$0xff]  }
  0x2d   : > { %1507 = vmatpush1.bf16.msra.mxu0 %v2364_v13  ;;  %v2372_v19 = vld [vmem:[%s2768_s11 + $0x84] ss:$16 sps:$4 sm:$0xff]   ;;  %v2376_v21 = vld [vmem:[%s2768_s11 + $0x80] ss:$16 sps:$4 sm:$0xff]  }
  0x2e   : > { %1550 = vmatpush1.bf16.msra.mxu1 %v2365_v14  ;;  %1508 = vmatprep.subr.bf16.mxu0 %v2366_v15  ;;  %v2374_v20 = vld [vmem:[%s2768_s11 + $0x284] ss:$16 sps:$4 sm:$0xff]   ;;  %v2377_v22 = vld [vmem:[%s2768_s11 + $0x280] ss:$16 sps:$4 sm:$0xff]   ;;  %v2459_v14 = vld [vmem:[%s2768_s11 + $0xe8] ss:$16 sps:$4 sm:$0xff]  }
  0x2f   : > { %1551 = vmatprep.subr.bf16.mxu1 %v2368_v16  ;;  %v2378_v23 = vld [vmem:[%s2768_s11 + $0x64] ss:$16 sps:$4 sm:$0xff]   ;;  %v2382_v25 = vld [vmem:[%s2768_s11 + $0x60] ss:$16 sps:$4 sm:$0xff]   ;;  %v2467_v16 = vld [vmem:[%s2768_s11 + $0xcc] ss:$16 sps:$4 sm:$0xff]  }
  0x30   : > { %v2380_v24 = vld [vmem:[%s2768_s11 + $0x264] ss:$16 sps:$4 sm:$0xff]   ;;  %v2383_v26 = vld [vmem:[%s2768_s11 + $0x260] ss:$16 sps:$4 sm:$0xff]  }
  0x31   : > { %1509 = vmatpush1.bf16.msra.mxu0 %v2370_v17  ;;  %v2384_v27 = vld [vmem:[%s2768_s11 + $0x44] ss:$16 sps:$4 sm:$0xff]   ;;  %v2388_v29 = vld [vmem:[%s2768_s11 + $0x40] ss:$16 sps:$4 sm:$0xff]  }
  0x32   : > { %1552 = vmatpush1.bf16.msra.mxu1 %v2371_v18  ;;  %1510 = vmatprep.subr.bf16.mxu0 %v2372_v19  ;;  %v2386_v28 = vld [vmem:[%s2768_s11 + $0x244] ss:$16 sps:$4 sm:$0xff]   ;;  %v2389_v30 = vld [vmem:[%s2768_s11 + $0x240] ss:$16 sps:$4 sm:$0xff]   ;;  %v2465_v18 = vld [vmem:[%s2768_s11 + $0xc8] ss:$16 sps:$4 sm:$0xff]  }
  0x33   : > { %1553 = vmatprep.subr.bf16.mxu1 %v2374_v20  ;;  %v2390_v31 = vld [vmem:[%s2768_s11 + $0x24] ss:$16 sps:$4 sm:$0xff]   ;;  %v2394_v33 = vld [vmem:[%s2768_s11 + $0x20] ss:$16 sps:$4 sm:$0xff]   ;;  %v2473_v20 = vld [vmem:[%s2768_s11 + $0xac] ss:$16 sps:$4 sm:$0xff]  }
  0x34   : > { %v2392_v32 = vld [vmem:[%s2768_s11 + $0x224] ss:$16 sps:$4 sm:$0xff]   ;;  %v2395_v34 = vld [vmem:[%s2768_s11 + $0x220] ss:$16 sps:$4 sm:$0xff]  }
  0x35   : > { %1511 = vmatpush1.bf16.msra.mxu0 %v2376_v21  ;;  %v2396_v35 = vld [vmem:[%s2768_s11 + $0x4] ss:$16 sps:$4 sm:$0xff]   ;;  %v2400_v37 = vld [vmem:[%s2768_s11] ss:$16 sps:$4 sm:$0xff]  }
  0x36   : > { %1554 = vmatpush1.bf16.msra.mxu1 %v2377_v22  ;;  %1512 = vmatprep.subr.bf16.mxu0 %v2378_v23  ;;  %v2398_v36 = vld [vmem:[%s2768_s11 + $0x204] ss:$16 sps:$4 sm:$0xff]   ;;  %v2401_v38 = vld [vmem:[%s2768_s11 + $0x200] ss:$16 sps:$4 sm:$0xff]   ;;  %v2471_v22 = vld [vmem:[%s2768_s11 + $0xa8] ss:$16 sps:$4 sm:$0xff]  }
  0x37   : > { %1555 = vmatprep.subr.bf16.mxu1 %v2380_v24  ;;  %v2402_v39 = vld [vmem:[%s2768_s11 + $0x1e4] ss:$16 sps:$4 sm:$0xff]   ;;  %v2406_v41 = vld [vmem:[%s2768_s11 + $0x1e0] ss:$16 sps:$4 sm:$0xff]   ;;  %v2479_v24 = vld [vmem:[%s2768_s11 + $0x8c] ss:$16 sps:$4 sm:$0xff]  }
  0x38   : > { %v2404_v40 = vld [vmem:[%s2768_s11 + $0x3e4] ss:$16 sps:$4 sm:$0xff]   ;;  %v2407_v42 = vld [vmem:[%s2768_s11 + $0x3e0] ss:$16 sps:$4 sm:$0xff]  }
  0x39   : > { %1513 = vmatpush1.bf16.msra.mxu0 %v2382_v25  ;;  %v2408_v43 = vld [vmem:[%s2768_s11 + $0x1c4] ss:$16 sps:$4 sm:$0xff]   ;;  %v2412_v45 = vld [vmem:[%s2768_s11 + $0x1c0] ss:$16 sps:$4 sm:$0xff]  }
  0x3a   : > { %1556 = vmatpush1.bf16.msra.mxu1 %v2383_v26  ;;  %1514 = vmatprep.subr.bf16.mxu0 %v2384_v27  ;;  %v2410_v44 = vld [vmem:[%s2768_s11 + $0x3c4] ss:$16 sps:$4 sm:$0xff]   ;;  %v2413_v46 = vld [vmem:[%s2768_s11 + $0x3c0] ss:$16 sps:$4 sm:$0xff]   ;;  %v2477_v26 = vld [vmem:[%s2768_s11 + $0x88] ss:$16 sps:$4 sm:$0xff]  }
  0x3b   : > { %1557 = vmatprep.subr.bf16.mxu1 %v2386_v28  ;;  %v2414_v47 = vld [vmem:[%s2768_s11 + $0x1a4] ss:$16 sps:$4 sm:$0xff]   ;;  %v2418_v49 = vld [vmem:[%s2768_s11 + $0x1a0] ss:$16 sps:$4 sm:$0xff]   ;;  %v2485_v28 = vld [vmem:[%s2768_s11 + $0x6c] ss:$16 sps:$4 sm:$0xff]  }
  0x3c   : > { %v2416_v48 = vld [vmem:[%s2768_s11 + $0x3a4] ss:$16 sps:$4 sm:$0xff]   ;;  %v2419_v50 = vld [vmem:[%s2768_s11 + $0x3a0] ss:$16 sps:$4 sm:$0xff]  }
  0x3d   : > { %1515 = vmatpush1.bf16.msra.mxu0 %v2388_v29  ;;  %v2420_v51 = vld [vmem:[%s2768_s11 + $0x184] ss:$16 sps:$4 sm:$0xff]   ;;  %v2424_v53 = vld [vmem:[%s2768_s11 + $0x180] ss:$16 sps:$4 sm:$0xff]  }
  0x3e   : > { %1558 = vmatpush1.bf16.msra.mxu1 %v2389_v30  ;;  %1516 = vmatprep.subr.bf16.mxu0 %v2390_v31  ;;  %v2422_v52 = vld [vmem:[%s2768_s11 + $0x384] ss:$16 sps:$4 sm:$0xff]   ;;  %v2425_v54 = vld [vmem:[%s2768_s11 + $0x380] ss:$16 sps:$4 sm:$0xff]   ;;  %v2483_v30 = vld [vmem:[%s2768_s11 + $0x68] ss:$16 sps:$4 sm:$0xff]  }
  0x3f   : > { %1559 = vmatprep.subr.bf16.mxu1 %v2392_v32  ;;  %v2426_v55 = vld [vmem:[%s2768_s11 + $0x164] ss:$16 sps:$4 sm:$0xff]   ;;  %v2430_v59 = vld [vmem:[%s2768_s11 + $0x160] ss:$16 sps:$4 sm:$0xff]   ;;  %v2491_v32 = vld [vmem:[%s2768_s11 + $0x4c] ss:$16 sps:$4 sm:$0xff]  }
  0x40   : > { %v2452_v56 = vld [vmem:[%s2770_s12 + $0x4] ss:$24 sps:$4 sm:$0xff]   ;;  %v2431_v60 = vld [vmem:[%s2768_s11 + $0x360] ss:$16 sps:$4 sm:$0xff]  }
  0x41   : > { %1517 = vmatpush1.bf16.msra.mxu0 %v2394_v33  ;;  %v2428_v57 = vld [vmem:[%s2768_s11 + $0x364] ss:$16 sps:$4 sm:$0xff]   ;;  %1536 = vmatprep.mubr.bf16.mxu0 %v2452_v56  ;;  %v2436_v63 = vld [vmem:[%s2768_s11 + $0x140] ss:$16 sps:$4 sm:$0xff]  }
  0x42   : > { %1560 = vmatpush1.bf16.msra.mxu1 %v2395_v34  ;;  %1518 = vmatprep.subr.bf16.mxu0 %v2396_v35  ;;  %v2825_v58 = vld [vmem:[%s2770_s12 + $0xc] ss:$24 sps:$4 sm:$0xff]   ;;  %v2437_v0 = vld [vmem:[%s2768_s11 + $0x340] ss:$16 sps:$4 sm:$0xff]   ;;  %v2489_v34 = vld [vmem:[%s2768_s11 + $0x48] ss:$16 sps:$4 sm:$0xff]  }
  0x43   : > { %1561 = vmatprep.subr.bf16.mxu1 %v2398_v36  ;;  %1579 = vmatprep.mubr.bf16.mxu1 %v2825_v58  ;;  %v2432_v61 = vld [vmem:[%s2768_s11 + $0x144] ss:$16 sps:$4 sm:$0xff]   ;;  %v2442_v3 = vld [vmem:[%s2768_s11 + $0x120] ss:$16 sps:$4 sm:$0xff]   ;;  %v2497_v36 = vld [vmem:[%s2768_s11 + $0x2c] ss:$16 sps:$4 sm:$0xff]  }
  0x44   : > { %v2434_v62 = vld [vmem:[%s2768_s11 + $0x344] ss:$16 sps:$4 sm:$0xff]   ;;  %v2443_v4 = vld [vmem:[%s2768_s11 + $0x320] ss:$16 sps:$4 sm:$0xff]  }
  0x45   : > { %1519 = vmatpush1.bf16.msra.mxu0 %v2400_v37  ;;  %v2438_v1 = vld [vmem:[%s2768_s11 + $0x124] ss:$16 sps:$4 sm:$0xff]   ;;  %v2448_v7 = vld [vmem:[%s2768_s11 + $0x100] ss:$16 sps:$4 sm:$0xff]  }
  0x46   : > { %1562 = vmatpush1.bf16.msra.mxu1 %v2401_v38  ;;  %1520 = vmatprep.subr.bf16.mxu0 %v2402_v39  ;;  %v2440_v2 = vld [vmem:[%s2768_s11 + $0x324] ss:$16 sps:$4 sm:$0xff]   ;;  %v2449_v8 = vld [vmem:[%s2768_s11 + $0x300] ss:$16 sps:$4 sm:$0xff]   ;;  %v2495_v38 = vld [vmem:[%s2768_s11 + $0x28] ss:$16 sps:$4 sm:$0xff]  }
  0x47   : > { %1563 = vmatprep.subr.bf16.mxu1 %v2404_v40  ;;  %v2444_v5 = vld [vmem:[%s2768_s11 + $0x104] ss:$16 sps:$4 sm:$0xff]   ;;  %v2845_v11 = vld [vmem:[%s2770_s12] ss:$24 sps:$4 sm:$0xff]   ;;  %v2503_v40 = vld [vmem:[%s2768_s11 + $0xc] ss:$16 sps:$4 sm:$0xff]  }
  0x48   : > { %v2446_v6 = vld [vmem:[%s2768_s11 + $0x304] ss:$16 sps:$4 sm:$0xff]   ;;  %v2848_v12 = vld [vmem:[%s2770_s12 + $0x8] ss:$24 sps:$4 sm:$0xff]  }
  0x49   : > { %1521 = vmatpush2.bf16.msra.mxu0 %v2406_v41  ;;  %v2458_v9 = vld [vmem:[%s2768_s11 + $0x4e4] ss:$16 sps:$4 sm:$0xff]   ;;  %v2456_v13 = vld [vmem:[%s2768_s11 + $0x4e0] ss:$16 sps:$4 sm:$0xff]  }
  0x4a   : > { %1564 = vmatpush2.bf16.msra.mxu1 %v2407_v42  ;;  %1522 = vmatprep.subr.bf16.mxu0 %v2408_v43  ;;  %v2464_v15 = vld [vmem:[%s2768_s11 + $0x4c4] ss:$16 sps:$4 sm:$0xff]   ;;  %v2462_v17 = vld [vmem:[%s2768_s11 + $0x4c0] ss:$16 sps:$4 sm:$0xff]   ;;  %v2501_v43 = vld [vmem:[%s2768_s11 + $0x8] ss:$16 sps:$4 sm:$0xff]  }
  0x4b   : > { %1565 = vmatprep.subr.bf16.mxu1 %v2410_v44  ;;  %v2470_v19 = vld [vmem:[%s2768_s11 + $0x4a4] ss:$16 sps:$4 sm:$0xff]   ;;  %v2468_v21 = vld [vmem:[%s2768_s11 + $0x4a0] ss:$16 sps:$4 sm:$0xff]  }
  0x4c   : > { %v2476_v23 = vld [vmem:[%s2768_s11 + $0x484] ss:$16 sps:$4 sm:$0xff]   ;;  %v2474_v25 = vld [vmem:[%s2768_s11 + $0x480] ss:$16 sps:$4 sm:$0xff]  }
  0x4d   : > { %1523 = vmatpush2.bf16.msra.mxu0 %v2412_v45  ;;  %v2482_v27 = vld [vmem:[%s2768_s11 + $0x464] ss:$16 sps:$4 sm:$0xff]   ;;  %v2480_v29 = vld [vmem:[%s2768_s11 + $0x460] ss:$16 sps:$4 sm:$0xff]   ;;  %v2509_v45 = vld [vmem:[%s2768_s11 + $0x1ec] ss:$16 sps:$4 sm:$0xff]  }
  0x4e   : > { %1566 = vmatpush2.bf16.msra.mxu1 %v2413_v46  ;;  %1524 = vmatprep.subr.bf16.mxu0 %v2414_v47  ;;  %v2488_v31 = vld [vmem:[%s2768_s11 + $0x444] ss:$16 sps:$4 sm:$0xff]   ;;  %v2486_v33 = vld [vmem:[%s2768_s11 + $0x440] ss:$16 sps:$4 sm:$0xff]   ;;  %v2507_v47 = vld [vmem:[%s2768_s11 + $0x1e8] ss:$16 sps:$4 sm:$0xff]  }
  0x4f   : > { %1567 = vmatprep.subr.bf16.mxu1 %v2416_v48  ;;  %v2494_v35 = vld [vmem:[%s2768_s11 + $0x424] ss:$16 sps:$4 sm:$0xff]   ;;  %v2492_v37 = vld [vmem:[%s2768_s11 + $0x420] ss:$16 sps:$4 sm:$0xff]  }
  0x50   : > { %v2500_v39 = vld [vmem:[%s2768_s11 + $0x404] ss:$16 sps:$4 sm:$0xff]   ;;  %v2498_v42 = vld [vmem:[%s2768_s11 + $0x400] ss:$16 sps:$4 sm:$0xff]  }
  0x51   : > { %1525 = vmatpush2.bf16.msra.mxu0 %v2418_v49  ;;  %v2881_v41 = vld [vmem:[%s2770_s12 + $0x14] ss:$24 sps:$4 sm:$0xff]   ;;  %v2504_v46 = vld [vmem:[%s2768_s11 + $0x5e0] ss:$16 sps:$4 sm:$0xff]  }
  0x52   : > { %1568 = vmatpush2.bf16.msra.mxu1 %v2419_v50  ;;  %1526 = vmatprep.subr.bf16.mxu0 %v2420_v51  ;;  %v2506_v44 = vld [vmem:[%s2768_s11 + $0x5e4] ss:$16 sps:$4 sm:$0xff]   ;;  %v2515_v49 = vld [vmem:[%s2768_s11 + $0x1cc] ss:$16 sps:$4 sm:$0xff]   ;;  %v2510_v50 = vld [vmem:[%s2768_s11 + $0x5c0] ss:$16 sps:$4 sm:$0xff]  }
  0x53   : > { %1569 = vmatprep.subr.bf16.mxu1 %v2422_v52  ;;  %v2512_v48 = vld [vmem:[%s2768_s11 + $0x5c4] ss:$16 sps:$4 sm:$0xff]   ;;  %v2513_v51 = vld [vmem:[%s2768_s11 + $0x1c8] ss:$16 sps:$4 sm:$0xff]  }
  0x54   : > { %v2518_v52 = vld [vmem:[%s2768_s11 + $0x5a4] ss:$16 sps:$4 sm:$0xff]  }
  0x55   : > { %1527 = vmatpush2.bf16.msra.mxu0 %v2424_v53  ;;  %v2521_v53 = vld [vmem:[%s2768_s11 + $0x1ac] ss:$16 sps:$4 sm:$0xff]  }
  0x56   : > { %1570 = vmatpush2.bf16.msra.mxu1 %v2425_v54  ;;  %1528 = vmatprep.subr.bf16.mxu0 %v2426_v55  ;;  %v2516_v54 = vld [vmem:[%s2768_s11 + $0x5a0] ss:$16 sps:$4 sm:$0xff]   ;;  %v2519_v55 = vld [vmem:[%s2768_s11 + $0x1a8] ss:$16 sps:$4 sm:$0xff]  }
  0x57   : > { %1571 = vmatprep.subr.bf16.mxu1 %v2428_v57  ;;  %v2527_v57 = vld [vmem:[%s2768_s11 + $0x18c] ss:$16 sps:$4 sm:$0xff]  }
  0x59   : > { %1529 = vmatpush2.bf16.msra.mxu0 %v2430_v59  ;;  %v2522_v59 = vld [vmem:[%s2768_s11 + $0x580] ss:$16 sps:$4 sm:$0xff]  }
  0x5a   : > { %1572 = vmatpush2.bf16.msra.mxu1 %v2431_v60  ;;  %1530 = vmatprep.subr.bf16.mxu0 %v2432_v61  ;;  %v2525_v60 = vld [vmem:[%s2768_s11 + $0x188] ss:$16 sps:$4 sm:$0xff]   ;;  %v2530_v61 = vld [vmem:[%s2768_s11 + $0x564] ss:$16 sps:$4 sm:$0xff]  }
  0x5b   : > { %1573 = vmatprep.subr.bf16.mxu1 %v2434_v62  ;;  %v2533_v62 = vld [vmem:[%s2768_s11 + $0x16c] ss:$16 sps:$4 sm:$0xff]  }
  0x5d   : > { %1531 = vmatpush2.bf16.msra.mxu0 %v2436_v63  ;;  %v2528_v63 = vld [vmem:[%s2768_s11 + $0x560] ss:$16 sps:$4 sm:$0xff]  }
  0x5e   : > { %1574 = vmatpush2.bf16.msra.mxu1 %v2437_v0  ;;  %1532 = vmatprep.subr.bf16.mxu0 %v2438_v1  ;;  %v2531_v0 = vld [vmem:[%s2768_s11 + $0x168] ss:$16 sps:$4 sm:$0xff]   ;;  %v2536_v1 = vld [vmem:[%s2768_s11 + $0x544] ss:$16 sps:$4 sm:$0xff]  }
  0x5f   : > { %1575 = vmatprep.subr.bf16.mxu1 %v2440_v2  ;;  %v2539_v2 = vld [vmem:[%s2768_s11 + $0x14c] ss:$16 sps:$4 sm:$0xff]  }
  0x61   : > { %1533 = vmatpush2.bf16.msra.mxu0 %v2442_v3  ;;  %v2534_v3 = vld [vmem:[%s2768_s11 + $0x540] ss:$16 sps:$4 sm:$0xff]  }
  0x62   : > { %1576 = vmatpush2.bf16.msra.mxu1 %v2443_v4  ;;  %1534 = vmatprep.subr.bf16.mxu0 %v2444_v5  ;;  %v2537_v4 = vld [vmem:[%s2768_s11 + $0x148] ss:$16 sps:$4 sm:$0xff]   ;;  %v2542_v5 = vld [vmem:[%s2768_s11 + $0x524] ss:$16 sps:$4 sm:$0xff]  }
  0x63   : > { %1577 = vmatprep.subr.bf16.mxu1 %v2446_v6  ;;  %v2545_v6 = vld [vmem:[%s2768_s11 + $0x12c] ss:$16 sps:$4 sm:$0xff]  }
  0x65   : > { %1535 = vmatpush2.bf16.msra.mxu0 %v2448_v7  ;;  %v2540_v7 = vld [vmem:[%s2768_s11 + $0x520] ss:$16 sps:$4 sm:$0xff]  }
  0x66   : > { %1578 = vmatpush2.bf16.msra.mxu1 %v2449_v8  ;;  %1590 = vmatprep.subr.bf16.mxu0 %v2458_v9  ;;  %v2543_v8 = vld [vmem:[%s2768_s11 + $0x128] ss:$16 sps:$4 sm:$0xff]   ;;  %v2548_v9 = vld [vmem:[%s2768_s11 + $0x504] ss:$16 sps:$4 sm:$0xff]  }
  0x67   : > { %1633 = vmatprep.subr.bf16.mxu1 %v2461_v10  ;;  %v2551_v10 = vld [vmem:[%s2768_s11 + $0x10c] ss:$16 sps:$4 sm:$0xff]  }
  0x68   : > { %1537 = vmatmul.mubr.bf16.vlgmr.msra.gmra.mxu0 %v2845_v11 }
  0x69   : > { %1580 = vmatmul.mubr.bf16.vlgmr.msra.gmra.mxu1 %v2848_v12  ;;  %1591 = vmatpush1.bf16.msra.mxu0 %v2456_v13  ;;  %v2546_v13 = vld [vmem:[%s2768_s11 + $0x500] ss:$16 sps:$4 sm:$0xff]  }
  0x6a   : > { %1634 = vmatpush1.bf16.msra.mxu1 %v2459_v14  ;;  %1592 = vmatprep.subr.bf16.mxu0 %v2464_v15  ;;  %v2549_v14 = vld [vmem:[%s2768_s11 + $0x108] ss:$16 sps:$4 sm:$0xff]   ;;  %v2557_v15 = vld [vmem:[%s2768_s11 + $0x2ec] ss:$16 sps:$4 sm:$0xff]  }
  0x6b   : > { %1635 = vmatprep.subr.bf16.mxu1 %v2467_v16  ;;  %1665 = vmatprep.mubr.bf16.mxu1 %v2452_v56  ;;  %v2524_v56 = vld [vmem:[%s2768_s11 + $0x584] ss:$16 sps:$4 sm:$0xff]   ;;  %v2560_v16 = vld [vmem:[%s2768_s11 + $0x4ec] ss:$16 sps:$4 sm:$0xff]  }
  0x6c   : > { %1622 = vmatprep.mubr.bf16.mxu0 %v2881_v41 }
  0x6d   : > { %1593 = vmatpush1.bf16.msra.mxu0 %v2462_v17  ;;  %v2921_v17 = vld [vmem:[%s2770_s12 + $0x10] ss:$24 sps:$4 sm:$0xff]  }
  0x6e   : > { %1636 = vmatpush1.bf16.msra.mxu1 %v2465_v18  ;;  %1594 = vmatprep.subr.bf16.mxu0 %v2470_v19  ;;  %v2555_v18 = vld [vmem:[%s2768_s11 + $0x2e8] ss:$16 sps:$4 sm:$0xff]  }
  0x6f   : > { %1637 = vmatprep.subr.bf16.mxu1 %v2473_v20  ;;  %v2558_v19 = vld [vmem:[%s2768_s11 + $0x4e8] ss:$16 sps:$4 sm:$0xff]   ;;  %v2563_v20 = vld [vmem:[%s2768_s11 + $0x2cc] ss:$16 sps:$4 sm:$0xff]  }
  0x71   : > { %1595 = vmatpush1.bf16.msra.mxu0 %v2468_v21  ;;  %v2566_v21 = vld [vmem:[%s2768_s11 + $0x4cc] ss:$16 sps:$4 sm:$0xff]  }
  0x72   : > { %1638 = vmatpush1.bf16.msra.mxu1 %v2471_v22  ;;  %1596 = vmatprep.subr.bf16.mxu0 %v2476_v23  ;;  %v2561_v22 = vld [vmem:[%s2768_s11 + $0x2c8] ss:$16 sps:$4 sm:$0xff]  }
  0x73   : > { %1639 = vmatprep.subr.bf16.mxu1 %v2479_v24  ;;  %v2564_v23 = vld [vmem:[%s2768_s11 + $0x4c8] ss:$16 sps:$4 sm:$0xff]   ;;  %v2569_v24 = vld [vmem:[%s2768_s11 + $0x2ac] ss:$16 sps:$4 sm:$0xff]  }
  0x75   : > { %1597 = vmatpush1.bf16.msra.mxu0 %v2474_v25  ;;  %v2572_v25 = vld [vmem:[%s2768_s11 + $0x4ac] ss:$16 sps:$4 sm:$0xff]  }
  0x76   : > { %1640 = vmatpush1.bf16.msra.mxu1 %v2477_v26  ;;  %1598 = vmatprep.subr.bf16.mxu0 %v2482_v27  ;;  %v2570_v26 = vld [vmem:[%s2768_s11 + $0x4a8] ss:$16 sps:$4 sm:$0xff]   ;;  %v2575_v27 = vld [vmem:[%s2768_s11 + $0x28c] ss:$16 sps:$4 sm:$0xff]  }
  0x77   : > { %1641 = vmatprep.subr.bf16.mxu1 %v2485_v28  ;;  %v2578_v28 = vld [vmem:[%s2768_s11 + $0x48c] ss:$16 sps:$4 sm:$0xff]  }
  0x79   : > { %1599 = vmatpush1.bf16.msra.mxu0 %v2480_v29  ;;  %v2573_v29 = vld [vmem:[%s2768_s11 + $0x288] ss:$16 sps:$4 sm:$0xff]  }
  0x7a   : > { %1642 = vmatpush1.bf16.msra.mxu1 %v2483_v30  ;;  %1600 = vmatprep.subr.bf16.mxu0 %v2488_v31  ;;  %v2581_v30 = vld [vmem:[%s2768_s11 + $0x26c] ss:$16 sps:$4 sm:$0xff]  }
  0x7b   : > { %1643 = vmatprep.subr.bf16.mxu1 %v2491_v32  ;;  %v2584_v31 = vld [vmem:[%s2768_s11 + $0x46c] ss:$16 sps:$4 sm:$0xff]   ;;  %v2579_v32 = vld [vmem:[%s2768_s11 + $0x268] ss:$16 sps:$4 sm:$0xff]  }
  0x7d   : > { %1601 = vmatpush1.bf16.msra.mxu0 %v2486_v33  ;;  %v2582_v33 = vld [vmem:[%s2768_s11 + $0x468] ss:$16 sps:$4 sm:$0xff]  }
  0x7e   : > { %1644 = vmatpush1.bf16.msra.mxu1 %v2489_v34  ;;  %1602 = vmatprep.subr.bf16.mxu0 %v2494_v35  ;;  %v2587_v34 = vld [vmem:[%s2768_s11 + $0x24c] ss:$16 sps:$4 sm:$0xff]  }
  0x7f   : > { %1645 = vmatprep.subr.bf16.mxu1 %v2497_v36  ;;  %v2590_v35 = vld [vmem:[%s2768_s11 + $0x44c] ss:$16 sps:$4 sm:$0xff]   ;;  %v2585_v36 = vld [vmem:[%s2768_s11 + $0x248] ss:$16 sps:$4 sm:$0xff]  }
  0x81   : > { %1603 = vmatpush1.bf16.msra.mxu0 %v2492_v37  ;;  %v2588_v37 = vld [vmem:[%s2768_s11 + $0x448] ss:$16 sps:$4 sm:$0xff]  }
  0x82   : > { %1646 = vmatpush1.bf16.msra.mxu1 %v2495_v38  ;;  %1604 = vmatprep.subr.bf16.mxu0 %v2500_v39  ;;  %v2593_v38 = vld [vmem:[%s2768_s11 + $0x22c] ss:$16 sps:$4 sm:$0xff]  }
  0x83   : > { %1647 = vmatprep.subr.bf16.mxu1 %v2503_v40  ;;  %v2596_v39 = vld [vmem:[%s2768_s11 + $0x42c] ss:$16 sps:$4 sm:$0xff]   ;;  %v2591_v40 = vld [vmem:[%s2768_s11 + $0x228] ss:$16 sps:$4 sm:$0xff]  }
  0x85   : > { %1605 = vmatpush1.bf16.msra.mxu0 %v2498_v42  ;;  %v2599_v42 = vld [vmem:[%s2768_s11 + $0x20c] ss:$16 sps:$4 sm:$0xff]  }
  0x86   : > { %1648 = vmatpush1.bf16.msra.mxu1 %v2501_v43  ;;  %1606 = vmatprep.subr.bf16.mxu0 %v2506_v44  ;;  %v2602_v43 = vld [vmem:[%s2768_s11 + $0x40c] ss:$16 sps:$4 sm:$0xff]   ;;  %v2597_v44 = vld [vmem:[%s2768_s11 + $0x208] ss:$16 sps:$4 sm:$0xff]  }
  0x87   : > { %1649 = vmatprep.subr.bf16.mxu1 %v2509_v45  ;;  %v2600_v45 = vld [vmem:[%s2768_s11 + $0x408] ss:$16 sps:$4 sm:$0xff]  }
  0x89   : > { %1607 = vmatpush2.bf16.msra.mxu0 %v2504_v46  ;;  %v2605_v46 = vld [vmem:[%s2768_s11 + $0x3ec] ss:$16 sps:$4 sm:$0xff]  }
  0x8a   : > { %1650 = vmatpush2.bf16.msra.mxu1 %v2507_v47  ;;  %1608 = vmatprep.subr.bf16.mxu0 %v2512_v48  ;;  %v2608_v47 = vld [vmem:[%s2768_s11 + $0x5ec] ss:$16 sps:$4 sm:$0xff]   ;;  %v2603_v48 = vld [vmem:[%s2768_s11 + $0x3e8] ss:$16 sps:$4 sm:$0xff]  }
  0x8b   : > { %1651 = vmatprep.subr.bf16.mxu1 %v2515_v49  ;;  %v2606_v49 = vld [vmem:[%s2768_s11 + $0x5e8] ss:$16 sps:$4 sm:$0xff]  }
  0x8d   : > { %1609 = vmatpush2.bf16.msra.mxu0 %v2510_v50  ;;  %v2611_v50 = vld [vmem:[%s2768_s11 + $0x3cc] ss:$16 sps:$4 sm:$0xff]  }
  0x8e   : > { %1652 = vmatpush2.bf16.msra.mxu1 %v2513_v51  ;;  %1610 = vmatprep.subr.bf16.mxu0 %v2518_v52  ;;  %v2614_v51 = vld [vmem:[%s2768_s11 + $0x5cc] ss:$16 sps:$4 sm:$0xff]   ;;  %v2609_v52 = vld [vmem:[%s2768_s11 + $0x3c8] ss:$16 sps:$4 sm:$0xff]  }
  0x8f   : > { %1653 = vmatprep.subr.bf16.mxu1 %v2521_v53  ;;  %v2612_v53 = vld [vmem:[%s2768_s11 + $0x5c8] ss:$16 sps:$4 sm:$0xff]  }
  0x91   : > { %1611 = vmatpush2.bf16.msra.mxu0 %v2516_v54  ;;  %v2617_v54 = vld [vmem:[%s2768_s11 + $0x3ac] ss:$16 sps:$4 sm:$0xff]  }
  0x92   : > { %1654 = vmatpush2.bf16.msra.mxu1 %v2519_v55  ;;  %1612 = vmatprep.subr.bf16.mxu0 %v2524_v56  ;;  %v2620_v55 = vld [vmem:[%s2768_s11 + $0x5ac] ss:$16 sps:$4 sm:$0xff]   ;;  %v2615_v56 = vld [vmem:[%s2768_s11 + $0x3a8] ss:$16 sps:$4 sm:$0xff]  }
  0x93   : > { %1655 = vmatprep.subr.bf16.mxu1 %v2527_v57  ;;  %v2618_v57 = vld [vmem:[%s2768_s11 + $0x5a8] ss:$16 sps:$4 sm:$0xff]  }
  0x95   : > { %1613 = vmatpush2.bf16.msra.mxu0 %v2522_v59  ;;  %v2623_v59 = vld [vmem:[%s2768_s11 + $0x38c] ss:$16 sps:$4 sm:$0xff]  }
  0x96   : > { %1656 = vmatpush2.bf16.msra.mxu1 %v2525_v60  ;;  %1614 = vmatprep.subr.bf16.mxu0 %v2530_v61  ;;  %v2626_v60 = vld [vmem:[%s2768_s11 + $0x58c] ss:$16 sps:$4 sm:$0xff]   ;;  %v2621_v61 = vld [vmem:[%s2768_s11 + $0x388] ss:$16 sps:$4 sm:$0xff]  }
  0x97   : > { %1657 = vmatprep.subr.bf16.mxu1 %v2533_v62  ;;  %v2624_v62 = vld [vmem:[%s2768_s11 + $0x588] ss:$16 sps:$4 sm:$0xff]  }
  0x99   : > { %1615 = vmatpush2.bf16.msra.mxu0 %v2528_v63  ;;  %v2629_v63 = vld [vmem:[%s2768_s11 + $0x36c] ss:$16 sps:$4 sm:$0xff]  }
  0x9a   : > { %1658 = vmatpush2.bf16.msra.mxu1 %v2531_v0  ;;  %1616 = vmatprep.subr.bf16.mxu0 %v2536_v1  ;;  %v2632_v0 = vld [vmem:[%s2768_s11 + $0x56c] ss:$16 sps:$4 sm:$0xff]   ;;  %v2627_v1 = vld [vmem:[%s2768_s11 + $0x368] ss:$16 sps:$4 sm:$0xff]  }
  0x9b   : > { %1659 = vmatprep.subr.bf16.mxu1 %v2539_v2  ;;  %v2630_v2 = vld [vmem:[%s2768_s11 + $0x568] ss:$16 sps:$4 sm:$0xff]  }
  0x9d   : > { %1617 = vmatpush2.bf16.msra.mxu0 %v2534_v3  ;;  %v2635_v3 = vld [vmem:[%s2768_s11 + $0x34c] ss:$16 sps:$4 sm:$0xff]  }
  0x9e   : > { %1660 = vmatpush2.bf16.msra.mxu1 %v2537_v4  ;;  %1618 = vmatprep.subr.bf16.mxu0 %v2542_v5  ;;  %v2638_v4 = vld [vmem:[%s2768_s11 + $0x54c] ss:$16 sps:$4 sm:$0xff]   ;;  %v2633_v5 = vld [vmem:[%s2768_s11 + $0x348] ss:$16 sps:$4 sm:$0xff]  }
  0x9f   : > { %1661 = vmatprep.subr.bf16.mxu1 %v2545_v6  ;;  %v2636_v6 = vld [vmem:[%s2768_s11 + $0x548] ss:$16 sps:$4 sm:$0xff]  }
  0xa1   : > { %1619 = vmatpush2.bf16.msra.mxu0 %v2540_v7  ;;  %v2641_v7 = vld [vmem:[%s2768_s11 + $0x32c] ss:$16 sps:$4 sm:$0xff]  }
  0xa2   : > { %1662 = vmatpush2.bf16.msra.mxu1 %v2543_v8  ;;  %1620 = vmatprep.subr.bf16.mxu0 %v2548_v9  ;;  %v2644_v8 = vld [vmem:[%s2768_s11 + $0x52c] ss:$16 sps:$4 sm:$0xff]   ;;  %v2639_v9 = vld [vmem:[%s2768_s11 + $0x328] ss:$16 sps:$4 sm:$0xff]  }
  0xa3   : > { %1663 = vmatprep.subr.bf16.mxu1 %v2551_v10  ;;  %v2642_v10 = vld [vmem:[%s2768_s11 + $0x528] ss:$16 sps:$4 sm:$0xff]  }
  0xa5   : > { %1621 = vmatpush2.bf16.msra.mxu0 %v2546_v13  ;;  %v2647_v13 = vld [vmem:[%s2768_s11 + $0x30c] ss:$16 sps:$4 sm:$0xff]  }
  0xa6   : > { %1664 = vmatpush2.bf16.msra.mxu1 %v2549_v14  ;;  %1676 = vmatprep.subr.bf16.mxu0 %v2557_v15  ;;  %v2650_v14 = vld [vmem:[%s2768_s11 + $0x50c] ss:$16 sps:$4 sm:$0xff]   ;;  %v2645_v15 = vld [vmem:[%s2768_s11 + $0x308] ss:$16 sps:$4 sm:$0xff]  }
  0xa7   : > { %1719 = vmatprep.subr.bf16.mxu1 %v2560_v16  ;;  %v2648_v16 = vld [vmem:[%s2768_s11 + $0x508] ss:$16 sps:$4 sm:$0xff]  }
  0xa8   : > { %1623 = vmatmul.mubr.bf16.vlgmr.msra.gmra.mxu0 %v2921_v17 }
  0xa9   : > { %1666 = vmatmul.mubr.bf16.vlgmr.msra.gmra.mxu1 %v2845_v11  ;;  %1677 = vmatpush1.bf16.msra.mxu0 %v2555_v18  ;;  %v2567_v11 = vld [vmem:[%s2768_s11 + $0x2a8] ss:$16 sps:$4 sm:$0xff]  }
  0xaa   : > { %1720 = vmatpush1.bf16.msra.mxu1 %v2558_v19  ;;  %1678 = vmatprep.subr.bf16.mxu0 %v2563_v20 }
  0xab   : > { %1721 = vmatprep.subr.bf16.mxu1 %v2566_v21  ;;  %1708 = vmatprep.mubr.bf16.mxu0 %v2825_v58  ;;  %v2576_v58 = vld [vmem:[%s2768_s11 + $0x488] ss:$16 sps:$4 sm:$0xff]  }
  0xac   : > { %1751 = vmatprep.mubr.bf16.mxu1 %v2881_v41  ;;  %v2594_v41 = vld [vmem:[%s2768_s11 + $0x428] ss:$16 sps:$4 sm:$0xff]  }
  0xad   : > { %1679 = vmatpush1.bf16.msra.mxu0 %v2561_v22 }
  0xae   : > { %1722 = vmatpush1.bf16.msra.mxu1 %v2564_v23  ;;  %1680 = vmatprep.subr.bf16.mxu0 %v2569_v24 }
  0xaf   : > { %1723 = vmatprep.subr.bf16.mxu1 %v2572_v25 }
  0xb1   : > { %1681 = vmatpush1.bf16.msra.mxu0 %v2567_v11  ;;  %v308_v11 = vld [vmem:[#allocation2 + $0x30] sm:$0xff] }
  0xb2   : > { %1724 = vmatpush1.bf16.msra.mxu1 %v2570_v26  ;;  %1682 = vmatprep.subr.bf16.mxu0 %v2575_v27 }
  0xb3   : > { %1725 = vmatprep.subr.bf16.mxu1 %v2578_v28 }
  0xb5   : > { %1683 = vmatpush1.bf16.msra.mxu0 %v2573_v29 }
  0xb6   : > { %1726 = vmatpush1.bf16.msra.mxu1 %v2576_v58  ;;  %1684 = vmatprep.subr.bf16.mxu0 %v2581_v30  ;;  %v309_v58 = vld [vmem:[#allocation2] sm:$0xff] }
  0xb7   : > { %1727 = vmatprep.subr.bf16.mxu1 %v2584_v31 }
  0xb9   : > { %1685 = vmatpush1.bf16.msra.mxu0 %v2579_v32 }
  0xba   : > { %1728 = vmatpush1.bf16.msra.mxu1 %v2582_v33  ;;  %1686 = vmatprep.subr.bf16.mxu0 %v2587_v34  ;;  %v312_v33 = vld [vmem:[#allocation2 + $0x8] sm:$0xff] }
  0xbb   : > { %1729 = vmatprep.subr.bf16.mxu1 %v2590_v35 }
  0xbd   : > { %1687 = vmatpush1.bf16.msra.mxu0 %v2585_v36 }
  0xbe   : > { %1730 = vmatpush1.bf16.msra.mxu1 %v2588_v37  ;;  %1688 = vmatprep.subr.bf16.mxu0 %v2593_v38  ;;  %v313_v37 = vld [vmem:[#allocation2 + $0x20] sm:$0xff] }
  0xbf   : > { %1731 = vmatprep.subr.bf16.mxu1 %v2596_v39 }
  0xc1   : > { %1689 = vmatpush1.bf16.msra.mxu0 %v2591_v40 }
  0xc2   : > { %1732 = vmatpush1.bf16.msra.mxu1 %v2594_v41  ;;  %1690 = vmatprep.subr.bf16.mxu0 %v2599_v42 }
  0xc3   : > { %1733 = vmatprep.subr.bf16.mxu1 %v2602_v43 }
  0xc5   : > { %1691 = vmatpush1.bf16.msra.mxu0 %v2597_v44 }
  0xc6   : > { %1734 = vmatpush1.bf16.msra.mxu1 %v2600_v45  ;;  %1692 = vmatprep.subr.bf16.mxu0 %v2605_v46 }
  0xc7   : > { %1735 = vmatprep.subr.bf16.mxu1 %v2608_v47 }
  0xc9   : > { %1693 = vmatpush2.bf16.msra.mxu0 %v2603_v48 }
  0xca   : > { %1736 = vmatpush2.bf16.msra.mxu1 %v2606_v49  ;;  %1694 = vmatprep.subr.bf16.mxu0 %v2611_v50  ;;  %v310_v49 = vld [vmem:[#allocation2 + $0x18] sm:$0xff] }
  0xcb   : > { %1737 = vmatprep.subr.bf16.mxu1 %v2614_v51 }
  0xcd   : > { %1695 = vmatpush2.bf16.msra.mxu0 %v2609_v52 }
  0xce   : > { %1738 = vmatpush2.bf16.msra.mxu1 %v2612_v53  ;;  %1696 = vmatprep.subr.bf16.mxu0 %v2617_v54  ;;  %v311_v54 = vld [vmem:[#allocation2 + $0x10] sm:$0xff] }
  0xcf   : > { %1739 = vmatprep.subr.bf16.mxu1 %v2620_v55 }
  0xd1   : > { %1697 = vmatpush2.bf16.msra.mxu0 %v2615_v56 }
  0xd2   : > { %1740 = vmatpush2.bf16.msra.mxu1 %v2618_v57  ;;  %1698 = vmatprep.subr.bf16.mxu0 %v2623_v59 }
  0xd3   : > { %1741 = vmatprep.subr.bf16.mxu1 %v2626_v60 }
  0xd5   : > { %1699 = vmatpush2.bf16.msra.mxu0 %v2621_v61  ;;  %v314_v61 = vld [vmem:[#allocation2 + $0x28] sm:$0xff] }
  0xd6   : > { %1742 = vmatpush2.bf16.msra.mxu1 %v2624_v62  ;;  %1700 = vmatprep.subr.bf16.mxu0 %v2629_v63 }
  0xd7   : > { %1743 = vmatprep.subr.bf16.mxu1 %v2632_v0 }
  0xd9   : > { %1701 = vmatpush2.bf16.msra.mxu0 %v2627_v1 }
  0xda   : > { %1744 = vmatpush2.bf16.msra.mxu1 %v2630_v2  ;;  %1702 = vmatprep.subr.bf16.mxu0 %v2635_v3  ;;  %v315_v2 = vld [vmem:[#allocation2 + $0x38] sm:$0xff] }
  0xdb   : > { %1745 = vmatprep.subr.bf16.mxu1 %v2638_v4 }
  0xdd   : > { %1703 = vmatpush2.bf16.msra.mxu0 %v2633_v5 }
  0xde   : > { %1746 = vmatpush2.bf16.msra.mxu1 %v2636_v6  ;;  %1704 = vmatprep.subr.bf16.mxu0 %v2641_v7 }
  0xdf   : > { %1747 = vmatprep.subr.bf16.mxu1 %v2644_v8 }
  0xe1   : > { %1705 = vmatpush2.bf16.msra.mxu0 %v2639_v9 }
  0xe2   : > { %1748 = vmatpush2.bf16.msra.mxu1 %v2642_v10  ;;  %1706 = vmatprep.subr.bf16.mxu0 %v2647_v13 }
  0xe3   : > { %1749 = vmatprep.subr.bf16.mxu1 %v2650_v14 }
  0xe5   : > { %1707 = vmatpush2.bf16.msra.mxu0 %v2645_v15 }
  0xe6   : > { %1750 = vmatpush2.bf16.msra.mxu1 %v2648_v16 }
  0xe8   : > { %1709 = vmatmul.mubr.bf16.vlgmr.msra.gmra.mxu0 %v2848_v12 }
  0xe9   : > { %1752 = vmatmul.mubr.bf16.vlgmr.msra.gmra.mxu1 %v2921_v17 }
 0x128   : > { %v1538_v18 = vpop.f32.mrf.mxu0 }
 0x129   : > { %v1581_v19 = vpop.f32.mrf.mxu1 }
 0x12a   : > { %v1540_v20 = vpop.f32.mrf.mxu0  ;;  %v1582_v25 = vadd.f32 %v1581_v19, %v1538_v18 }
 0x12b   : > { %v1583_v21 = vpop.f32.mrf.mxu1 }
 0x12c   : > { %v1542_v22 = vpop.f32.mrf.mxu0  ;;  %v1584_v27 = vadd.f32 %v1583_v21, %v1540_v20 }
 0x12d   : > { %v1585_v23 = vpop.f32.mrf.mxu1 }
 0x12e   : > { %v1544_v24 = vpop.f32.mrf.mxu0  ;;  %v1586_v31 = vadd.f32 %v1585_v23, %v1542_v22 }
 0x12f   : > { %v1587_v29 = vpop.f32.mrf.mxu1 }
 0x130   : > { %v1588_v34 = vadd.f32 %v1587_v29, %v1544_v24 }
 0x168   : > { %v1624_v26 = vpop.f32.mrf.mxu0 }
 0x169   : > { %v1625_v28 = vadd.f32 %v1624_v26, %v1582_v25  ;;  %v1667_v42 = vpop.f32.mrf.mxu1 }
 0x16a   : > { %v1626_v30 = vpop.f32.mrf.mxu0 }
 0x16b   : > { %v1762_v32 = vadd.f32 %v1625_v28, %v308_v11  ;;  %v1627_v12 = vadd.f32 %v1626_v30, %v1584_v27  ;;  %v1669_v43 = vpop.f32.mrf.mxu1 }
 0x16c   : > { %v1628_v17 = vpop.f32.mrf.mxu0 }
 0x16d   : > { %1770 = vst [vmem:[#allocation2 + $0x30] sm:$0xff] %v1762_v32  ;;  %v1763_v35 = vadd.f32 %v1627_v12, %v309_v58  ;;  %v1629_v36 = vadd.f32 %v1628_v17, %v1586_v31  ;;  %v1671_v44 = vpop.f32.mrf.mxu1 }
 0x16e   : > { %v1630_v38 = vpop.f32.mrf.mxu0 }
 0x16f   : > { %1771 = vst [vmem:[#allocation2] sm:$0xff] %v1763_v35  ;;  %v1766_v39 = vadd.f32 %v1629_v36, %v312_v33  ;;  %v1631_v40 = vadd.f32 %v1630_v38, %v1588_v34  ;;  %v1673_v45 = vpop.f32.mrf.mxu1 }
 0x171   : > { %1774 = vst [vmem:[#allocation2 + $0x8] sm:$0xff] %v1766_v39  ;;  %v1767_v41 = vadd.f32 %v1631_v40, %v313_v37 }
 0x173   : > { %1775 = vst [vmem:[#allocation2 + $0x20] sm:$0xff] %v1767_v41 }
 0x1a8   : > { %v1710_v46 = vpop.f32.mrf.mxu0 }
 0x1a9   : > { %v1753_v47 = vpop.f32.mrf.mxu1  ;;  %v1711_v48 = vadd.f32 %v1710_v46, %v1667_v42 }
 0x1aa   : > { %v1712_v50 = vpop.f32.mrf.mxu0 }
 0x1ab   : > { %v1755_v51 = vpop.f32.mrf.mxu1  ;;  %v1754_v52 = vadd.f32 %v1753_v47, %v1711_v48  ;;  %v1713_v53 = vadd.f32 %v1712_v50, %v1669_v43 }
 0x1ac   : > { %v1714_v55 = vpop.f32.mrf.mxu0 }
 0x1ad   : > { %v1757_v56 = vpop.f32.mrf.mxu1  ;;  %v1764_v57 = vadd.f32 %v1754_v52, %v310_v49  ;;  %v1756_v59 = vadd.f32 %v1755_v51, %v1713_v53  ;;  %v1715_v60 = vadd.f32 %v1714_v55, %v1671_v44 }
 0x1ae   : > { %v1716_v62 = vpop.f32.mrf.mxu0 }
 0x1af   : > { %1772 = vst [vmem:[#allocation2 + $0x18] sm:$0xff] %v1764_v57  ;;  %v1765_v63 = vadd.f32 %v1756_v59, %v311_v54  ;;  %v1758_v0 = vadd.f32 %v1757_v56, %v1715_v60  ;;  %v1717_v1 = vadd.f32 %v1716_v62, %v1673_v45  ;;  %v1759_v3 = vpop.f32.mrf.mxu1 }
 0x1b1   : > { %1773 = vst [vmem:[#allocation2 + $0x10] sm:$0xff] %v1765_v63  ;;  %v1768_v4 = vadd.f32 %v1758_v0, %v314_v61  ;;  %v1760_v5 = vadd.f32 %v1759_v3, %v1717_v1  ;;  %1781 = sbr.rel (%p2293_p11) target bundleno = 470 (0x1d6), region = 59 }
 0x1b3   : > { %1776 = vst [vmem:[#allocation2 + $0x28] sm:$0xff] %v1768_v4  ;;  %v1769_v6 = vadd.f32 %v1760_v5, %v315_v2 }
 0x1b5   : > { %1777 = vst [vmem:[#allocation2 + $0x38] sm:$0xff] %v1769_v6 }
 0x1b6   : > { %v1782_v7 = vld [vmem:[#allocation2 + $0x30] sm:$0xff]  ;;  %v1783_v8 = vld [vmem:[#allocation2] sm:$0xff]  ;;  %v1784_v9 = vld [vmem:[#allocation2 + $0x18] sm:$0xff]  ;;  %v1855_v10 = vlaneseq }
 0x1b7   : > { %v2306_v13 = vpack.c.bf16 %v1783_v8, %v1782_v7  ;;  %v1880_v14 = vmul.f32 %v1782_v7, %v1782_v7  ;;  %v1881_v15 = vmul.f32 %v1783_v8, %v1783_v8  ;;  %v1882_v18 = vmul.f32 %v1784_v9, %v1784_v9  ;;  %v1786_v19 = vld [vmem:[#allocation2 + $0x8] sm:$0xff]  ;;  %v1787_v20 = vld [vmem:[#allocation2 + $0x20] sm:$0xff] }
 0x1b8   : > { %v1785_v16 = vld [vmem:[#allocation2 + $0x10] sm:$0xff]  ;;  %v2308_v23 = vpack.c.bf16 %v1787_v20, %v1786_v19  ;;  %v1818_v24 = vadd.f32 %v1786_v19, %v1782_v7  ;;  %v1825_v26 = vadd.f32 %v1787_v20, %v1783_v8  ;;  %v1884_v27 = vmul.f32 %v1786_v19, %v1786_v19 }
 0x1b9   : > { %v2307_v21 = vpack.c.bf16 %v1785_v16, %v1784_v9  ;;  %v1883_v22 = vmul.f32 %v1785_v16, %v1785_v16  ;;  %1814 = vst [vmem:[%s3029_s2] sm:$0xff] %v2306_v13  ;;  %v1885_v28 = vmul.f32 %v1787_v20, %v1787_v20  ;;  %v2692_v13 = vmov 1966171168  }
 0x1ba   : > { %v1788_v25 = vld [vmem:[#allocation2 + $0x28] sm:$0xff]  ;;  %1816 = vst [vmem:[%s3029_s2 + $0x10] sm:$0xff] %v2308_v23  ;;  %v1819_v58 = vrot.slane %v1818_v24, 4  ;;  %v1826_v12 = vrot.slane %v1825_v26, 4  ;;  %v1888_v33 = vadd.f32 %v1884_v27, %v1880_v14  ;;  %v1853_v14 = vunpack.c.l.s4 %v2692_v13 }
 0x1bb   : > { %1815 = vst [vmem:[%s3029_s2 + $0x8] sm:$0xff] %v2307_v21  ;;  %v1832_v30 = vadd.f32 %v1788_v25, %v1784_v9  ;;  %v1886_v32 = vmul.f32 %v1788_v25, %v1788_v25  ;;  %v1895_v17 = vadd.f32 %v1885_v28, %v1881_v15  ;;  %v1856_v15 = vshrl.u32 %v1855_v10, 7 }
 0x1bc   : > { %v1789_v11 = vld [vmem:[#allocation2 + $0x38] sm:$0xff]  ;;  %v1820_v35 = vadd.f32 %v1819_v58, %v1818_v24  ;;  %v1827_v39 = vadd.f32 %v1826_v12, %v1825_v26  ;;  %v1889_v40 = vrot.slane %v1888_v33, 4  ;;  %v1854_v21 = vunpack.c.0.s8 %v1853_v14 }
 0x1bd   : > { %v2309_v29 = vpack.c.bf16 %v1789_v11, %v1788_v25  ;;  %v1839_v31 = vadd.f32 %v1789_v11, %v1785_v16  ;;  %v1887_v34 = vmul.f32 %v1789_v11, %v1789_v11  ;;  %v1833_v36 = vrot.slane %v1832_v30, 4 }
 0x1be   : > { %v1902_v38 = vadd.f32 %v1886_v32, %v1882_v18  ;;  %v1896_v41 = vrot.slane %v1895_v17, 4  ;;  %v1821_v43 = vrot.slane %v1820_v35, 2  ;;  %v1828_v47 = vrot.slane %v1827_v39, 2 }
 0x1bf   : > { %1817 = vst [vmem:[%s3029_s2 + $0x18] sm:$0xff] %v2309_v29  ;;  %v1840_v37 = vrot.slane %v1839_v31, 4  ;;  %v1909_v42 = vadd.f32 %v1887_v34, %v1883_v22  ;;  %v1834_v44 = vadd.f32 %v1833_v36, %v1832_v30  ;;  %v1890_v48 = vadd.f32 %v1889_v40, %v1888_v33 }
 0x1c0   : > { %v1903_v46 = vrot.slane %v1902_v38, 4  ;;  %v1897_v49 = vadd.f32 %v1896_v41, %v1895_v17  ;;  %v1822_v51 = vadd.f32 %v1821_v43, %v1820_v35  ;;  %v1829_v55 = vadd.f32 %v1828_v47, %v1827_v39 }
 0x1c1   : > { %v1841_v45 = vadd.f32 %v1840_v37, %v1839_v31  ;;  %v1910_v50 = vrot.slane %v1909_v42, 4  ;;  %v1835_v52 = vrot.slane %v1834_v44, 2  ;;  %v1891_v56 = vrot.slane %v1890_v48, 2 }
 0x1c2   : > { %v1904_v54 = vadd.f32 %v1903_v46, %v1902_v38  ;;  %v1898_v57 = vrot.slane %v1897_v49, 2  ;;  %v1823_v60 = vrot.slane %v1822_v51, 1  ;;  %v1830_v0 = vrot.slane %v1829_v55, 1 }
 0x1c3   : > { %v1842_v53 = vrot.slane %v1841_v45, 2  ;;  %v1911_v59 = vadd.f32 %v1910_v50, %v1909_v42  ;;  %v1836_v61 = vadd.f32 %v1835_v52, %v1834_v44  ;;  %v1892_v1 = vadd.f32 %v1891_v56, %v1890_v48 }
 0x1c4   : > { %v1905_v63 = vrot.slane %v1904_v54, 2  ;;  %v1899_v2 = vadd.f32 %v1898_v57, %v1897_v49  ;;  %v1824_v7 = vadd.f32 %v1823_v60, %v1822_v51  ;;  %v1831_v9 = vadd.f32 %v1830_v0, %v1829_v55 }
 0x1c5   : > { %v1843_v62 = vadd.f32 %v1842_v53, %v1841_v45  ;;  %v1912_v3 = vrot.slane %v1911_v59, 2  ;;  %v1837_v4 = vrot.slane %v1836_v61, 1  ;;  %v1893_v19 = vrot.slane %v1892_v1, 1 }
 0x1c6   : > { %v1906_v6 = vadd.f32 %v1905_v63, %v1904_v54  ;;  %v1850_v20 = vcombine.low %v1824_v7, %v1831_v9  ;;  %v1900_v22 = vrot.slane %v1899_v2, 1  ;;  %v1857_v26 = vsub.s32 %v1854_v21, %v1856_v15 }
 0x1c7   : > { %v1844_v5 = vrot.slane %v1843_v62, 1  ;;  %v1913_v8 = vadd.f32 %v1912_v3, %v1911_v59  ;;  %v1838_v16 = vadd.f32 %v1837_v4, %v1836_v61  ;;  %v1894_v25 = vadd.f32 %v1893_v19, %v1892_v1 }
 0x1c8   : > { %v1907_v23 = vrot.slane %v1906_v6, 1  ;;  %v1901_v27 = vadd.f32 %v1900_v22, %v1899_v2  ;;  %v1858_v58 = vrot.slane %v1850_v20, %v1857_v26  ;;  %vm1877_vm0 = vcmp.lt.s32.totalorder %v1855_v10, 512 }
 0x1c9   : > { %v1845_v18 = vadd.f32 %v1844_v5, %v1843_v62  ;;  %v1914_v11 = vrot.slane %v1913_v8, 1 }
 0x1ca   : > { %v1908_v28 = vadd.f32 %v1907_v23, %v1906_v6  ;;  %v1920_v31 = vcombine.low %v1894_v25, %v1901_v27 }
 0x1cb   : > { %v1851_v24 = vcombine.low %v1838_v16, %v1845_v18  ;;  %v1915_v29 = vadd.f32 %v1914_v11, %v1913_v8 }
 0x1cc   : > { %v1928_v33 = vrot.slane %v1920_v31, %v1857_v26 }
 0x1cd   : > { %v1865_v30 = vrot.slane %v1851_v24, %v1857_v26  ;;  %v1921_v32 = vcombine.low %v1908_v28, %v1915_v29 }
 0x1cf   : > { %v1866_v12 = vcombine.low %v1858_v58, %v1865_v30  ;;  %v1935_v17 = vrot.slane %v1921_v32, %v1857_v26 }
 0x1d1   : > { %v1873_v34 = vrot.slane %v1866_v12, %v1857_v26  ;;  %v1936_v35 = vcombine.low %v1928_v33, %v1935_v17 }
 0x1d3   : > { %1879 = vst.msk [vmem:[%s3030_s3] sm:$0xf] %vm1877_vm0, %v1873_v34  ;;  %v1943_v36 = vrot.slane %v1936_v35, %v1857_v26 }
 0x1d5   : > { %1945 = vst.msk [vmem:[%s3031_s4] sm:$0xf] %vm1877_vm0, %v1943_v36 }
 0x1d6 PF: > { %s15_s19 = sadd.s32 1, %s2689_s19   ;;  %s3032_s15 = smov %s2677_s16 }
 0x1d7   : > { %p12_p12 = scmp.ge.s32.totalorder %s15_s19, 8   ;;  %s3033_s16 = smov %s2753_s23 }
 0x1d8   : > { %s3034_s17 = smov %s2685_s18  ;;  %s3035_s18 = smov %s3037_s20 }
 0x1d9   :  { %14 = sbr.rel (!%p12_p12) target bundleno = 3 (0x3), region = 121 }

// kernel: resnet18_forward.80
= control target key start
LH: loop header
LB: loop body
LE: loop exit
PB: predicated region body
PF: predicated region fallthrough
CT: control target
= control target key end

     0   :  { %v28_v0 = vlaneseq  ;;  %s176_s0 = inlined_call_operand.vmem [shape: bf16[16,512], index: 0, kind: input, shape index: {}]   ;;  %s177_s1 = inlined_call_operand.vmem [shape: f32[1,512], index: 1, kind: input, shape index: {}]   ;;  %s178_s2 = inlined_call_operand.vmem [shape: f32[1,512], index: 2, kind: input, shape index: {}]   ;;  %s179_s3 = inlined_call_operand.vmem [shape: bf16[16,512], index: 3, kind: output, shape index: {}]  }
   0x1   :  { %v14_v1 = vld [vmem:[%s176_s0] sm:$0xff]  ;;  %v15_v3 = vld [vmem:[%s176_s0 + $0x8] sm:$0xff]  ;;  %v16_v4 = vld [vmem:[%s176_s0 + $0x10] sm:$0xff] }
   0x2   :  { %v29_v2 = vshrl.u32 %v28_v0, 7  ;;  %v17_v5 = vld [vmem:[%s176_s0 + $0x18] sm:$0xff]  ;;  %v18_v6 = vunpack.c.l.bf16 %v14_v1  ;;  %v19_v7 = vunpack.c.h.bf16 %v14_v1  ;;  %v26_v8 = vld [vmem:[%s177_s1] sm:$0xf]  ;;  %v22_v10 = vunpack.c.l.bf16 %v16_v4 }
   0x3   :  { %v56_v9 = vld [vmem:[%s178_s2] sm:$0xf]  ;;  %v23_v11 = vunpack.c.h.bf16 %v16_v4  ;;  %v20_v16 = vunpack.c.l.bf16 %v15_v3  ;;  %v21_v17 = vunpack.c.h.bf16 %v15_v3  ;;  %v24_v18 = vunpack.c.l.bf16 %v17_v5 }
   0x4   :  { %v30_v12 = vsub.s32 0, %v29_v2  ;;  %v34_v13 = vsub.s32 1, %v29_v2  ;;  %v38_v14 = vsub.s32 2, %v29_v2  ;;  %v42_v15 = vsub.s32 3, %v29_v2 }
   0x5   :  { %v25_v19 = vunpack.c.h.bf16 %v17_v5 }
   0x6   :  { %v31_v20 = vrot.slane %v26_v8, %v30_v12  ;;  %v35_v21 = vrot.slane %v26_v8, %v34_v13  ;;  %v61_v22 = vrot.slane %v56_v9, %v30_v12  ;;  %v65_v23 = vrot.slane %v56_v9, %v34_v13 }
   0x7   :  { %v39_v24 = vrot.slane %v26_v8, %v38_v14  ;;  %v43_v25 = vrot.slane %v26_v8, %v42_v15  ;;  %v69_v26 = vrot.slane %v56_v9, %v38_v14  ;;  %v73_v27 = vrot.slane %v56_v9, %v42_v15 }
   0x8   :  { %v48_v28 = vmul.f32 %v31_v20, %v18_v6  ;;  %v49_v29 = vmul.f32 %v35_v21, %v19_v7  ;;  %v52_v30 = vmul.f32 %v31_v20, %v22_v10  ;;  %v53_v31 = vmul.f32 %v35_v21, %v23_v11 }
   0x9   :  { %v50_v32 = vmul.f32 %v39_v24, %v20_v16  ;;  %v51_v33 = vmul.f32 %v43_v25, %v21_v17  ;;  %v54_v34 = vmul.f32 %v39_v24, %v24_v18  ;;  %v55_v35 = vmul.f32 %v43_v25, %v25_v19 }
   0xa   :  { %v78_v36 = vadd.f32 %v61_v22, %v48_v28  ;;  %v79_v37 = vadd.f32 %v65_v23, %v49_v29  ;;  %v82_v38 = vadd.f32 %v61_v22, %v52_v30  ;;  %v83_v39 = vadd.f32 %v65_v23, %v53_v31 }
   0xb   :  { %v80_v40 = vadd.f32 %v69_v26, %v50_v32  ;;  %v81_v41 = vadd.f32 %v73_v27, %v51_v33  ;;  %v84_v42 = vadd.f32 %v69_v26, %v54_v34  ;;  %v85_v43 = vadd.f32 %v73_v27, %v55_v35 }
   0xc   :  { %v122_v44 = vpack.c.bf16 %v79_v37, %v78_v36  ;;  %v124_v45 = vpack.c.bf16 %v83_v39, %v82_v38 }
   0xd   :  { %v123_v46 = vpack.c.bf16 %v81_v41, %v80_v40  ;;  %v125_v47 = vpack.c.bf16 %v85_v43, %v84_v42 }
   0xe   :  { %110 = vst [vmem:[%s179_s3] sm:$0xff] %v122_v44  ;;  %112 = vst [vmem:[%s179_s3 + $0x10] sm:$0xff] %v124_v45 }
   0xf   :  { %111 = vst [vmem:[%s179_s3 + $0x8] sm:$0xff] %v123_v46  ;;  %113 = vst [vmem:[%s179_s3 + $0x18] sm:$0xff] %v125_v47 }

// kernel: resnet18_forward.86
= control target key start
LH: loop header
LB: loop body
LE: loop exit
PB: predicated region body
PF: predicated region fallthrough
CT: control target
= control target key end

     0   :  { %s204_s6 = smov 0   ;;  %s225_s0 = inlined_call_operand.vmem [shape: bf16[2,1,512], index: 0, kind: input, shape index: {}]   ;;  %s226_s1 = inlined_call_operand.vmem [shape: f32[2,1,512], index: 1, kind: output, shape index: {}]  }
   0x1 LB: > { %s182_s7 = sadd.s32 4294967295, %s206_s6   ;;  %p186_p0 = scmp.ge.s32.totalorder %s206_s6, 1  ;;  %s206_s6 = sphi %s204_s6, %s11_s6  }
   0x2   : > { %p86_p1 = scmp.lt.s32.totalorder %s206_s6, 3 }
   0x4   : > { %p87_p2 = pnand %p186_p0, %p86_p1 }
   0x5   : > { %p104_p3 = scmp.lt.s32.totalorder (!%p87_p2), %s182_s7, 1 }
   0x6   : > { %90 = sbr.rel (%p87_p2) target bundleno = 21 (0x15), region = 24 }
   0xb   : > { %v119_v0 = vlaneseq  ;;  %v208_v1 = vmov 1966171168   ;;  %s228_s7 = smov (!%p104_p3, %s182_s7), 1 }
   0xc   : > { %v117_v2 = vunpack.c.l.s4 %v208_v1  ;;  %s187_s8 = sshll.u32 %s228_s7, 2 }
   0xd   : > { %v120_v3 = vshrl.u32 %v119_v0, 7  ;;  %s107_s11 = scalar_lea.vmem %s225_s0, %s187_s8  ;;  %s111_s14 = scalar_lea.vmem %s226_s1, %s187_s8  ;;  %vm126_vm0 = vcmp.lt.s32.totalorder %v119_v0, 512 }
   0xe   : > { %v118_v4 = vunpack.c.0.s8 %v117_v2  ;;  %v112_v6 = vld [vmem:[%s107_s11] sm:$0xf] }
   0xf   : > { %v113_v7 = vunpack.c.l.bf16 %v112_v6 }
  0x10   : > { %v121_v5 = vsub.s32 %v118_v4, %v120_v3 }
  0x12   : > { %v122_v8 = vrot.slane %v113_v7, %v121_v5 }
  0x14   : > { %128 = vst.msk [vmem:[%s111_s14] sm:$0xf] %vm126_vm0, %v122_v8 }
  0x15 PF: > { %s11_s6 = sadd.s32 1, %s206_s6  }
  0x16   : > { %p8_p4 = scmp.ge.s32.totalorder %s11_s6, 4  }
  0x18   :  { %10 = sbr.rel (!%p8_p4) target bundleno = 1 (0x1), region = 54 }

// kernel: resnet18_forward.81
= control target key start
LH: loop header
LB: loop body
LE: loop exit
PB: predicated region body
PF: predicated region fallthrough
CT: control target
= control target key end

     0   :  { %v31_v0 = vlaneseq  ;;  %s224_s0 = inlined_call_operand.vmem [shape: bf16[16,512], index: 0, kind: input, shape index: {}]   ;;  %s225_s1 = inlined_call_operand.vmem [shape: bf16[16,512], index: 1, kind: input, shape index: {}]   ;;  %s226_s2 = inlined_call_operand.vmem [shape: f32[1,512], index: 2, kind: input, shape index: {}]   ;;  %s227_s3 = inlined_call_operand.vmem [shape: f32[1,512], index: 3, kind: input, shape index: {}]   ;;  %s228_s4 = inlined_call_operand.vmem [shape: bf16[16,512], index: 4, kind: output, shape index: {}]  }
   0x1   :  { %v17_v1 = vld [vmem:[%s224_s0] sm:$0xff]  ;;  %v18_v6 = vld [vmem:[%s224_s0 + $0x8] sm:$0xff]  ;;  %v19_v14 = vld [vmem:[%s224_s0 + $0x10] sm:$0xff] }
   0x2   :  { %v21_v2 = vunpack.c.l.bf16 %v17_v1  ;;  %v22_v3 = vunpack.c.h.bf16 %v17_v1  ;;  %v32_v4 = vshrl.u32 %v31_v0, 7  ;;  %v89_v5 = vld [vmem:[%s225_s1] sm:$0xff]  ;;  %v90_v7 = vld [vmem:[%s225_s1 + $0x8] sm:$0xff]  ;;  %v23_v12 = vunpack.c.l.bf16 %v18_v6  ;;  %v91_v27 = vld [vmem:[%s225_s1 + $0x10] sm:$0xff] }
   0x3   :  { %v29_v8 = vld [vmem:[%s226_s2] sm:$0xf]  ;;  %v93_v10 = vunpack.c.l.bf16 %v89_v5  ;;  %v94_v11 = vunpack.c.h.bf16 %v89_v5  ;;  %v24_v13 = vunpack.c.h.bf16 %v18_v6  ;;  %v95_v19 = vunpack.c.l.bf16 %v90_v7  ;;  %v20_v36 = vld [vmem:[%s224_s0 + $0x18] sm:$0xff] }
   0x4   :  { %v59_v9 = vld [vmem:[%s227_s3] sm:$0xf]  ;;  %v33_v15 = vsub.s32 0, %v32_v4  ;;  %v37_v16 = vsub.s32 1, %v32_v4  ;;  %v41_v17 = vsub.s32 2, %v32_v4  ;;  %v45_v18 = vsub.s32 3, %v32_v4 }
   0x5   :  { %v96_v20 = vunpack.c.h.bf16 %v90_v7  ;;  %v25_v21 = vunpack.c.l.bf16 %v19_v14  ;;  %v26_v22 = vunpack.c.h.bf16 %v19_v14  ;;  %v97_v39 = vunpack.c.l.bf16 %v91_v27  ;;  %v92_v57 = vld [vmem:[%s225_s1 + $0x18] sm:$0xff] }
   0x6   :  { %v34_v23 = vrot.slane %v29_v8, %v33_v15  ;;  %v38_v24 = vrot.slane %v29_v8, %v37_v16  ;;  %v64_v25 = vrot.slane %v59_v9, %v33_v15  ;;  %v68_v26 = vrot.slane %v59_v9, %v37_v16 }
   0x7   :  { %v42_v28 = vrot.slane %v29_v8, %v41_v17  ;;  %v46_v29 = vrot.slane %v29_v8, %v45_v18  ;;  %v72_v30 = vrot.slane %v59_v9, %v41_v17  ;;  %v76_v31 = vrot.slane %v59_v9, %v45_v18 }
   0x8   :  { %v51_v32 = vmul.f32 %v34_v23, %v21_v2  ;;  %v52_v33 = vmul.f32 %v38_v24, %v22_v3  ;;  %v55_v34 = vmul.f32 %v34_v23, %v25_v21  ;;  %v56_v35 = vmul.f32 %v38_v24, %v26_v22 }
   0x9   :  { %v53_v37 = vmul.f32 %v42_v28, %v23_v12  ;;  %v54_v38 = vmul.f32 %v46_v29, %v24_v13  ;;  %v98_v40 = vunpack.c.h.bf16 %v91_v27  ;;  %v27_v47 = vunpack.c.l.bf16 %v20_v36 }
   0xa   :  { %v81_v41 = vadd.f32 %v64_v25, %v51_v32  ;;  %v82_v42 = vadd.f32 %v68_v26, %v52_v33  ;;  %v85_v43 = vadd.f32 %v64_v25, %v55_v34  ;;  %v86_v44 = vadd.f32 %v68_v26, %v56_v35 }
   0xb   :  { %v83_v45 = vadd.f32 %v72_v30, %v53_v37  ;;  %v84_v46 = vadd.f32 %v76_v31, %v54_v38  ;;  %v28_v48 = vunpack.c.h.bf16 %v20_v36  ;;  %v57_v55 = vmul.f32 %v42_v28, %v27_v47 }
   0xc   :  { %v101_v49 = vadd.f32 %v93_v10, %v81_v41  ;;  %v102_v50 = vadd.f32 %v94_v11, %v82_v42  ;;  %v105_v51 = vadd.f32 %v97_v39, %v85_v43  ;;  %v106_v52 = vadd.f32 %v98_v40, %v86_v44 }
   0xd   :  { %v103_v53 = vadd.f32 %v95_v19, %v83_v45  ;;  %v104_v54 = vadd.f32 %v96_v20, %v84_v46  ;;  %v58_v56 = vmul.f32 %v46_v29, %v28_v48  ;;  %v87_v0 = vadd.f32 %v72_v30, %v57_v55 }
   0xe   :  { %v109_v58 = vmax.f32 %v101_v49, 0.0  ;;  %v110_v59 = vmax.f32 %v102_v50, 0.0  ;;  %v113_v60 = vmax.f32 %v105_v51, 0.0  ;;  %v114_v61 = vmax.f32 %v106_v52, 0.0 }
   0xf   :  { %v111_v62 = vmax.f32 %v103_v53, 0.0  ;;  %v112_v63 = vmax.f32 %v104_v54, 0.0  ;;  %v88_v1 = vadd.f32 %v76_v31, %v58_v56  ;;  %v99_v4 = vunpack.c.l.bf16 %v92_v57 }
  0x10   :  { %v153_v2 = vpack.c.bf16 %v110_v59, %v109_v58  ;;  %v155_v3 = vpack.c.bf16 %v114_v61, %v113_v60  ;;  %v100_v5 = vunpack.c.h.bf16 %v92_v57 }
  0x11   :  { %v154_v6 = vpack.c.bf16 %v112_v63, %v111_v62  ;;  %v107_v7 = vadd.f32 %v99_v4, %v87_v0 }
  0x12   :  { %141 = vst [vmem:[%s228_s4] sm:$0xff] %v153_v2  ;;  %143 = vst [vmem:[%s228_s4 + $0x10] sm:$0xff] %v155_v3  ;;  %v108_v8 = vadd.f32 %v100_v5, %v88_v1 }
  0x13   :  { %142 = vst [vmem:[%s228_s4 + $0x8] sm:$0xff] %v154_v6  ;;  %v115_v9 = vmax.f32 %v107_v7, 0.0 }
  0x14   :  { %v116_v10 = vmax.f32 %v108_v8, 0.0 }
  0x16   :  { %v156_v11 = vpack.c.bf16 %v116_v10, %v115_v9 }
  0x18   :  { %144 = vst [vmem:[%s228_s4 + $0x18] sm:$0xff] %v156_v11 }

// kernel: resnet18_forward.87
= control target key start
LH: loop header
LB: loop body
LE: loop exit
PB: predicated region body
PF: predicated region fallthrough
CT: control target
= control target key end

     0   :  { %s1986_s1 = inlined_call_operand.vmem [shape: bf16[512,512], index: 1, kind: input, shape index: {}]   ;;  %s1987_s0 = inlined_call_operand.vmem [shape: bf16[16,512], index: 0, kind: input, shape index: {}]   ;;  %s1988_s2 = inlined_call_operand.vmem [shape: bf16[16,512], index: 2, kind: output, shape index: {0}]   ;;  %s1989_s3 = inlined_call_operand.vmem [shape: f32[1,1,512], index: 3, kind: output, shape index: {1}]   ;;  %s1990_s4 = inlined_call_operand.vmem [shape: f32[1,1,512], index: 4, kind: output, shape index: {2}]  }
   0x1   :  { %v1334_v0 = vld [vmem:[%s1986_s1 + $0xe4] ss:$16 sps:$4 sm:$0xff]   ;;  %v1338_v2 = vld [vmem:[%s1986_s1 + $0xe0] ss:$16 sps:$4 sm:$0xff]   ;;  %v1435_v51 = vld [vmem:[%s1987_s0 + $0xc] ss:$16 sps:$4 sm:$0xff]  }
   0x2   :  { %v1336_v1 = vld [vmem:[%s1986_s1 + $0x2e4] ss:$16 sps:$4 sm:$0xff]   ;;  %826 = vmatprep.subr.bf16.mxu0 %v1334_v0  ;;  %v1339_v3 = vld [vmem:[%s1986_s1 + $0x2e0] ss:$16 sps:$4 sm:$0xff]   ;;  %901 = vmatprep.mubr.bf16.mxu1 %v1435_v51 }
   0x3   :  { %869 = vmatprep.subr.bf16.mxu1 %v1336_v1  ;;  %v1340_v4 = vld [vmem:[%s1986_s1 + $0xc4] ss:$16 sps:$4 sm:$0xff]   ;;  %827 = vmatpush1.bf16.msra.mxu0 %v1338_v2  ;;  %v1344_v6 = vld [vmem:[%s1986_s1 + $0xc0] ss:$16 sps:$4 sm:$0xff]   ;;  %v1438_v2 = vld [vmem:[%s1986_s1 + $0xec] ss:$16 sps:$4 sm:$0xff]  }
   0x4   :  { %870 = vmatpush1.bf16.msra.mxu1 %v1339_v3  ;;  %v1342_v5 = vld [vmem:[%s1986_s1 + $0x2c4] ss:$16 sps:$4 sm:$0xff]   ;;  %828 = vmatprep.subr.bf16.mxu0 %v1340_v4  ;;  %v1345_v7 = vld [vmem:[%s1986_s1 + $0x2c0] ss:$16 sps:$4 sm:$0xff]   ;;  %v1441_v3 = vld [vmem:[%s1986_s1 + $0x2ec] ss:$16 sps:$4 sm:$0xff]  }
   0x5   :  { %871 = vmatprep.subr.bf16.mxu1 %v1342_v5  ;;  %v1346_v8 = vld [vmem:[%s1986_s1 + $0xa4] ss:$16 sps:$4 sm:$0xff]   ;;  %v1350_v10 = vld [vmem:[%s1986_s1 + $0xa0] ss:$16 sps:$4 sm:$0xff]   ;;  %v1770_v5 = vld [vmem:[%s1987_s0 + $0x8] ss:$16 sps:$4 sm:$0xff]  }
   0x6   :  { %v1348_v9 = vld [vmem:[%s1986_s1 + $0x2a4] ss:$16 sps:$4 sm:$0xff]   ;;  %v1351_v11 = vld [vmem:[%s1986_s1 + $0x2a0] ss:$16 sps:$4 sm:$0xff]  }
   0x7   :  { %829 = vmatpush1.bf16.msra.mxu0 %v1344_v6  ;;  %v1352_v12 = vld [vmem:[%s1986_s1 + $0x84] ss:$16 sps:$4 sm:$0xff]   ;;  %v1356_v14 = vld [vmem:[%s1986_s1 + $0x80] ss:$16 sps:$4 sm:$0xff]   ;;  %v1436_v6 = vld [vmem:[%s1986_s1 + $0xe8] ss:$16 sps:$4 sm:$0xff]  }
   0x8   :  { %872 = vmatpush1.bf16.msra.mxu1 %v1345_v7  ;;  %830 = vmatprep.subr.bf16.mxu0 %v1346_v8  ;;  %v1354_v13 = vld [vmem:[%s1986_s1 + $0x284] ss:$16 sps:$4 sm:$0xff]   ;;  %v1357_v15 = vld [vmem:[%s1986_s1 + $0x280] ss:$16 sps:$4 sm:$0xff]   ;;  %v1439_v7 = vld [vmem:[%s1986_s1 + $0x2e8] ss:$16 sps:$4 sm:$0xff]  }
   0x9   :  { %873 = vmatprep.subr.bf16.mxu1 %v1348_v9  ;;  %v1358_v16 = vld [vmem:[%s1986_s1 + $0x64] ss:$16 sps:$4 sm:$0xff]   ;;  %v1362_v18 = vld [vmem:[%s1986_s1 + $0x60] ss:$16 sps:$4 sm:$0xff]   ;;  %v1444_v8 = vld [vmem:[%s1986_s1 + $0xcc] ss:$16 sps:$4 sm:$0xff]  }
   0xa   :  { %v1360_v17 = vld [vmem:[%s1986_s1 + $0x264] ss:$16 sps:$4 sm:$0xff]   ;;  %v1363_v19 = vld [vmem:[%s1986_s1 + $0x260] ss:$16 sps:$4 sm:$0xff]   ;;  %v1447_v9 = vld [vmem:[%s1986_s1 + $0x2cc] ss:$16 sps:$4 sm:$0xff]  }
   0xb   :  { %831 = vmatpush1.bf16.msra.mxu0 %v1350_v10  ;;  %v1364_v20 = vld [vmem:[%s1986_s1 + $0x44] ss:$16 sps:$4 sm:$0xff]   ;;  %v1368_v22 = vld [vmem:[%s1986_s1 + $0x40] ss:$16 sps:$4 sm:$0xff]   ;;  %v1442_v10 = vld [vmem:[%s1986_s1 + $0xc8] ss:$16 sps:$4 sm:$0xff]  }
   0xc   :  { %874 = vmatpush1.bf16.msra.mxu1 %v1351_v11  ;;  %832 = vmatprep.subr.bf16.mxu0 %v1352_v12  ;;  %v1366_v21 = vld [vmem:[%s1986_s1 + $0x244] ss:$16 sps:$4 sm:$0xff]   ;;  %v1369_v23 = vld [vmem:[%s1986_s1 + $0x240] ss:$16 sps:$4 sm:$0xff]   ;;  %v1445_v11 = vld [vmem:[%s1986_s1 + $0x2c8] ss:$16 sps:$4 sm:$0xff]  }
   0xd   :  { %875 = vmatprep.subr.bf16.mxu1 %v1354_v13  ;;  %v1370_v24 = vld [vmem:[%s1986_s1 + $0x24] ss:$16 sps:$4 sm:$0xff]   ;;  %v1374_v26 = vld [vmem:[%s1986_s1 + $0x20] ss:$16 sps:$4 sm:$0xff]   ;;  %v1450_v12 = vld [vmem:[%s1986_s1 + $0xac] ss:$16 sps:$4 sm:$0xff]  }
   0xe   :  { %v1372_v25 = vld [vmem:[%s1986_s1 + $0x224] ss:$16 sps:$4 sm:$0xff]   ;;  %v1375_v27 = vld [vmem:[%s1986_s1 + $0x220] ss:$16 sps:$4 sm:$0xff]   ;;  %v1453_v13 = vld [vmem:[%s1986_s1 + $0x2ac] ss:$16 sps:$4 sm:$0xff]  }
   0xf   :  { %833 = vmatpush1.bf16.msra.mxu0 %v1356_v14  ;;  %v1376_v28 = vld [vmem:[%s1986_s1 + $0x4] ss:$16 sps:$4 sm:$0xff]   ;;  %v1380_v30 = vld [vmem:[%s1986_s1] ss:$16 sps:$4 sm:$0xff]   ;;  %v1448_v14 = vld [vmem:[%s1986_s1 + $0xa8] ss:$16 sps:$4 sm:$0xff]  }
  0x10   :  { %876 = vmatpush1.bf16.msra.mxu1 %v1357_v15  ;;  %834 = vmatprep.subr.bf16.mxu0 %v1358_v16  ;;  %v1378_v29 = vld [vmem:[%s1986_s1 + $0x204] ss:$16 sps:$4 sm:$0xff]   ;;  %v1381_v31 = vld [vmem:[%s1986_s1 + $0x200] ss:$16 sps:$4 sm:$0xff]   ;;  %v1451_v15 = vld [vmem:[%s1986_s1 + $0x2a8] ss:$16 sps:$4 sm:$0xff]  }
  0x11   :  { %877 = vmatprep.subr.bf16.mxu1 %v1360_v17  ;;  %v1382_v32 = vld [vmem:[%s1986_s1 + $0x1e4] ss:$16 sps:$4 sm:$0xff]   ;;  %v1386_v34 = vld [vmem:[%s1986_s1 + $0x1e0] ss:$16 sps:$4 sm:$0xff]   ;;  %v1456_v16 = vld [vmem:[%s1986_s1 + $0x8c] ss:$16 sps:$4 sm:$0xff]  }
  0x12   :  { %v1384_v33 = vld [vmem:[%s1986_s1 + $0x3e4] ss:$16 sps:$4 sm:$0xff]   ;;  %v1387_v35 = vld [vmem:[%s1986_s1 + $0x3e0] ss:$16 sps:$4 sm:$0xff]   ;;  %v1459_v17 = vld [vmem:[%s1986_s1 + $0x28c] ss:$16 sps:$4 sm:$0xff]  }
  0x13   :  { %835 = vmatpush1.bf16.msra.mxu0 %v1362_v18  ;;  %v1388_v36 = vld [vmem:[%s1986_s1 + $0x1c4] ss:$16 sps:$4 sm:$0xff]   ;;  %v1392_v38 = vld [vmem:[%s1986_s1 + $0x1c0] ss:$16 sps:$4 sm:$0xff]   ;;  %v1454_v18 = vld [vmem:[%s1986_s1 + $0x88] ss:$16 sps:$4 sm:$0xff]  }
  0x14   :  { %878 = vmatpush1.bf16.msra.mxu1 %v1363_v19  ;;  %836 = vmatprep.subr.bf16.mxu0 %v1364_v20  ;;  %v1390_v37 = vld [vmem:[%s1986_s1 + $0x3c4] ss:$16 sps:$4 sm:$0xff]   ;;  %v1393_v39 = vld [vmem:[%s1986_s1 + $0x3c0] ss:$16 sps:$4 sm:$0xff]   ;;  %v1457_v19 = vld [vmem:[%s1986_s1 + $0x288] ss:$16 sps:$4 sm:$0xff]  }
  0x15   :  { %879 = vmatprep.subr.bf16.mxu1 %v1366_v21  ;;  %v1394_v40 = vld [vmem:[%s1986_s1 + $0x1a4] ss:$16 sps:$4 sm:$0xff]   ;;  %v1398_v42 = vld [vmem:[%s1986_s1 + $0x1a0] ss:$16 sps:$4 sm:$0xff]   ;;  %v1462_v20 = vld [vmem:[%s1986_s1 + $0x6c] ss:$16 sps:$4 sm:$0xff]  }
  0x16   :  { %v1396_v41 = vld [vmem:[%s1986_s1 + $0x3a4] ss:$16 sps:$4 sm:$0xff]   ;;  %v1399_v43 = vld [vmem:[%s1986_s1 + $0x3a0] ss:$16 sps:$4 sm:$0xff]   ;;  %v1465_v21 = vld [vmem:[%s1986_s1 + $0x26c] ss:$16 sps:$4 sm:$0xff]  }
  0x17   :  { %837 = vmatpush1.bf16.msra.mxu0 %v1368_v22  ;;  %v1400_v44 = vld [vmem:[%s1986_s1 + $0x184] ss:$16 sps:$4 sm:$0xff]   ;;  %v1404_v46 = vld [vmem:[%s1986_s1 + $0x180] ss:$16 sps:$4 sm:$0xff]   ;;  %v1460_v22 = vld [vmem:[%s1986_s1 + $0x68] ss:$16 sps:$4 sm:$0xff]  }
  0x18   :  { %880 = vmatpush1.bf16.msra.mxu1 %v1369_v23  ;;  %838 = vmatprep.subr.bf16.mxu0 %v1370_v24  ;;  %v1402_v45 = vld [vmem:[%s1986_s1 + $0x384] ss:$16 sps:$4 sm:$0xff]   ;;  %v1405_v47 = vld [vmem:[%s1986_s1 + $0x380] ss:$16 sps:$4 sm:$0xff]   ;;  %v1463_v23 = vld [vmem:[%s1986_s1 + $0x268] ss:$16 sps:$4 sm:$0xff]  }
  0x19   :  { %881 = vmatprep.subr.bf16.mxu1 %v1372_v25  ;;  %v1406_v48 = vld [vmem:[%s1986_s1 + $0x164] ss:$16 sps:$4 sm:$0xff]   ;;  %v1410_v52 = vld [vmem:[%s1986_s1 + $0x160] ss:$16 sps:$4 sm:$0xff]   ;;  %v1468_v24 = vld [vmem:[%s1986_s1 + $0x4c] ss:$16 sps:$4 sm:$0xff]  }
  0x1a   :  { %v1432_v49 = vld [vmem:[%s1987_s0 + $0x4] ss:$16 sps:$4 sm:$0xff]   ;;  %v1411_v53 = vld [vmem:[%s1986_s1 + $0x360] ss:$16 sps:$4 sm:$0xff]   ;;  %v1471_v25 = vld [vmem:[%s1986_s1 + $0x24c] ss:$16 sps:$4 sm:$0xff]  }
  0x1b   :  { %839 = vmatpush1.bf16.msra.mxu0 %v1374_v26  ;;  %v1408_v50 = vld [vmem:[%s1986_s1 + $0x364] ss:$16 sps:$4 sm:$0xff]   ;;  %858 = vmatprep.mubr.bf16.mxu0 %v1432_v49  ;;  %v1416_v56 = vld [vmem:[%s1986_s1 + $0x140] ss:$16 sps:$4 sm:$0xff]   ;;  %v1466_v26 = vld [vmem:[%s1986_s1 + $0x48] ss:$16 sps:$4 sm:$0xff]  }
  0x1c   :  { %882 = vmatpush1.bf16.msra.mxu1 %v1375_v27  ;;  %840 = vmatprep.subr.bf16.mxu0 %v1376_v28  ;;  %v1412_v54 = vld [vmem:[%s1986_s1 + $0x144] ss:$16 sps:$4 sm:$0xff]   ;;  %v1417_v57 = vld [vmem:[%s1986_s1 + $0x340] ss:$16 sps:$4 sm:$0xff]   ;;  %v1469_v27 = vld [vmem:[%s1986_s1 + $0x248] ss:$16 sps:$4 sm:$0xff]  }
  0x1d   :  { %883 = vmatprep.subr.bf16.mxu1 %v1378_v29  ;;  %v1414_v55 = vld [vmem:[%s1986_s1 + $0x344] ss:$16 sps:$4 sm:$0xff]   ;;  %v1422_v60 = vld [vmem:[%s1986_s1 + $0x120] ss:$16 sps:$4 sm:$0xff]   ;;  %v1474_v28 = vld [vmem:[%s1986_s1 + $0x2c] ss:$16 sps:$4 sm:$0xff]  }
  0x1e   :  { %v1418_v58 = vld [vmem:[%s1986_s1 + $0x124] ss:$16 sps:$4 sm:$0xff]   ;;  %v1423_v61 = vld [vmem:[%s1986_s1 + $0x320] ss:$16 sps:$4 sm:$0xff]   ;;  %v1477_v29 = vld [vmem:[%s1986_s1 + $0x22c] ss:$16 sps:$4 sm:$0xff]  }
  0x1f   :  { %841 = vmatpush1.bf16.msra.mxu0 %v1380_v30  ;;  %v1420_v59 = vld [vmem:[%s1986_s1 + $0x324] ss:$16 sps:$4 sm:$0xff]   ;;  %v1428_v0 = vld [vmem:[%s1986_s1 + $0x100] ss:$16 sps:$4 sm:$0xff]   ;;  %v1472_v30 = vld [vmem:[%s1986_s1 + $0x28] ss:$16 sps:$4 sm:$0xff]  }
  0x20   :  { %884 = vmatpush1.bf16.msra.mxu1 %v1381_v31  ;;  %842 = vmatprep.subr.bf16.mxu0 %v1382_v32  ;;  %v1424_v62 = vld [vmem:[%s1986_s1 + $0x104] ss:$16 sps:$4 sm:$0xff]   ;;  %v1429_v1 = vld [vmem:[%s1986_s1 + $0x300] ss:$16 sps:$4 sm:$0xff]   ;;  %v1475_v31 = vld [vmem:[%s1986_s1 + $0x228] ss:$16 sps:$4 sm:$0xff]  }
  0x21   :  { %885 = vmatprep.subr.bf16.mxu1 %v1384_v33  ;;  %v1426_v63 = vld [vmem:[%s1986_s1 + $0x304] ss:$16 sps:$4 sm:$0xff]   ;;  %v1765_v4 = vld [vmem:[%s1987_s0] ss:$16 sps:$4 sm:$0xff]   ;;  %v1480_v32 = vld [vmem:[%s1986_s1 + $0xc] ss:$16 sps:$4 sm:$0xff]  }
  0x22   :  { %v1483_v33 = vld [vmem:[%s1986_s1 + $0x20c] ss:$16 sps:$4 sm:$0xff]  }
  0x23   :  { %843 = vmatpush2.bf16.msra.mxu0 %v1386_v34  ;;  %v1478_v34 = vld [vmem:[%s1986_s1 + $0x8] ss:$16 sps:$4 sm:$0xff]  }
  0x24   :  { %886 = vmatpush2.bf16.msra.mxu1 %v1387_v35  ;;  %844 = vmatprep.subr.bf16.mxu0 %v1388_v36  ;;  %v1481_v35 = vld [vmem:[%s1986_s1 + $0x208] ss:$16 sps:$4 sm:$0xff]   ;;  %v1486_v36 = vld [vmem:[%s1986_s1 + $0x1ec] ss:$16 sps:$4 sm:$0xff]  }
  0x25   :  { %887 = vmatprep.subr.bf16.mxu1 %v1390_v37  ;;  %v1489_v37 = vld [vmem:[%s1986_s1 + $0x3ec] ss:$16 sps:$4 sm:$0xff]  }
  0x27   :  { %845 = vmatpush2.bf16.msra.mxu0 %v1392_v38  ;;  %v1484_v38 = vld [vmem:[%s1986_s1 + $0x1e8] ss:$16 sps:$4 sm:$0xff]  }
  0x28   :  { %888 = vmatpush2.bf16.msra.mxu1 %v1393_v39  ;;  %846 = vmatprep.subr.bf16.mxu0 %v1394_v40  ;;  %v1487_v39 = vld [vmem:[%s1986_s1 + $0x3e8] ss:$16 sps:$4 sm:$0xff]   ;;  %v1492_v40 = vld [vmem:[%s1986_s1 + $0x1cc] ss:$16 sps:$4 sm:$0xff]  }
  0x29   :  { %889 = vmatprep.subr.bf16.mxu1 %v1396_v41  ;;  %v1495_v41 = vld [vmem:[%s1986_s1 + $0x3cc] ss:$16 sps:$4 sm:$0xff]  }
  0x2b   :  { %847 = vmatpush2.bf16.msra.mxu0 %v1398_v42  ;;  %v1490_v42 = vld [vmem:[%s1986_s1 + $0x1c8] ss:$16 sps:$4 sm:$0xff]  }
  0x2c   :  { %890 = vmatpush2.bf16.msra.mxu1 %v1399_v43  ;;  %848 = vmatprep.subr.bf16.mxu0 %v1400_v44  ;;  %v1493_v43 = vld [vmem:[%s1986_s1 + $0x3c8] ss:$16 sps:$4 sm:$0xff]   ;;  %v1498_v44 = vld [vmem:[%s1986_s1 + $0x1ac] ss:$16 sps:$4 sm:$0xff]  }
  0x2d   :  { %891 = vmatprep.subr.bf16.mxu1 %v1402_v45  ;;  %v1501_v45 = vld [vmem:[%s1986_s1 + $0x3ac] ss:$16 sps:$4 sm:$0xff]  }
  0x2f   :  { %849 = vmatpush2.bf16.msra.mxu0 %v1404_v46  ;;  %v1496_v46 = vld [vmem:[%s1986_s1 + $0x1a8] ss:$16 sps:$4 sm:$0xff]  }
  0x30   :  { %892 = vmatpush2.bf16.msra.mxu1 %v1405_v47  ;;  %850 = vmatprep.subr.bf16.mxu0 %v1406_v48  ;;  %v1499_v47 = vld [vmem:[%s1986_s1 + $0x3a8] ss:$16 sps:$4 sm:$0xff]   ;;  %v1504_v48 = vld [vmem:[%s1986_s1 + $0x18c] ss:$16 sps:$4 sm:$0xff]  }
  0x31   :  { %893 = vmatprep.subr.bf16.mxu1 %v1408_v50  ;;  %v1502_v50 = vld [vmem:[%s1986_s1 + $0x188] ss:$16 sps:$4 sm:$0xff]  }
  0x33   :  { %851 = vmatpush2.bf16.msra.mxu0 %v1410_v52  ;;  %v1510_v52 = vld [vmem:[%s1986_s1 + $0x16c] ss:$16 sps:$4 sm:$0xff]  }
  0x34   :  { %894 = vmatpush2.bf16.msra.mxu1 %v1411_v53  ;;  %852 = vmatprep.subr.bf16.mxu0 %v1412_v54  ;;  %v1513_v53 = vld [vmem:[%s1986_s1 + $0x36c] ss:$16 sps:$4 sm:$0xff]   ;;  %v1508_v54 = vld [vmem:[%s1986_s1 + $0x168] ss:$16 sps:$4 sm:$0xff]  }
  0x35   :  { %895 = vmatprep.subr.bf16.mxu1 %v1414_v55  ;;  %v1511_v55 = vld [vmem:[%s1986_s1 + $0x368] ss:$16 sps:$4 sm:$0xff]  }
  0x37   :  { %853 = vmatpush2.bf16.msra.mxu0 %v1416_v56  ;;  %v1516_v56 = vld [vmem:[%s1986_s1 + $0x14c] ss:$16 sps:$4 sm:$0xff]  }
  0x38   :  { %896 = vmatpush2.bf16.msra.mxu1 %v1417_v57  ;;  %854 = vmatprep.subr.bf16.mxu0 %v1418_v58  ;;  %v1519_v57 = vld [vmem:[%s1986_s1 + $0x34c] ss:$16 sps:$4 sm:$0xff]   ;;  %v1514_v58 = vld [vmem:[%s1986_s1 + $0x148] ss:$16 sps:$4 sm:$0xff]  }
  0x39   :  { %897 = vmatprep.subr.bf16.mxu1 %v1420_v59  ;;  %v1517_v59 = vld [vmem:[%s1986_s1 + $0x348] ss:$16 sps:$4 sm:$0xff]  }
  0x3b   :  { %855 = vmatpush2.bf16.msra.mxu0 %v1422_v60  ;;  %v1522_v60 = vld [vmem:[%s1986_s1 + $0x12c] ss:$16 sps:$4 sm:$0xff]  }
  0x3c   :  { %898 = vmatpush2.bf16.msra.mxu1 %v1423_v61  ;;  %856 = vmatprep.subr.bf16.mxu0 %v1424_v62  ;;  %v1525_v61 = vld [vmem:[%s1986_s1 + $0x32c] ss:$16 sps:$4 sm:$0xff]   ;;  %v1520_v62 = vld [vmem:[%s1986_s1 + $0x128] ss:$16 sps:$4 sm:$0xff]  }
  0x3d   :  { %899 = vmatprep.subr.bf16.mxu1 %v1426_v63  ;;  %v1523_v63 = vld [vmem:[%s1986_s1 + $0x328] ss:$16 sps:$4 sm:$0xff]  }
  0x3f   :  { %857 = vmatpush2.bf16.msra.mxu0 %v1428_v0  ;;  %v1528_v0 = vld [vmem:[%s1986_s1 + $0x10c] ss:$16 sps:$4 sm:$0xff]  }
  0x40   :  { %900 = vmatpush2.bf16.msra.mxu1 %v1429_v1  ;;  %912 = vmatprep.subr.bf16.mxu0 %v1438_v2  ;;  %v1531_v1 = vld [vmem:[%s1986_s1 + $0x30c] ss:$16 sps:$4 sm:$0xff]   ;;  %v1526_v2 = vld [vmem:[%s1986_s1 + $0x108] ss:$16 sps:$4 sm:$0xff]  }
  0x41   :  { %955 = vmatprep.subr.bf16.mxu1 %v1441_v3  ;;  %v1529_v3 = vld [vmem:[%s1986_s1 + $0x308] ss:$16 sps:$4 sm:$0xff]  }
  0x42   :  { %859 = vmatmul.mubr.bf16.vlgmr.msra.gmra.mxu0 %v1765_v4 }
  0x43   :  { %902 = vmatmul.mubr.bf16.vlgmr.msra.gmra.mxu1 %v1770_v5  ;;  %913 = vmatpush1.bf16.msra.mxu0 %v1436_v6 }
  0x44   :  { %956 = vmatpush1.bf16.msra.mxu1 %v1439_v7  ;;  %914 = vmatprep.subr.bf16.mxu0 %v1444_v8 }
  0x45   :  { %957 = vmatprep.subr.bf16.mxu1 %v1447_v9  ;;  %944 = vmatprep.mubr.bf16.mxu0 %v1432_v49  ;;  %v1507_v49 = vld [vmem:[%s1986_s1 + $0x38c] ss:$16 sps:$4 sm:$0xff]  }
  0x46   :  { %987 = vmatprep.mubr.bf16.mxu1 %v1435_v51  ;;  %v1505_v51 = vld [vmem:[%s1986_s1 + $0x388] ss:$16 sps:$4 sm:$0xff]  }
  0x47   :  { %915 = vmatpush1.bf16.msra.mxu0 %v1442_v10 }
  0x48   :  { %958 = vmatpush1.bf16.msra.mxu1 %v1445_v11  ;;  %916 = vmatprep.subr.bf16.mxu0 %v1450_v12 }
  0x49   :  { %959 = vmatprep.subr.bf16.mxu1 %v1453_v13 }
  0x4b   :  { %917 = vmatpush1.bf16.msra.mxu0 %v1448_v14 }
  0x4c   :  { %960 = vmatpush1.bf16.msra.mxu1 %v1451_v15  ;;  %918 = vmatprep.subr.bf16.mxu0 %v1456_v16 }
  0x4d   :  { %961 = vmatprep.subr.bf16.mxu1 %v1459_v17 }
  0x4f   :  { %919 = vmatpush1.bf16.msra.mxu0 %v1454_v18 }
  0x50   :  { %962 = vmatpush1.bf16.msra.mxu1 %v1457_v19  ;;  %920 = vmatprep.subr.bf16.mxu0 %v1462_v20 }
  0x51   :  { %963 = vmatprep.subr.bf16.mxu1 %v1465_v21 }
  0x53   :  { %921 = vmatpush1.bf16.msra.mxu0 %v1460_v22 }
  0x54   :  { %964 = vmatpush1.bf16.msra.mxu1 %v1463_v23  ;;  %922 = vmatprep.subr.bf16.mxu0 %v1468_v24 }
  0x55   :  { %965 = vmatprep.subr.bf16.mxu1 %v1471_v25 }
  0x57   :  { %923 = vmatpush1.bf16.msra.mxu0 %v1466_v26 }
  0x58   :  { %966 = vmatpush1.bf16.msra.mxu1 %v1469_v27  ;;  %924 = vmatprep.subr.bf16.mxu0 %v1474_v28 }
  0x59   :  { %967 = vmatprep.subr.bf16.mxu1 %v1477_v29 }
  0x5b   :  { %925 = vmatpush1.bf16.msra.mxu0 %v1472_v30 }
  0x5c   :  { %968 = vmatpush1.bf16.msra.mxu1 %v1475_v31  ;;  %926 = vmatprep.subr.bf16.mxu0 %v1480_v32 }
  0x5d   :  { %969 = vmatprep.subr.bf16.mxu1 %v1483_v33 }
  0x5f   :  { %927 = vmatpush1.bf16.msra.mxu0 %v1478_v34 }
  0x60   :  { %970 = vmatpush1.bf16.msra.mxu1 %v1481_v35  ;;  %928 = vmatprep.subr.bf16.mxu0 %v1486_v36 }
  0x61   :  { %971 = vmatprep.subr.bf16.mxu1 %v1489_v37 }
  0x63   :  { %929 = vmatpush2.bf16.msra.mxu0 %v1484_v38 }
  0x64   :  { %972 = vmatpush2.bf16.msra.mxu1 %v1487_v39  ;;  %930 = vmatprep.subr.bf16.mxu0 %v1492_v40 }
  0x65   :  { %973 = vmatprep.subr.bf16.mxu1 %v1495_v41 }
  0x67   :  { %931 = vmatpush2.bf16.msra.mxu0 %v1490_v42 }
  0x68   :  { %974 = vmatpush2.bf16.msra.mxu1 %v1493_v43  ;;  %932 = vmatprep.subr.bf16.mxu0 %v1498_v44 }
  0x69   :  { %975 = vmatprep.subr.bf16.mxu1 %v1501_v45 }
  0x6b   :  { %933 = vmatpush2.bf16.msra.mxu0 %v1496_v46 }
  0x6c   :  { %976 = vmatpush2.bf16.msra.mxu1 %v1499_v47  ;;  %934 = vmatprep.subr.bf16.mxu0 %v1504_v48 }
  0x6d   :  { %977 = vmatprep.subr.bf16.mxu1 %v1507_v49 }
  0x6f   :  { %935 = vmatpush2.bf16.msra.mxu0 %v1502_v50 }
  0x70   :  { %978 = vmatpush2.bf16.msra.mxu1 %v1505_v51  ;;  %936 = vmatprep.subr.bf16.mxu0 %v1510_v52 }
  0x71   :  { %979 = vmatprep.subr.bf16.mxu1 %v1513_v53 }
  0x73   :  { %937 = vmatpush2.bf16.msra.mxu0 %v1508_v54 }
  0x74   :  { %980 = vmatpush2.bf16.msra.mxu1 %v1511_v55  ;;  %938 = vmatprep.subr.bf16.mxu0 %v1516_v56 }
  0x75   :  { %981 = vmatprep.subr.bf16.mxu1 %v1519_v57 }
  0x77   :  { %939 = vmatpush2.bf16.msra.mxu0 %v1514_v58 }
  0x78   :  { %982 = vmatpush2.bf16.msra.mxu1 %v1517_v59  ;;  %940 = vmatprep.subr.bf16.mxu0 %v1522_v60 }
  0x79   :  { %983 = vmatprep.subr.bf16.mxu1 %v1525_v61 }
  0x7b   :  { %941 = vmatpush2.bf16.msra.mxu0 %v1520_v62 }
  0x7c   :  { %984 = vmatpush2.bf16.msra.mxu1 %v1523_v63  ;;  %942 = vmatprep.subr.bf16.mxu0 %v1528_v0 }
  0x7d   :  { %985 = vmatprep.subr.bf16.mxu1 %v1531_v1 }
  0x7f   :  { %943 = vmatpush2.bf16.msra.mxu0 %v1526_v2 }
  0x80   :  { %986 = vmatpush2.bf16.msra.mxu1 %v1529_v3 }
  0x82   :  { %945 = vmatmul.mubr.bf16.vlgmr.msra.gmra.mxu0 %v1765_v4 }
  0x83   :  { %988 = vmatmul.mubr.bf16.vlgmr.msra.gmra.mxu1 %v1770_v5 }
 0x102   :  { %v860_v6 = vpop.f32.mrf.mxu0 }
 0x103   :  { %v903_v7 = vpop.f32.mrf.mxu1 }
 0x104   :  { %v904_v8 = vadd.f32 %v903_v7, %v860_v6  ;;  %v862_v9 = vpop.f32.mrf.mxu0 }
 0x105   :  { %v905_v10 = vpop.f32.mrf.mxu1 }
 0x106   :  { %v906_v11 = vadd.f32 %v905_v10, %v862_v9  ;;  %v864_v12 = vpop.f32.mrf.mxu0  ;;  %v1115_v18 = vmul.f32 %v904_v8, %v904_v8 }
 0x107   :  { %v907_v13 = vpop.f32.mrf.mxu1 }
 0x108   :  { %v1329_v14 = vpack.c.bf16 %v906_v11, %v904_v8  ;;  %v908_v15 = vadd.f32 %v907_v13, %v864_v12  ;;  %v866_v16 = vpop.f32.mrf.mxu0  ;;  %v1116_v24 = vmul.f32 %v906_v11, %v906_v11 }
 0x109   :  { %v909_v17 = vpop.f32.mrf.mxu1 }
 0x10a   :  { %1049 = vst [vmem:[%s1988_s2] sm:$0xff] %v1329_v14  ;;  %v1053_v4 = vadd.f32 %v908_v15, %v904_v8  ;;  %v1119_v19 = vmul.f32 %v908_v15, %v908_v15  ;;  %v910_v5 = vadd.f32 %v909_v17, %v866_v16 }
 0x10c   :  { %v1054_v20 = vrot.slane %v1053_v4, 4  ;;  %v1123_v21 = vadd.f32 %v1119_v19, %v1115_v18  ;;  %v1331_v22 = vpack.c.bf16 %v910_v5, %v908_v15  ;;  %v1060_v23 = vadd.f32 %v910_v5, %v906_v11 }
 0x10d   :  { %v1120_v25 = vmul.f32 %v910_v5, %v910_v5  ;;  %v1532_v15 = vmov 1966171168   ;;  %v1090_v18 = vlaneseq }
 0x10e   :  { %v1055_v26 = vadd.f32 %v1054_v20, %v1053_v4  ;;  %v1124_v27 = vrot.slane %v1123_v21, 4  ;;  %1051 = vst [vmem:[%s1988_s2 + $0x10] sm:$0xff] %v1331_v22  ;;  %v1061_v28 = vrot.slane %v1060_v23, 4  ;;  %v1088_v16 = vunpack.c.l.s4 %v1532_v15 }
 0x10f   :  { %v1130_v29 = vadd.f32 %v1120_v25, %v1116_v24  ;;  %vm1112_vm0 = vcmp.lt.s32.totalorder %v1090_v18, 512 }
 0x110   :  { %v1056_v30 = vrot.slane %v1055_v26, 2  ;;  %v1125_v31 = vadd.f32 %v1124_v27, %v1123_v21  ;;  %v1062_v32 = vadd.f32 %v1061_v28, %v1060_v23  ;;  %v1089_v24 = vunpack.c.0.s8 %v1088_v16 }
 0x111   :  { %v1131_v33 = vrot.slane %v1130_v29, 4 }
 0x112   :  { %v1057_v34 = vadd.f32 %v1056_v30, %v1055_v26  ;;  %v1126_v35 = vrot.slane %v1125_v31, 2  ;;  %v1063_v36 = vrot.slane %v1062_v32, 2  ;;  %v1091_v26 = vshrl.u32 %v1090_v18, 7 }
 0x113   :  { %v1132_v37 = vadd.f32 %v1131_v33, %v1130_v29 }
 0x114   :  { %v1058_v38 = vrot.slane %v1057_v34, 1  ;;  %v1127_v39 = vadd.f32 %v1126_v35, %v1125_v31  ;;  %v1064_v40 = vadd.f32 %v1063_v36, %v1062_v32 }
 0x115   :  { %v1133_v41 = vrot.slane %v1132_v37, 2 }
 0x116   :  { %v1065_v42 = vrot.slane %v1064_v40, 1  ;;  %v1128_v43 = vrot.slane %v1127_v39, 1  ;;  %v1968_v45 = vadd.f32 %v1058_v38, %v1057_v34  ;;  %v1092_v34 = vsub.s32 %v1089_v24, %v1091_v26 }
 0x117   :  { %v1134_v44 = vadd.f32 %v1133_v41, %v1132_v37 }
 0x118   :  { %v1066_v46 = vadd.f32 %v1065_v42, %v1064_v40  ;;  %v1971_v49 = vadd.f32 %v1128_v43, %v1127_v39 }
 0x119   :  { %v1135_v47 = vrot.slane %v1134_v44, 1 }
 0x11a   :  { %v1085_v48 = vcombine.low %v1968_v45, %v1066_v46 }
 0x11b   :  { %v1136_v50 = vadd.f32 %v1135_v47, %v1134_v44 }
 0x11c   :  { %v1093_v41 = vrot.slane %v1085_v48, %v1092_v34 }
 0x11d   :  { %v1155_v51 = vcombine.low %v1971_v49, %v1136_v50 }
 0x11f   :  { %v1163_v45 = vrot.slane %v1155_v51, %v1092_v34 }
 0x142   :  { %v946_v52 = vpop.f32.mrf.mxu0 }
 0x143   :  { %v989_v53 = vpop.f32.mrf.mxu1 }
 0x144   :  { %v948_v54 = vpop.f32.mrf.mxu0  ;;  %v990_v56 = vadd.f32 %v989_v53, %v946_v52 }
 0x145   :  { %v991_v55 = vpop.f32.mrf.mxu1 }
 0x146   :  { %v992_v57 = vadd.f32 %v991_v55, %v948_v54  ;;  %v950_v58 = vpop.f32.mrf.mxu0  ;;  %v1117_v0 = vmul.f32 %v990_v56, %v990_v56 }
 0x147   :  { %v993_v59 = vpop.f32.mrf.mxu1 }
 0x148   :  { %v1330_v60 = vpack.c.bf16 %v992_v57, %v990_v56  ;;  %v994_v61 = vadd.f32 %v993_v59, %v950_v58  ;;  %v952_v62 = vpop.f32.mrf.mxu0  ;;  %v1118_v10 = vmul.f32 %v992_v57, %v992_v57 }
 0x149   :  { %v995_v63 = vpop.f32.mrf.mxu1 }
 0x14a   :  { %1050 = vst [vmem:[%s1988_s2 + $0x8] sm:$0xff] %v1330_v60  ;;  %v1067_v1 = vadd.f32 %v994_v61, %v990_v56  ;;  %v1121_v2 = vmul.f32 %v994_v61, %v994_v61  ;;  %v996_v3 = vadd.f32 %v995_v63, %v952_v62 }
 0x14c   :  { %v1068_v6 = vrot.slane %v1067_v1, 4  ;;  %v1137_v7 = vadd.f32 %v1121_v2, %v1117_v0  ;;  %v1332_v8 = vpack.c.bf16 %v996_v3, %v994_v61  ;;  %v1074_v9 = vadd.f32 %v996_v3, %v992_v57 }
 0x14d   :  { %v1122_v11 = vmul.f32 %v996_v3, %v996_v3 }
 0x14e   :  { %v1069_v12 = vadd.f32 %v1068_v6, %v1067_v1  ;;  %v1138_v13 = vrot.slane %v1137_v7, 4  ;;  %1052 = vst [vmem:[%s1988_s2 + $0x18] sm:$0xff] %v1332_v8  ;;  %v1075_v14 = vrot.slane %v1074_v9, 4 }
 0x14f   :  { %v1144_v17 = vadd.f32 %v1122_v11, %v1118_v10 }
 0x150   :  { %v1070_v4 = vrot.slane %v1069_v12, 2  ;;  %v1139_v19 = vadd.f32 %v1138_v13, %v1137_v7  ;;  %v1076_v5 = vadd.f32 %v1075_v14, %v1074_v9 }
 0x151   :  { %v1145_v20 = vrot.slane %v1144_v17, 4 }
 0x152   :  { %v1071_v21 = vadd.f32 %v1070_v4, %v1069_v12  ;;  %v1140_v22 = vrot.slane %v1139_v19, 2  ;;  %v1077_v23 = vrot.slane %v1076_v5, 2 }
 0x153   :  { %v1146_v25 = vadd.f32 %v1145_v20, %v1144_v17 }
 0x154   :  { %v1072_v27 = vrot.slane %v1071_v21, 1  ;;  %v1141_v28 = vadd.f32 %v1140_v22, %v1139_v19  ;;  %v1078_v29 = vadd.f32 %v1077_v23, %v1076_v5 }
 0x155   :  { %v1147_v30 = vrot.slane %v1146_v25, 2 }
 0x156   :  { %v1079_v31 = vrot.slane %v1078_v29, 1  ;;  %v1142_v32 = vrot.slane %v1141_v28, 1  ;;  %v1073_v35 = vadd.f32 %v1072_v27, %v1071_v21 }
 0x157   :  { %v1148_v33 = vadd.f32 %v1147_v30, %v1146_v25 }
 0x158   :  { %v1080_v36 = vadd.f32 %v1079_v31, %v1078_v29  ;;  %v1143_v39 = vadd.f32 %v1142_v32, %v1141_v28 }
 0x159   :  { %v1149_v37 = vrot.slane %v1148_v33, 1 }
 0x15a   :  { %v1086_v38 = vcombine.low %v1073_v35, %v1080_v36 }
 0x15b   :  { %v1150_v40 = vadd.f32 %v1149_v37, %v1148_v33 }
 0x15c   :  { %v1100_v42 = vrot.slane %v1086_v38, %v1092_v34 }
 0x15d   :  { %v1156_v43 = vcombine.low %v1143_v39, %v1150_v40 }
 0x15e   :  { %v1101_v44 = vcombine.low %v1093_v41, %v1100_v42 }
 0x15f   :  { %v1170_v46 = vrot.slane %v1156_v43, %v1092_v34 }
 0x160   :  { %v1108_v47 = vrot.slane %v1101_v44, %v1092_v34 }
 0x161   :  { %v1171_v49 = vcombine.low %v1163_v45, %v1170_v46 }
 0x162   :  { %1114 = vst.msk [vmem:[%s1989_s3] sm:$0xf] %vm1112_vm0, %v1108_v47 }
 0x163   :  { %v1178_v50 = vrot.slane %v1171_v49, %v1092_v34 }
 0x165   :  { %1180 = vst.msk [vmem:[%s1990_s4] sm:$0xf] %vm1112_vm0, %v1178_v50 }

// kernel: resnet18_forward.89
= control target key start
LH: loop header
LB: loop body
LE: loop exit
PB: predicated region body
PF: predicated region fallthrough
CT: control target
= control target key end

     0   :  { %s665_s1 = inlined_call_operand.vmem [shape: bf16[512,128], index: 1, kind: input, shape index: {}]   ;;  %s666_s0 = inlined_call_operand.vmem [shape: bf16[16,512], index: 0, kind: input, shape index: {}]   ;;  %s667_s2 = inlined_call_operand.vmem [shape: f32[1,128], index: 2, kind: input, shape index: {}]   ;;  %s668_s3 = inlined_call_operand.vmem [shape: f32[16,128], index: 3, kind: output, shape index: {}]  }
   0x1   :  { %v490_v0 = vld [vmem:[%s665_s1 + $0x78] sm:$0xff]   ;;  %v494_v4 = vld [vmem:[%s665_s1 + $0x70] sm:$0xff]   ;;  %v498_v8 = vld [vmem:[%s665_s1 + $0x68] sm:$0xff]  }
   0x2   :  { %v491_v1 = vld [vmem:[%s665_s1 + $0xf8] sm:$0xff]   ;;  %446 = vmatprep.subr.bf16.mxu0 %v490_v0  ;;  %v495_v5 = vld [vmem:[%s665_s1 + $0xf0] sm:$0xff]   ;;  %v499_v9 = vld [vmem:[%s665_s1 + $0xe8] sm:$0xff]  }
   0x3   :  { %v492_v2 = vld [vmem:[%s665_s1 + $0x38] sm:$0xff]   ;;  %468 = vmatprep.subr.bf16.mxu1 %v491_v1  ;;  %v496_v6 = vld [vmem:[%s665_s1 + $0x30] sm:$0xff]   ;;  %v500_v10 = vld [vmem:[%s665_s1 + $0x28] sm:$0xff]  }
   0x4   :  { %v493_v3 = vld [vmem:[%s665_s1 + $0xb8] sm:$0xff]   ;;  %447 = vmatpush3.bf16.msra.mxu0 %v492_v2  ;;  %v497_v7 = vld [vmem:[%s665_s1 + $0xb0] sm:$0xff]   ;;  %v501_v11 = vld [vmem:[%s665_s1 + $0xa8] sm:$0xff]  }
   0x5   :  { %469 = vmatpush3.bf16.msra.mxu1 %v493_v3  ;;  %448 = vmatprep.subr.bf16.mxu0 %v494_v4  ;;  %v502_v12 = vld [vmem:[%s665_s1 + $0x60] sm:$0xff]   ;;  %v506_v16 = vld [vmem:[%s665_s1 + $0x58] sm:$0xff]   ;;  %v510_v20 = vld [vmem:[%s665_s1 + $0x50] sm:$0xff]  }
   0x6   :  { %470 = vmatprep.subr.bf16.mxu1 %v495_v5  ;;  %v503_v13 = vld [vmem:[%s665_s1 + $0xe0] sm:$0xff]   ;;  %v507_v17 = vld [vmem:[%s665_s1 + $0xd8] sm:$0xff]   ;;  %v511_v21 = vld [vmem:[%s665_s1 + $0xd0] sm:$0xff]  }
   0x7   :  { %v504_v14 = vld [vmem:[%s665_s1 + $0x20] sm:$0xff]   ;;  %v508_v18 = vld [vmem:[%s665_s1 + $0x18] sm:$0xff]   ;;  %v512_v22 = vld [vmem:[%s665_s1 + $0x10] sm:$0xff]  }
   0x8   :  { %449 = vmatpush3.bf16.msra.mxu0 %v496_v6  ;;  %v505_v15 = vld [vmem:[%s665_s1 + $0xa0] sm:$0xff]   ;;  %v509_v19 = vld [vmem:[%s665_s1 + $0x98] sm:$0xff]   ;;  %v513_v23 = vld [vmem:[%s665_s1 + $0x90] sm:$0xff]  }
   0x9   :  { %471 = vmatpush3.bf16.msra.mxu1 %v497_v7  ;;  %450 = vmatprep.subr.bf16.mxu0 %v498_v8  ;;  %v514_v24 = vld [vmem:[%s665_s1 + $0x48] sm:$0xff]   ;;  %v518_v28 = vld [vmem:[%s665_s1 + $0x40] sm:$0xff]  }
   0xa   :  { %472 = vmatprep.subr.bf16.mxu1 %v499_v9  ;;  %v515_v25 = vld [vmem:[%s665_s1 + $0xc8] sm:$0xff]   ;;  %v519_v29 = vld [vmem:[%s665_s1 + $0xc0] sm:$0xff]  }
   0xb   :  { %v516_v26 = vld [vmem:[%s665_s1 + $0x8] sm:$0xff]   ;;  %v520_v30 = vld [vmem:[%s665_s1] sm:$0xff]  }
   0xc   :  { %451 = vmatpush3.bf16.msra.mxu0 %v500_v10  ;;  %v517_v27 = vld [vmem:[%s665_s1 + $0x88] sm:$0xff]   ;;  %v521_v31 = vld [vmem:[%s665_s1 + $0x80] sm:$0xff]  }
   0xd   :  { %473 = vmatpush3.bf16.msra.mxu1 %v501_v11  ;;  %452 = vmatprep.subr.bf16.mxu0 %v502_v12  ;;  %v522_v32 = vld [vmem:[%s666_s0] ss:$16 sps:$4 sm:$0xff]   ;;  %v524_v33 = vld [vmem:[%s666_s0 + $0x4] ss:$16 sps:$4 sm:$0xff]   ;;  %v525_v34 = vld [vmem:[%s666_s0 + $0x8] ss:$16 sps:$4 sm:$0xff]  }
   0xe   :  { %474 = vmatprep.subr.bf16.mxu1 %v503_v13  ;;  %v527_v35 = vld [vmem:[%s666_s0 + $0xc] ss:$16 sps:$4 sm:$0xff]   ;;  %335 = vmatprep.mubr.bf16.mxu0 %v524_v33  ;;  %v445_v43 = vld [vmem:[%s667_s2] ss:$0 sm:$0xff] }
   0xf   :  { %376 = vmatprep.mubr.bf16.mxu1 %v527_v35 }
  0x10   :  { %453 = vmatpush3.bf16.msra.mxu0 %v504_v14 }
  0x11   :  { %475 = vmatpush3.bf16.msra.mxu1 %v505_v15  ;;  %454 = vmatprep.subr.bf16.mxu0 %v506_v16 }
  0x12   :  { %476 = vmatprep.subr.bf16.mxu1 %v507_v17 }
  0x14   :  { %455 = vmatpush3.bf16.msra.mxu0 %v508_v18 }
  0x15   :  { %477 = vmatpush3.bf16.msra.mxu1 %v509_v19  ;;  %456 = vmatprep.subr.bf16.mxu0 %v510_v20 }
  0x16   :  { %478 = vmatprep.subr.bf16.mxu1 %v511_v21 }
  0x18   :  { %457 = vmatpush3.bf16.msra.mxu0 %v512_v22 }
  0x19   :  { %479 = vmatpush3.bf16.msra.mxu1 %v513_v23  ;;  %458 = vmatprep.subr.bf16.mxu0 %v514_v24 }
  0x1a   :  { %480 = vmatprep.subr.bf16.mxu1 %v515_v25 }
  0x1c   :  { %459 = vmatpush3.bf16.msra.mxu0 %v516_v26 }
  0x1d   :  { %481 = vmatpush3.bf16.msra.mxu1 %v517_v27  ;;  %460 = vmatprep.subr.bf16.mxu0 %v518_v28 }
  0x1e   :  { %482 = vmatprep.subr.bf16.mxu1 %v519_v29 }
  0x20   :  { %461 = vmatpush3.bf16.msra.mxu0 %v520_v30 }
  0x21   :  { %483 = vmatpush3.bf16.msra.mxu1 %v521_v31 }
  0x23   :  { %336 = vmatmul.mubr.bf16.vlgmr.msra.gmra.mxu0 %v522_v32 }
  0x24   :  { %377 = vmatmul.mubr.bf16.vlgmr.msra.gmra.mxu1 %v525_v34 }
  0xe3   :  { %v462_v36 = vpop.f32.mrf.mxu0 }
  0xe4   :  { %v484_v37 = vpop.f32.mrf.mxu1 }
  0xe5   :  { %v463_v38 = vpop.f32.mrf.mxu0 }
  0xe6   :  { %v464_v39 = vadd.f32 %v463_v38, %v462_v36  ;;  %v485_v40 = vpop.f32.mrf.mxu1 }
  0xe7   :  { %v486_v41 = vadd.f32 %v485_v40, %v484_v37  ;;  %v465_v42 = vpop.f32.mrf.mxu0 }
  0xe8   :  { %v487_v44 = vpop.f32.mrf.mxu1 }
  0xe9   :  { %v379_v45 = vadd.f32 %v486_v41, %v464_v39  ;;  %v466_v46 = vpop.f32.mrf.mxu0 }
  0xea   :  { %v467_v47 = vadd.f32 %v466_v46, %v465_v42  ;;  %v488_v48 = vpop.f32.mrf.mxu1 }
  0xeb   :  { %v401_v49 = vadd.f32 %v445_v43, %v379_v45  ;;  %v489_v50 = vadd.f32 %v488_v48, %v487_v44 }
  0xed   :  { %403 = vst [vmem:[%s668_s3] sm:$0xff] %v401_v49  ;;  %v382_v51 = vadd.f32 %v489_v50, %v467_v47 }
  0xef   :  { %v402_v52 = vadd.f32 %v445_v43, %v382_v51 }
  0xf1   :  { %404 = vst [vmem:[%s668_s3 + $0x8] sm:$0xff] %v402_v52 }

</bundles_post_ra>
